<compile_context>
chip_gen: v6e
topology: v6e:2x2x1
jax: 0.10.0
libtpu: 0.0.40
codegen_flags: <defaults>
</compile_context>

<pallas_src>
import math
import functools
import numpy as np

import jax
import jax.numpy as jnp
from jax import lax
from jax.experimental import pallas as pl
from jax.experimental.pallas import tpu as pltpu  # noqa: F401  (TPU backend)

# ----------------------------- configuration --------------------------------
RELATION_NUM = 7          # relation_num  -> vocab = relation_num + 1 = 8
EMB_SIZE = 32             # emb_size
NUM_HEADS = 8
HEAD_DIM = EMB_SIZE // NUM_HEADS
BATCH = 2
SEQ_LEN = 3               # PositionalEmbedding max_len = 3
LN_EPS = 1e-5


# ----------------------------- in-kernel helpers -----------------------------
def _layernorm(x, g, b, eps):
    mu = jnp.mean(x, axis=-1, keepdims=True)
    var = jnp.mean(jnp.square(x - mu), axis=-1, keepdims=True)
    return (x - mu) * lax.rsqrt(var + eps) * g + b


def _plogp(p):
    # p * log(p) with the convention 0*log(0) == 0 (NaN-safe).
    return p * jnp.log(jnp.where(p > 0, p, 1.0))


def _head_mask(ch, h, d):
    # (1, E) float mask selecting the channels of head h.
    return ((ch >= h * d) & (ch < (h + 1) * d)).astype(jnp.float32)


# ----------------------------- Pallas kernels --------------------------------
def _rel_attn_kernel(rel_ref, kw_ref, kb_ref, vw_ref, vb_ref, lng_ref, lnb_ref,
                     attn_ref, krel_ref, vrel_ref, *, H, D, eps):
    """ProbAttention over the relation embeddings (exact full attention here),
    followed by layernorm(rel + 0.1 * ctx) and the fc_k / fc_v projections of
    the result (reused by every downstream attention call)."""
    B, R, E = rel_ref.shape
    g = lng_ref[...]
    be = lnb_ref[...]
    scale = 1.0 / math.sqrt(D)
    ch = lax.broadcasted_iota(jnp.int32, (1, E), 1)
    for b in range(B):
        xb = rel_ref[b]                                        # (R, E)
        ctx = jnp.zeros((R, E), jnp.float32)
        for h in range(H):
            mask = _head_mask(ch, h, D)
            qm = xb * mask * scale                             # scale folded into q
            s = lax.dot_general(qm, xb, (((1,), (1,)), ((), ())),
                                preferred_element_type=jnp.float32)   # (R, R)
            m = jnp.max(s, axis=-1, keepdims=True)
            e = jnp.exp(s - m)
            p = e * pl.reciprocal(jnp.sum(e, axis=-1, keepdims=True), approx=True)
            attn_ref[b * H + h] = p
            ctx = ctx + jnp.dot(p, xb * mask, preferred_element_type=jnp.float32)
        y = _layernorm(xb + 0.1 * ctx, g, be, eps)             # (R, E)
        krel_ref[b] = jnp.dot(y, kw_ref[...], preferred_element_type=jnp.float32) + kb_ref[...]
        vrel_ref[b] = jnp.dot(y, vw_ref[...], preferred_element_type=jnp.float32) + vb_ref[...]


def _reduce_step_kernel(xt_ref, krel_ref, vrel_ref,
                        s1wa_ref, s1wb_ref, s1b_ref, s2w_ref, s2b_ref,
                        fcw_ref, fcb_ref,
                        qw_ref, qb_ref, kw_ref, kb_ref, vw_ref, vb_ref,
                        ow_ref, ob_ref, w1w_ref, w1b_ref, w2w_ref, w2b_ref,
                        lng_ref, lnb_ref,
                        out_ref, loss_ref, *, H, D, eps):
    """Fused reduce_rel_pairs step for seq_len > 2."""
    S, B, E = xt_ref.shape
    R = krel_ref.shape[1]
    g = lng_ref[...]
    be = lnb_ref[...]

    x_rows = [xt_ref[i] for i in range(S)]                     # each (B, E)

    # --- slider MLP over the S-1 adjacent pairs (batched over B) ---
    h_list, c_list = [], []
    for i in range(S - 1):
        h1 = jnp.maximum(
            jnp.dot(x_rows[i], s1wa_ref[...], preferred_element_type=jnp.float32)
            + jnp.dot(x_rows[i + 1], s1wb_ref[...], preferred_element_type=jnp.float32)
            + s1b_ref[...], 0.0)                               # (B, 2E)
        h2 = jnp.dot(h1, s2w_ref[...], preferred_element_type=jnp.float32) + s2b_ref[...]
        hh = _layernorm(h2, g, be, eps)                        # (B, E)
        h_list.append(hh)
        logit = jnp.sum(hh * fcw_ref[...], axis=-1, keepdims=True) + fcb_ref[...]  # (B, 1)
        c_list.append(jax.nn.sigmoid(logit))

    # --- argmax over pair choices (first occurrence), gather selected h ---
    best_v = c_list[0]
    sel = jnp.zeros((B, 1), jnp.int32)
    for i in range(1, S - 1):
        better = c_list[i] > best_v
        best_v = jnp.where(better, c_list[i], best_v)
        sel = jnp.where(better, jnp.full((B, 1), i, jnp.int32), sel)
    selected = h_list[0]
    for i in range(1, S - 1):
        selected = jnp.where(sel == i, h_list[i], selected)    # (B, E)

    # --- multi-head attention: query = selected, kv = [relations ; selected] ---
    q = jnp.dot(selected, qw_ref[...], preferred_element_type=jnp.float32) + qb_ref[...]
    k_self = jnp.dot(selected, kw_ref[...], preferred_element_type=jnp.float32) + kb_ref[...]
    v_self = jnp.dot(selected, vw_ref[...], preferred_element_type=jnp.float32) + vb_ref[...]

    scale = 1.0 / math.sqrt(D)
    ch = lax.broadcasted_iota(jnp.int32, (1, E), 1)
    bcol = lax.broadcasted_iota(jnp.int32, (B, 1), 0)
    ctx = jnp.zeros((B, E), jnp.float32)
    ent = jnp.zeros((B, 1), jnp.float32)
    for b in range(B):
        q_b = q[b:b + 1, :] * scale
        ks_b = k_self[b:b + 1, :]
        vs_b = v_self[b:b + 1, :]
        kr_b = krel_ref[b]                                     # (R, E)
        vr_b = vrel_ref[b]                                     # (R, E)
        ctx_b = jnp.zeros((1, E), jnp.float32)
        ar_sum = jnp.zeros((1, R), jnp.float32)
        as_sum = jnp.zeros((1, 1), jnp.float32)
        for h in range(H):
            mask = _head_mask(ch, h, D)
            qm = q_b * mask
            s_rel = lax.dot_general(qm, kr_b, (((1,), (1,)), ((), ())),
                                    preferred_element_type=jnp.float32)   # (1, R)
            s_self = jnp.sum(qm * ks_b, axis=-1, keepdims=True)           # (1, 1)
            m = jnp.maximum(jnp.max(s_rel, axis=-1, keepdims=True), s_self)
            e_rel = jnp.exp(s_rel - m)
            e_self = jnp.exp(s_self - m)
            inv = pl.reciprocal(jnp.sum(e_rel, axis=-1, keepdims=True) + e_self,
                                approx=True)
            p_rel = e_rel * inv
            p_self = e_self * inv
            ctx_b = ctx_b + jnp.dot(p_rel, vr_b * mask,
                                    preferred_element_type=jnp.float32) \
                          + p_self * (vs_b * mask)
            ar_sum = ar_sum + p_rel
            as_sum = as_sum + p_self
        a_rel = ar_sum * (1.0 / H)
        a_self = as_sum * (1.0 / H)
        ent_b = -(jnp.sum(_plogp(a_rel), axis=-1, keepdims=True) + _plogp(a_self))
        ctx = jnp.where(bcol == b, ctx_b, ctx)
        ent = jnp.where(bcol == b, ent_b, ent)

    # --- output projection, residual + LN, feed-forward + residual + LN ---
    o = jnp.dot(ctx, ow_ref[...], preferred_element_type=jnp.float32) + ob_ref[...]
    y = _layernorm(o + selected, g, be, eps)
    f1 = jnp.maximum(jnp.dot(y, w1w_ref[...], preferred_element_type=jnp.float32)
                     + w1b_ref[...], 0.0)
    f2 = jnp.dot(f1, w2w_ref[...], preferred_element_type=jnp.float32) + w2b_ref[...]
    val = _layernorm(f2 + y, g, be, eps)                       # (B, E)

    # --- rebuild the reduced sequence: replace row `sel`, drop row `sel`+1 ---
    for j in range(S - 1):
        row = jnp.where(sel == j, val,
                        jnp.where(sel > j, x_rows[j], x_rows[j + 1]))
        out_ref[j] = row                                       # out layout (S-1, B, E)
    loss_ref[...] = ent


def _reduce_pair_kernel(x0_ref, x1_ref, s1wa_ref, s1wb_ref, s1b_ref,
                        s2w_ref, s2b_ref, lng_ref, lnb_ref, out_ref, *, eps):
    """Fused reduce_rel_pairs step for seq_len == 2."""
    h1 = jnp.maximum(
        jnp.dot(x0_ref[...], s1wa_ref[...], preferred_element_type=jnp.float32)
        + jnp.dot(x1_ref[...], s1wb_ref[...], preferred_element_type=jnp.float32)
        + s1b_ref[...], 0.0)
    h2 = jnp.dot(h1, s2w_ref[...], preferred_element_type=jnp.float32) + s2b_ref[...]
    out_ref[...] = _layernorm(h2, lng_ref[...], lnb_ref[...], eps)


def _mha_scores_kernel(x_ref, krel_ref, qw_ref, qb_ref, kw_ref, kb_ref,
                       srel_ref, sself_ref, ent_ref, *, H, D):
    """Final multi-head attention: only the head-mean scores and the entropy of
    the head-mean attention weights are needed (the value path is unused)."""
    B, E = x_ref.shape
    R = krel_ref.shape[1]
    x = x_ref[...]
    q = jnp.dot(x, qw_ref[...], preferred_element_type=jnp.float32) + qb_ref[...]
    k_self = jnp.dot(x, kw_ref[...], preferred_element_type=jnp.float32) + kb_ref[...]

    scale = 1.0 / math.sqrt(D)
    ch = lax.broadcasted_iota(jnp.int32, (1, E), 1)
    bcol = lax.broadcasted_iota(jnp.int32, (B, 1), 0)
    srel = jnp.zeros((B, R), jnp.float32)
    sself = jnp.zeros((B, 1), jnp.float32)
    ent = jnp.zeros((B, 1), jnp.float32)
    for b in range(B):
        q_b = q[b:b + 1, :] * scale
        ks_b = k_self[b:b + 1, :]
        kr_b = krel_ref[b]                                     # (R, E)
        sr_sum = jnp.zeros((1, R), jnp.float32)
        ss_sum = jnp.zeros((1, 1), jnp.float32)
        ar_sum = jnp.zeros((1, R), jnp.float32)
        as_sum = jnp.zeros((1, 1), jnp.float32)
        for h in range(H):
            mask = _head_mask(ch, h, D)
            qm = q_b * mask
            s_rel = lax.dot_general(qm, kr_b, (((1,), (1,)), ((), ())),
                                    preferred_element_type=jnp.float32)   # (1, R)
            s_self = jnp.sum(qm * ks_b, axis=-1, keepdims=True)           # (1, 1)
            m = jnp.maximum(jnp.max(s_rel, axis=-1, keepdims=True), s_self)
            e_rel = jnp.exp(s_rel - m)
            e_self = jnp.exp(s_self - m)
            inv = pl.reciprocal(jnp.sum(e_rel, axis=-1, keepdims=True) + e_self,
                                approx=True)
            ar_sum = ar_sum + e_rel * inv
            as_sum = as_sum + e_self * inv
            sr_sum = sr_sum + s_rel
            ss_sum = ss_sum + s_self
        a_rel = ar_sum * (1.0 / H)
        a_self = as_sum * (1.0 / H)
        ent_b = -(jnp.sum(_plogp(a_rel), axis=-1, keepdims=True) + _plogp(a_self))
        srel = jnp.where(bcol == b, sr_sum * (1.0 / H), srel)
        sself = jnp.where(bcol == b, ss_sum * (1.0 / H), sself)
        ent = jnp.where(bcol == b, ent_b, ent)
    srel_ref[...] = srel
    sself_ref[...] = sself
    ent_ref[...] = ent


# ----------------------------- parameters ------------------------------------
def init_params(key, relation_num=RELATION_NUM, emb_size=EMB_SIZE):
    R, E = relation_num, emb_size
    keys = list(jax.random.split(key, 32))
    it = iter(keys)

    def lin(fan_in, fan_out):
        bound = 1.0 / math.sqrt(fan_in)
        w = jax.random.uniform(next(it), (fan_in, fan_out), jnp.float32, -bound, bound)
        b = jax.random.uniform(next(it), (fan_out,), jnp.float32, -bound, bound)
        return w, b

    p = {}
    emb = jax.random.normal(next(it), (R + 1, E), jnp.float32)
    p["emb"] = emb.at[R].set(0.0)                      # padding_idx = relation_num

    for name, fi, fo in [("slider1", 2 * E, 2 * E), ("slider2", 2 * E, E),
                         ("fc", E, 1),
                         ("w_1", E, E), ("w_2", E, E),
                         ("fc_q", E, E), ("fc_k", E, E), ("fc_v", E, E), ("out", E, E)]:
        w, b = lin(fi, fo)
        p[name + "_w"], p[name + "_b"] = w, b

    p["ln_g"] = jnp.ones((E,), jnp.float32)
    p["ln_b"] = jnp.zeros((E,), jnp.float32)

    # PositionalEmbedding buffer (max_len = 3)
    pe = np.zeros((3, E), np.float32)
    position = np.arange(3, dtype=np.float32)[:, None]
    div_term = np.exp(np.arange(0, E, 2, dtype=np.float32) * -(math.log(10000.0) / E))
    pe[:, 0::2] = np.sin(position * div_term)
    pe[:, 1::2] = np.cos(position * div_term)
    p["pe"] = jnp.asarray(pe)[None]                    # (1, 3, E)
    return p


# ----------------------------- wrappers (glue) --------------------------------
def relation_attention(rel_ori, p):
    B, R, E = rel_ori.shape
    attn, k_rel, v_rel = pl.pallas_call(
        functools.partial(_rel_attn_kernel, H=NUM_HEADS, D=HEAD_DIM, eps=LN_EPS),
        out_shape=(jax.ShapeDtypeStruct((B * NUM_HEADS, R, R), jnp.float32),
                   jax.ShapeDtypeStruct((B, R, E), jnp.float32),
                   jax.ShapeDtypeStruct((B, R, E), jnp.float32)),
    )(rel_ori,
      p["fc_k_w"], p["fc_k_b"].reshape(1, E),
      p["fc_v_w"], p["fc_v_b"].reshape(1, E),
      p["ln_g"].reshape(1, E), p["ln_b"].reshape(1, E))
    return attn.reshape(B, NUM_HEADS, R, R), k_rel, v_rel


def reduce_rel_pairs(x, k_rel, v_rel, p):
    B, S, E = x.shape
    if S > 2:
        x_t = jnp.transpose(x, (1, 0, 2))                    # (S, B, E)
        out_t, loss = pl.pallas_call(
            functools.partial(_reduce_step_kernel, H=NUM_HEADS, D=HEAD_DIM, eps=LN_EPS),
            out_shape=(jax.ShapeDtypeStruct((S - 1, B, E), jnp.float32),
                       jax.ShapeDtypeStruct((B, 1), jnp.float32)),
        )(x_t, k_rel, v_rel,
          p["slider1_w"][:E], p["slider1_w"][E:], p["slider1_b"].reshape(1, 2 * E),
          p["slider2_w"], p["slider2_b"].reshape(1, E),
          p["fc_w"].reshape(1, E), p["fc_b"].reshape(1, 1),
          p["fc_q_w"], p["fc_q_b"].reshape(1, E),
          p["fc_k_w"], p["fc_k_b"].reshape(1, E),
          p["fc_v_w"], p["fc_v_b"].reshape(1, E),
          p["out_w"], p["out_b"].reshape(1, E),
          p["w_1_w"], p["w_1_b"].reshape(1, E),
          p["w_2_w"], p["w_2_b"].reshape(1, E),
          p["ln_g"].reshape(1, E), p["ln_b"].reshape(1, E))
        return jnp.transpose(out_t, (1, 0, 2)), loss
    else:
        out = pl.pallas_call(
            functools.partial(_reduce_pair_kernel, eps=LN_EPS),
            out_shape=jax.ShapeDtypeStruct((B, E), jnp.float32),
        )(x[:, 0, :], x[:, 1, :],
          p["slider1_w"][:E], p["slider1_w"][E:], p["slider1_b"].reshape(1, 2 * E),
          p["slider2_w"], p["slider2_b"].reshape(1, E),
          p["ln_g"].reshape(1, E), p["ln_b"].reshape(1, E))
        return out[:, None, :], jnp.zeros((B, 1), jnp.float32)


def final_scores(x, k_rel, p):
    B, S, E = x.shape                                        # S == 1 after the loop
    R = k_rel.shape[1]
    xq = x[:, 0, :]                                          # (B, E)
    s_rel, s_self, ent = pl.pallas_call(
        functools.partial(_mha_scores_kernel, H=NUM_HEADS, D=HEAD_DIM),
        out_shape=(jax.ShapeDtypeStruct((B, R), jnp.float32),
                   jax.ShapeDtypeStruct((B, 1), jnp.float32),
                   jax.ShapeDtypeStruct((B, 1), jnp.float32)),
    )(xq, k_rel,
      p["fc_q_w"], p["fc_q_b"].reshape(1, E),
      p["fc_k_w"], p["fc_k_b"].reshape(1, E))
    scores = jnp.concatenate([s_rel, s_self], axis=-1)       # (B, R+1): kv = [relations ; input]
    return scores, ent


@jax.jit
def encoder_forward(params, token_ids):
    B, S = token_ids.shape
    R, E = RELATION_NUM, EMB_SIZE

    x = params["emb"][token_ids] + params["pe"][:, :S]                 # (B, S, E)
    rel_ori = jnp.broadcast_to(params["emb"][:R][None], (B, R, E))     # (B, R, E)

    rel_attn_w, k_rel, v_rel = relation_attention(rel_ori, params)

    cur = x
    losses = []
    for _ in range(S - 1):
        cur, loss = reduce_rel_pairs(cur, k_rel, v_rel, params)
        losses.append(loss)

    scores, ent = final_scores(cur, k_rel, params)                     # predict_head = squeeze(1)
    losses.append(ent)
    loss_tensor = jnp.concatenate(losses, axis=-1)                     # (B, S)
    return scores, loss_tensor, rel_attn_w


# ----------------------------------- main ------------------------------------
if __name__ == "__main__":
    key = jax.random.PRNGKey(0)
    pkey, dkey = jax.random.split(key)
    params = init_params(pkey)
    token_ids = jax.random.randint(dkey, (BATCH, SEQ_LEN), 0, RELATION_NUM + 1)

    pred, loss_tensor, rel_attn_weight = encoder_forward(params, token_ids)
    jax.block_until_ready((pred, loss_tensor, rel_attn_weight))

    assert pred.shape == (BATCH, RELATION_NUM + 1)
    assert loss_tensor.shape == (BATCH, SEQ_LEN)
    assert rel_attn_weight.shape == (BATCH, NUM_HEADS, RELATION_NUM, RELATION_NUM)
    assert bool(jnp.all(jnp.isfinite(pred))) and bool(jnp.all(jnp.isfinite(loss_tensor)))
    print("KERNEL_OK")
</pallas_src>

<mosaic_0001>
module attributes {stable_mosaic.version = 11 : i64} {
  func.func @_reduce_pair_kernel(%arg0: memref<2x32xf32, #tpu.memory_space<vmem>>, %arg1: memref<2x32xf32, #tpu.memory_space<vmem>>, %arg2: memref<32x64xf32, #tpu.memory_space<vmem>>, %arg3: memref<32x64xf32, #tpu.memory_space<vmem>>, %arg4: memref<1x64xf32, #tpu.memory_space<vmem>>, %arg5: memref<64x32xf32, #tpu.memory_space<vmem>>, %arg6: memref<1x32xf32, #tpu.memory_space<vmem>>, %arg7: memref<1x32xf32, #tpu.memory_space<vmem>>, %arg8: memref<1x32xf32, #tpu.memory_space<vmem>>, %arg9: memref<2x32xf32, #tpu.memory_space<vmem>>) attributes {dimension_semantics = [], scalar_prefetch = 0 : i64, scratch_operands = 0 : i64, tpu.core_type = #tpu.core_type<tc>} {
    %c0 = arith.constant 0 : index
    %c0_0 = arith.constant 0 : index
    %0 = vector.load %arg0[%c0, %c0_0] : memref<2x32xf32, #tpu.memory_space<vmem>>, vector<2x32xf32>
    %c0_1 = arith.constant 0 : index
    %c0_2 = arith.constant 0 : index
    %1 = vector.load %arg2[%c0_1, %c0_2] : memref<32x64xf32, #tpu.memory_space<vmem>>, vector<32x64xf32>
    %cst = arith.constant dense<0.000000e+00> : vector<2x64xf32>
    %2 = tpu.matmul %0, %1, %cst {dimension_numbers = #tpu.dot_dimension_numbers<[1], [0], [0], [1], [0, 0, 1, 1], [], []>} : vector<2x32xf32>, vector<32x64xf32>, vector<2x64xf32> -> vector<2x64xf32>
    %c0_3 = arith.constant 0 : index
    %c0_4 = arith.constant 0 : index
    %3 = vector.load %arg1[%c0_3, %c0_4] : memref<2x32xf32, #tpu.memory_space<vmem>>, vector<2x32xf32>
    %c0_5 = arith.constant 0 : index
    %c0_6 = arith.constant 0 : index
    %4 = vector.load %arg3[%c0_5, %c0_6] : memref<32x64xf32, #tpu.memory_space<vmem>>, vector<32x64xf32>
    %cst_7 = arith.constant dense<0.000000e+00> : vector<2x64xf32>
    %5 = tpu.matmul %3, %4, %cst_7 {dimension_numbers = #tpu.dot_dimension_numbers<[1], [0], [0], [1], [0, 0, 1, 1], [], []>} : vector<2x32xf32>, vector<32x64xf32>, vector<2x64xf32> -> vector<2x64xf32>
    %6 = arith.addf %2, %5 : vector<2x64xf32>
    %c0_8 = arith.constant 0 : index
    %c0_9 = arith.constant 0 : index
    %7 = vector.load %arg4[%c0_8, %c0_9] : memref<1x64xf32, #tpu.memory_space<vmem>>, vector<1x64xf32>
    %8 = vector.broadcast %7 : vector<1x64xf32> to vector<2x64xf32>
    %9 = arith.addf %6, %8 : vector<2x64xf32>
    %cst_10 = arith.constant 0.000000e+00 : f32
    %10 = vector.broadcast %cst_10 : f32 to vector<2x64xf32>
    %11 = arith.maximumf %9, %10 : vector<2x64xf32>
    %c0_11 = arith.constant 0 : index
    %c0_12 = arith.constant 0 : index
    %12 = vector.load %arg5[%c0_11, %c0_12] : memref<64x32xf32, #tpu.memory_space<vmem>>, vector<64x32xf32>
    %cst_13 = arith.constant dense<0.000000e+00> : vector<2x32xf32>
    %13 = tpu.matmul %11, %12, %cst_13 {dimension_numbers = #tpu.dot_dimension_numbers<[1], [0], [0], [1], [0, 0, 1, 1], [], []>} : vector<2x64xf32>, vector<64x32xf32>, vector<2x32xf32> -> vector<2x32xf32>
    %c0_14 = arith.constant 0 : index
    %c0_15 = arith.constant 0 : index
    %14 = vector.load %arg6[%c0_14, %c0_15] : memref<1x32xf32, #tpu.memory_space<vmem>>, vector<1x32xf32>
    %15 = vector.broadcast %14 : vector<1x32xf32> to vector<2x32xf32>
    %16 = arith.addf %13, %15 : vector<2x32xf32>
    %c0_16 = arith.constant 0 : index
    %c0_17 = arith.constant 0 : index
    %17 = vector.load %arg7[%c0_16, %c0_17] : memref<1x32xf32, #tpu.memory_space<vmem>>, vector<1x32xf32>
    %c0_18 = arith.constant 0 : index
    %c0_19 = arith.constant 0 : index
    %18 = vector.load %arg8[%c0_18, %c0_19] : memref<1x32xf32, #tpu.memory_space<vmem>>, vector<1x32xf32>
    %cst_20 = arith.constant dense<0.000000e+00> : vector<2xf32>
    %19 = vector.multi_reduction <add>, %16, %cst_20 [1] : vector<2x32xf32> to vector<2xf32>
    %20 = vector.shape_cast %19 : vector<2xf32> to vector<2x1xf32>
    %cst_21 = arith.constant 3.200000e+01 : f32
    %21 = vector.broadcast %cst_21 : f32 to vector<2x1xf32>
    %22 = arith.divf %20, %21 : vector<2x1xf32>
    %23 = vector.broadcast %22 : vector<2x1xf32> to vector<2x32xf32>
    %24 = arith.subf %16, %23 : vector<2x32xf32>
    %25 = arith.mulf %24, %24 : vector<2x32xf32>
    %cst_22 = arith.constant dense<0.000000e+00> : vector<2xf32>
    %26 = vector.multi_reduction <add>, %25, %cst_22 [1] : vector<2x32xf32> to vector<2xf32>
    %27 = vector.shape_cast %26 : vector<2xf32> to vector<2x1xf32>
    %cst_23 = arith.constant 3.200000e+01 : f32
    %28 = vector.broadcast %cst_23 : f32 to vector<2x1xf32>
    %29 = arith.divf %27, %28 : vector<2x1xf32>
    %30 = vector.broadcast %22 : vector<2x1xf32> to vector<2x32xf32>
    %31 = arith.subf %16, %30 : vector<2x32xf32>
    %cst_24 = arith.constant 9.99999974E-6 : f32
    %32 = vector.broadcast %cst_24 : f32 to vector<2x1xf32>
    %33 = arith.addf %29, %32 : vector<2x1xf32>
    %34 = math.rsqrt %33 : vector<2x1xf32>
    %35 = vector.broadcast %34 : vector<2x1xf32> to vector<2x32xf32>
    %36 = arith.mulf %31, %35 : vector<2x32xf32>
    %37 = vector.broadcast %17 : vector<1x32xf32> to vector<2x32xf32>
    %38 = arith.mulf %36, %37 : vector<2x32xf32>
    %39 = vector.broadcast %18 : vector<1x32xf32> to vector<2x32xf32>
    %40 = arith.addf %38, %39 : vector<2x32xf32>
    %c0_25 = arith.constant 0 : index
    %c0_26 = arith.constant 0 : index
    %41 = vector.load %arg9[%c0_25, %c0_26] : memref<2x32xf32, #tpu.memory_space<vmem>>, vector<2x32xf32>
    tpu.vector_store %arg9[%c0_25, %c0_26], %40 {strides = array<i32>} : memref<2x32xf32, #tpu.memory_space<vmem>>, vector<2x32xf32>,
    return
  }
}

module attributes {stable_mosaic.version = 11 : i64} {
  func.func @_rel_attn_kernel(%arg0: memref<2x7x32xf32, #tpu.memory_space<vmem>>, %arg1: memref<32x32xf32, #tpu.memory_space<vmem>>, %arg2: memref<1x32xf32, #tpu.memory_space<vmem>>, %arg3: memref<32x32xf32, #tpu.memory_space<vmem>>, %arg4: memref<1x32xf32, #tpu.memory_space<vmem>>, %arg5: memref<1x32xf32, #tpu.memory_space<vmem>>, %arg6: memref<1x32xf32, #tpu.memory_space<vmem>>, %arg7: memref<16x7x7xf32, #tpu.memory_space<vmem>>, %arg8: memref<2x7x32xf32, #tpu.memory_space<vmem>>, %arg9: memref<2x7x32xf32, #tpu.memory_space<vmem>>) attributes {dimension_semantics = [], scalar_prefetch = 0 : i64, scratch_operands = 0 : i64, tpu.core_type = #tpu.core_type<tc>} {
    %c0 = arith.constant 0 : index
    %c0_0 = arith.constant 0 : index
    %0 = vector.load %arg5[%c0, %c0_0] : memref<1x32xf32, #tpu.memory_space<vmem>>, vector<1x32xf32>
    %c0_1 = arith.constant 0 : index
    %c0_2 = arith.constant 0 : index
    %1 = vector.load %arg6[%c0_1, %c0_2] : memref<1x32xf32, #tpu.memory_space<vmem>>, vector<1x32xf32>
    %2 = tpu.iota {dimensions = array<i32: 1>} : vector<1x32xi32>
    %c0_3 = arith.constant 0 : index
    %c0_4 = arith.constant 0 : index
    %c0_5 = arith.constant 0 : index
    %3 = vector.load %arg0[%c0_3, %c0_4, %c0_5] : memref<2x7x32xf32, #tpu.memory_space<vmem>>, vector<1x7x32xf32>
    %4 = vector.shape_cast %3 : vector<1x7x32xf32> to vector<7x32xf32>
    %cst = arith.constant 0.000000e+00 : f32
    %5 = vector.broadcast %cst : f32 to vector<7x32xf32>
    %c0_i32 = arith.constant 0 : i32
    %6 = vector.broadcast %c0_i32 : i32 to vector<1x32xi32>
    %7 = arith.cmpi sge, %2, %6 : vector<1x32xi32>
    %c4_i32 = arith.constant 4 : i32
    %8 = vector.broadcast %c4_i32 : i32 to vector<1x32xi32>
    %9 = arith.cmpi slt, %2, %8 : vector<1x32xi32>
    %10 = arith.andi %7, %9 : vector<1x32xi1>
    %11 = arith.extui %10 : vector<1x32xi1> to vector<1x32xi32>
    %12 = arith.sitofp %11 : vector<1x32xi32> to vector<1x32xf32>
    %13 = vector.broadcast %12 : vector<1x32xf32> to vector<7x32xf32>
    %14 = arith.mulf %4, %13 : vector<7x32xf32>
    %cst_6 = arith.constant 5.000000e-01 : f32
    %15 = vector.broadcast %cst_6 : f32 to vector<7x32xf32>
    %16 = arith.mulf %14, %15 : vector<7x32xf32>
    %cst_7 = arith.constant dense<0.000000e+00> : vector<7x7xf32>
    %17 = tpu.matmul %16, %4, %cst_7 {dimension_numbers = #tpu.dot_dimension_numbers<[1], [1], [0], [0], [0, 0, 1, 0], [], []>} : vector<7x32xf32>, vector<7x32xf32>, vector<7x7xf32> -> vector<7x7xf32>
    %cst_8 = arith.constant dense<0xFF800000> : vector<7xf32>
    %18 = vector.multi_reduction <maximumf>, %17, %cst_8 [1] : vector<7x7xf32> to vector<7xf32>
    %19 = vector.shape_cast %18 : vector<7xf32> to vector<7x1xf32>
    %20 = vector.broadcast %19 : vector<7x1xf32> to vector<7x7xf32>
    %21 = arith.subf %17, %20 : vector<7x7xf32>
    %22 = math.exp %21 : vector<7x7xf32>
    %cst_9 = arith.constant dense<0.000000e+00> : vector<7xf32>
    %23 = vector.multi_reduction <add>, %22, %cst_9 [1] : vector<7x7xf32> to vector<7xf32>
    %24 = vector.shape_cast %23 : vector<7xf32> to vector<7x1xf32>
    %25 = tpu.reciprocal %24 {approx = true} : vector<7x1xf32> -> vector<7x1xf32>
    %26 = vector.broadcast %25 : vector<7x1xf32> to vector<7x7xf32>
    %27 = arith.mulf %22, %26 : vector<7x7xf32>
    %c0_10 = arith.constant 0 : index
    %c0_11 = arith.constant 0 : index
    %c0_12 = arith.constant 0 : index
    %28 = vector.load %arg7[%c0_10, %c0_11, %c0_12] : memref<16x7x7xf32, #tpu.memory_space<vmem>>, vector<1x7x7xf32>
    %29 = vector.shape_cast %28 : vector<1x7x7xf32> to vector<7x7xf32>
    %30 = vector.shape_cast %27 : vector<7x7xf32> to vector<1x7x7xf32>
    tpu.vector_store %arg7[%c0_10, %c0_11, %c0_12], %30 {strides = array<i32>} : memref<16x7x7xf32, #tpu.memory_space<vmem>>, vector<1x7x7xf32>,
    %31 = vector.broadcast %12 : vector<1x32xf32> to vector<7x32xf32>
    %32 = arith.mulf %4, %31 : vector<7x32xf32>
    %cst_13 = arith.constant dense<0.000000e+00> : vector<7x32xf32>
    %33 = tpu.matmul %27, %32, %cst_13 {dimension_numbers = #tpu.dot_dimension_numbers<[1], [0], [0], [1], [0, 0, 1, 1], [], []>} : vector<7x7xf32>, vector<7x32xf32>, vector<7x32xf32> -> vector<7x32xf32>
    %34 = arith.addf %5, %33 : vector<7x32xf32>
    %c4_i32_14 = arith.constant 4 : i32
    %35 = vector.broadcast %c4_i32_14 : i32 to vector<1x32xi32>
    %36 = arith.cmpi sge, %2, %35 : vector<1x32xi32>
    %c8_i32 = arith.constant 8 : i32
    %37 = vector.broadcast %c8_i32 : i32 to vector<1x32xi32>
    %38 = arith.cmpi slt, %2, %37 : vector<1x32xi32>
    %39 = arith.andi %36, %38 : vector<1x32xi1>
    %40 = arith.extui %39 : vector<1x32xi1> to vector<1x32xi32>
    %41 = arith.sitofp %40 : vector<1x32xi32> to vector<1x32xf32>
    %42 = vector.broadcast %41 : vector<1x32xf32> to vector<7x32xf32>
    %43 = arith.mulf %4, %42 : vector<7x32xf32>
    %cst_15 = arith.constant 5.000000e-01 : f32
    %44 = vector.broadcast %cst_15 : f32 to vector<7x32xf32>
    %45 = arith.mulf %43, %44 : vector<7x32xf32>
    %cst_16 = arith.constant dense<0.000000e+00> : vector<7x7xf32>
    %46 = tpu.matmul %45, %4, %cst_16 {dimension_numbers = #tpu.dot_dimension_numbers<[1], [1], [0], [0], [0, 0, 1, 0], [], []>} : vector<7x32xf32>, vector<7x32xf32>, vector<7x7xf32> -> vector<7x7xf32>
    %cst_17 = arith.constant dense<0xFF800000> : vector<7xf32>
    %47 = vector.multi_reduction <maximumf>, %46, %cst_17 [1] : vector<7x7xf32> to vector<7xf32>
    %48 = vector.shape_cast %47 : vector<7xf32> to vector<7x1xf32>
    %49 = vector.broadcast %48 : vector<7x1xf32> to vector<7x7xf32>
    %50 = arith.subf %46, %49 : vector<7x7xf32>
    %51 = math.exp %50 : vector<7x7xf32>
    %cst_18 = arith.constant dense<0.000000e+00> : vector<7xf32>
    %52 = vector.multi_reduction <add>, %51, %cst_18 [1] : vector<7x7xf32> to vector<7xf32>
    %53 = vector.shape_cast %52 : vector<7xf32> to vector<7x1xf32>
    %54 = tpu.reciprocal %53 {approx = true} : vector<7x1xf32> -> vector<7x1xf32>
    %55 = vector.broadcast %54 : vector<7x1xf32> to vector<7x7xf32>
    %56 = arith.mulf %51, %55 : vector<7x7xf32>
    %c1 = arith.constant 1 : index
    %c0_19 = arith.constant 0 : index
    %c0_20 = arith.constant 0 : index
    %57 = vector.load %arg7[%c1, %c0_19, %c0_20] : memref<16x7x7xf32, #tpu.memory_space<vmem>>, vector<1x7x7xf32>
    %58 = vector.shape_cast %57 : vector<1x7x7xf32> to vector<7x7xf32>
    %59 = vector.shape_cast %56 : vector<7x7xf32> to vector<1x7x7xf32>
    tpu.vector_store %arg7[%c1, %c0_19, %c0_20], %59 {strides = array<i32>} : memref<16x7x7xf32, #tpu.memory_space<vmem>>, vector<1x7x7xf32>,
    %60 = vector.broadcast %41 : vector<1x32xf32> to vector<7x32xf32>
    %61 = arith.mulf %4, %60 : vector<7x32xf32>
    %cst_21 = arith.constant dense<0.000000e+00> : vector<7x32xf32>
    %62 = tpu.matmul %56, %61, %cst_21 {dimension_numbers = #tpu.dot_dimension_numbers<[1], [0], [0], [1], [0, 0, 1, 1], [], []>} : vector<7x7xf32>, vector<7x32xf32>, vector<7x32xf32> -> vector<7x32xf32>
    %63 = arith.addf %34, %62 : vector<7x32xf32>
    %c8_i32_22 = arith.constant 8 : i32
    %64 = vector.broadcast %c8_i32_22 : i32 to vector<1x32xi32>
    %65 = arith.cmpi sge, %2, %64 : vector<1x32xi32>
    %c12_i32 = arith.constant 12 : i32
    %66 = vector.broadcast %c12_i32 : i32 to vector<1x32xi32>
    %67 = arith.cmpi slt, %2, %66 : vector<1x32xi32>
    %68 = arith.andi %65, %67 : vector<1x32xi1>
    %69 = arith.extui %68 : vector<1x32xi1> to vector<1x32xi32>
    %70 = arith.sitofp %69 : vector<1x32xi32> to vector<1x32xf32>
    %71 = vector.broadcast %70 : vector<1x32xf32> to vector<7x32xf32>
    %72 = arith.mulf %4, %71 : vector<7x32xf32>
    %cst_23 = arith.constant 5.000000e-01 : f32
    %73 = vector.broadcast %cst_23 : f32 to vector<7x32xf32>
    %74 = arith.mulf %72, %73 : vector<7x32xf32>
    %cst_24 = arith.constant dense<0.000000e+00> : vector<7x7xf32>
    %75 = tpu.matmul %74, %4, %cst_24 {dimension_numbers = #tpu.dot_dimension_numbers<[1], [1], [0], [0], [0, 0, 1, 0], [], []>} : vector<7x32xf32>, vector<7x32xf32>, vector<7x7xf32> -> vector<7x7xf32>
    %cst_25 = arith.constant dense<0xFF800000> : vector<7xf32>
    %76 = vector.multi_reduction <maximumf>, %75, %cst_25 [1] : vector<7x7xf32> to vector<7xf32>
    %77 = vector.shape_cast %76 : vector<7xf32> to vector<7x1xf32>
    %78 = vector.broadcast %77 : vector<7x1xf32> to vector<7x7xf32>
    %79 = arith.subf %75, %78 : vector<7x7xf32>
    %80 = math.exp %79 : vector<7x7xf32>
    %cst_26 = arith.constant dense<0.000000e+00> : vector<7xf32>
    %81 = vector.multi_reduction <add>, %80, %cst_26 [1] : vector<7x7xf32> to vector<7xf32>
    %82 = vector.shape_cast %81 : vector<7xf32> to vector<7x1xf32>
    %83 = tpu.reciprocal %82 {approx = true} : vector<7x1xf32> -> vector<7x1xf32>
    %84 = vector.broadcast %83 : vector<7x1xf32> to vector<7x7xf32>
    %85 = arith.mulf %80, %84 : vector<7x7xf32>
    %c2 = arith.constant 2 : index
    %c0_27 = arith.constant 0 : index
    %c0_28 = arith.constant 0 : index
    %86 = vector.load %arg7[%c2, %c0_27, %c0_28] : memref<16x7x7xf32, #tpu.memory_space<vmem>>, vector<1x7x7xf32>
    %87 = vector.shape_cast %86 : vector<1x7x7xf32> to vector<7x7xf32>
    %88 = vector.shape_cast %85 : vector<7x7xf32> to vector<1x7x7xf32>
    tpu.vector_store %arg7[%c2, %c0_27, %c0_28], %88 {strides = array<i32>} : memref<16x7x7xf32, #tpu.memory_space<vmem>>, vector<1x7x7xf32>,
    %89 = vector.broadcast %70 : vector<1x32xf32> to vector<7x32xf32>
    %90 = arith.mulf %4, %89 : vector<7x32xf32>
    %cst_29 = arith.constant dense<0.000000e+00> : vector<7x32xf32>
    %91 = tpu.matmul %85, %90, %cst_29 {dimension_numbers = #tpu.dot_dimension_numbers<[1], [0], [0], [1], [0, 0, 1, 1], [], []>} : vector<7x7xf32>, vector<7x32xf32>, vector<7x32xf32> -> vector<7x32xf32>
    %92 = arith.addf %63, %91 : vector<7x32xf32>
    %c12_i32_30 = arith.constant 12 : i32
    %93 = vector.broadcast %c12_i32_30 : i32 to vector<1x32xi32>
    %94 = arith.cmpi sge, %2, %93 : vector<1x32xi32>
    %c16_i32 = arith.constant 16 : i32
    %95 = vector.broadcast %c16_i32 : i32 to vector<1x32xi32>
    %96 = arith.cmpi slt, %2, %95 : vector<1x32xi32>
    %97 = arith.andi %94, %96 : vector<1x32xi1>
    %98 = arith.extui %97 : vector<1x32xi1> to vector<1x32xi32>
    %99 = arith.sitofp %98 : vector<1x32xi32> to vector<1x32xf32>
    %100 = vector.broadcast %99 : vector<1x32xf32> to vector<7x32xf32>
    %101 = arith.mulf %4, %100 : vector<7x32xf32>
    %cst_31 = arith.constant 5.000000e-01 : f32
    %102 = vector.broadcast %cst_31 : f32 to vector<7x32xf32>
    %103 = arith.mulf %101, %102 : vector<7x32xf32>
    %cst_32 = arith.constant dense<0.000000e+00> : vector<7x7xf32>
    %104 = tpu.matmul %103, %4, %cst_32 {dimension_numbers = #tpu.dot_dimension_numbers<[1], [1], [0], [0], [0, 0, 1, 0], [], []>} : vector<7x32xf32>, vector<7x32xf32>, vector<7x7xf32> -> vector<7x7xf32>
    %cst_33 = arith.constant dense<0xFF800000> : vector<7xf32>
    %105 = vector.multi_reduction <maximumf>, %104, %cst_33 [1] : vector<7x7xf32> to vector<7xf32>
    %106 = vector.shape_cast %105 : vector<7xf32> to vector<7x1xf32>
    %107 = vector.broadcast %106 : vector<7x1xf32> to vector<7x7xf32>
    %108 = arith.subf %104, %107 : vector<7x7xf32>
    %109 = math.exp %108 : vector<7x7xf32>
    %cst_34 = arith.constant dense<0.000000e+00> : vector<7xf32>
    %110 = vector.multi_reduction <add>, %109, %cst_34 [1] : vector<7x7xf32> to vector<7xf32>
    %111 = vector.shape_cast %110 : vector<7xf32> to vector<7x1xf32>
    %112 = tpu.reciprocal %111 {approx = true} : vector<7x1xf32> -> vector<7x1xf32>
    %113 = vector.broadcast %112 : vector<7x1xf32> to vector<7x7xf32>
    %114 = arith.mulf %109, %113 : vector<7x7xf32>
    %c3 = arith.constant 3 : index
    %c0_35 = arith.constant 0 : index
    %c0_36 = arith.constant 0 : index
    %115 = vector.load %arg7[%c3, %c0_35, %c0_36] : memref<16x7x7xf32, #tpu.memory_space<vmem>>, vector<1x7x7xf32>
    %116 = vector.shape_cast %115 : vector<1x7x7xf32> to vector<7x7xf32>
    %117 = vector.shape_cast %114 : vector<7x7xf32> to vector<1x7x7xf32>
    tpu.vector_store %arg7[%c3, %c0_35, %c0_36], %117 {strides = array<i32>} : memref<16x7x7xf32, #tpu.memory_space<vmem>>, vector<1x7x7xf32>,
    %118 = vector.broadcast %99 : vector<1x32xf32> to vector<7x32xf32>
    %119 = arith.mulf %4, %118 : vector<7x32xf32>
    %cst_37 = arith.constant dense<0.000000e+00> : vector<7x32xf32>
    %120 = tpu.matmul %114, %119, %cst_37 {dimension_numbers = #tpu.dot_dimension_numbers<[1], [0], [0], [1], [0, 0, 1, 1], [], []>} : vector<7x7xf32>, vector<7x32xf32>, vector<7x32xf32> -> vector<7x32xf32>
    %121 = arith.addf %92, %120 : vector<7x32xf32>
    %c16_i32_38 = arith.constant 16 : i32
    %122 = vector.broadcast %c16_i32_38 : i32 to vector<1x32xi32>
    %123 = arith.cmpi sge, %2, %122 : vector<1x32xi32>
    %c20_i32 = arith.constant 20 : i32
    %124 = vector.broadcast %c20_i32 : i32 to vector<1x32xi32>
    %125 = arith.cmpi slt, %2, %124 : vector<1x32xi32>
    %126 = arith.andi %123, %125 : vector<1x32xi1>
    %127 = arith.extui %126 : vector<1x32xi1> to vector<1x32xi32>
    %128 = arith.sitofp %127 : vector<1x32xi32> to vector<1x32xf32>
    %129 = vector.broadcast %128 : vector<1x32xf32> to vector<7x32xf32>
    %130 = arith.mulf %4, %129 : vector<7x32xf32>
    %cst_39 = arith.constant 5.000000e-01 : f32
    %131 = vector.broadcast %cst_39 : f32 to vector<7x32xf32>
    %132 = arith.mulf %130, %131 : vector<7x32xf32>
    %cst_40 = arith.constant dense<0.000000e+00> : vector<7x7xf32>
    %133 = tpu.matmul %132, %4, %cst_40 {dimension_numbers = #tpu.dot_dimension_numbers<[1], [1], [0], [0], [0, 0, 1, 0], [], []>} : vector<7x32xf32>, vector<7x32xf32>, vector<7x7xf32> -> vector<7x7xf32>
    %cst_41 = arith.constant dense<0xFF800000> : vector<7xf32>
    %134 = vector.multi_reduction <maximumf>, %133, %cst_41 [1] : vector<7x7xf32> to vector<7xf32>
    %135 = vector.shape_cast %134 : vector<7xf32> to vector<7x1xf32>
    %136 = vector.broadcast %135 : vector<7x1xf32> to vector<7x7xf32>
    %137 = arith.subf %133, %136 : vector<7x7xf32>
    %138 = math.exp %137 : vector<7x7xf32>
    %cst_42 = arith.constant dense<0.000000e+00> : vector<7xf32>
    %139 = vector.multi_reduction <add>, %138, %cst_42 [1] : vector<7x7xf32> to vector<7xf32>
    %140 = vector.shape_cast %139 : vector<7xf32> to vector<7x1xf32>
    %141 = tpu.reciprocal %140 {approx = true} : vector<7x1xf32> -> vector<7x1xf32>
    %142 = vector.broadcast %141 : vector<7x1xf32> to vector<7x7xf32>
    %143 = arith.mulf %138, %142 : vector<7x7xf32>
    %c4 = arith.constant 4 : index
    %c0_43 = arith.constant 0 : index
    %c0_44 = arith.constant 0 : index
    %144 = vector.load %arg7[%c4, %c0_43, %c0_44] : memref<16x7x7xf32, #tpu.memory_space<vmem>>, vector<1x7x7xf32>
    %145 = vector.shape_cast %144 : vector<1x7x7xf32> to vector<7x7xf32>
    %146 = vector.shape_cast %143 : vector<7x7xf32> to vector<1x7x7xf32>
    tpu.vector_store %arg7[%c4, %c0_43, %c0_44], %146 {strides = array<i32>} : memref<16x7x7xf32, #tpu.memory_space<vmem>>, vector<1x7x7xf32>,
    %147 = vector.broadcast %128 : vector<1x32xf32> to vector<7x32xf32>
    %148 = arith.mulf %4, %147 : vector<7x32xf32>
    %cst_45 = arith.constant dense<0.000000e+00> : vector<7x32xf32>
    %149 = tpu.matmul %143, %148, %cst_45 {dimension_numbers = #tpu.dot_dimension_numbers<[1], [0], [0], [1], [0, 0, 1, 1], [], []>} : vector<7x7xf32>, vector<7x32xf32>, vector<7x32xf32> -> vector<7x32xf32>
    %150 = arith.addf %121, %149 : vector<7x32xf32>
    %c20_i32_46 = arith.constant 20 : i32
    %151 = vector.broadcast %c20_i32_46 : i32 to vector<1x32xi32>
    %152 = arith.cmpi sge, %2, %151 : vector<1x32xi32>
    %c24_i32 = arith.constant 24 : i32
    %153 = vector.broadcast %c24_i32 : i32 to vector<1x32xi32>
    %154 = arith.cmpi slt, %2, %153 : vector<1x32xi32>
    %155 = arith.andi %152, %154 : vector<1x32xi1>
    %156 = arith.extui %155 : vector<1x32xi1> to vector<1x32xi32>
    %157 = arith.sitofp %156 : vector<1x32xi32> to vector<1x32xf32>
    %158 = vector.broadcast %157 : vector<1x32xf32> to vector<7x32xf32>
    %159 = arith.mulf %4, %158 : vector<7x32xf32>
    %cst_47 = arith.constant 5.000000e-01 : f32
    %160 = vector.broadcast %cst_47 : f32 to vector<7x32xf32>
    %161 = arith.mulf %159, %160 : vector<7x32xf32>
    %cst_48 = arith.constant dense<0.000000e+00> : vector<7x7xf32>
    %162 = tpu.matmul %161, %4, %cst_48 {dimension_numbers = #tpu.dot_dimension_numbers<[1], [1], [0], [0], [0, 0, 1, 0], [], []>} : vector<7x32xf32>, vector<7x32xf32>, vector<7x7xf32> -> vector<7x7xf32>
    %cst_49 = arith.constant dense<0xFF800000> : vector<7xf32>
    %163 = vector.multi_reduction <maximumf>, %162, %cst_49 [1] : vector<7x7xf32> to vector<7xf32>
    %164 = vector.shape_cast %163 : vector<7xf32> to vector<7x1xf32>
    %165 = vector.broadcast %164 : vector<7x1xf32> to vector<7x7xf32>
    %166 = arith.subf %162, %165 : vector<7x7xf32>
    %167 = math.exp %166 : vector<7x7xf32>
    %cst_50 = arith.constant dense<0.000000e+00> : vector<7xf32>
    %168 = vector.multi_reduction <add>, %167, %cst_50 [1] : vector<7x7xf32> to vector<7xf32>
    %169 = vector.shape_cast %168 : vector<7xf32> to vector<7x1xf32>
    %170 = tpu.reciprocal %169 {approx = true} : vector<7x1xf32> -> vector<7x1xf32>
    %171 = vector.broadcast %170 : vector<7x1xf32> to vector<7x7xf32>
    %172 = arith.mulf %167, %171 : vector<7x7xf32>
    %c5 = arith.constant 5 : index
    %c0_51 = arith.constant 0 : index
    %c0_52 = arith.constant 0 : index
    %173 = vector.load %arg7[%c5, %c0_51, %c0_52] : memref<16x7x7xf32, #tpu.memory_space<vmem>>, vector<1x7x7xf32>
    %174 = vector.shape_cast %173 : vector<1x7x7xf32> to vector<7x7xf32>
    %175 = vector.shape_cast %172 : vector<7x7xf32> to vector<1x7x7xf32>
    tpu.vector_store %arg7[%c5, %c0_51, %c0_52], %175 {strides = array<i32>} : memref<16x7x7xf32, #tpu.memory_space<vmem>>, vector<1x7x7xf32>,
    %176 = vector.broadcast %157 : vector<1x32xf32> to vector<7x32xf32>
    %177 = arith.mulf %4, %176 : vector<7x32xf32>
    %cst_53 = arith.constant dense<0.000000e+00> : vector<7x32xf32>
    %178 = tpu.matmul %172, %177, %cst_53 {dimension_numbers = #tpu.dot_dimension_numbers<[1], [0], [0], [1], [0, 0, 1, 1], [], []>} : vector<7x7xf32>, vector<7x32xf32>, vector<7x32xf32> -> vector<7x32xf32>
    %179 = arith.addf %150, %178 : vector<7x32xf32>
    %c24_i32_54 = arith.constant 24 : i32
    %180 = vector.broadcast %c24_i32_54 : i32 to vector<1x32xi32>
    %181 = arith.cmpi sge, %2, %180 : vector<1x32xi32>
    %c28_i32 = arith.constant 28 : i32
    %182 = vector.broadcast %c28_i32 : i32 to vector<1x32xi32>
    %183 = arith.cmpi slt, %2, %182 : vector<1x32xi32>
    %184 = arith.andi %181, %183 : vector<1x32xi1>
    %185 = arith.extui %184 : vector<1x32xi1> to vector<1x32xi32>
    %186 = arith.sitofp %185 : vector<1x32xi32> to vector<1x32xf32>
    %187 = vector.broadcast %186 : vector<1x32xf32> to vector<7x32xf32>
    %188 = arith.mulf %4, %187 : vector<7x32xf32>
    %cst_55 = arith.constant 5.000000e-01 : f32
    %189 = vector.broadcast %cst_55 : f32 to vector<7x32xf32>
    %190 = arith.mulf %188, %189 : vector<7x32xf32>
    %cst_56 = arith.constant dense<0.000000e+00> : vector<7x7xf32>
    %191 = tpu.matmul %190, %4, %cst_56 {dimension_numbers = #tpu.dot_dimension_numbers<[1], [1], [0], [0], [0, 0, 1, 0], [], []>} : vector<7x32xf32>, vector<7x32xf32>, vector<7x7xf32> -> vector<7x7xf32>
    %cst_57 = arith.constant dense<0xFF800000> : vector<7xf32>
    %192 = vector.multi_reduction <maximumf>, %191, %cst_57 [1] : vector<7x7xf32> to vector<7xf32>
    %193 = vector.shape_cast %192 : vector<7xf32> to vector<7x1xf32>
    %194 = vector.broadcast %193 : vector<7x1xf32> to vector<7x7xf32>
    %195 = arith.subf %191, %194 : vector<7x7xf32>
    %196 = math.exp %195 : vector<7x7xf32>
    %cst_58 = arith.constant dense<0.000000e+00> : vector<7xf32>
    %197 = vector.multi_reduction <add>, %196, %cst_58 [1] : vector<7x7xf32> to vector<7xf32>
    %198 = vector.shape_cast %197 : vector<7xf32> to vector<7x1xf32>
    %199 = tpu.reciprocal %198 {approx = true} : vector<7x1xf32> -> vector<7x1xf32>
    %200 = vector.broadcast %199 : vector<7x1xf32> to vector<7x7xf32>
    %201 = arith.mulf %196, %200 : vector<7x7xf32>
    %c6 = arith.constant 6 : index
    %c0_59 = arith.constant 0 : index
    %c0_60 = arith.constant 0 : index
    %202 = vector.load %arg7[%c6, %c0_59, %c0_60] : memref<16x7x7xf32, #tpu.memory_space<vmem>>, vector<1x7x7xf32>
    %203 = vector.shape_cast %202 : vector<1x7x7xf32> to vector<7x7xf32>
    %204 = vector.shape_cast %201 : vector<7x7xf32> to vector<1x7x7xf32>
    tpu.vector_store %arg7[%c6, %c0_59, %c0_60], %204 {strides = array<i32>} : memref<16x7x7xf32, #tpu.memory_space<vmem>>, vector<1x7x7xf32>,
    %205 = vector.broadcast %186 : vector<1x32xf32> to vector<7x32xf32>
    %206 = arith.mulf %4, %205 : vector<7x32xf32>
    %cst_61 = arith.constant dense<0.000000e+00> : vector<7x32xf32>
    %207 = tpu.matmul %201, %206, %cst_61 {dimension_numbers = #tpu.dot_dimension_numbers<[1], [0], [0], [1], [0, 0, 1, 1], [], []>} : vector<7x7xf32>, vector<7x32xf32>, vector<7x32xf32> -> vector<7x32xf32>
    %208 = arith.addf %179, %207 : vector<7x32xf32>
    %c28_i32_62 = arith.constant 28 : i32
    %209 = vector.broadcast %c28_i32_62 : i32 to vector<1x32xi32>
    %210 = arith.cmpi sge, %2, %209 : vector<1x32xi32>
    %c32_i32 = arith.constant 32 : i32
    %211 = vector.broadcast %c32_i32 : i32 to vector<1x32xi32>
    %212 = arith.cmpi slt, %2, %211 : vector<1x32xi32>
    %213 = arith.andi %210, %212 : vector<1x32xi1>
    %214 = arith.extui %213 : vector<1x32xi1> to vector<1x32xi32>
    %215 = arith.sitofp %214 : vector<1x32xi32> to vector<1x32xf32>
    %216 = vector.broadcast %215 : vector<1x32xf32> to vector<7x32xf32>
    %217 = arith.mulf %4, %216 : vector<7x32xf32>
    %cst_63 = arith.constant 5.000000e-01 : f32
    %218 = vector.broadcast %cst_63 : f32 to vector<7x32xf32>
    %219 = arith.mulf %217, %218 : vector<7x32xf32>
    %cst_64 = arith.constant dense<0.000000e+00> : vector<7x7xf32>
    %220 = tpu.matmul %219, %4, %cst_64 {dimension_numbers = #tpu.dot_dimension_numbers<[1], [1], [0], [0], [0, 0, 1, 0], [], []>} : vector<7x32xf32>, vector<7x32xf32>, vector<7x7xf32> -> vector<7x7xf32>
    %cst_65 = arith.constant dense<0xFF800000> : vector<7xf32>
    %221 = vector.multi_reduction <maximumf>, %220, %cst_65 [1] : vector<7x7xf32> to vector<7xf32>
    %222 = vector.shape_cast %221 : vector<7xf32> to vector<7x1xf32>
    %223 = vector.broadcast %222 : vector<7x1xf32> to vector<7x7xf32>
    %224 = arith.subf %220, %223 : vector<7x7xf32>
    %225 = math.exp %224 : vector<7x7xf32>
    %cst_66 = arith.constant dense<0.000000e+00> : vector<7xf32>
    %226 = vector.multi_reduction <add>, %225, %cst_66 [1] : vector<7x7xf32> to vector<7xf32>
    %227 = vector.shape_cast %226 : vector<7xf32> to vector<7x1xf32>
    %228 = tpu.reciprocal %227 {approx = true} : vector<7x1xf32> -> vector<7x1xf32>
    %229 = vector.broadcast %228 : vector<7x1xf32> to vector<7x7xf32>
    %230 = arith.mulf %225, %229 : vector<7x7xf32>
    %c7 = arith.constant 7 : index
    %c0_67 = arith.constant 0 : index
    %c0_68 = arith.constant 0 : index
    %231 = vector.load %arg7[%c7, %c0_67, %c0_68] : memref<16x7x7xf32, #tpu.memory_space<vmem>>, vector<1x7x7xf32>
    %232 = vector.shape_cast %231 : vector<1x7x7xf32> to vector<7x7xf32>
    %233 = vector.shape_cast %230 : vector<7x7xf32> to vector<1x7x7xf32>
    tpu.vector_store %arg7[%c7, %c0_67, %c0_68], %233 {strides = array<i32>} : memref<16x7x7xf32, #tpu.memory_space<vmem>>, vector<1x7x7xf32>,
    %234 = vector.broadcast %215 : vector<1x32xf32> to vector<7x32xf32>
    %235 = arith.mulf %4, %234 : vector<7x32xf32>
    %cst_69 = arith.constant dense<0.000000e+00> : vector<7x32xf32>
    %236 = tpu.matmul %230, %235, %cst_69 {dimension_numbers = #tpu.dot_dimension_numbers<[1], [0], [0], [1], [0, 0, 1, 1], [], []>} : vector<7x7xf32>, vector<7x32xf32>, vector<7x32xf32> -> vector<7x32xf32>
    %237 = arith.addf %208, %236 : vector<7x32xf32>
    %cst_70 = arith.constant 1.000000e-01 : f32
    %238 = vector.broadcast %cst_70 : f32 to vector<7x32xf32>
    %239 = arith.mulf %238, %237 : vector<7x32xf32>
    %240 = arith.addf %4, %239 : vector<7x32xf32>
    %cst_71 = arith.constant dense<0.000000e+00> : vector<7xf32>
    %241 = vector.multi_reduction <add>, %240, %cst_71 [1] : vector<7x32xf32> to vector<7xf32>
    %242 = vector.shape_cast %241 : vector<7xf32> to vector<7x1xf32>
    %cst_72 = arith.constant 3.200000e+01 : f32
    %243 = vector.broadcast %cst_72 : f32 to vector<7x1xf32>
    %244 = arith.divf %242, %243 : vector<7x1xf32>
    %245 = vector.broadcast %244 : vector<7x1xf32> to vector<7x32xf32>
    %246 = arith.subf %240, %245 : vector<7x32xf32>
    %247 = arith.mulf %246, %246 : vector<7x32xf32>
    %cst_73 = arith.constant dense<0.000000e+00> : vector<7xf32>
    %248 = vector.multi_reduction <add>, %247, %cst_73 [1] : vector<7x32xf32> to vector<7xf32>
    %249 = vector.shape_cast %248 : vector<7xf32> to vector<7x1xf32>
    %cst_74 = arith.constant 3.200000e+01 : f32
    %250 = vector.broadcast %cst_74 : f32 to vector<7x1xf32>
    %251 = arith.divf %249, %250 : vector<7x1xf32>
    %252 = vector.broadcast %244 : vector<7x1xf32> to vector<7x32xf32>
    %253 = arith.subf %240, %252 : vector<7x32xf32>
    %cst_75 = arith.constant 9.99999974E-6 : f32
    %254 = vector.broadcast %cst_75 : f32 to vector<7x1xf32>
    %255 = arith.addf %251, %254 : vector<7x1xf32>
    %256 = math.rsqrt %255 : vector<7x1xf32>
    %257 = vector.broadcast %256 : vector<7x1xf32> to vector<7x32xf32>
    %258 = arith.mulf %253, %257 : vector<7x32xf32>
    %259 = vector.broadcast %0 : vector<1x32xf32> to vector<7x32xf32>
    %260 = arith.mulf %258, %259 : vector<7x32xf32>
    %261 = vector.broadcast %1 : vector<1x32xf32> to vector<7x32xf32>
    %262 = arith.addf %260, %261 : vector<7x32xf32>
    %c0_76 = arith.constant 0 : index
    %c0_77 = arith.constant 0 : index
    %263 = vector.load %arg1[%c0_76, %c0_77] : memref<32x32xf32, #tpu.memory_space<vmem>>, vector<32x32xf32>
    %cst_78 = arith.constant dense<0.000000e+00> : vector<7x32xf32>
    %264 = tpu.matmul %262, %263, %cst_78 {dimension_numbers = #tpu.dot_dimension_numbers<[1], [0], [0], [1], [0, 0, 1, 1], [], []>} : vector<7x32xf32>, vector<32x32xf32>, vector<7x32xf32> -> vector<7x32xf32>
    %c0_79 = arith.constant 0 : index
    %c0_80 = arith.constant 0 : index
    %265 = vector.load %arg2[%c0_79, %c0_80] : memref<1x32xf32, #tpu.memory_space<vmem>>, vector<1x32xf32>
    %266 = vector.broadcast %265 : vector<1x32xf32> to vector<7x32xf32>
    %267 = arith.addf %264, %266 : vector<7x32xf32>
    %c0_81 = arith.constant 0 : index
    %c0_82 = arith.constant 0 : index
    %c0_83 = arith.constant 0 : index
    %268 = vector.load %arg8[%c0_81, %c0_82, %c0_83] : memref<2x7x32xf32, #tpu.memory_space<vmem>>, vector<1x7x32xf32>
    %269 = vector.shape_cast %268 : vector<1x7x32xf32> to vector<7x32xf32>
    %270 = vector.shape_cast %267 : vector<7x32xf32> to vector<1x7x32xf32>
    tpu.vector_store %arg8[%c0_81, %c0_82, %c0_83], %270 {strides = array<i32>} : memref<2x7x32xf32, #tpu.memory_space<vmem>>, vector<1x7x32xf32>,
    %c0_84 = arith.constant 0 : index
    %c0_85 = arith.constant 0 : index
    %271 = vector.load %arg3[%c0_84, %c0_85] : memref<32x32xf32, #tpu.memory_space<vmem>>, vector<32x32xf32>
    %cst_86 = arith.constant dense<0.000000e+00> : vector<7x32xf32>
    %272 = tpu.matmul %262, %271, %cst_86 {dimension_numbers = #tpu.dot_dimension_numbers<[1], [0], [0], [1], [0, 0, 1, 1], [], []>} : vector<7x32xf32>, vector<32x32xf32>, vector<7x32xf32> -> vector<7x32xf32>
    %c0_87 = arith.constant 0 : index
    %c0_88 = arith.constant 0 : index
    %273 = vector.load %arg4[%c0_87, %c0_88] : memref<1x32xf32, #tpu.memory_space<vmem>>, vector<1x32xf32>
    %274 = vector.broadcast %273 : vector<1x32xf32> to vector<7x32xf32>
    %275 = arith.addf %272, %274 : vector<7x32xf32>
    %c0_89 = arith.constant 0 : index
    %c0_90 = arith.constant 0 : index
    %c0_91 = arith.constant 0 : index
    %276 = vector.load %arg9[%c0_89, %c0_90, %c0_91] : memref<2x7x32xf32, #tpu.memory_space<vmem>>, vector<1x7x32xf32>
    %277 = vector.shape_cast %276 : vector<1x7x32xf32> to vector<7x32xf32>
    %278 = vector.shape_cast %275 : vector<7x32xf32> to vector<1x7x32xf32>
    tpu.vector_store %arg9[%c0_89, %c0_90, %c0_91], %278 {strides = array<i32>} : memref<2x7x32xf32, #tpu.memory_space<vmem>>, vector<1x7x32xf32>,
    %c1_92 = arith.constant 1 : index
    %c0_93 = arith.constant 0 : index
    %c0_94 = arith.constant 0 : index
    %279 = vector.load %arg0[%c1_92, %c0_93, %c0_94] : memref<2x7x32xf32, #tpu.memory_space<vmem>>, vector<1x7x32xf32>
    %280 = vector.shape_cast %279 : vector<1x7x32xf32> to vector<7x32xf32>
    %cst_95 = arith.constant 0.000000e+00 : f32
    %281 = vector.broadcast %cst_95 : f32 to vector<7x32xf32>
    %c0_i32_96 = arith.constant 0 : i32
    %282 = vector.broadcast %c0_i32_96 : i32 to vector<1x32xi32>
    %283 = arith.cmpi sge, %2, %282 : vector<1x32xi32>
    %c4_i32_97 = arith.constant 4 : i32
    %284 = vector.broadcast %c4_i32_97 : i32 to vector<1x32xi32>
    %285 = arith.cmpi slt, %2, %284 : vector<1x32xi32>
    %286 = arith.andi %283, %285 : vector<1x32xi1>
    %287 = arith.extui %286 : vector<1x32xi1> to vector<1x32xi32>
    %288 = arith.sitofp %287 : vector<1x32xi32> to vector<1x32xf32>
    %289 = vector.broadcast %288 : vector<1x32xf32> to vector<7x32xf32>
    %290 = arith.mulf %280, %289 : vector<7x32xf32>
    %cst_98 = arith.constant 5.000000e-01 : f32
    %291 = vector.broadcast %cst_98 : f32 to vector<7x32xf32>
    %292 = arith.mulf %290, %291 : vector<7x32xf32>
    %cst_99 = arith.constant dense<0.000000e+00> : vector<7x7xf32>
    %293 = tpu.matmul %292, %280, %cst_99 {dimension_numbers = #tpu.dot_dimension_numbers<[1], [1], [0], [0], [0, 0, 1, 0], [], []>} : vector<7x32xf32>, vector<7x32xf32>, vector<7x7xf32> -> vector<7x7xf32>
    %cst_100 = arith.constant dense<0xFF800000> : vector<7xf32>
    %294 = vector.multi_reduction <maximumf>, %293, %cst_100 [1] : vector<7x7xf32> to vector<7xf32>
    %295 = vector.shape_cast %294 : vector<7xf32> to vector<7x1xf32>
    %296 = vector.broadcast %295 : vector<7x1xf32> to vector<7x7xf32>
    %297 = arith.subf %293, %296 : vector<7x7xf32>
    %298 = math.exp %297 : vector<7x7xf32>
    %cst_101 = arith.constant dense<0.000000e+00> : vector<7xf32>
    %299 = vector.multi_reduction <add>, %298, %cst_101 [1] : vector<7x7xf32> to vector<7xf32>
    %300 = vector.shape_cast %299 : vector<7xf32> to vector<7x1xf32>
    %301 = tpu.reciprocal %300 {approx = true} : vector<7x1xf32> -> vector<7x1xf32>
    %302 = vector.broadcast %301 : vector<7x1xf32> to vector<7x7xf32>
    %303 = arith.mulf %298, %302 : vector<7x7xf32>
    %c8 = arith.constant 8 : index
    %c0_102 = arith.constant 0 : index
    %c0_103 = arith.constant 0 : index
    %304 = vector.load %arg7[%c8, %c0_102, %c0_103] : memref<16x7x7xf32, #tpu.memory_space<vmem>>, vector<1x7x7xf32>
    %305 = vector.shape_cast %304 : vector<1x7x7xf32> to vector<7x7xf32>
    %306 = vector.shape_cast %303 : vector<7x7xf32> to vector<1x7x7xf32>
    tpu.vector_store %arg7[%c8, %c0_102, %c0_103], %306 {strides = array<i32>} : memref<16x7x7xf32, #tpu.memory_space<vmem>>, vector<1x7x7xf32>,
    %307 = vector.broadcast %288 : vector<1x32xf32> to vector<7x32xf32>
    %308 = arith.mulf %280, %307 : vector<7x32xf32>
    %cst_104 = arith.constant dense<0.000000e+00> : vector<7x32xf32>
    %309 = tpu.matmul %303, %308, %cst_104 {dimension_numbers = #tpu.dot_dimension_numbers<[1], [0], [0], [1], [0, 0, 1, 1], [], []>} : vector<7x7xf32>, vector<7x32xf32>, vector<7x32xf32> -> vector<7x32xf32>
    %310 = arith.addf %281, %309 : vector<7x32xf32>
    %c4_i32_105 = arith.constant 4 : i32
    %311 = vector.broadcast %c4_i32_105 : i32 to vector<1x32xi32>
    %312 = arith.cmpi sge, %2, %311 : vector<1x32xi32>
    %c8_i32_106 = arith.constant 8 : i32
    %313 = vector.broadcast %c8_i32_106 : i32 to vector<1x32xi32>
    %314 = arith.cmpi slt, %2, %313 : vector<1x32xi32>
    %315 = arith.andi %312, %314 : vector<1x32xi1>
    %316 = arith.extui %315 : vector<1x32xi1> to vector<1x32xi32>
    %317 = arith.sitofp %316 : vector<1x32xi32> to vector<1x32xf32>
    %318 = vector.broadcast %317 : vector<1x32xf32> to vector<7x32xf32>
    %319 = arith.mulf %280, %318 : vector<7x32xf32>
    %cst_107 = arith.constant 5.000000e-01 : f32
    %320 = vector.broadcast %cst_107 : f32 to vector<7x32xf32>
    %321 = arith.mulf %319, %320 : vector<7x32xf32>
    %cst_108 = arith.constant dense<0.000000e+00> : vector<7x7xf32>
    %322 = tpu.matmul %321, %280, %cst_108 {dimension_numbers = #tpu.dot_dimension_numbers<[1], [1], [0], [0], [0, 0, 1, 0], [], []>} : vector<7x32xf32>, vector<7x32xf32>, vector<7x7xf32> -> vector<7x7xf32>
    %cst_109 = arith.constant dense<0xFF800000> : vector<7xf32>
    %323 = vector.multi_reduction <maximumf>, %322, %cst_109 [1] : vector<7x7xf32> to vector<7xf32>
    %324 = vector.shape_cast %323 : vector<7xf32> to vector<7x1xf32>
    %325 = vector.broadcast %324 : vector<7x1xf32> to vector<7x7xf32>
    %326 = arith.subf %322, %325 : vector<7x7xf32>
    %327 = math.exp %326 : vector<7x7xf32>
    %cst_110 = arith.constant dense<0.000000e+00> : vector<7xf32>
    %328 = vector.multi_reduction <add>, %327, %cst_110 [1] : vector<7x7xf32> to vector<7xf32>
    %329 = vector.shape_cast %328 : vector<7xf32> to vector<7x1xf32>
    %330 = tpu.reciprocal %329 {approx = true} : vector<7x1xf32> -> vector<7x1xf32>
    %331 = vector.broadcast %330 : vector<7x1xf32> to vector<7x7xf32>
    %332 = arith.mulf %327, %331 : vector<7x7xf32>
    %c9 = arith.constant 9 : index
    %c0_111 = arith.constant 0 : index
    %c0_112 = arith.constant 0 : index
    %333 = vector.load %arg7[%c9, %c0_111, %c0_112] : memref<16x7x7xf32, #tpu.memory_space<vmem>>, vector<1x7x7xf32>
    %334 = vector.shape_cast %333 : vector<1x7x7xf32> to vector<7x7xf32>
    %335 = vector.shape_cast %332 : vector<7x7xf32> to vector<1x7x7xf32>
    tpu.vector_store %arg7[%c9, %c0_111, %c0_112], %335 {strides = array<i32>} : memref<16x7x7xf32, #tpu.memory_space<vmem>>, vector<1x7x7xf32>,
    %336 = vector.broadcast %317 : vector<1x32xf32> to vector<7x32xf32>
    %337 = arith.mulf %280, %336 : vector<7x32xf32>
    %cst_113 = arith.constant dense<0.000000e+00> : vector<7x32xf32>
    %338 = tpu.matmul %332, %337, %cst_113 {dimension_numbers = #tpu.dot_dimension_numbers<[1], [0], [0], [1], [0, 0, 1, 1], [], []>} : vector<7x7xf32>, vector<7x32xf32>, vector<7x32xf32> -> vector<7x32xf32>
    %339 = arith.addf %310, %338 : vector<7x32xf32>
    %c8_i32_114 = arith.constant 8 : i32
    %340 = vector.broadcast %c8_i32_114 : i32 to vector<1x32xi32>
    %341 = arith.cmpi sge, %2, %340 : vector<1x32xi32>
    %c12_i32_115 = arith.constant 12 : i32
    %342 = vector.broadcast %c12_i32_115 : i32 to vector<1x32xi32>
    %343 = arith.cmpi slt, %2, %342 : vector<1x32xi32>
    %344 = arith.andi %341, %343 : vector<1x32xi1>
    %345 = arith.extui %344 : vector<1x32xi1> to vector<1x32xi32>
    %346 = arith.sitofp %345 : vector<1x32xi32> to vector<1x32xf32>
    %347 = vector.broadcast %346 : vector<1x32xf32> to vector<7x32xf32>
    %348 = arith.mulf %280, %347 : vector<7x32xf32>
    %cst_116 = arith.constant 5.000000e-01 : f32
    %349 = vector.broadcast %cst_116 : f32 to vector<7x32xf32>
    %350 = arith.mulf %348, %349 : vector<7x32xf32>
    %cst_117 = arith.constant dense<0.000000e+00> : vector<7x7xf32>
    %351 = tpu.matmul %350, %280, %cst_117 {dimension_numbers = #tpu.dot_dimension_numbers<[1], [1], [0], [0], [0, 0, 1, 0], [], []>} : vector<7x32xf32>, vector<7x32xf32>, vector<7x7xf32> -> vector<7x7xf32>
    %cst_118 = arith.constant dense<0xFF800000> : vector<7xf32>
    %352 = vector.multi_reduction <maximumf>, %351, %cst_118 [1] : vector<7x7xf32> to vector<7xf32>
    %353 = vector.shape_cast %352 : vector<7xf32> to vector<7x1xf32>
    %354 = vector.broadcast %353 : vector<7x1xf32> to vector<7x7xf32>
    %355 = arith.subf %351, %354 : vector<7x7xf32>
    %356 = math.exp %355 : vector<7x7xf32>
    %cst_119 = arith.constant dense<0.000000e+00> : vector<7xf32>
    %357 = vector.multi_reduction <add>, %356, %cst_119 [1] : vector<7x7xf32> to vector<7xf32>
    %358 = vector.shape_cast %357 : vector<7xf32> to vector<7x1xf32>
    %359 = tpu.reciprocal %358 {approx = true} : vector<7x1xf32> -> vector<7x1xf32>
    %360 = vector.broadcast %359 : vector<7x1xf32> to vector<7x7xf32>
    %361 = arith.mulf %356, %360 : vector<7x7xf32>
    %c10 = arith.constant 10 : index
    %c0_120 = arith.constant 0 : index
    %c0_121 = arith.constant 0 : index
    %362 = vector.load %arg7[%c10, %c0_120, %c0_121] : memref<16x7x7xf32, #tpu.memory_space<vmem>>, vector<1x7x7xf32>
    %363 = vector.shape_cast %362 : vector<1x7x7xf32> to vector<7x7xf32>
    %364 = vector.shape_cast %361 : vector<7x7xf32> to vector<1x7x7xf32>
    tpu.vector_store %arg7[%c10, %c0_120, %c0_121], %364 {strides = array<i32>} : memref<16x7x7xf32, #tpu.memory_space<vmem>>, vector<1x7x7xf32>,
    %365 = vector.broadcast %346 : vector<1x32xf32> to vector<7x32xf32>
    %366 = arith.mulf %280, %365 : vector<7x32xf32>
    %cst_122 = arith.constant dense<0.000000e+00> : vector<7x32xf32>
    %367 = tpu.matmul %361, %366, %cst_122 {dimension_numbers = #tpu.dot_dimension_numbers<[1], [0], [0], [1], [0, 0, 1, 1], [], []>} : vector<7x7xf32>, vector<7x32xf32>, vector<7x32xf32> -> vector<7x32xf32>
    %368 = arith.addf %339, %367 : vector<7x32xf32>
    %c12_i32_123 = arith.constant 12 : i32
    %369 = vector.broadcast %c12_i32_123 : i32 to vector<1x32xi32>
    %370 = arith.cmpi sge, %2, %369 : vector<1x32xi32>
    %c16_i32_124 = arith.constant 16 : i32
    %371 = vector.broadcast %c16_i32_124 : i32 to vector<1x32xi32>
    %372 = arith.cmpi slt, %2, %371 : vector<1x32xi32>
    %373 = arith.andi %370, %372 : vector<1x32xi1>
    %374 = arith.extui %373 : vector<1x32xi1> to vector<1x32xi32>
    %375 = arith.sitofp %374 : vector<1x32xi32> to vector<1x32xf32>
    %376 = vector.broadcast %375 : vector<1x32xf32> to vector<7x32xf32>
    %377 = arith.mulf %280, %376 : vector<7x32xf32>
    %cst_125 = arith.constant 5.000000e-01 : f32
    %378 = vector.broadcast %cst_125 : f32 to vector<7x32xf32>
    %379 = arith.mulf %377, %378 : vector<7x32xf32>
    %cst_126 = arith.constant dense<0.000000e+00> : vector<7x7xf32>
    %380 = tpu.matmul %379, %280, %cst_126 {dimension_numbers = #tpu.dot_dimension_numbers<[1], [1], [0], [0], [0, 0, 1, 0], [], []>} : vector<7x32xf32>, vector<7x32xf32>, vector<7x7xf32> -> vector<7x7xf32>
    %cst_127 = arith.constant dense<0xFF800000> : vector<7xf32>
    %381 = vector.multi_reduction <maximumf>, %380, %cst_127 [1] : vector<7x7xf32> to vector<7xf32>
    %382 = vector.shape_cast %381 : vector<7xf32> to vector<7x1xf32>
    %383 = vector.broadcast %382 : vector<7x1xf32> to vector<7x7xf32>
    %384 = arith.subf %380, %383 : vector<7x7xf32>
    %385 = math.exp %384 : vector<7x7xf32>
    %cst_128 = arith.constant dense<0.000000e+00> : vector<7xf32>
    %386 = vector.multi_reduction <add>, %385, %cst_128 [1] : vector<7x7xf32> to vector<7xf32>
    %387 = vector.shape_cast %386 : vector<7xf32> to vector<7x1xf32>
    %388 = tpu.reciprocal %387 {approx = true} : vector<7x1xf32> -> vector<7x1xf32>
    %389 = vector.broadcast %388 : vector<7x1xf32> to vector<7x7xf32>
    %390 = arith.mulf %385, %389 : vector<7x7xf32>
    %c11 = arith.constant 11 : index
    %c0_129 = arith.constant 0 : index
    %c0_130 = arith.constant 0 : index
    %391 = vector.load %arg7[%c11, %c0_129, %c0_130] : memref<16x7x7xf32, #tpu.memory_space<vmem>>, vector<1x7x7xf32>
    %392 = vector.shape_cast %391 : vector<1x7x7xf32> to vector<7x7xf32>
    %393 = vector.shape_cast %390 : vector<7x7xf32> to vector<1x7x7xf32>
    tpu.vector_store %arg7[%c11, %c0_129, %c0_130], %393 {strides = array<i32>} : memref<16x7x7xf32, #tpu.memory_space<vmem>>, vector<1x7x7xf32>,
    %394 = vector.broadcast %375 : vector<1x32xf32> to vector<7x32xf32>
    %395 = arith.mulf %280, %394 : vector<7x32xf32>
    %cst_131 = arith.constant dense<0.000000e+00> : vector<7x32xf32>
    %396 = tpu.matmul %390, %395, %cst_131 {dimension_numbers = #tpu.dot_dimension_numbers<[1], [0], [0], [1], [0, 0, 1, 1], [], []>} : vector<7x7xf32>, vector<7x32xf32>, vector<7x32xf32> -> vector<7x32xf32>
    %397 = arith.addf %368, %396 : vector<7x32xf32>
    %c16_i32_132 = arith.constant 16 : i32
    %398 = vector.broadcast %c16_i32_132 : i32 to vector<1x32xi32>
    %399 = arith.cmpi sge, %2, %398 : vector<1x32xi32>
    %c20_i32_133 = arith.constant 20 : i32
    %400 = vector.broadcast %c20_i32_133 : i32 to vector<1x32xi32>
    %401 = arith.cmpi slt, %2, %400 : vector<1x32xi32>
    %402 = arith.andi %399, %401 : vector<1x32xi1>
    %403 = arith.extui %402 : vector<1x32xi1> to vector<1x32xi32>
    %404 = arith.sitofp %403 : vector<1x32xi32> to vector<1x32xf32>
    %405 = vector.broadcast %404 : vector<1x32xf32> to vector<7x32xf32>
    %406 = arith.mulf %280, %405 : vector<7x32xf32>
    %cst_134 = arith.constant 5.000000e-01 : f32
    %407 = vector.broadcast %cst_134 : f32 to vector<7x32xf32>
    %408 = arith.mulf %406, %407 : vector<7x32xf32>
    %cst_135 = arith.constant dense<0.000000e+00> : vector<7x7xf32>
    %409 = tpu.matmul %408, %280, %cst_135 {dimension_numbers = #tpu.dot_dimension_numbers<[1], [1], [0], [0], [0, 0, 1, 0], [], []>} : vector<7x32xf32>, vector<7x32xf32>, vector<7x7xf32> -> vector<7x7xf32>
    %cst_136 = arith.constant dense<0xFF800000> : vector<7xf32>
    %410 = vector.multi_reduction <maximumf>, %409, %cst_136 [1] : vector<7x7xf32> to vector<7xf32>
    %411 = vector.shape_cast %410 : vector<7xf32> to vector<7x1xf32>
    %412 = vector.broadcast %411 : vector<7x1xf32> to vector<7x7xf32>
    %413 = arith.subf %409, %412 : vector<7x7xf32>
    %414 = math.exp %413 : vector<7x7xf32>
    %cst_137 = arith.constant dense<0.000000e+00> : vector<7xf32>
    %415 = vector.multi_reduction <add>, %414, %cst_137 [1] : vector<7x7xf32> to vector<7xf32>
    %416 = vector.shape_cast %415 : vector<7xf32> to vector<7x1xf32>
    %417 = tpu.reciprocal %416 {approx = true} : vector<7x1xf32> -> vector<7x1xf32>
    %418 = vector.broadcast %417 : vector<7x1xf32> to vector<7x7xf32>
    %419 = arith.mulf %414, %418 : vector<7x7xf32>
    %c12 = arith.constant 12 : index
    %c0_138 = arith.constant 0 : index
    %c0_139 = arith.constant 0 : index
    %420 = vector.load %arg7[%c12, %c0_138, %c0_139] : memref<16x7x7xf32, #tpu.memory_space<vmem>>, vector<1x7x7xf32>
    %421 = vector.shape_cast %420 : vector<1x7x7xf32> to vector<7x7xf32>
    %422 = vector.shape_cast %419 : vector<7x7xf32> to vector<1x7x7xf32>
    tpu.vector_store %arg7[%c12, %c0_138, %c0_139], %422 {strides = array<i32>} : memref<16x7x7xf32, #tpu.memory_space<vmem>>, vector<1x7x7xf32>,
    %423 = vector.broadcast %404 : vector<1x32xf32> to vector<7x32xf32>
    %424 = arith.mulf %280, %423 : vector<7x32xf32>
    %cst_140 = arith.constant dense<0.000000e+00> : vector<7x32xf32>
    %425 = tpu.matmul %419, %424, %cst_140 {dimension_numbers = #tpu.dot_dimension_numbers<[1], [0], [0], [1], [0, 0, 1, 1], [], []>} : vector<7x7xf32>, vector<7x32xf32>, vector<7x32xf32> -> vector<7x32xf32>
    %426 = arith.addf %397, %425 : vector<7x32xf32>
    %c20_i32_141 = arith.constant 20 : i32
    %427 = vector.broadcast %c20_i32_141 : i32 to vector<1x32xi32>
    %428 = arith.cmpi sge, %2, %427 : vector<1x32xi32>
    %c24_i32_142 = arith.constant 24 : i32
    %429 = vector.broadcast %c24_i32_142 : i32 to vector<1x32xi32>
    %430 = arith.cmpi slt, %2, %429 : vector<1x32xi32>
    %431 = arith.andi %428, %430 : vector<1x32xi1>
    %432 = arith.extui %431 : vector<1x32xi1> to vector<1x32xi32>
    %433 = arith.sitofp %432 : vector<1x32xi32> to vector<1x32xf32>
    %434 = vector.broadcast %433 : vector<1x32xf32> to vector<7x32xf32>
    %435 = arith.mulf %280, %434 : vector<7x32xf32>
    %cst_143 = arith.constant 5.000000e-01 : f32
    %436 = vector.broadcast %cst_143 : f32 to vector<7x32xf32>
    %437 = arith.mulf %435, %436 : vector<7x32xf32>
    %cst_144 = arith.constant dense<0.000000e+00> : vector<7x7xf32>
    %438 = tpu.matmul %437, %280, %cst_144 {dimension_numbers = #tpu.dot_dimension_numbers<[1], [1], [0], [0], [0, 0, 1, 0], [], []>} : vector<7x32xf32>, vector<7x32xf32>, vector<7x7xf32> -> vector<7x7xf32>
    %cst_145 = arith.constant dense<0xFF800000> : vector<7xf32>
    %439 = vector.multi_reduction <maximumf>, %438, %cst_145 [1] : vector<7x7xf32> to vector<7xf32>
    %440 = vector.shape_cast %439 : vector<7xf32> to vector<7x1xf32>
    %441 = vector.broadcast %440 : vector<7x1xf32> to vector<7x7xf32>
    %442 = arith.subf %438, %441 : vector<7x7xf32>
    %443 = math.exp %442 : vector<7x7xf32>
    %cst_146 = arith.constant dense<0.000000e+00> : vector<7xf32>
    %444 = vector.multi_reduction <add>, %443, %cst_146 [1] : vector<7x7xf32> to vector<7xf32>
    %445 = vector.shape_cast %444 : vector<7xf32> to vector<7x1xf32>
    %446 = tpu.reciprocal %445 {approx = true} : vector<7x1xf32> -> vector<7x1xf32>
    %447 = vector.broadcast %446 : vector<7x1xf32> to vector<7x7xf32>
    %448 = arith.mulf %443, %447 : vector<7x7xf32>
    %c13 = arith.constant 13 : index
    %c0_147 = arith.constant 0 : index
    %c0_148 = arith.constant 0 : index
    %449 = vector.load %arg7[%c13, %c0_147, %c0_148] : memref<16x7x7xf32, #tpu.memory_space<vmem>>, vector<1x7x7xf32>
    %450 = vector.shape_cast %449 : vector<1x7x7xf32> to vector<7x7xf32>
    %451 = vector.shape_cast %448 : vector<7x7xf32> to vector<1x7x7xf32>
    tpu.vector_store %arg7[%c13, %c0_147, %c0_148], %451 {strides = array<i32>} : memref<16x7x7xf32, #tpu.memory_space<vmem>>, vector<1x7x7xf32>,
    %452 = vector.broadcast %433 : vector<1x32xf32> to vector<7x32xf32>
    %453 = arith.mulf %280, %452 : vector<7x32xf32>
    %cst_149 = arith.constant dense<0.000000e+00> : vector<7x32xf32>
    %454 = tpu.matmul %448, %453, %cst_149 {dimension_numbers = #tpu.dot_dimension_numbers<[1], [0], [0], [1], [0, 0, 1, 1], [], []>} : vector<7x7xf32>, vector<7x32xf32>, vector<7x32xf32> -> vector<7x32xf32>
    %455 = arith.addf %426, %454 : vector<7x32xf32>
    %c24_i32_150 = arith.constant 24 : i32
    %456 = vector.broadcast %c24_i32_150 : i32 to vector<1x32xi32>
    %457 = arith.cmpi sge, %2, %456 : vector<1x32xi32>
    %c28_i32_151 = arith.constant 28 : i32
    %458 = vector.broadcast %c28_i32_151 : i32 to vector<1x32xi32>
    %459 = arith.cmpi slt, %2, %458 : vector<1x32xi32>
    %460 = arith.andi %457, %459 : vector<1x32xi1>
    %461 = arith.extui %460 : vector<1x32xi1> to vector<1x32xi32>
    %462 = arith.sitofp %461 : vector<1x32xi32> to vector<1x32xf32>
    %463 = vector.broadcast %462 : vector<1x32xf32> to vector<7x32xf32>
    %464 = arith.mulf %280, %463 : vector<7x32xf32>
    %cst_152 = arith.constant 5.000000e-01 : f32
    %465 = vector.broadcast %cst_152 : f32 to vector<7x32xf32>
    %466 = arith.mulf %464, %465 : vector<7x32xf32>
    %cst_153 = arith.constant dense<0.000000e+00> : vector<7x7xf32>
    %467 = tpu.matmul %466, %280, %cst_153 {dimension_numbers = #tpu.dot_dimension_numbers<[1], [1], [0], [0], [0, 0, 1, 0], [], []>} : vector<7x32xf32>, vector<7x32xf32>, vector<7x7xf32> -> vector<7x7xf32>
    %cst_154 = arith.constant dense<0xFF800000> : vector<7xf32>
    %468 = vector.multi_reduction <maximumf>, %467, %cst_154 [1] : vector<7x7xf32> to vector<7xf32>
    %469 = vector.shape_cast %468 : vector<7xf32> to vector<7x1xf32>
    %470 = vector.broadcast %469 : vector<7x1xf32> to vector<7x7xf32>
    %471 = arith.subf %467, %470 : vector<7x7xf32>
    %472 = math.exp %471 : vector<7x7xf32>
    %cst_155 = arith.constant dense<0.000000e+00> : vector<7xf32>
    %473 = vector.multi_reduction <add>, %472, %cst_155 [1] : vector<7x7xf32> to vector<7xf32>
    %474 = vector.shape_cast %473 : vector<7xf32> to vector<7x1xf32>
    %475 = tpu.reciprocal %474 {approx = true} : vector<7x1xf32> -> vector<7x1xf32>
    %476 = vector.broadcast %475 : vector<7x1xf32> to vector<7x7xf32>
    %477 = arith.mulf %472, %476 : vector<7x7xf32>
    %c14 = arith.constant 14 : index
    %c0_156 = arith.constant 0 : index
    %c0_157 = arith.constant 0 : index
    %478 = vector.load %arg7[%c14, %c0_156, %c0_157] : memref<16x7x7xf32, #tpu.memory_space<vmem>>, vector<1x7x7xf32>
    %479 = vector.shape_cast %478 : vector<1x7x7xf32> to vector<7x7xf32>
    %480 = vector.shape_cast %477 : vector<7x7xf32> to vector<1x7x7xf32>
    tpu.vector_store %arg7[%c14, %c0_156, %c0_157], %480 {strides = array<i32>} : memref<16x7x7xf32, #tpu.memory_space<vmem>>, vector<1x7x7xf32>,
    %481 = vector.broadcast %462 : vector<1x32xf32> to vector<7x32xf32>
    %482 = arith.mulf %280, %481 : vector<7x32xf32>
    %cst_158 = arith.constant dense<0.000000e+00> : vector<7x32xf32>
    %483 = tpu.matmul %477, %482, %cst_158 {dimension_numbers = #tpu.dot_dimension_numbers<[1], [0], [0], [1], [0, 0, 1, 1], [], []>} : vector<7x7xf32>, vector<7x32xf32>, vector<7x32xf32> -> vector<7x32xf32>
    %484 = arith.addf %455, %483 : vector<7x32xf32>
    %c28_i32_159 = arith.constant 28 : i32
    %485 = vector.broadcast %c28_i32_159 : i32 to vector<1x32xi32>
    %486 = arith.cmpi sge, %2, %485 : vector<1x32xi32>
    %c32_i32_160 = arith.constant 32 : i32
    %487 = vector.broadcast %c32_i32_160 : i32 to vector<1x32xi32>
    %488 = arith.cmpi slt, %2, %487 : vector<1x32xi32>
    %489 = arith.andi %486, %488 : vector<1x32xi1>
    %490 = arith.extui %489 : vector<1x32xi1> to vector<1x32xi32>
    %491 = arith.sitofp %490 : vector<1x32xi32> to vector<1x32xf32>
    %492 = vector.broadcast %491 : vector<1x32xf32> to vector<7x32xf32>
    %493 = arith.mulf %280, %492 : vector<7x32xf32>
    %cst_161 = arith.constant 5.000000e-01 : f32
    %494 = vector.broadcast %cst_161 : f32 to vector<7x32xf32>
    %495 = arith.mulf %493, %494 : vector<7x32xf32>
    %cst_162 = arith.constant dense<0.000000e+00> : vector<7x7xf32>
    %496 = tpu.matmul %495, %280, %cst_162 {dimension_numbers = #tpu.dot_dimension_numbers<[1], [1], [0], [0], [0, 0, 1, 0], [], []>} : vector<7x32xf32>, vector<7x32xf32>, vector<7x7xf32> -> vector<7x7xf32>
    %cst_163 = arith.constant dense<0xFF800000> : vector<7xf32>
    %497 = vector.multi_reduction <maximumf>, %496, %cst_163 [1] : vector<7x7xf32> to vector<7xf32>
    %498 = vector.shape_cast %497 : vector<7xf32> to vector<7x1xf32>
    %499 = vector.broadcast %498 : vector<7x1xf32> to vector<7x7xf32>
    %500 = arith.subf %496, %499 : vector<7x7xf32>
    %501 = math.exp %500 : vector<7x7xf32>
    %cst_164 = arith.constant dense<0.000000e+00> : vector<7xf32>
    %502 = vector.multi_reduction <add>, %501, %cst_164 [1] : vector<7x7xf32> to vector<7xf32>
    %503 = vector.shape_cast %502 : vector<7xf32> to vector<7x1xf32>
    %504 = tpu.reciprocal %503 {approx = true} : vector<7x1xf32> -> vector<7x1xf32>
    %505 = vector.broadcast %504 : vector<7x1xf32> to vector<7x7xf32>
    %506 = arith.mulf %501, %505 : vector<7x7xf32>
    %c15 = arith.constant 15 : index
    %c0_165 = arith.constant 0 : index
    %c0_166 = arith.constant 0 : index
    %507 = vector.load %arg7[%c15, %c0_165, %c0_166] : memref<16x7x7xf32, #tpu.memory_space<vmem>>, vector<1x7x7xf32>
    %508 = vector.shape_cast %507 : vector<1x7x7xf32> to vector<7x7xf32>
    %509 = vector.shape_cast %506 : vector<7x7xf32> to vector<1x7x7xf32>
    tpu.vector_store %arg7[%c15, %c0_165, %c0_166], %509 {strides = array<i32>} : memref<16x7x7xf32, #tpu.memory_space<vmem>>, vector<1x7x7xf32>,
    %510 = vector.broadcast %491 : vector<1x32xf32> to vector<7x32xf32>
    %511 = arith.mulf %280, %510 : vector<7x32xf32>
    %cst_167 = arith.constant dense<0.000000e+00> : vector<7x32xf32>
    %512 = tpu.matmul %506, %511, %cst_167 {dimension_numbers = #tpu.dot_dimension_numbers<[1], [0], [0], [1], [0, 0, 1, 1], [], []>} : vector<7x7xf32>, vector<7x32xf32>, vector<7x32xf32> -> vector<7x32xf32>
    %513 = arith.addf %484, %512 : vector<7x32xf32>
    %cst_168 = arith.constant 1.000000e-01 : f32
    %514 = vector.broadcast %cst_168 : f32 to vector<7x32xf32>
    %515 = arith.mulf %514, %513 : vector<7x32xf32>
    %516 = arith.addf %280, %515 : vector<7x32xf32>
    %cst_169 = arith.constant dense<0.000000e+00> : vector<7xf32>
    %517 = vector.multi_reduction <add>, %516, %cst_169 [1] : vector<7x32xf32> to vector<7xf32>
    %518 = vector.shape_cast %517 : vector<7xf32> to vector<7x1xf32>
    %cst_170 = arith.constant 3.200000e+01 : f32
    %519 = vector.broadcast %cst_170 : f32 to vector<7x1xf32>
    %520 = arith.divf %518, %519 : vector<7x1xf32>
    %521 = vector.broadcast %520 : vector<7x1xf32> to vector<7x32xf32>
    %522 = arith.subf %516, %521 : vector<7x32xf32>
    %523 = arith.mulf %522, %522 : vector<7x32xf32>
    %cst_171 = arith.constant dense<0.000000e+00> : vector<7xf32>
    %524 = vector.multi_reduction <add>, %523, %cst_171 [1] : vector<7x32xf32> to vector<7xf32>
    %525 = vector.shape_cast %524 : vector<7xf32> to vector<7x1xf32>
    %cst_172 = arith.constant 3.200000e+01 : f32
    %526 = vector.broadcast %cst_172 : f32 to vector<7x1xf32>
    %527 = arith.divf %525, %526 : vector<7x1xf32>
    %528 = vector.broadcast %520 : vector<7x1xf32> to vector<7x32xf32>
    %529 = arith.subf %516, %528 : vector<7x32xf32>
    %cst_173 = arith.constant 9.99999974E-6 : f32
    %530 = vector.broadcast %cst_173 : f32 to vector<7x1xf32>
    %531 = arith.addf %527, %530 : vector<7x1xf32>
    %532 = math.rsqrt %531 : vector<7x1xf32>
    %533 = vector.broadcast %532 : vector<7x1xf32> to vector<7x32xf32>
    %534 = arith.mulf %529, %533 : vector<7x32xf32>
    %535 = vector.broadcast %0 : vector<1x32xf32> to vector<7x32xf32>
    %536 = arith.mulf %534, %535 : vector<7x32xf32>
    %537 = vector.broadcast %1 : vector<1x32xf32> to vector<7x32xf32>
    %538 = arith.addf %536, %537 : vector<7x32xf32>
    %c0_174 = arith.constant 0 : index
    %c0_175 = arith.constant 0 : index
    %539 = vector.load %arg1[%c0_174, %c0_175] : memref<32x32xf32, #tpu.memory_space<vmem>>, vector<32x32xf32>
    %cst_176 = arith.constant dense<0.000000e+00> : vector<7x32xf32>
    %540 = tpu.matmul %538, %539, %cst_176 {dimension_numbers = #tpu.dot_dimension_numbers<[1], [0], [0], [1], [0, 0, 1, 1], [], []>} : vector<7x32xf32>, vector<32x32xf32>, vector<7x32xf32> -> vector<7x32xf32>
    %c0_177 = arith.constant 0 : index
    %c0_178 = arith.constant 0 : index
    %541 = vector.load %arg2[%c0_177, %c0_178] : memref<1x32xf32, #tpu.memory_space<vmem>>, vector<1x32xf32>
    %542 = vector.broadcast %541 : vector<1x32xf32> to vector<7x32xf32>
    %543 = arith.addf %540, %542 : vector<7x32xf32>
    %c1_179 = arith.constant 1 : index
    %c0_180 = arith.constant 0 : index
    %c0_181 = arith.constant 0 : index
    %544 = vector.load %arg8[%c1_179, %c0_180, %c0_181] : memref<2x7x32xf32, #tpu.memory_space<vmem>>, vector<1x7x32xf32>
    %545 = vector.shape_cast %544 : vector<1x7x32xf32> to vector<7x32xf32>
    %546 = vector.shape_cast %543 : vector<7x32xf32> to vector<1x7x32xf32>
    tpu.vector_store %arg8[%c1_179, %c0_180, %c0_181], %546 {strides = array<i32>} : memref<2x7x32xf32, #tpu.memory_space<vmem>>, vector<1x7x32xf32>,
    %c0_182 = arith.constant 0 : index
    %c0_183 = arith.constant 0 : index
    %547 = vector.load %arg3[%c0_182, %c0_183] : memref<32x32xf32, #tpu.memory_space<vmem>>, vector<32x32xf32>
    %cst_184 = arith.constant dense<0.000000e+00> : vector<7x32xf32>
    %548 = tpu.matmul %538, %547, %cst_184 {dimension_numbers = #tpu.dot_dimension_numbers<[1], [0], [0], [1], [0, 0, 1, 1], [], []>} : vector<7x32xf32>, vector<32x32xf32>, vector<7x32xf32> -> vector<7x32xf32>
    %c0_185 = arith.constant 0 : index
    %c0_186 = arith.constant 0 : index
    %549 = vector.load %arg4[%c0_185, %c0_186] : memref<1x32xf32, #tpu.memory_space<vmem>>, vector<1x32xf32>
    %550 = vector.broadcast %549 : vector<1x32xf32> to vector<7x32xf32>
    %551 = arith.addf %548, %550 : vector<7x32xf32>
    %c1_187 = arith.constant 1 : index
    %c0_188 = arith.constant 0 : index
    %c0_189 = arith.constant 0 : index
    %552 = vector.load %arg9[%c1_187, %c0_188, %c0_189] : memref<2x7x32xf32, #tpu.memory_space<vmem>>, vector<1x7x32xf32>
    %553 = vector.shape_cast %552 : vector<1x7x32xf32> to vector<7x32xf32>
    %554 = vector.shape_cast %551 : vector<7x32xf32> to vector<1x7x32xf32>
    tpu.vector_store %arg9[%c1_187, %c0_188, %c0_189], %554 {strides = array<i32>} : memref<2x7x32xf32, #tpu.memory_space<vmem>>, vector<1x7x32xf32>,
    return
  }
}

module attributes {stable_mosaic.version = 11 : i64} {
  func.func @_mha_scores_kernel(%arg0: memref<2x32xf32, #tpu.memory_space<vmem>>, %arg1: memref<2x7x32xf32, #tpu.memory_space<vmem>>, %arg2: memref<32x32xf32, #tpu.memory_space<vmem>>, %arg3: memref<1x32xf32, #tpu.memory_space<vmem>>, %arg4: memref<32x32xf32, #tpu.memory_space<vmem>>, %arg5: memref<1x32xf32, #tpu.memory_space<vmem>>, %arg6: memref<2x7xf32, #tpu.memory_space<vmem>>, %arg7: memref<2x1xf32, #tpu.memory_space<vmem>>, %arg8: memref<2x1xf32, #tpu.memory_space<vmem>>) attributes {dimension_semantics = [], scalar_prefetch = 0 : i64, scratch_operands = 0 : i64, tpu.core_type = #tpu.core_type<tc>} {
    %c0 = arith.constant 0 : index
    %c0_0 = arith.constant 0 : index
    %0 = vector.load %arg0[%c0, %c0_0] : memref<2x32xf32, #tpu.memory_space<vmem>>, vector<2x32xf32>
    %c0_1 = arith.constant 0 : index
    %c0_2 = arith.constant 0 : index
    %1 = vector.load %arg2[%c0_1, %c0_2] : memref<32x32xf32, #tpu.memory_space<vmem>>, vector<32x32xf32>
    %cst = arith.constant dense<0.000000e+00> : vector<2x32xf32>
    %2 = tpu.matmul %0, %1, %cst {dimension_numbers = #tpu.dot_dimension_numbers<[1], [0], [0], [1], [0, 0, 1, 1], [], []>} : vector<2x32xf32>, vector<32x32xf32>, vector<2x32xf32> -> vector<2x32xf32>
    %c0_3 = arith.constant 0 : index
    %c0_4 = arith.constant 0 : index
    %3 = vector.load %arg3[%c0_3, %c0_4] : memref<1x32xf32, #tpu.memory_space<vmem>>, vector<1x32xf32>
    %4 = vector.broadcast %3 : vector<1x32xf32> to vector<2x32xf32>
    %5 = arith.addf %2, %4 : vector<2x32xf32>
    %c0_5 = arith.constant 0 : index
    %c0_6 = arith.constant 0 : index
    %6 = vector.load %arg4[%c0_5, %c0_6] : memref<32x32xf32, #tpu.memory_space<vmem>>, vector<32x32xf32>
    %cst_7 = arith.constant dense<0.000000e+00> : vector<2x32xf32>
    %7 = tpu.matmul %0, %6, %cst_7 {dimension_numbers = #tpu.dot_dimension_numbers<[1], [0], [0], [1], [0, 0, 1, 1], [], []>} : vector<2x32xf32>, vector<32x32xf32>, vector<2x32xf32> -> vector<2x32xf32>
    %c0_8 = arith.constant 0 : index
    %c0_9 = arith.constant 0 : index
    %8 = vector.load %arg5[%c0_8, %c0_9] : memref<1x32xf32, #tpu.memory_space<vmem>>, vector<1x32xf32>
    %9 = vector.broadcast %8 : vector<1x32xf32> to vector<2x32xf32>
    %10 = arith.addf %7, %9 : vector<2x32xf32>
    %11 = tpu.iota {dimensions = array<i32: 1>} : vector<1x32xi32>
    %12 = tpu.iota {dimensions = array<i32: 0>} : vector<2x1xi32>
    %cst_10 = arith.constant 0.000000e+00 : f32
    %13 = vector.broadcast %cst_10 : f32 to vector<2x7xf32>
    %cst_11 = arith.constant 0.000000e+00 : f32
    %14 = vector.broadcast %cst_11 : f32 to vector<2x1xf32>
    %cst_12 = arith.constant 0.000000e+00 : f32
    %15 = vector.broadcast %cst_12 : f32 to vector<2x1xf32>
    %16 = vector.extract_strided_slice %5 {offsets = [0, 0], sizes = [1, 32], strides = [1, 1]} : vector<2x32xf32> to vector<1x32xf32>
    %cst_13 = arith.constant 5.000000e-01 : f32
    %17 = vector.broadcast %cst_13 : f32 to vector<1x32xf32>
    %18 = arith.mulf %16, %17 : vector<1x32xf32>
    %19 = vector.extract_strided_slice %10 {offsets = [0, 0], sizes = [1, 32], strides = [1, 1]} : vector<2x32xf32> to vector<1x32xf32>
    %c0_14 = arith.constant 0 : index
    %c0_15 = arith.constant 0 : index
    %c0_16 = arith.constant 0 : index
    %20 = vector.load %arg1[%c0_14, %c0_15, %c0_16] : memref<2x7x32xf32, #tpu.memory_space<vmem>>, vector<1x7x32xf32>
    %21 = vector.shape_cast %20 : vector<1x7x32xf32> to vector<7x32xf32>
    %cst_17 = arith.constant 0.000000e+00 : f32
    %22 = vector.broadcast %cst_17 : f32 to vector<1x7xf32>
    %cst_18 = arith.constant 0.000000e+00 : f32
    %23 = vector.broadcast %cst_18 : f32 to vector<1x1xf32>
    %cst_19 = arith.constant 0.000000e+00 : f32
    %24 = vector.broadcast %cst_19 : f32 to vector<1x7xf32>
    %cst_20 = arith.constant 0.000000e+00 : f32
    %25 = vector.broadcast %cst_20 : f32 to vector<1x1xf32>
    %c0_i32 = arith.constant 0 : i32
    %26 = vector.broadcast %c0_i32 : i32 to vector<1x32xi32>
    %27 = arith.cmpi sge, %11, %26 : vector<1x32xi32>
    %c4_i32 = arith.constant 4 : i32
    %28 = vector.broadcast %c4_i32 : i32 to vector<1x32xi32>
    %29 = arith.cmpi slt, %11, %28 : vector<1x32xi32>
    %30 = arith.andi %27, %29 : vector<1x32xi1>
    %31 = arith.extui %30 : vector<1x32xi1> to vector<1x32xi32>
    %32 = arith.sitofp %31 : vector<1x32xi32> to vector<1x32xf32>
    %33 = arith.mulf %18, %32 : vector<1x32xf32>
    %cst_21 = arith.constant dense<0.000000e+00> : vector<1x7xf32>
    %34 = tpu.matmul %33, %21, %cst_21 {dimension_numbers = #tpu.dot_dimension_numbers<[1], [1], [0], [0], [0, 0, 1, 0], [], []>} : vector<1x32xf32>, vector<7x32xf32>, vector<1x7xf32> -> vector<1x7xf32>
    %35 = arith.mulf %33, %19 : vector<1x32xf32>
    %cst_22 = arith.constant dense<0.000000e+00> : vector<1xf32>
    %36 = vector.multi_reduction <add>, %35, %cst_22 [1] : vector<1x32xf32> to vector<1xf32>
    %37 = vector.shape_cast %36 : vector<1xf32> to vector<1x1xf32>
    %cst_23 = arith.constant dense<0xFF800000> : vector<1xf32>
    %38 = vector.multi_reduction <maximumf>, %34, %cst_23 [1] : vector<1x7xf32> to vector<1xf32>
    %39 = vector.shape_cast %38 : vector<1xf32> to vector<1x1xf32>
    %40 = arith.maximumf %39, %37 : vector<1x1xf32>
    %41 = vector.broadcast %40 : vector<1x1xf32> to vector<1x7xf32>
    %42 = arith.subf %34, %41 : vector<1x7xf32>
    %43 = math.exp %42 : vector<1x7xf32>
    %44 = arith.subf %37, %40 : vector<1x1xf32>
    %45 = math.exp %44 : vector<1x1xf32>
    %cst_24 = arith.constant dense<0.000000e+00> : vector<1xf32>
    %46 = vector.multi_reduction <add>, %43, %cst_24 [1] : vector<1x7xf32> to vector<1xf32>
    %47 = vector.shape_cast %46 : vector<1xf32> to vector<1x1xf32>
    %48 = arith.addf %47, %45 : vector<1x1xf32>
    %49 = tpu.reciprocal %48 {approx = true} : vector<1x1xf32> -> vector<1x1xf32>
    %50 = vector.broadcast %49 : vector<1x1xf32> to vector<1x7xf32>
    %51 = arith.mulf %43, %50 : vector<1x7xf32>
    %52 = arith.addf %24, %51 : vector<1x7xf32>
    %53 = arith.mulf %45, %49 : vector<1x1xf32>
    %54 = arith.addf %25, %53 : vector<1x1xf32>
    %55 = arith.addf %22, %34 : vector<1x7xf32>
    %56 = arith.addf %23, %37 : vector<1x1xf32>
    %c4_i32_25 = arith.constant 4 : i32
    %57 = vector.broadcast %c4_i32_25 : i32 to vector<1x32xi32>
    %58 = arith.cmpi sge, %11, %57 : vector<1x32xi32>
    %c8_i32 = arith.constant 8 : i32
    %59 = vector.broadcast %c8_i32 : i32 to vector<1x32xi32>
    %60 = arith.cmpi slt, %11, %59 : vector<1x32xi32>
    %61 = arith.andi %58, %60 : vector<1x32xi1>
    %62 = arith.extui %61 : vector<1x32xi1> to vector<1x32xi32>
    %63 = arith.sitofp %62 : vector<1x32xi32> to vector<1x32xf32>
    %64 = arith.mulf %18, %63 : vector<1x32xf32>
    %cst_26 = arith.constant dense<0.000000e+00> : vector<1x7xf32>
    %65 = tpu.matmul %64, %21, %cst_26 {dimension_numbers = #tpu.dot_dimension_numbers<[1], [1], [0], [0], [0, 0, 1, 0], [], []>} : vector<1x32xf32>, vector<7x32xf32>, vector<1x7xf32> -> vector<1x7xf32>
    %66 = arith.mulf %64, %19 : vector<1x32xf32>
    %cst_27 = arith.constant dense<0.000000e+00> : vector<1xf32>
    %67 = vector.multi_reduction <add>, %66, %cst_27 [1] : vector<1x32xf32> to vector<1xf32>
    %68 = vector.shape_cast %67 : vector<1xf32> to vector<1x1xf32>
    %cst_28 = arith.constant dense<0xFF800000> : vector<1xf32>
    %69 = vector.multi_reduction <maximumf>, %65, %cst_28 [1] : vector<1x7xf32> to vector<1xf32>
    %70 = vector.shape_cast %69 : vector<1xf32> to vector<1x1xf32>
    %71 = arith.maximumf %70, %68 : vector<1x1xf32>
    %72 = vector.broadcast %71 : vector<1x1xf32> to vector<1x7xf32>
    %73 = arith.subf %65, %72 : vector<1x7xf32>
    %74 = math.exp %73 : vector<1x7xf32>
    %75 = arith.subf %68, %71 : vector<1x1xf32>
    %76 = math.exp %75 : vector<1x1xf32>
    %cst_29 = arith.constant dense<0.000000e+00> : vector<1xf32>
    %77 = vector.multi_reduction <add>, %74, %cst_29 [1] : vector<1x7xf32> to vector<1xf32>
    %78 = vector.shape_cast %77 : vector<1xf32> to vector<1x1xf32>
    %79 = arith.addf %78, %76 : vector<1x1xf32>
    %80 = tpu.reciprocal %79 {approx = true} : vector<1x1xf32> -> vector<1x1xf32>
    %81 = vector.broadcast %80 : vector<1x1xf32> to vector<1x7xf32>
    %82 = arith.mulf %74, %81 : vector<1x7xf32>
    %83 = arith.addf %52, %82 : vector<1x7xf32>
    %84 = arith.mulf %76, %80 : vector<1x1xf32>
    %85 = arith.addf %54, %84 : vector<1x1xf32>
    %86 = arith.addf %55, %65 : vector<1x7xf32>
    %87 = arith.addf %56, %68 : vector<1x1xf32>
    %c8_i32_30 = arith.constant 8 : i32
    %88 = vector.broadcast %c8_i32_30 : i32 to vector<1x32xi32>
    %89 = arith.cmpi sge, %11, %88 : vector<1x32xi32>
    %c12_i32 = arith.constant 12 : i32
    %90 = vector.broadcast %c12_i32 : i32 to vector<1x32xi32>
    %91 = arith.cmpi slt, %11, %90 : vector<1x32xi32>
    %92 = arith.andi %89, %91 : vector<1x32xi1>
    %93 = arith.extui %92 : vector<1x32xi1> to vector<1x32xi32>
    %94 = arith.sitofp %93 : vector<1x32xi32> to vector<1x32xf32>
    %95 = arith.mulf %18, %94 : vector<1x32xf32>
    %cst_31 = arith.constant dense<0.000000e+00> : vector<1x7xf32>
    %96 = tpu.matmul %95, %21, %cst_31 {dimension_numbers = #tpu.dot_dimension_numbers<[1], [1], [0], [0], [0, 0, 1, 0], [], []>} : vector<1x32xf32>, vector<7x32xf32>, vector<1x7xf32> -> vector<1x7xf32>
    %97 = arith.mulf %95, %19 : vector<1x32xf32>
    %cst_32 = arith.constant dense<0.000000e+00> : vector<1xf32>
    %98 = vector.multi_reduction <add>, %97, %cst_32 [1] : vector<1x32xf32> to vector<1xf32>
    %99 = vector.shape_cast %98 : vector<1xf32> to vector<1x1xf32>
    %cst_33 = arith.constant dense<0xFF800000> : vector<1xf32>
    %100 = vector.multi_reduction <maximumf>, %96, %cst_33 [1] : vector<1x7xf32> to vector<1xf32>
    %101 = vector.shape_cast %100 : vector<1xf32> to vector<1x1xf32>
    %102 = arith.maximumf %101, %99 : vector<1x1xf32>
    %103 = vector.broadcast %102 : vector<1x1xf32> to vector<1x7xf32>
    %104 = arith.subf %96, %103 : vector<1x7xf32>
    %105 = math.exp %104 : vector<1x7xf32>
    %106 = arith.subf %99, %102 : vector<1x1xf32>
    %107 = math.exp %106 : vector<1x1xf32>
    %cst_34 = arith.constant dense<0.000000e+00> : vector<1xf32>
    %108 = vector.multi_reduction <add>, %105, %cst_34 [1] : vector<1x7xf32> to vector<1xf32>
    %109 = vector.shape_cast %108 : vector<1xf32> to vector<1x1xf32>
    %110 = arith.addf %109, %107 : vector<1x1xf32>
    %111 = tpu.reciprocal %110 {approx = true} : vector<1x1xf32> -> vector<1x1xf32>
    %112 = vector.broadcast %111 : vector<1x1xf32> to vector<1x7xf32>
    %113 = arith.mulf %105, %112 : vector<1x7xf32>
    %114 = arith.addf %83, %113 : vector<1x7xf32>
    %115 = arith.mulf %107, %111 : vector<1x1xf32>
    %116 = arith.addf %85, %115 : vector<1x1xf32>
    %117 = arith.addf %86, %96 : vector<1x7xf32>
    %118 = arith.addf %87, %99 : vector<1x1xf32>
    %c12_i32_35 = arith.constant 12 : i32
    %119 = vector.broadcast %c12_i32_35 : i32 to vector<1x32xi32>
    %120 = arith.cmpi sge, %11, %119 : vector<1x32xi32>
    %c16_i32 = arith.constant 16 : i32
    %121 = vector.broadcast %c16_i32 : i32 to vector<1x32xi32>
    %122 = arith.cmpi slt, %11, %121 : vector<1x32xi32>
    %123 = arith.andi %120, %122 : vector<1x32xi1>
    %124 = arith.extui %123 : vector<1x32xi1> to vector<1x32xi32>
    %125 = arith.sitofp %124 : vector<1x32xi32> to vector<1x32xf32>
    %126 = arith.mulf %18, %125 : vector<1x32xf32>
    %cst_36 = arith.constant dense<0.000000e+00> : vector<1x7xf32>
    %127 = tpu.matmul %126, %21, %cst_36 {dimension_numbers = #tpu.dot_dimension_numbers<[1], [1], [0], [0], [0, 0, 1, 0], [], []>} : vector<1x32xf32>, vector<7x32xf32>, vector<1x7xf32> -> vector<1x7xf32>
    %128 = arith.mulf %126, %19 : vector<1x32xf32>
    %cst_37 = arith.constant dense<0.000000e+00> : vector<1xf32>
    %129 = vector.multi_reduction <add>, %128, %cst_37 [1] : vector<1x32xf32> to vector<1xf32>
    %130 = vector.shape_cast %129 : vector<1xf32> to vector<1x1xf32>
    %cst_38 = arith.constant dense<0xFF800000> : vector<1xf32>
    %131 = vector.multi_reduction <maximumf>, %127, %cst_38 [1] : vector<1x7xf32> to vector<1xf32>
    %132 = vector.shape_cast %131 : vector<1xf32> to vector<1x1xf32>
    %133 = arith.maximumf %132, %130 : vector<1x1xf32>
    %134 = vector.broadcast %133 : vector<1x1xf32> to vector<1x7xf32>
    %135 = arith.subf %127, %134 : vector<1x7xf32>
    %136 = math.exp %135 : vector<1x7xf32>
    %137 = arith.subf %130, %133 : vector<1x1xf32>
    %138 = math.exp %137 : vector<1x1xf32>
    %cst_39 = arith.constant dense<0.000000e+00> : vector<1xf32>
    %139 = vector.multi_reduction <add>, %136, %cst_39 [1] : vector<1x7xf32> to vector<1xf32>
    %140 = vector.shape_cast %139 : vector<1xf32> to vector<1x1xf32>
    %141 = arith.addf %140, %138 : vector<1x1xf32>
    %142 = tpu.reciprocal %141 {approx = true} : vector<1x1xf32> -> vector<1x1xf32>
    %143 = vector.broadcast %142 : vector<1x1xf32> to vector<1x7xf32>
    %144 = arith.mulf %136, %143 : vector<1x7xf32>
    %145 = arith.addf %114, %144 : vector<1x7xf32>
    %146 = arith.mulf %138, %142 : vector<1x1xf32>
    %147 = arith.addf %116, %146 : vector<1x1xf32>
    %148 = arith.addf %117, %127 : vector<1x7xf32>
    %149 = arith.addf %118, %130 : vector<1x1xf32>
    %c16_i32_40 = arith.constant 16 : i32
    %150 = vector.broadcast %c16_i32_40 : i32 to vector<1x32xi32>
    %151 = arith.cmpi sge, %11, %150 : vector<1x32xi32>
    %c20_i32 = arith.constant 20 : i32
    %152 = vector.broadcast %c20_i32 : i32 to vector<1x32xi32>
    %153 = arith.cmpi slt, %11, %152 : vector<1x32xi32>
    %154 = arith.andi %151, %153 : vector<1x32xi1>
    %155 = arith.extui %154 : vector<1x32xi1> to vector<1x32xi32>
    %156 = arith.sitofp %155 : vector<1x32xi32> to vector<1x32xf32>
    %157 = arith.mulf %18, %156 : vector<1x32xf32>
    %cst_41 = arith.constant dense<0.000000e+00> : vector<1x7xf32>
    %158 = tpu.matmul %157, %21, %cst_41 {dimension_numbers = #tpu.dot_dimension_numbers<[1], [1], [0], [0], [0, 0, 1, 0], [], []>} : vector<1x32xf32>, vector<7x32xf32>, vector<1x7xf32> -> vector<1x7xf32>
    %159 = arith.mulf %157, %19 : vector<1x32xf32>
    %cst_42 = arith.constant dense<0.000000e+00> : vector<1xf32>
    %160 = vector.multi_reduction <add>, %159, %cst_42 [1] : vector<1x32xf32> to vector<1xf32>
    %161 = vector.shape_cast %160 : vector<1xf32> to vector<1x1xf32>
    %cst_43 = arith.constant dense<0xFF800000> : vector<1xf32>
    %162 = vector.multi_reduction <maximumf>, %158, %cst_43 [1] : vector<1x7xf32> to vector<1xf32>
    %163 = vector.shape_cast %162 : vector<1xf32> to vector<1x1xf32>
    %164 = arith.maximumf %163, %161 : vector<1x1xf32>
    %165 = vector.broadcast %164 : vector<1x1xf32> to vector<1x7xf32>
    %166 = arith.subf %158, %165 : vector<1x7xf32>
    %167 = math.exp %166 : vector<1x7xf32>
    %168 = arith.subf %161, %164 : vector<1x1xf32>
    %169 = math.exp %168 : vector<1x1xf32>
    %cst_44 = arith.constant dense<0.000000e+00> : vector<1xf32>
    %170 = vector.multi_reduction <add>, %167, %cst_44 [1] : vector<1x7xf32> to vector<1xf32>
    %171 = vector.shape_cast %170 : vector<1xf32> to vector<1x1xf32>
    %172 = arith.addf %171, %169 : vector<1x1xf32>
    %173 = tpu.reciprocal %172 {approx = true} : vector<1x1xf32> -> vector<1x1xf32>
    %174 = vector.broadcast %173 : vector<1x1xf32> to vector<1x7xf32>
    %175 = arith.mulf %167, %174 : vector<1x7xf32>
    %176 = arith.addf %145, %175 : vector<1x7xf32>
    %177 = arith.mulf %169, %173 : vector<1x1xf32>
    %178 = arith.addf %147, %177 : vector<1x1xf32>
    %179 = arith.addf %148, %158 : vector<1x7xf32>
    %180 = arith.addf %149, %161 : vector<1x1xf32>
    %c20_i32_45 = arith.constant 20 : i32
    %181 = vector.broadcast %c20_i32_45 : i32 to vector<1x32xi32>
    %182 = arith.cmpi sge, %11, %181 : vector<1x32xi32>
    %c24_i32 = arith.constant 24 : i32
    %183 = vector.broadcast %c24_i32 : i32 to vector<1x32xi32>
    %184 = arith.cmpi slt, %11, %183 : vector<1x32xi32>
    %185 = arith.andi %182, %184 : vector<1x32xi1>
    %186 = arith.extui %185 : vector<1x32xi1> to vector<1x32xi32>
    %187 = arith.sitofp %186 : vector<1x32xi32> to vector<1x32xf32>
    %188 = arith.mulf %18, %187 : vector<1x32xf32>
    %cst_46 = arith.constant dense<0.000000e+00> : vector<1x7xf32>
    %189 = tpu.matmul %188, %21, %cst_46 {dimension_numbers = #tpu.dot_dimension_numbers<[1], [1], [0], [0], [0, 0, 1, 0], [], []>} : vector<1x32xf32>, vector<7x32xf32>, vector<1x7xf32> -> vector<1x7xf32>
    %190 = arith.mulf %188, %19 : vector<1x32xf32>
    %cst_47 = arith.constant dense<0.000000e+00> : vector<1xf32>
    %191 = vector.multi_reduction <add>, %190, %cst_47 [1] : vector<1x32xf32> to vector<1xf32>
    %192 = vector.shape_cast %191 : vector<1xf32> to vector<1x1xf32>
    %cst_48 = arith.constant dense<0xFF800000> : vector<1xf32>
    %193 = vector.multi_reduction <maximumf>, %189, %cst_48 [1] : vector<1x7xf32> to vector<1xf32>
    %194 = vector.shape_cast %193 : vector<1xf32> to vector<1x1xf32>
    %195 = arith.maximumf %194, %192 : vector<1x1xf32>
    %196 = vector.broadcast %195 : vector<1x1xf32> to vector<1x7xf32>
    %197 = arith.subf %189, %196 : vector<1x7xf32>
    %198 = math.exp %197 : vector<1x7xf32>
    %199 = arith.subf %192, %195 : vector<1x1xf32>
    %200 = math.exp %199 : vector<1x1xf32>
    %cst_49 = arith.constant dense<0.000000e+00> : vector<1xf32>
    %201 = vector.multi_reduction <add>, %198, %cst_49 [1] : vector<1x7xf32> to vector<1xf32>
    %202 = vector.shape_cast %201 : vector<1xf32> to vector<1x1xf32>
    %203 = arith.addf %202, %200 : vector<1x1xf32>
    %204 = tpu.reciprocal %203 {approx = true} : vector<1x1xf32> -> vector<1x1xf32>
    %205 = vector.broadcast %204 : vector<1x1xf32> to vector<1x7xf32>
    %206 = arith.mulf %198, %205 : vector<1x7xf32>
    %207 = arith.addf %176, %206 : vector<1x7xf32>
    %208 = arith.mulf %200, %204 : vector<1x1xf32>
    %209 = arith.addf %178, %208 : vector<1x1xf32>
    %210 = arith.addf %179, %189 : vector<1x7xf32>
    %211 = arith.addf %180, %192 : vector<1x1xf32>
    %c24_i32_50 = arith.constant 24 : i32
    %212 = vector.broadcast %c24_i32_50 : i32 to vector<1x32xi32>
    %213 = arith.cmpi sge, %11, %212 : vector<1x32xi32>
    %c28_i32 = arith.constant 28 : i32
    %214 = vector.broadcast %c28_i32 : i32 to vector<1x32xi32>
    %215 = arith.cmpi slt, %11, %214 : vector<1x32xi32>
    %216 = arith.andi %213, %215 : vector<1x32xi1>
    %217 = arith.extui %216 : vector<1x32xi1> to vector<1x32xi32>
    %218 = arith.sitofp %217 : vector<1x32xi32> to vector<1x32xf32>
    %219 = arith.mulf %18, %218 : vector<1x32xf32>
    %cst_51 = arith.constant dense<0.000000e+00> : vector<1x7xf32>
    %220 = tpu.matmul %219, %21, %cst_51 {dimension_numbers = #tpu.dot_dimension_numbers<[1], [1], [0], [0], [0, 0, 1, 0], [], []>} : vector<1x32xf32>, vector<7x32xf32>, vector<1x7xf32> -> vector<1x7xf32>
    %221 = arith.mulf %219, %19 : vector<1x32xf32>
    %cst_52 = arith.constant dense<0.000000e+00> : vector<1xf32>
    %222 = vector.multi_reduction <add>, %221, %cst_52 [1] : vector<1x32xf32> to vector<1xf32>
    %223 = vector.shape_cast %222 : vector<1xf32> to vector<1x1xf32>
    %cst_53 = arith.constant dense<0xFF800000> : vector<1xf32>
    %224 = vector.multi_reduction <maximumf>, %220, %cst_53 [1] : vector<1x7xf32> to vector<1xf32>
    %225 = vector.shape_cast %224 : vector<1xf32> to vector<1x1xf32>
    %226 = arith.maximumf %225, %223 : vector<1x1xf32>
    %227 = vector.broadcast %226 : vector<1x1xf32> to vector<1x7xf32>
    %228 = arith.subf %220, %227 : vector<1x7xf32>
    %229 = math.exp %228 : vector<1x7xf32>
    %230 = arith.subf %223, %226 : vector<1x1xf32>
    %231 = math.exp %230 : vector<1x1xf32>
    %cst_54 = arith.constant dense<0.000000e+00> : vector<1xf32>
    %232 = vector.multi_reduction <add>, %229, %cst_54 [1] : vector<1x7xf32> to vector<1xf32>
    %233 = vector.shape_cast %232 : vector<1xf32> to vector<1x1xf32>
    %234 = arith.addf %233, %231 : vector<1x1xf32>
    %235 = tpu.reciprocal %234 {approx = true} : vector<1x1xf32> -> vector<1x1xf32>
    %236 = vector.broadcast %235 : vector<1x1xf32> to vector<1x7xf32>
    %237 = arith.mulf %229, %236 : vector<1x7xf32>
    %238 = arith.addf %207, %237 : vector<1x7xf32>
    %239 = arith.mulf %231, %235 : vector<1x1xf32>
    %240 = arith.addf %209, %239 : vector<1x1xf32>
    %241 = arith.addf %210, %220 : vector<1x7xf32>
    %242 = arith.addf %211, %223 : vector<1x1xf32>
    %c28_i32_55 = arith.constant 28 : i32
    %243 = vector.broadcast %c28_i32_55 : i32 to vector<1x32xi32>
    %244 = arith.cmpi sge, %11, %243 : vector<1x32xi32>
    %c32_i32 = arith.constant 32 : i32
    %245 = vector.broadcast %c32_i32 : i32 to vector<1x32xi32>
    %246 = arith.cmpi slt, %11, %245 : vector<1x32xi32>
    %247 = arith.andi %244, %246 : vector<1x32xi1>
    %248 = arith.extui %247 : vector<1x32xi1> to vector<1x32xi32>
    %249 = arith.sitofp %248 : vector<1x32xi32> to vector<1x32xf32>
    %250 = arith.mulf %18, %249 : vector<1x32xf32>
    %cst_56 = arith.constant dense<0.000000e+00> : vector<1x7xf32>
    %251 = tpu.matmul %250, %21, %cst_56 {dimension_numbers = #tpu.dot_dimension_numbers<[1], [1], [0], [0], [0, 0, 1, 0], [], []>} : vector<1x32xf32>, vector<7x32xf32>, vector<1x7xf32> -> vector<1x7xf32>
    %252 = arith.mulf %250, %19 : vector<1x32xf32>
    %cst_57 = arith.constant dense<0.000000e+00> : vector<1xf32>
    %253 = vector.multi_reduction <add>, %252, %cst_57 [1] : vector<1x32xf32> to vector<1xf32>
    %254 = vector.shape_cast %253 : vector<1xf32> to vector<1x1xf32>
    %cst_58 = arith.constant dense<0xFF800000> : vector<1xf32>
    %255 = vector.multi_reduction <maximumf>, %251, %cst_58 [1] : vector<1x7xf32> to vector<1xf32>
    %256 = vector.shape_cast %255 : vector<1xf32> to vector<1x1xf32>
    %257 = arith.maximumf %256, %254 : vector<1x1xf32>
    %258 = vector.broadcast %257 : vector<1x1xf32> to vector<1x7xf32>
    %259 = arith.subf %251, %258 : vector<1x7xf32>
    %260 = math.exp %259 : vector<1x7xf32>
    %261 = arith.subf %254, %257 : vector<1x1xf32>
    %262 = math.exp %261 : vector<1x1xf32>
    %cst_59 = arith.constant dense<0.000000e+00> : vector<1xf32>
    %263 = vector.multi_reduction <add>, %260, %cst_59 [1] : vector<1x7xf32> to vector<1xf32>
    %264 = vector.shape_cast %263 : vector<1xf32> to vector<1x1xf32>
    %265 = arith.addf %264, %262 : vector<1x1xf32>
    %266 = tpu.reciprocal %265 {approx = true} : vector<1x1xf32> -> vector<1x1xf32>
    %267 = vector.broadcast %266 : vector<1x1xf32> to vector<1x7xf32>
    %268 = arith.mulf %260, %267 : vector<1x7xf32>
    %269 = arith.addf %238, %268 : vector<1x7xf32>
    %270 = arith.mulf %262, %266 : vector<1x1xf32>
    %271 = arith.addf %240, %270 : vector<1x1xf32>
    %272 = arith.addf %241, %251 : vector<1x7xf32>
    %273 = arith.addf %242, %254 : vector<1x1xf32>
    %cst_60 = arith.constant 1.250000e-01 : f32
    %274 = vector.broadcast %cst_60 : f32 to vector<1x7xf32>
    %275 = arith.mulf %269, %274 : vector<1x7xf32>
    %cst_61 = arith.constant 1.250000e-01 : f32
    %276 = vector.broadcast %cst_61 : f32 to vector<1x1xf32>
    %277 = arith.mulf %271, %276 : vector<1x1xf32>
    %cst_62 = arith.constant 0.000000e+00 : f32
    %278 = vector.broadcast %cst_62 : f32 to vector<1x7xf32>
    %279 = arith.cmpf ogt, %275, %278 : vector<1x7xf32>
    %cst_63 = arith.constant 1.000000e+00 : f32
    %280 = vector.broadcast %cst_63 : f32 to vector<1x7xf32>
    %281 = arith.select %279, %275, %280 : vector<1x7xi1>, vector<1x7xf32>
    %282 = math.log %281 : vector<1x7xf32>
    %283 = arith.mulf %275, %282 : vector<1x7xf32>
    %cst_64 = arith.constant dense<0.000000e+00> : vector<1xf32>
    %284 = vector.multi_reduction <add>, %283, %cst_64 [1] : vector<1x7xf32> to vector<1xf32>
    %285 = vector.shape_cast %284 : vector<1xf32> to vector<1x1xf32>
    %cst_65 = arith.constant 0.000000e+00 : f32
    %286 = vector.broadcast %cst_65 : f32 to vector<1x1xf32>
    %287 = arith.cmpf ogt, %277, %286 : vector<1x1xf32>
    %cst_66 = arith.constant 1.000000e+00 : f32
    %288 = vector.broadcast %cst_66 : f32 to vector<1x1xf32>
    %289 = arith.select %287, %277, %288 : vector<1x1xi1>, vector<1x1xf32>
    %290 = math.log %289 : vector<1x1xf32>
    %291 = arith.mulf %277, %290 : vector<1x1xf32>
    %292 = arith.addf %285, %291 : vector<1x1xf32>
    %cst_67 = arith.constant 0.000000e+00 : f32
    %293 = vector.broadcast %cst_67 : f32 to vector<1x1xf32>
    %294 = arith.subf %293, %292 : vector<1x1xf32>
    %c0_i32_68 = arith.constant 0 : i32
    %295 = vector.broadcast %c0_i32_68 : i32 to vector<2x1xi32>
    %296 = arith.cmpi eq, %12, %295 : vector<2x1xi32>
    %cst_69 = arith.constant 1.250000e-01 : f32
    %297 = vector.broadcast %cst_69 : f32 to vector<1x7xf32>
    %298 = arith.mulf %272, %297 : vector<1x7xf32>
    %299 = vector.shape_cast %296 : vector<2x1xi1> to vector<2x1xi1>
    %300 = vector.broadcast %299 : vector<2x1xi1> to vector<2x7xi1>
    %301 = vector.shape_cast %298 : vector<1x7xf32> to vector<1x7xf32>
    %302 = vector.broadcast %301 : vector<1x7xf32> to vector<2x7xf32>
    %303 = arith.select %300, %302, %13 : vector<2x7xi1>, vector<2x7xf32>
    %c0_i32_70 = arith.constant 0 : i32
    %304 = vector.broadcast %c0_i32_70 : i32 to vector<2x1xi32>
    %305 = arith.cmpi eq, %12, %304 : vector<2x1xi32>
    %cst_71 = arith.constant 1.250000e-01 : f32
    %306 = vector.broadcast %cst_71 : f32 to vector<1x1xf32>
    %307 = arith.mulf %273, %306 : vector<1x1xf32>
    %308 = vector.shape_cast %307 : vector<1x1xf32> to vector<1x1xf32>
    %309 = vector.broadcast %308 : vector<1x1xf32> to vector<2x1xf32>
    %310 = arith.select %305, %309, %14 : vector<2x1xi1>, vector<2x1xf32>
    %c0_i32_72 = arith.constant 0 : i32
    %311 = vector.broadcast %c0_i32_72 : i32 to vector<2x1xi32>
    %312 = arith.cmpi eq, %12, %311 : vector<2x1xi32>
    %313 = vector.shape_cast %294 : vector<1x1xf32> to vector<1x1xf32>
    %314 = vector.broadcast %313 : vector<1x1xf32> to vector<2x1xf32>
    %315 = arith.select %312, %314, %15 : vector<2x1xi1>, vector<2x1xf32>
    %316 = vector.extract_strided_slice %5 {offsets = [1, 0], sizes = [1, 32], strides = [1, 1]} : vector<2x32xf32> to vector<1x32xf32>
    %cst_73 = arith.constant 5.000000e-01 : f32
    %317 = vector.broadcast %cst_73 : f32 to vector<1x32xf32>
    %318 = arith.mulf %316, %317 : vector<1x32xf32>
    %319 = vector.extract_strided_slice %10 {offsets = [1, 0], sizes = [1, 32], strides = [1, 1]} : vector<2x32xf32> to vector<1x32xf32>
    %c1 = arith.constant 1 : index
    %c0_74 = arith.constant 0 : index
    %c0_75 = arith.constant 0 : index
    %320 = vector.load %arg1[%c1, %c0_74, %c0_75] : memref<2x7x32xf32, #tpu.memory_space<vmem>>, vector<1x7x32xf32>
    %321 = vector.shape_cast %320 : vector<1x7x32xf32> to vector<7x32xf32>
    %cst_76 = arith.constant 0.000000e+00 : f32
    %322 = vector.broadcast %cst_76 : f32 to vector<1x7xf32>
    %cst_77 = arith.constant 0.000000e+00 : f32
    %323 = vector.broadcast %cst_77 : f32 to vector<1x1xf32>
    %cst_78 = arith.constant 0.000000e+00 : f32
    %324 = vector.broadcast %cst_78 : f32 to vector<1x7xf32>
    %cst_79 = arith.constant 0.000000e+00 : f32
    %325 = vector.broadcast %cst_79 : f32 to vector<1x1xf32>
    %c0_i32_80 = arith.constant 0 : i32
    %326 = vector.broadcast %c0_i32_80 : i32 to vector<1x32xi32>
    %327 = arith.cmpi sge, %11, %326 : vector<1x32xi32>
    %c4_i32_81 = arith.constant 4 : i32
    %328 = vector.broadcast %c4_i32_81 : i32 to vector<1x32xi32>
    %329 = arith.cmpi slt, %11, %328 : vector<1x32xi32>
    %330 = arith.andi %327, %329 : vector<1x32xi1>
    %331 = arith.extui %330 : vector<1x32xi1> to vector<1x32xi32>
    %332 = arith.sitofp %331 : vector<1x32xi32> to vector<1x32xf32>
    %333 = arith.mulf %318, %332 : vector<1x32xf32>
    %cst_82 = arith.constant dense<0.000000e+00> : vector<1x7xf32>
    %334 = tpu.matmul %333, %321, %cst_82 {dimension_numbers = #tpu.dot_dimension_numbers<[1], [1], [0], [0], [0, 0, 1, 0], [], []>} : vector<1x32xf32>, vector<7x32xf32>, vector<1x7xf32> -> vector<1x7xf32>
    %335 = arith.mulf %333, %319 : vector<1x32xf32>
    %cst_83 = arith.constant dense<0.000000e+00> : vector<1xf32>
    %336 = vector.multi_reduction <add>, %335, %cst_83 [1] : vector<1x32xf32> to vector<1xf32>
    %337 = vector.shape_cast %336 : vector<1xf32> to vector<1x1xf32>
    %cst_84 = arith.constant dense<0xFF800000> : vector<1xf32>
    %338 = vector.multi_reduction <maximumf>, %334, %cst_84 [1] : vector<1x7xf32> to vector<1xf32>
    %339 = vector.shape_cast %338 : vector<1xf32> to vector<1x1xf32>
    %340 = arith.maximumf %339, %337 : vector<1x1xf32>
    %341 = vector.broadcast %340 : vector<1x1xf32> to vector<1x7xf32>
    %342 = arith.subf %334, %341 : vector<1x7xf32>
    %343 = math.exp %342 : vector<1x7xf32>
    %344 = arith.subf %337, %340 : vector<1x1xf32>
    %345 = math.exp %344 : vector<1x1xf32>
    %cst_85 = arith.constant dense<0.000000e+00> : vector<1xf32>
    %346 = vector.multi_reduction <add>, %343, %cst_85 [1] : vector<1x7xf32> to vector<1xf32>
    %347 = vector.shape_cast %346 : vector<1xf32> to vector<1x1xf32>
    %348 = arith.addf %347, %345 : vector<1x1xf32>
    %349 = tpu.reciprocal %348 {approx = true} : vector<1x1xf32> -> vector<1x1xf32>
    %350 = vector.broadcast %349 : vector<1x1xf32> to vector<1x7xf32>
    %351 = arith.mulf %343, %350 : vector<1x7xf32>
    %352 = arith.addf %324, %351 : vector<1x7xf32>
    %353 = arith.mulf %345, %349 : vector<1x1xf32>
    %354 = arith.addf %325, %353 : vector<1x1xf32>
    %355 = arith.addf %322, %334 : vector<1x7xf32>
    %356 = arith.addf %323, %337 : vector<1x1xf32>
    %c4_i32_86 = arith.constant 4 : i32
    %357 = vector.broadcast %c4_i32_86 : i32 to vector<1x32xi32>
    %358 = arith.cmpi sge, %11, %357 : vector<1x32xi32>
    %c8_i32_87 = arith.constant 8 : i32
    %359 = vector.broadcast %c8_i32_87 : i32 to vector<1x32xi32>
    %360 = arith.cmpi slt, %11, %359 : vector<1x32xi32>
    %361 = arith.andi %358, %360 : vector<1x32xi1>
    %362 = arith.extui %361 : vector<1x32xi1> to vector<1x32xi32>
    %363 = arith.sitofp %362 : vector<1x32xi32> to vector<1x32xf32>
    %364 = arith.mulf %318, %363 : vector<1x32xf32>
    %cst_88 = arith.constant dense<0.000000e+00> : vector<1x7xf32>
    %365 = tpu.matmul %364, %321, %cst_88 {dimension_numbers = #tpu.dot_dimension_numbers<[1], [1], [0], [0], [0, 0, 1, 0], [], []>} : vector<1x32xf32>, vector<7x32xf32>, vector<1x7xf32> -> vector<1x7xf32>
    %366 = arith.mulf %364, %319 : vector<1x32xf32>
    %cst_89 = arith.constant dense<0.000000e+00> : vector<1xf32>
    %367 = vector.multi_reduction <add>, %366, %cst_89 [1] : vector<1x32xf32> to vector<1xf32>
    %368 = vector.shape_cast %367 : vector<1xf32> to vector<1x1xf32>
    %cst_90 = arith.constant dense<0xFF800000> : vector<1xf32>
    %369 = vector.multi_reduction <maximumf>, %365, %cst_90 [1] : vector<1x7xf32> to vector<1xf32>
    %370 = vector.shape_cast %369 : vector<1xf32> to vector<1x1xf32>
    %371 = arith.maximumf %370, %368 : vector<1x1xf32>
    %372 = vector.broadcast %371 : vector<1x1xf32> to vector<1x7xf32>
    %373 = arith.subf %365, %372 : vector<1x7xf32>
    %374 = math.exp %373 : vector<1x7xf32>
    %375 = arith.subf %368, %371 : vector<1x1xf32>
    %376 = math.exp %375 : vector<1x1xf32>
    %cst_91 = arith.constant dense<0.000000e+00> : vector<1xf32>
    %377 = vector.multi_reduction <add>, %374, %cst_91 [1] : vector<1x7xf32> to vector<1xf32>
    %378 = vector.shape_cast %377 : vector<1xf32> to vector<1x1xf32>
    %379 = arith.addf %378, %376 : vector<1x1xf32>
    %380 = tpu.reciprocal %379 {approx = true} : vector<1x1xf32> -> vector<1x1xf32>
    %381 = vector.broadcast %380 : vector<1x1xf32> to vector<1x7xf32>
    %382 = arith.mulf %374, %381 : vector<1x7xf32>
    %383 = arith.addf %352, %382 : vector<1x7xf32>
    %384 = arith.mulf %376, %380 : vector<1x1xf32>
    %385 = arith.addf %354, %384 : vector<1x1xf32>
    %386 = arith.addf %355, %365 : vector<1x7xf32>
    %387 = arith.addf %356, %368 : vector<1x1xf32>
    %c8_i32_92 = arith.constant 8 : i32
    %388 = vector.broadcast %c8_i32_92 : i32 to vector<1x32xi32>
    %389 = arith.cmpi sge, %11, %388 : vector<1x32xi32>
    %c12_i32_93 = arith.constant 12 : i32
    %390 = vector.broadcast %c12_i32_93 : i32 to vector<1x32xi32>
    %391 = arith.cmpi slt, %11, %390 : vector<1x32xi32>
    %392 = arith.andi %389, %391 : vector<1x32xi1>
    %393 = arith.extui %392 : vector<1x32xi1> to vector<1x32xi32>
    %394 = arith.sitofp %393 : vector<1x32xi32> to vector<1x32xf32>
    %395 = arith.mulf %318, %394 : vector<1x32xf32>
    %cst_94 = arith.constant dense<0.000000e+00> : vector<1x7xf32>
    %396 = tpu.matmul %395, %321, %cst_94 {dimension_numbers = #tpu.dot_dimension_numbers<[1], [1], [0], [0], [0, 0, 1, 0], [], []>} : vector<1x32xf32>, vector<7x32xf32>, vector<1x7xf32> -> vector<1x7xf32>
    %397 = arith.mulf %395, %319 : vector<1x32xf32>
    %cst_95 = arith.constant dense<0.000000e+00> : vector<1xf32>
    %398 = vector.multi_reduction <add>, %397, %cst_95 [1] : vector<1x32xf32> to vector<1xf32>
    %399 = vector.shape_cast %398 : vector<1xf32> to vector<1x1xf32>
    %cst_96 = arith.constant dense<0xFF800000> : vector<1xf32>
    %400 = vector.multi_reduction <maximumf>, %396, %cst_96 [1] : vector<1x7xf32> to vector<1xf32>
    %401 = vector.shape_cast %400 : vector<1xf32> to vector<1x1xf32>
    %402 = arith.maximumf %401, %399 : vector<1x1xf32>
    %403 = vector.broadcast %402 : vector<1x1xf32> to vector<1x7xf32>
    %404 = arith.subf %396, %403 : vector<1x7xf32>
    %405 = math.exp %404 : vector<1x7xf32>
    %406 = arith.subf %399, %402 : vector<1x1xf32>
    %407 = math.exp %406 : vector<1x1xf32>
    %cst_97 = arith.constant dense<0.000000e+00> : vector<1xf32>
    %408 = vector.multi_reduction <add>, %405, %cst_97 [1] : vector<1x7xf32> to vector<1xf32>
    %409 = vector.shape_cast %408 : vector<1xf32> to vector<1x1xf32>
    %410 = arith.addf %409, %407 : vector<1x1xf32>
    %411 = tpu.reciprocal %410 {approx = true} : vector<1x1xf32> -> vector<1x1xf32>
    %412 = vector.broadcast %411 : vector<1x1xf32> to vector<1x7xf32>
    %413 = arith.mulf %405, %412 : vector<1x7xf32>
    %414 = arith.addf %383, %413 : vector<1x7xf32>
    %415 = arith.mulf %407, %411 : vector<1x1xf32>
    %416 = arith.addf %385, %415 : vector<1x1xf32>
    %417 = arith.addf %386, %396 : vector<1x7xf32>
    %418 = arith.addf %387, %399 : vector<1x1xf32>
    %c12_i32_98 = arith.constant 12 : i32
    %419 = vector.broadcast %c12_i32_98 : i32 to vector<1x32xi32>
    %420 = arith.cmpi sge, %11, %419 : vector<1x32xi32>
    %c16_i32_99 = arith.constant 16 : i32
    %421 = vector.broadcast %c16_i32_99 : i32 to vector<1x32xi32>
    %422 = arith.cmpi slt, %11, %421 : vector<1x32xi32>
    %423 = arith.andi %420, %422 : vector<1x32xi1>
    %424 = arith.extui %423 : vector<1x32xi1> to vector<1x32xi32>
    %425 = arith.sitofp %424 : vector<1x32xi32> to vector<1x32xf32>
    %426 = arith.mulf %318, %425 : vector<1x32xf32>
    %cst_100 = arith.constant dense<0.000000e+00> : vector<1x7xf32>
    %427 = tpu.matmul %426, %321, %cst_100 {dimension_numbers = #tpu.dot_dimension_numbers<[1], [1], [0], [0], [0, 0, 1, 0], [], []>} : vector<1x32xf32>, vector<7x32xf32>, vector<1x7xf32> -> vector<1x7xf32>
    %428 = arith.mulf %426, %319 : vector<1x32xf32>
    %cst_101 = arith.constant dense<0.000000e+00> : vector<1xf32>
    %429 = vector.multi_reduction <add>, %428, %cst_101 [1] : vector<1x32xf32> to vector<1xf32>
    %430 = vector.shape_cast %429 : vector<1xf32> to vector<1x1xf32>
    %cst_102 = arith.constant dense<0xFF800000> : vector<1xf32>
    %431 = vector.multi_reduction <maximumf>, %427, %cst_102 [1] : vector<1x7xf32> to vector<1xf32>
    %432 = vector.shape_cast %431 : vector<1xf32> to vector<1x1xf32>
    %433 = arith.maximumf %432, %430 : vector<1x1xf32>
    %434 = vector.broadcast %433 : vector<1x1xf32> to vector<1x7xf32>
    %435 = arith.subf %427, %434 : vector<1x7xf32>
    %436 = math.exp %435 : vector<1x7xf32>
    %437 = arith.subf %430, %433 : vector<1x1xf32>
    %438 = math.exp %437 : vector<1x1xf32>
    %cst_103 = arith.constant dense<0.000000e+00> : vector<1xf32>
    %439 = vector.multi_reduction <add>, %436, %cst_103 [1] : vector<1x7xf32> to vector<1xf32>
    %440 = vector.shape_cast %439 : vector<1xf32> to vector<1x1xf32>
    %441 = arith.addf %440, %438 : vector<1x1xf32>
    %442 = tpu.reciprocal %441 {approx = true} : vector<1x1xf32> -> vector<1x1xf32>
    %443 = vector.broadcast %442 : vector<1x1xf32> to vector<1x7xf32>
    %444 = arith.mulf %436, %443 : vector<1x7xf32>
    %445 = arith.addf %414, %444 : vector<1x7xf32>
    %446 = arith.mulf %438, %442 : vector<1x1xf32>
    %447 = arith.addf %416, %446 : vector<1x1xf32>
    %448 = arith.addf %417, %427 : vector<1x7xf32>
    %449 = arith.addf %418, %430 : vector<1x1xf32>
    %c16_i32_104 = arith.constant 16 : i32
    %450 = vector.broadcast %c16_i32_104 : i32 to vector<1x32xi32>
    %451 = arith.cmpi sge, %11, %450 : vector<1x32xi32>
    %c20_i32_105 = arith.constant 20 : i32
    %452 = vector.broadcast %c20_i32_105 : i32 to vector<1x32xi32>
    %453 = arith.cmpi slt, %11, %452 : vector<1x32xi32>
    %454 = arith.andi %451, %453 : vector<1x32xi1>
    %455 = arith.extui %454 : vector<1x32xi1> to vector<1x32xi32>
    %456 = arith.sitofp %455 : vector<1x32xi32> to vector<1x32xf32>
    %457 = arith.mulf %318, %456 : vector<1x32xf32>
    %cst_106 = arith.constant dense<0.000000e+00> : vector<1x7xf32>
    %458 = tpu.matmul %457, %321, %cst_106 {dimension_numbers = #tpu.dot_dimension_numbers<[1], [1], [0], [0], [0, 0, 1, 0], [], []>} : vector<1x32xf32>, vector<7x32xf32>, vector<1x7xf32> -> vector<1x7xf32>
    %459 = arith.mulf %457, %319 : vector<1x32xf32>
    %cst_107 = arith.constant dense<0.000000e+00> : vector<1xf32>
    %460 = vector.multi_reduction <add>, %459, %cst_107 [1] : vector<1x32xf32> to vector<1xf32>
    %461 = vector.shape_cast %460 : vector<1xf32> to vector<1x1xf32>
    %cst_108 = arith.constant dense<0xFF800000> : vector<1xf32>
    %462 = vector.multi_reduction <maximumf>, %458, %cst_108 [1] : vector<1x7xf32> to vector<1xf32>
    %463 = vector.shape_cast %462 : vector<1xf32> to vector<1x1xf32>
    %464 = arith.maximumf %463, %461 : vector<1x1xf32>
    %465 = vector.broadcast %464 : vector<1x1xf32> to vector<1x7xf32>
    %466 = arith.subf %458, %465 : vector<1x7xf32>
    %467 = math.exp %466 : vector<1x7xf32>
    %468 = arith.subf %461, %464 : vector<1x1xf32>
    %469 = math.exp %468 : vector<1x1xf32>
    %cst_109 = arith.constant dense<0.000000e+00> : vector<1xf32>
    %470 = vector.multi_reduction <add>, %467, %cst_109 [1] : vector<1x7xf32> to vector<1xf32>
    %471 = vector.shape_cast %470 : vector<1xf32> to vector<1x1xf32>
    %472 = arith.addf %471, %469 : vector<1x1xf32>
    %473 = tpu.reciprocal %472 {approx = true} : vector<1x1xf32> -> vector<1x1xf32>
    %474 = vector.broadcast %473 : vector<1x1xf32> to vector<1x7xf32>
    %475 = arith.mulf %467, %474 : vector<1x7xf32>
    %476 = arith.addf %445, %475 : vector<1x7xf32>
    %477 = arith.mulf %469, %473 : vector<1x1xf32>
    %478 = arith.addf %447, %477 : vector<1x1xf32>
    %479 = arith.addf %448, %458 : vector<1x7xf32>
    %480 = arith.addf %449, %461 : vector<1x1xf32>
    %c20_i32_110 = arith.constant 20 : i32
    %481 = vector.broadcast %c20_i32_110 : i32 to vector<1x32xi32>
    %482 = arith.cmpi sge, %11, %481 : vector<1x32xi32>
    %c24_i32_111 = arith.constant 24 : i32
    %483 = vector.broadcast %c24_i32_111 : i32 to vector<1x32xi32>
    %484 = arith.cmpi slt, %11, %483 : vector<1x32xi32>
    %485 = arith.andi %482, %484 : vector<1x32xi1>
    %486 = arith.extui %485 : vector<1x32xi1> to vector<1x32xi32>
    %487 = arith.sitofp %486 : vector<1x32xi32> to vector<1x32xf32>
    %488 = arith.mulf %318, %487 : vector<1x32xf32>
    %cst_112 = arith.constant dense<0.000000e+00> : vector<1x7xf32>
    %489 = tpu.matmul %488, %321, %cst_112 {dimension_numbers = #tpu.dot_dimension_numbers<[1], [1], [0], [0], [0, 0, 1, 0], [], []>} : vector<1x32xf32>, vector<7x32xf32>, vector<1x7xf32> -> vector<1x7xf32>
    %490 = arith.mulf %488, %319 : vector<1x32xf32>
    %cst_113 = arith.constant dense<0.000000e+00> : vector<1xf32>
    %491 = vector.multi_reduction <add>, %490, %cst_113 [1] : vector<1x32xf32> to vector<1xf32>
    %492 = vector.shape_cast %491 : vector<1xf32> to vector<1x1xf32>
    %cst_114 = arith.constant dense<0xFF800000> : vector<1xf32>
    %493 = vector.multi_reduction <maximumf>, %489, %cst_114 [1] : vector<1x7xf32> to vector<1xf32>
    %494 = vector.shape_cast %493 : vector<1xf32> to vector<1x1xf32>
    %495 = arith.maximumf %494, %492 : vector<1x1xf32>
    %496 = vector.broadcast %495 : vector<1x1xf32> to vector<1x7xf32>
    %497 = arith.subf %489, %496 : vector<1x7xf32>
    %498 = math.exp %497 : vector<1x7xf32>
    %499 = arith.subf %492, %495 : vector<1x1xf32>
    %500 = math.exp %499 : vector<1x1xf32>
    %cst_115 = arith.constant dense<0.000000e+00> : vector<1xf32>
    %501 = vector.multi_reduction <add>, %498, %cst_115 [1] : vector<1x7xf32> to vector<1xf32>
    %502 = vector.shape_cast %501 : vector<1xf32> to vector<1x1xf32>
    %503 = arith.addf %502, %500 : vector<1x1xf32>
    %504 = tpu.reciprocal %503 {approx = true} : vector<1x1xf32> -> vector<1x1xf32>
    %505 = vector.broadcast %504 : vector<1x1xf32> to vector<1x7xf32>
    %506 = arith.mulf %498, %505 : vector<1x7xf32>
    %507 = arith.addf %476, %506 : vector<1x7xf32>
    %508 = arith.mulf %500, %504 : vector<1x1xf32>
    %509 = arith.addf %478, %508 : vector<1x1xf32>
    %510 = arith.addf %479, %489 : vector<1x7xf32>
    %511 = arith.addf %480, %492 : vector<1x1xf32>
    %c24_i32_116 = arith.constant 24 : i32
    %512 = vector.broadcast %c24_i32_116 : i32 to vector<1x32xi32>
    %513 = arith.cmpi sge, %11, %512 : vector<1x32xi32>
    %c28_i32_117 = arith.constant 28 : i32
    %514 = vector.broadcast %c28_i32_117 : i32 to vector<1x32xi32>
    %515 = arith.cmpi slt, %11, %514 : vector<1x32xi32>
    %516 = arith.andi %513, %515 : vector<1x32xi1>
    %517 = arith.extui %516 : vector<1x32xi1> to vector<1x32xi32>
    %518 = arith.sitofp %517 : vector<1x32xi32> to vector<1x32xf32>
    %519 = arith.mulf %318, %518 : vector<1x32xf32>
    %cst_118 = arith.constant dense<0.000000e+00> : vector<1x7xf32>
    %520 = tpu.matmul %519, %321, %cst_118 {dimension_numbers = #tpu.dot_dimension_numbers<[1], [1], [0], [0], [0, 0, 1, 0], [], []>} : vector<1x32xf32>, vector<7x32xf32>, vector<1x7xf32> -> vector<1x7xf32>
    %521 = arith.mulf %519, %319 : vector<1x32xf32>
    %cst_119 = arith.constant dense<0.000000e+00> : vector<1xf32>
    %522 = vector.multi_reduction <add>, %521, %cst_119 [1] : vector<1x32xf32> to vector<1xf32>
    %523 = vector.shape_cast %522 : vector<1xf32> to vector<1x1xf32>
    %cst_120 = arith.constant dense<0xFF800000> : vector<1xf32>
    %524 = vector.multi_reduction <maximumf>, %520, %cst_120 [1] : vector<1x7xf32> to vector<1xf32>
    %525 = vector.shape_cast %524 : vector<1xf32> to vector<1x1xf32>
    %526 = arith.maximumf %525, %523 : vector<1x1xf32>
    %527 = vector.broadcast %526 : vector<1x1xf32> to vector<1x7xf32>
    %528 = arith.subf %520, %527 : vector<1x7xf32>
    %529 = math.exp %528 : vector<1x7xf32>
    %530 = arith.subf %523, %526 : vector<1x1xf32>
    %531 = math.exp %530 : vector<1x1xf32>
    %cst_121 = arith.constant dense<0.000000e+00> : vector<1xf32>
    %532 = vector.multi_reduction <add>, %529, %cst_121 [1] : vector<1x7xf32> to vector<1xf32>
    %533 = vector.shape_cast %532 : vector<1xf32> to vector<1x1xf32>
    %534 = arith.addf %533, %531 : vector<1x1xf32>
    %535 = tpu.reciprocal %534 {approx = true} : vector<1x1xf32> -> vector<1x1xf32>
    %536 = vector.broadcast %535 : vector<1x1xf32> to vector<1x7xf32>
    %537 = arith.mulf %529, %536 : vector<1x7xf32>
    %538 = arith.addf %507, %537 : vector<1x7xf32>
    %539 = arith.mulf %531, %535 : vector<1x1xf32>
    %540 = arith.addf %509, %539 : vector<1x1xf32>
    %541 = arith.addf %510, %520 : vector<1x7xf32>
    %542 = arith.addf %511, %523 : vector<1x1xf32>
    %c28_i32_122 = arith.constant 28 : i32
    %543 = vector.broadcast %c28_i32_122 : i32 to vector<1x32xi32>
    %544 = arith.cmpi sge, %11, %543 : vector<1x32xi32>
    %c32_i32_123 = arith.constant 32 : i32
    %545 = vector.broadcast %c32_i32_123 : i32 to vector<1x32xi32>
    %546 = arith.cmpi slt, %11, %545 : vector<1x32xi32>
    %547 = arith.andi %544, %546 : vector<1x32xi1>
    %548 = arith.extui %547 : vector<1x32xi1> to vector<1x32xi32>
    %549 = arith.sitofp %548 : vector<1x32xi32> to vector<1x32xf32>
    %550 = arith.mulf %318, %549 : vector<1x32xf32>
    %cst_124 = arith.constant dense<0.000000e+00> : vector<1x7xf32>
    %551 = tpu.matmul %550, %321, %cst_124 {dimension_numbers = #tpu.dot_dimension_numbers<[1], [1], [0], [0], [0, 0, 1, 0], [], []>} : vector<1x32xf32>, vector<7x32xf32>, vector<1x7xf32> -> vector<1x7xf32>
    %552 = arith.mulf %550, %319 : vector<1x32xf32>
    %cst_125 = arith.constant dense<0.000000e+00> : vector<1xf32>
    %553 = vector.multi_reduction <add>, %552, %cst_125 [1] : vector<1x32xf32> to vector<1xf32>
    %554 = vector.shape_cast %553 : vector<1xf32> to vector<1x1xf32>
    %cst_126 = arith.constant dense<0xFF800000> : vector<1xf32>
    %555 = vector.multi_reduction <maximumf>, %551, %cst_126 [1] : vector<1x7xf32> to vector<1xf32>
    %556 = vector.shape_cast %555 : vector<1xf32> to vector<1x1xf32>
    %557 = arith.maximumf %556, %554 : vector<1x1xf32>
    %558 = vector.broadcast %557 : vector<1x1xf32> to vector<1x7xf32>
    %559 = arith.subf %551, %558 : vector<1x7xf32>
    %560 = math.exp %559 : vector<1x7xf32>
    %561 = arith.subf %554, %557 : vector<1x1xf32>
    %562 = math.exp %561 : vector<1x1xf32>
    %cst_127 = arith.constant dense<0.000000e+00> : vector<1xf32>
    %563 = vector.multi_reduction <add>, %560, %cst_127 [1] : vector<1x7xf32> to vector<1xf32>
    %564 = vector.shape_cast %563 : vector<1xf32> to vector<1x1xf32>
    %565 = arith.addf %564, %562 : vector<1x1xf32>
    %566 = tpu.reciprocal %565 {approx = true} : vector<1x1xf32> -> vector<1x1xf32>
    %567 = vector.broadcast %566 : vector<1x1xf32> to vector<1x7xf32>
    %568 = arith.mulf %560, %567 : vector<1x7xf32>
    %569 = arith.addf %538, %568 : vector<1x7xf32>
    %570 = arith.mulf %562, %566 : vector<1x1xf32>
    %571 = arith.addf %540, %570 : vector<1x1xf32>
    %572 = arith.addf %541, %551 : vector<1x7xf32>
    %573 = arith.addf %542, %554 : vector<1x1xf32>
    %cst_128 = arith.constant 1.250000e-01 : f32
    %574 = vector.broadcast %cst_128 : f32 to vector<1x7xf32>
    %575 = arith.mulf %569, %574 : vector<1x7xf32>
    %cst_129 = arith.constant 1.250000e-01 : f32
    %576 = vector.broadcast %cst_129 : f32 to vector<1x1xf32>
    %577 = arith.mulf %571, %576 : vector<1x1xf32>
    %cst_130 = arith.constant 0.000000e+00 : f32
    %578 = vector.broadcast %cst_130 : f32 to vector<1x7xf32>
    %579 = arith.cmpf ogt, %575, %578 : vector<1x7xf32>
    %cst_131 = arith.constant 1.000000e+00 : f32
    %580 = vector.broadcast %cst_131 : f32 to vector<1x7xf32>
    %581 = arith.select %579, %575, %580 : vector<1x7xi1>, vector<1x7xf32>
    %582 = math.log %581 : vector<1x7xf32>
    %583 = arith.mulf %575, %582 : vector<1x7xf32>
    %cst_132 = arith.constant dense<0.000000e+00> : vector<1xf32>
    %584 = vector.multi_reduction <add>, %583, %cst_132 [1] : vector<1x7xf32> to vector<1xf32>
    %585 = vector.shape_cast %584 : vector<1xf32> to vector<1x1xf32>
    %cst_133 = arith.constant 0.000000e+00 : f32
    %586 = vector.broadcast %cst_133 : f32 to vector<1x1xf32>
    %587 = arith.cmpf ogt, %577, %586 : vector<1x1xf32>
    %cst_134 = arith.constant 1.000000e+00 : f32
    %588 = vector.broadcast %cst_134 : f32 to vector<1x1xf32>
    %589 = arith.select %587, %577, %588 : vector<1x1xi1>, vector<1x1xf32>
    %590 = math.log %589 : vector<1x1xf32>
    %591 = arith.mulf %577, %590 : vector<1x1xf32>
    %592 = arith.addf %585, %591 : vector<1x1xf32>
    %cst_135 = arith.constant 0.000000e+00 : f32
    %593 = vector.broadcast %cst_135 : f32 to vector<1x1xf32>
    %594 = arith.subf %593, %592 : vector<1x1xf32>
    %c1_i32 = arith.constant 1 : i32
    %595 = vector.broadcast %c1_i32 : i32 to vector<2x1xi32>
    %596 = arith.cmpi eq, %12, %595 : vector<2x1xi32>
    %cst_136 = arith.constant 1.250000e-01 : f32
    %597 = vector.broadcast %cst_136 : f32 to vector<1x7xf32>
    %598 = arith.mulf %572, %597 : vector<1x7xf32>
    %599 = vector.shape_cast %596 : vector<2x1xi1> to vector<2x1xi1>
    %600 = vector.broadcast %599 : vector<2x1xi1> to vector<2x7xi1>
    %601 = vector.shape_cast %598 : vector<1x7xf32> to vector<1x7xf32>
    %602 = vector.broadcast %601 : vector<1x7xf32> to vector<2x7xf32>
    %603 = arith.select %600, %602, %303 : vector<2x7xi1>, vector<2x7xf32>
    %c1_i32_137 = arith.constant 1 : i32
    %604 = vector.broadcast %c1_i32_137 : i32 to vector<2x1xi32>
    %605 = arith.cmpi eq, %12, %604 : vector<2x1xi32>
    %cst_138 = arith.constant 1.250000e-01 : f32
    %606 = vector.broadcast %cst_138 : f32 to vector<1x1xf32>
    %607 = arith.mulf %573, %606 : vector<1x1xf32>
    %608 = vector.shape_cast %607 : vector<1x1xf32> to vector<1x1xf32>
    %609 = vector.broadcast %608 : vector<1x1xf32> to vector<2x1xf32>
    %610 = arith.select %605, %609, %310 : vector<2x1xi1>, vector<2x1xf32>
    %c1_i32_139 = arith.constant 1 : i32
    %611 = vector.broadcast %c1_i32_139 : i32 to vector<2x1xi32>
    %612 = arith.cmpi eq, %12, %611 : vector<2x1xi32>
    %613 = vector.shape_cast %594 : vector<1x1xf32> to vector<1x1xf32>
    %614 = vector.broadcast %613 : vector<1x1xf32> to vector<2x1xf32>
    %615 = arith.select %612, %614, %315 : vector<2x1xi1>, vector<2x1xf32>
    %c0_140 = arith.constant 0 : index
    %c0_141 = arith.constant 0 : index
    %616 = vector.load %arg6[%c0_140, %c0_141] : memref<2x7xf32, #tpu.memory_space<vmem>>, vector<2x7xf32>
    tpu.vector_store %arg6[%c0_140, %c0_141], %603 {strides = array<i32>} : memref<2x7xf32, #tpu.memory_space<vmem>>, vector<2x7xf32>,
    %c0_142 = arith.constant 0 : index
    %c0_143 = arith.constant 0 : index
    %617 = vector.load %arg7[%c0_142, %c0_143] : memref<2x1xf32, #tpu.memory_space<vmem>>, vector<2x1xf32>
    tpu.vector_store %arg7[%c0_142, %c0_143], %610 {strides = array<i32>} : memref<2x1xf32, #tpu.memory_space<vmem>>, vector<2x1xf32>,
    %c0_144 = arith.constant 0 : index
    %c0_145 = arith.constant 0 : index
    %618 = vector.load %arg8[%c0_144, %c0_145] : memref<2x1xf32, #tpu.memory_space<vmem>>, vector<2x1xf32>
    tpu.vector_store %arg8[%c0_144, %c0_145], %615 {strides = array<i32>} : memref<2x1xf32, #tpu.memory_space<vmem>>, vector<2x1xf32>,
    return
  }
}

module attributes {stable_mosaic.version = 11 : i64} {
  func.func @_reduce_step_kernel(%arg0: memref<3x2x32xf32, #tpu.memory_space<vmem>>, %arg1: memref<2x7x32xf32, #tpu.memory_space<vmem>>, %arg2: memref<2x7x32xf32, #tpu.memory_space<vmem>>, %arg3: memref<32x64xf32, #tpu.memory_space<vmem>>, %arg4: memref<32x64xf32, #tpu.memory_space<vmem>>, %arg5: memref<1x64xf32, #tpu.memory_space<vmem>>, %arg6: memref<64x32xf32, #tpu.memory_space<vmem>>, %arg7: memref<1x32xf32, #tpu.memory_space<vmem>>, %arg8: memref<1x32xf32, #tpu.memory_space<vmem>>, %arg9: memref<1x1xf32, #tpu.memory_space<vmem>>, %arg10: memref<32x32xf32, #tpu.memory_space<vmem>>, %arg11: memref<1x32xf32, #tpu.memory_space<vmem>>, %arg12: memref<32x32xf32, #tpu.memory_space<vmem>>, %arg13: memref<1x32xf32, #tpu.memory_space<vmem>>, %arg14: memref<32x32xf32, #tpu.memory_space<vmem>>, %arg15: memref<1x32xf32, #tpu.memory_space<vmem>>, %arg16: memref<32x32xf32, #tpu.memory_space<vmem>>, %arg17: memref<1x32xf32, #tpu.memory_space<vmem>>, %arg18: memref<32x32xf32, #tpu.memory_space<vmem>>, %arg19: memref<1x32xf32, #tpu.memory_space<vmem>>, %arg20: memref<32x32xf32, #tpu.memory_space<vmem>>, %arg21: memref<1x32xf32, #tpu.memory_space<vmem>>, %arg22: memref<1x32xf32, #tpu.memory_space<vmem>>, %arg23: memref<1x32xf32, #tpu.memory_space<vmem>>, %arg24: memref<2x2x32xf32, #tpu.memory_space<vmem>>, %arg25: memref<2x1xf32, #tpu.memory_space<vmem>>) attributes {dimension_semantics = [], scalar_prefetch = 0 : i64, scratch_operands = 0 : i64, tpu.core_type = #tpu.core_type<tc>} {
    %c0 = arith.constant 0 : index
    %c0_0 = arith.constant 0 : index
    %0 = vector.load %arg22[%c0, %c0_0] : memref<1x32xf32, #tpu.memory_space<vmem>>, vector<1x32xf32>
    %c0_1 = arith.constant 0 : index
    %c0_2 = arith.constant 0 : index
    %1 = vector.load %arg23[%c0_1, %c0_2] : memref<1x32xf32, #tpu.memory_space<vmem>>, vector<1x32xf32>
    %c0_3 = arith.constant 0 : index
    %c0_4 = arith.constant 0 : index
    %c0_5 = arith.constant 0 : index
    %2 = vector.load %arg0[%c0_3, %c0_4, %c0_5] : memref<3x2x32xf32, #tpu.memory_space<vmem>>, vector<1x2x32xf32>
    %3 = vector.shape_cast %2 : vector<1x2x32xf32> to vector<2x32xf32>
    %c1 = arith.constant 1 : index
    %c0_6 = arith.constant 0 : index
    %c0_7 = arith.constant 0 : index
    %4 = vector.load %arg0[%c1, %c0_6, %c0_7] : memref<3x2x32xf32, #tpu.memory_space<vmem>>, vector<1x2x32xf32>
    %5 = vector.shape_cast %4 : vector<1x2x32xf32> to vector<2x32xf32>
    %c2 = arith.constant 2 : index
    %c0_8 = arith.constant 0 : index
    %c0_9 = arith.constant 0 : index
    %6 = vector.load %arg0[%c2, %c0_8, %c0_9] : memref<3x2x32xf32, #tpu.memory_space<vmem>>, vector<1x2x32xf32>
    %7 = vector.shape_cast %6 : vector<1x2x32xf32> to vector<2x32xf32>
    %c0_10 = arith.constant 0 : index
    %c0_11 = arith.constant 0 : index
    %8 = vector.load %arg3[%c0_10, %c0_11] : memref<32x64xf32, #tpu.memory_space<vmem>>, vector<32x64xf32>
    %cst = arith.constant dense<0.000000e+00> : vector<2x64xf32>
    %9 = tpu.matmul %3, %8, %cst {dimension_numbers = #tpu.dot_dimension_numbers<[1], [0], [0], [1], [0, 0, 1, 1], [], []>} : vector<2x32xf32>, vector<32x64xf32>, vector<2x64xf32> -> vector<2x64xf32>
    %c0_12 = arith.constant 0 : index
    %c0_13 = arith.constant 0 : index
    %10 = vector.load %arg4[%c0_12, %c0_13] : memref<32x64xf32, #tpu.memory_space<vmem>>, vector<32x64xf32>
    %cst_14 = arith.constant dense<0.000000e+00> : vector<2x64xf32>
    %11 = tpu.matmul %5, %10, %cst_14 {dimension_numbers = #tpu.dot_dimension_numbers<[1], [0], [0], [1], [0, 0, 1, 1], [], []>} : vector<2x32xf32>, vector<32x64xf32>, vector<2x64xf32> -> vector<2x64xf32>
    %12 = arith.addf %9, %11 : vector<2x64xf32>
    %c0_15 = arith.constant 0 : index
    %c0_16 = arith.constant 0 : index
    %13 = vector.load %arg5[%c0_15, %c0_16] : memref<1x64xf32, #tpu.memory_space<vmem>>, vector<1x64xf32>
    %14 = vector.broadcast %13 : vector<1x64xf32> to vector<2x64xf32>
    %15 = arith.addf %12, %14 : vector<2x64xf32>
    %cst_17 = arith.constant 0.000000e+00 : f32
    %16 = vector.broadcast %cst_17 : f32 to vector<2x64xf32>
    %17 = arith.maximumf %15, %16 : vector<2x64xf32>
    %c0_18 = arith.constant 0 : index
    %c0_19 = arith.constant 0 : index
    %18 = vector.load %arg6[%c0_18, %c0_19] : memref<64x32xf32, #tpu.memory_space<vmem>>, vector<64x32xf32>
    %cst_20 = arith.constant dense<0.000000e+00> : vector<2x32xf32>
    %19 = tpu.matmul %17, %18, %cst_20 {dimension_numbers = #tpu.dot_dimension_numbers<[1], [0], [0], [1], [0, 0, 1, 1], [], []>} : vector<2x64xf32>, vector<64x32xf32>, vector<2x32xf32> -> vector<2x32xf32>
    %c0_21 = arith.constant 0 : index
    %c0_22 = arith.constant 0 : index
    %20 = vector.load %arg7[%c0_21, %c0_22] : memref<1x32xf32, #tpu.memory_space<vmem>>, vector<1x32xf32>
    %21 = vector.broadcast %20 : vector<1x32xf32> to vector<2x32xf32>
    %22 = arith.addf %19, %21 : vector<2x32xf32>
    %cst_23 = arith.constant dense<0.000000e+00> : vector<2xf32>
    %23 = vector.multi_reduction <add>, %22, %cst_23 [1] : vector<2x32xf32> to vector<2xf32>
    %24 = vector.shape_cast %23 : vector<2xf32> to vector<2x1xf32>
    %cst_24 = arith.constant 3.200000e+01 : f32
    %25 = vector.broadcast %cst_24 : f32 to vector<2x1xf32>
    %26 = arith.divf %24, %25 : vector<2x1xf32>
    %27 = vector.broadcast %26 : vector<2x1xf32> to vector<2x32xf32>
    %28 = arith.subf %22, %27 : vector<2x32xf32>
    %29 = arith.mulf %28, %28 : vector<2x32xf32>
    %cst_25 = arith.constant dense<0.000000e+00> : vector<2xf32>
    %30 = vector.multi_reduction <add>, %29, %cst_25 [1] : vector<2x32xf32> to vector<2xf32>
    %31 = vector.shape_cast %30 : vector<2xf32> to vector<2x1xf32>
    %cst_26 = arith.constant 3.200000e+01 : f32
    %32 = vector.broadcast %cst_26 : f32 to vector<2x1xf32>
    %33 = arith.divf %31, %32 : vector<2x1xf32>
    %34 = vector.broadcast %26 : vector<2x1xf32> to vector<2x32xf32>
    %35 = arith.subf %22, %34 : vector<2x32xf32>
    %cst_27 = arith.constant 9.99999974E-6 : f32
    %36 = vector.broadcast %cst_27 : f32 to vector<2x1xf32>
    %37 = arith.addf %33, %36 : vector<2x1xf32>
    %38 = math.rsqrt %37 : vector<2x1xf32>
    %39 = vector.broadcast %38 : vector<2x1xf32> to vector<2x32xf32>
    %40 = arith.mulf %35, %39 : vector<2x32xf32>
    %41 = vector.broadcast %0 : vector<1x32xf32> to vector<2x32xf32>
    %42 = arith.mulf %40, %41 : vector<2x32xf32>
    %43 = vector.broadcast %1 : vector<1x32xf32> to vector<2x32xf32>
    %44 = arith.addf %42, %43 : vector<2x32xf32>
    %c0_28 = arith.constant 0 : index
    %c0_29 = arith.constant 0 : index
    %45 = vector.load %arg8[%c0_28, %c0_29] : memref<1x32xf32, #tpu.memory_space<vmem>>, vector<1x32xf32>
    %46 = vector.broadcast %45 : vector<1x32xf32> to vector<2x32xf32>
    %47 = arith.mulf %44, %46 : vector<2x32xf32>
    %cst_30 = arith.constant dense<0.000000e+00> : vector<2xf32>
    %48 = vector.multi_reduction <add>, %47, %cst_30 [1] : vector<2x32xf32> to vector<2xf32>
    %49 = vector.shape_cast %48 : vector<2xf32> to vector<2x1xf32>
    %c0_31 = arith.constant 0 : index
    %c0_32 = arith.constant 0 : index
    %50 = vector.load %arg9[%c0_31, %c0_32] : memref<1x1xf32, #tpu.memory_space<vmem>>, vector<1x1xf32>
    %51 = vector.broadcast %50 : vector<1x1xf32> to vector<2x1xf32>
    %52 = arith.addf %49, %51 : vector<2x1xf32>
    %53 = arith.negf %52 : vector<2x1xf32>
    %54 = math.exp %53 : vector<2x1xf32>
    %cst_33 = arith.constant 1.000000e+00 : f32
    %55 = vector.broadcast %cst_33 : f32 to vector<2x1xf32>
    %56 = arith.addf %55, %54 : vector<2x1xf32>
    %57 = arith.divf %55, %56 : vector<2x1xf32>
    %c0_34 = arith.constant 0 : index
    %c0_35 = arith.constant 0 : index
    %58 = vector.load %arg3[%c0_34, %c0_35] : memref<32x64xf32, #tpu.memory_space<vmem>>, vector<32x64xf32>
    %cst_36 = arith.constant dense<0.000000e+00> : vector<2x64xf32>
    %59 = tpu.matmul %5, %58, %cst_36 {dimension_numbers = #tpu.dot_dimension_numbers<[1], [0], [0], [1], [0, 0, 1, 1], [], []>} : vector<2x32xf32>, vector<32x64xf32>, vector<2x64xf32> -> vector<2x64xf32>
    %c0_37 = arith.constant 0 : index
    %c0_38 = arith.constant 0 : index
    %60 = vector.load %arg4[%c0_37, %c0_38] : memref<32x64xf32, #tpu.memory_space<vmem>>, vector<32x64xf32>
    %cst_39 = arith.constant dense<0.000000e+00> : vector<2x64xf32>
    %61 = tpu.matmul %7, %60, %cst_39 {dimension_numbers = #tpu.dot_dimension_numbers<[1], [0], [0], [1], [0, 0, 1, 1], [], []>} : vector<2x32xf32>, vector<32x64xf32>, vector<2x64xf32> -> vector<2x64xf32>
    %62 = arith.addf %59, %61 : vector<2x64xf32>
    %c0_40 = arith.constant 0 : index
    %c0_41 = arith.constant 0 : index
    %63 = vector.load %arg5[%c0_40, %c0_41] : memref<1x64xf32, #tpu.memory_space<vmem>>, vector<1x64xf32>
    %64 = vector.broadcast %63 : vector<1x64xf32> to vector<2x64xf32>
    %65 = arith.addf %62, %64 : vector<2x64xf32>
    %cst_42 = arith.constant 0.000000e+00 : f32
    %66 = vector.broadcast %cst_42 : f32 to vector<2x64xf32>
    %67 = arith.maximumf %65, %66 : vector<2x64xf32>
    %c0_43 = arith.constant 0 : index
    %c0_44 = arith.constant 0 : index
    %68 = vector.load %arg6[%c0_43, %c0_44] : memref<64x32xf32, #tpu.memory_space<vmem>>, vector<64x32xf32>
    %cst_45 = arith.constant dense<0.000000e+00> : vector<2x32xf32>
    %69 = tpu.matmul %67, %68, %cst_45 {dimension_numbers = #tpu.dot_dimension_numbers<[1], [0], [0], [1], [0, 0, 1, 1], [], []>} : vector<2x64xf32>, vector<64x32xf32>, vector<2x32xf32> -> vector<2x32xf32>
    %c0_46 = arith.constant 0 : index
    %c0_47 = arith.constant 0 : index
    %70 = vector.load %arg7[%c0_46, %c0_47] : memref<1x32xf32, #tpu.memory_space<vmem>>, vector<1x32xf32>
    %71 = vector.broadcast %70 : vector<1x32xf32> to vector<2x32xf32>
    %72 = arith.addf %69, %71 : vector<2x32xf32>
    %cst_48 = arith.constant dense<0.000000e+00> : vector<2xf32>
    %73 = vector.multi_reduction <add>, %72, %cst_48 [1] : vector<2x32xf32> to vector<2xf32>
    %74 = vector.shape_cast %73 : vector<2xf32> to vector<2x1xf32>
    %cst_49 = arith.constant 3.200000e+01 : f32
    %75 = vector.broadcast %cst_49 : f32 to vector<2x1xf32>
    %76 = arith.divf %74, %75 : vector<2x1xf32>
    %77 = vector.broadcast %76 : vector<2x1xf32> to vector<2x32xf32>
    %78 = arith.subf %72, %77 : vector<2x32xf32>
    %79 = arith.mulf %78, %78 : vector<2x32xf32>
    %cst_50 = arith.constant dense<0.000000e+00> : vector<2xf32>
    %80 = vector.multi_reduction <add>, %79, %cst_50 [1] : vector<2x32xf32> to vector<2xf32>
    %81 = vector.shape_cast %80 : vector<2xf32> to vector<2x1xf32>
    %cst_51 = arith.constant 3.200000e+01 : f32
    %82 = vector.broadcast %cst_51 : f32 to vector<2x1xf32>
    %83 = arith.divf %81, %82 : vector<2x1xf32>
    %84 = vector.broadcast %76 : vector<2x1xf32> to vector<2x32xf32>
    %85 = arith.subf %72, %84 : vector<2x32xf32>
    %cst_52 = arith.constant 9.99999974E-6 : f32
    %86 = vector.broadcast %cst_52 : f32 to vector<2x1xf32>
    %87 = arith.addf %83, %86 : vector<2x1xf32>
    %88 = math.rsqrt %87 : vector<2x1xf32>
    %89 = vector.broadcast %88 : vector<2x1xf32> to vector<2x32xf32>
    %90 = arith.mulf %85, %89 : vector<2x32xf32>
    %91 = vector.broadcast %0 : vector<1x32xf32> to vector<2x32xf32>
    %92 = arith.mulf %90, %91 : vector<2x32xf32>
    %93 = vector.broadcast %1 : vector<1x32xf32> to vector<2x32xf32>
    %94 = arith.addf %92, %93 : vector<2x32xf32>
    %c0_53 = arith.constant 0 : index
    %c0_54 = arith.constant 0 : index
    %95 = vector.load %arg8[%c0_53, %c0_54] : memref<1x32xf32, #tpu.memory_space<vmem>>, vector<1x32xf32>
    %96 = vector.broadcast %95 : vector<1x32xf32> to vector<2x32xf32>
    %97 = arith.mulf %94, %96 : vector<2x32xf32>
    %cst_55 = arith.constant dense<0.000000e+00> : vector<2xf32>
    %98 = vector.multi_reduction <add>, %97, %cst_55 [1] : vector<2x32xf32> to vector<2xf32>
    %99 = vector.shape_cast %98 : vector<2xf32> to vector<2x1xf32>
    %c0_56 = arith.constant 0 : index
    %c0_57 = arith.constant 0 : index
    %100 = vector.load %arg9[%c0_56, %c0_57] : memref<1x1xf32, #tpu.memory_space<vmem>>, vector<1x1xf32>
    %101 = vector.broadcast %100 : vector<1x1xf32> to vector<2x1xf32>
    %102 = arith.addf %99, %101 : vector<2x1xf32>
    %103 = arith.negf %102 : vector<2x1xf32>
    %104 = math.exp %103 : vector<2x1xf32>
    %cst_58 = arith.constant 1.000000e+00 : f32
    %105 = vector.broadcast %cst_58 : f32 to vector<2x1xf32>
    %106 = arith.addf %105, %104 : vector<2x1xf32>
    %107 = arith.divf %105, %106 : vector<2x1xf32>
    %c0_i32 = arith.constant 0 : i32
    %108 = vector.broadcast %c0_i32 : i32 to vector<2x1xi32>
    %109 = arith.cmpf ogt, %107, %57 : vector<2x1xf32>
    %c1_i32 = arith.constant 1 : i32
    %110 = vector.broadcast %c1_i32 : i32 to vector<2x1xi32>
    %111 = arith.select %109, %110, %108 : vector<2x1xi1>, vector<2x1xi32>
    %c1_i32_59 = arith.constant 1 : i32
    %112 = vector.broadcast %c1_i32_59 : i32 to vector<2x1xi32>
    %113 = arith.cmpi eq, %111, %112 : vector<2x1xi32>
    %114 = vector.shape_cast %113 : vector<2x1xi1> to vector<2x1xi1>
    %115 = vector.broadcast %114 : vector<2x1xi1> to vector<2x32xi1>
    %116 = arith.select %115, %94, %44 : vector<2x32xi1>, vector<2x32xf32>
    %c0_60 = arith.constant 0 : index
    %c0_61 = arith.constant 0 : index
    %117 = vector.load %arg10[%c0_60, %c0_61] : memref<32x32xf32, #tpu.memory_space<vmem>>, vector<32x32xf32>
    %cst_62 = arith.constant dense<0.000000e+00> : vector<2x32xf32>
    %118 = tpu.matmul %116, %117, %cst_62 {dimension_numbers = #tpu.dot_dimension_numbers<[1], [0], [0], [1], [0, 0, 1, 1], [], []>} : vector<2x32xf32>, vector<32x32xf32>, vector<2x32xf32> -> vector<2x32xf32>
    %c0_63 = arith.constant 0 : index
    %c0_64 = arith.constant 0 : index
    %119 = vector.load %arg11[%c0_63, %c0_64] : memref<1x32xf32, #tpu.memory_space<vmem>>, vector<1x32xf32>
    %120 = vector.broadcast %119 : vector<1x32xf32> to vector<2x32xf32>
    %121 = arith.addf %118, %120 : vector<2x32xf32>
    %c0_65 = arith.constant 0 : index
    %c0_66 = arith.constant 0 : index
    %122 = vector.load %arg12[%c0_65, %c0_66] : memref<32x32xf32, #tpu.memory_space<vmem>>, vector<32x32xf32>
    %cst_67 = arith.constant dense<0.000000e+00> : vector<2x32xf32>
    %123 = tpu.matmul %116, %122, %cst_67 {dimension_numbers = #tpu.dot_dimension_numbers<[1], [0], [0], [1], [0, 0, 1, 1], [], []>} : vector<2x32xf32>, vector<32x32xf32>, vector<2x32xf32> -> vector<2x32xf32>
    %c0_68 = arith.constant 0 : index
    %c0_69 = arith.constant 0 : index
    %124 = vector.load %arg13[%c0_68, %c0_69] : memref<1x32xf32, #tpu.memory_space<vmem>>, vector<1x32xf32>
    %125 = vector.broadcast %124 : vector<1x32xf32> to vector<2x32xf32>
    %126 = arith.addf %123, %125 : vector<2x32xf32>
    %c0_70 = arith.constant 0 : index
    %c0_71 = arith.constant 0 : index
    %127 = vector.load %arg14[%c0_70, %c0_71] : memref<32x32xf32, #tpu.memory_space<vmem>>, vector<32x32xf32>
    %cst_72 = arith.constant dense<0.000000e+00> : vector<2x32xf32>
    %128 = tpu.matmul %116, %127, %cst_72 {dimension_numbers = #tpu.dot_dimension_numbers<[1], [0], [0], [1], [0, 0, 1, 1], [], []>} : vector<2x32xf32>, vector<32x32xf32>, vector<2x32xf32> -> vector<2x32xf32>
    %c0_73 = arith.constant 0 : index
    %c0_74 = arith.constant 0 : index
    %129 = vector.load %arg15[%c0_73, %c0_74] : memref<1x32xf32, #tpu.memory_space<vmem>>, vector<1x32xf32>
    %130 = vector.broadcast %129 : vector<1x32xf32> to vector<2x32xf32>
    %131 = arith.addf %128, %130 : vector<2x32xf32>
    %132 = tpu.iota {dimensions = array<i32: 1>} : vector<1x32xi32>
    %133 = tpu.iota {dimensions = array<i32: 0>} : vector<2x1xi32>
    %cst_75 = arith.constant 0.000000e+00 : f32
    %134 = vector.broadcast %cst_75 : f32 to vector<2x32xf32>
    %cst_76 = arith.constant 0.000000e+00 : f32
    %135 = vector.broadcast %cst_76 : f32 to vector<2x1xf32>
    %136 = vector.extract_strided_slice %121 {offsets = [0, 0], sizes = [1, 32], strides = [1, 1]} : vector<2x32xf32> to vector<1x32xf32>
    %cst_77 = arith.constant 5.000000e-01 : f32
    %137 = vector.broadcast %cst_77 : f32 to vector<1x32xf32>
    %138 = arith.mulf %136, %137 : vector<1x32xf32>
    %139 = vector.extract_strided_slice %126 {offsets = [0, 0], sizes = [1, 32], strides = [1, 1]} : vector<2x32xf32> to vector<1x32xf32>
    %140 = vector.extract_strided_slice %131 {offsets = [0, 0], sizes = [1, 32], strides = [1, 1]} : vector<2x32xf32> to vector<1x32xf32>
    %c0_78 = arith.constant 0 : index
    %c0_79 = arith.constant 0 : index
    %c0_80 = arith.constant 0 : index
    %141 = vector.load %arg1[%c0_78, %c0_79, %c0_80] : memref<2x7x32xf32, #tpu.memory_space<vmem>>, vector<1x7x32xf32>
    %142 = vector.shape_cast %141 : vector<1x7x32xf32> to vector<7x32xf32>
    %c0_81 = arith.constant 0 : index
    %c0_82 = arith.constant 0 : index
    %c0_83 = arith.constant 0 : index
    %143 = vector.load %arg2[%c0_81, %c0_82, %c0_83] : memref<2x7x32xf32, #tpu.memory_space<vmem>>, vector<1x7x32xf32>
    %144 = vector.shape_cast %143 : vector<1x7x32xf32> to vector<7x32xf32>
    %cst_84 = arith.constant 0.000000e+00 : f32
    %145 = vector.broadcast %cst_84 : f32 to vector<1x32xf32>
    %cst_85 = arith.constant 0.000000e+00 : f32
    %146 = vector.broadcast %cst_85 : f32 to vector<1x7xf32>
    %cst_86 = arith.constant 0.000000e+00 : f32
    %147 = vector.broadcast %cst_86 : f32 to vector<1x1xf32>
    %c0_i32_87 = arith.constant 0 : i32
    %148 = vector.broadcast %c0_i32_87 : i32 to vector<1x32xi32>
    %149 = arith.cmpi sge, %132, %148 : vector<1x32xi32>
    %c4_i32 = arith.constant 4 : i32
    %150 = vector.broadcast %c4_i32 : i32 to vector<1x32xi32>
    %151 = arith.cmpi slt, %132, %150 : vector<1x32xi32>
    %152 = arith.andi %149, %151 : vector<1x32xi1>
    %153 = arith.extui %152 : vector<1x32xi1> to vector<1x32xi32>
    %154 = arith.sitofp %153 : vector<1x32xi32> to vector<1x32xf32>
    %155 = arith.mulf %138, %154 : vector<1x32xf32>
    %cst_88 = arith.constant dense<0.000000e+00> : vector<1x7xf32>
    %156 = tpu.matmul %155, %142, %cst_88 {dimension_numbers = #tpu.dot_dimension_numbers<[1], [1], [0], [0], [0, 0, 1, 0], [], []>} : vector<1x32xf32>, vector<7x32xf32>, vector<1x7xf32> -> vector<1x7xf32>
    %157 = arith.mulf %155, %139 : vector<1x32xf32>
    %cst_89 = arith.constant dense<0.000000e+00> : vector<1xf32>
    %158 = vector.multi_reduction <add>, %157, %cst_89 [1] : vector<1x32xf32> to vector<1xf32>
    %159 = vector.shape_cast %158 : vector<1xf32> to vector<1x1xf32>
    %cst_90 = arith.constant dense<0xFF800000> : vector<1xf32>
    %160 = vector.multi_reduction <maximumf>, %156, %cst_90 [1] : vector<1x7xf32> to vector<1xf32>
    %161 = vector.shape_cast %160 : vector<1xf32> to vector<1x1xf32>
    %162 = arith.maximumf %161, %159 : vector<1x1xf32>
    %163 = vector.broadcast %162 : vector<1x1xf32> to vector<1x7xf32>
    %164 = arith.subf %156, %163 : vector<1x7xf32>
    %165 = math.exp %164 : vector<1x7xf32>
    %166 = arith.subf %159, %162 : vector<1x1xf32>
    %167 = math.exp %166 : vector<1x1xf32>
    %cst_91 = arith.constant dense<0.000000e+00> : vector<1xf32>
    %168 = vector.multi_reduction <add>, %165, %cst_91 [1] : vector<1x7xf32> to vector<1xf32>
    %169 = vector.shape_cast %168 : vector<1xf32> to vector<1x1xf32>
    %170 = arith.addf %169, %167 : vector<1x1xf32>
    %171 = tpu.reciprocal %170 {approx = true} : vector<1x1xf32> -> vector<1x1xf32>
    %172 = vector.broadcast %171 : vector<1x1xf32> to vector<1x7xf32>
    %173 = arith.mulf %165, %172 : vector<1x7xf32>
    %174 = arith.mulf %167, %171 : vector<1x1xf32>
    %175 = vector.broadcast %154 : vector<1x32xf32> to vector<7x32xf32>
    %176 = arith.mulf %144, %175 : vector<7x32xf32>
    %cst_92 = arith.constant dense<0.000000e+00> : vector<1x32xf32>
    %177 = tpu.matmul %173, %176, %cst_92 {dimension_numbers = #tpu.dot_dimension_numbers<[1], [0], [0], [1], [0, 0, 1, 1], [], []>} : vector<1x7xf32>, vector<7x32xf32>, vector<1x32xf32> -> vector<1x32xf32>
    %178 = arith.addf %145, %177 : vector<1x32xf32>
    %179 = arith.mulf %140, %154 : vector<1x32xf32>
    %180 = vector.broadcast %174 : vector<1x1xf32> to vector<1x32xf32>
    %181 = arith.mulf %180, %179 : vector<1x32xf32>
    %182 = arith.addf %178, %181 : vector<1x32xf32>
    %183 = arith.addf %146, %173 : vector<1x7xf32>
    %184 = arith.addf %147, %174 : vector<1x1xf32>
    %c4_i32_93 = arith.constant 4 : i32
    %185 = vector.broadcast %c4_i32_93 : i32 to vector<1x32xi32>
    %186 = arith.cmpi sge, %132, %185 : vector<1x32xi32>
    %c8_i32 = arith.constant 8 : i32
    %187 = vector.broadcast %c8_i32 : i32 to vector<1x32xi32>
    %188 = arith.cmpi slt, %132, %187 : vector<1x32xi32>
    %189 = arith.andi %186, %188 : vector<1x32xi1>
    %190 = arith.extui %189 : vector<1x32xi1> to vector<1x32xi32>
    %191 = arith.sitofp %190 : vector<1x32xi32> to vector<1x32xf32>
    %192 = arith.mulf %138, %191 : vector<1x32xf32>
    %cst_94 = arith.constant dense<0.000000e+00> : vector<1x7xf32>
    %193 = tpu.matmul %192, %142, %cst_94 {dimension_numbers = #tpu.dot_dimension_numbers<[1], [1], [0], [0], [0, 0, 1, 0], [], []>} : vector<1x32xf32>, vector<7x32xf32>, vector<1x7xf32> -> vector<1x7xf32>
    %194 = arith.mulf %192, %139 : vector<1x32xf32>
    %cst_95 = arith.constant dense<0.000000e+00> : vector<1xf32>
    %195 = vector.multi_reduction <add>, %194, %cst_95 [1] : vector<1x32xf32> to vector<1xf32>
    %196 = vector.shape_cast %195 : vector<1xf32> to vector<1x1xf32>
    %cst_96 = arith.constant dense<0xFF800000> : vector<1xf32>
    %197 = vector.multi_reduction <maximumf>, %193, %cst_96 [1] : vector<1x7xf32> to vector<1xf32>
    %198 = vector.shape_cast %197 : vector<1xf32> to vector<1x1xf32>
    %199 = arith.maximumf %198, %196 : vector<1x1xf32>
    %200 = vector.broadcast %199 : vector<1x1xf32> to vector<1x7xf32>
    %201 = arith.subf %193, %200 : vector<1x7xf32>
    %202 = math.exp %201 : vector<1x7xf32>
    %203 = arith.subf %196, %199 : vector<1x1xf32>
    %204 = math.exp %203 : vector<1x1xf32>
    %cst_97 = arith.constant dense<0.000000e+00> : vector<1xf32>
    %205 = vector.multi_reduction <add>, %202, %cst_97 [1] : vector<1x7xf32> to vector<1xf32>
    %206 = vector.shape_cast %205 : vector<1xf32> to vector<1x1xf32>
    %207 = arith.addf %206, %204 : vector<1x1xf32>
    %208 = tpu.reciprocal %207 {approx = true} : vector<1x1xf32> -> vector<1x1xf32>
    %209 = vector.broadcast %208 : vector<1x1xf32> to vector<1x7xf32>
    %210 = arith.mulf %202, %209 : vector<1x7xf32>
    %211 = arith.mulf %204, %208 : vector<1x1xf32>
    %212 = vector.broadcast %191 : vector<1x32xf32> to vector<7x32xf32>
    %213 = arith.mulf %144, %212 : vector<7x32xf32>
    %cst_98 = arith.constant dense<0.000000e+00> : vector<1x32xf32>
    %214 = tpu.matmul %210, %213, %cst_98 {dimension_numbers = #tpu.dot_dimension_numbers<[1], [0], [0], [1], [0, 0, 1, 1], [], []>} : vector<1x7xf32>, vector<7x32xf32>, vector<1x32xf32> -> vector<1x32xf32>
    %215 = arith.addf %182, %214 : vector<1x32xf32>
    %216 = arith.mulf %140, %191 : vector<1x32xf32>
    %217 = vector.broadcast %211 : vector<1x1xf32> to vector<1x32xf32>
    %218 = arith.mulf %217, %216 : vector<1x32xf32>
    %219 = arith.addf %215, %218 : vector<1x32xf32>
    %220 = arith.addf %183, %210 : vector<1x7xf32>
    %221 = arith.addf %184, %211 : vector<1x1xf32>
    %c8_i32_99 = arith.constant 8 : i32
    %222 = vector.broadcast %c8_i32_99 : i32 to vector<1x32xi32>
    %223 = arith.cmpi sge, %132, %222 : vector<1x32xi32>
    %c12_i32 = arith.constant 12 : i32
    %224 = vector.broadcast %c12_i32 : i32 to vector<1x32xi32>
    %225 = arith.cmpi slt, %132, %224 : vector<1x32xi32>
    %226 = arith.andi %223, %225 : vector<1x32xi1>
    %227 = arith.extui %226 : vector<1x32xi1> to vector<1x32xi32>
    %228 = arith.sitofp %227 : vector<1x32xi32> to vector<1x32xf32>
    %229 = arith.mulf %138, %228 : vector<1x32xf32>
    %cst_100 = arith.constant dense<0.000000e+00> : vector<1x7xf32>
    %230 = tpu.matmul %229, %142, %cst_100 {dimension_numbers = #tpu.dot_dimension_numbers<[1], [1], [0], [0], [0, 0, 1, 0], [], []>} : vector<1x32xf32>, vector<7x32xf32>, vector<1x7xf32> -> vector<1x7xf32>
    %231 = arith.mulf %229, %139 : vector<1x32xf32>
    %cst_101 = arith.constant dense<0.000000e+00> : vector<1xf32>
    %232 = vector.multi_reduction <add>, %231, %cst_101 [1] : vector<1x32xf32> to vector<1xf32>
    %233 = vector.shape_cast %232 : vector<1xf32> to vector<1x1xf32>
    %cst_102 = arith.constant dense<0xFF800000> : vector<1xf32>
    %234 = vector.multi_reduction <maximumf>, %230, %cst_102 [1] : vector<1x7xf32> to vector<1xf32>
    %235 = vector.shape_cast %234 : vector<1xf32> to vector<1x1xf32>
    %236 = arith.maximumf %235, %233 : vector<1x1xf32>
    %237 = vector.broadcast %236 : vector<1x1xf32> to vector<1x7xf32>
    %238 = arith.subf %230, %237 : vector<1x7xf32>
    %239 = math.exp %238 : vector<1x7xf32>
    %240 = arith.subf %233, %236 : vector<1x1xf32>
    %241 = math.exp %240 : vector<1x1xf32>
    %cst_103 = arith.constant dense<0.000000e+00> : vector<1xf32>
    %242 = vector.multi_reduction <add>, %239, %cst_103 [1] : vector<1x7xf32> to vector<1xf32>
    %243 = vector.shape_cast %242 : vector<1xf32> to vector<1x1xf32>
    %244 = arith.addf %243, %241 : vector<1x1xf32>
    %245 = tpu.reciprocal %244 {approx = true} : vector<1x1xf32> -> vector<1x1xf32>
    %246 = vector.broadcast %245 : vector<1x1xf32> to vector<1x7xf32>
    %247 = arith.mulf %239, %246 : vector<1x7xf32>
    %248 = arith.mulf %241, %245 : vector<1x1xf32>
    %249 = vector.broadcast %228 : vector<1x32xf32> to vector<7x32xf32>
    %250 = arith.mulf %144, %249 : vector<7x32xf32>
    %cst_104 = arith.constant dense<0.000000e+00> : vector<1x32xf32>
    %251 = tpu.matmul %247, %250, %cst_104 {dimension_numbers = #tpu.dot_dimension_numbers<[1], [0], [0], [1], [0, 0, 1, 1], [], []>} : vector<1x7xf32>, vector<7x32xf32>, vector<1x32xf32> -> vector<1x32xf32>
    %252 = arith.addf %219, %251 : vector<1x32xf32>
    %253 = arith.mulf %140, %228 : vector<1x32xf32>
    %254 = vector.broadcast %248 : vector<1x1xf32> to vector<1x32xf32>
    %255 = arith.mulf %254, %253 : vector<1x32xf32>
    %256 = arith.addf %252, %255 : vector<1x32xf32>
    %257 = arith.addf %220, %247 : vector<1x7xf32>
    %258 = arith.addf %221, %248 : vector<1x1xf32>
    %c12_i32_105 = arith.constant 12 : i32
    %259 = vector.broadcast %c12_i32_105 : i32 to vector<1x32xi32>
    %260 = arith.cmpi sge, %132, %259 : vector<1x32xi32>
    %c16_i32 = arith.constant 16 : i32
    %261 = vector.broadcast %c16_i32 : i32 to vector<1x32xi32>
    %262 = arith.cmpi slt, %132, %261 : vector<1x32xi32>
    %263 = arith.andi %260, %262 : vector<1x32xi1>
    %264 = arith.extui %263 : vector<1x32xi1> to vector<1x32xi32>
    %265 = arith.sitofp %264 : vector<1x32xi32> to vector<1x32xf32>
    %266 = arith.mulf %138, %265 : vector<1x32xf32>
    %cst_106 = arith.constant dense<0.000000e+00> : vector<1x7xf32>
    %267 = tpu.matmul %266, %142, %cst_106 {dimension_numbers = #tpu.dot_dimension_numbers<[1], [1], [0], [0], [0, 0, 1, 0], [], []>} : vector<1x32xf32>, vector<7x32xf32>, vector<1x7xf32> -> vector<1x7xf32>
    %268 = arith.mulf %266, %139 : vector<1x32xf32>
    %cst_107 = arith.constant dense<0.000000e+00> : vector<1xf32>
    %269 = vector.multi_reduction <add>, %268, %cst_107 [1] : vector<1x32xf32> to vector<1xf32>
    %270 = vector.shape_cast %269 : vector<1xf32> to vector<1x1xf32>
    %cst_108 = arith.constant dense<0xFF800000> : vector<1xf32>
    %271 = vector.multi_reduction <maximumf>, %267, %cst_108 [1] : vector<1x7xf32> to vector<1xf32>
    %272 = vector.shape_cast %271 : vector<1xf32> to vector<1x1xf32>
    %273 = arith.maximumf %272, %270 : vector<1x1xf32>
    %274 = vector.broadcast %273 : vector<1x1xf32> to vector<1x7xf32>
    %275 = arith.subf %267, %274 : vector<1x7xf32>
    %276 = math.exp %275 : vector<1x7xf32>
    %277 = arith.subf %270, %273 : vector<1x1xf32>
    %278 = math.exp %277 : vector<1x1xf32>
    %cst_109 = arith.constant dense<0.000000e+00> : vector<1xf32>
    %279 = vector.multi_reduction <add>, %276, %cst_109 [1] : vector<1x7xf32> to vector<1xf32>
    %280 = vector.shape_cast %279 : vector<1xf32> to vector<1x1xf32>
    %281 = arith.addf %280, %278 : vector<1x1xf32>
    %282 = tpu.reciprocal %281 {approx = true} : vector<1x1xf32> -> vector<1x1xf32>
    %283 = vector.broadcast %282 : vector<1x1xf32> to vector<1x7xf32>
    %284 = arith.mulf %276, %283 : vector<1x7xf32>
    %285 = arith.mulf %278, %282 : vector<1x1xf32>
    %286 = vector.broadcast %265 : vector<1x32xf32> to vector<7x32xf32>
    %287 = arith.mulf %144, %286 : vector<7x32xf32>
    %cst_110 = arith.constant dense<0.000000e+00> : vector<1x32xf32>
    %288 = tpu.matmul %284, %287, %cst_110 {dimension_numbers = #tpu.dot_dimension_numbers<[1], [0], [0], [1], [0, 0, 1, 1], [], []>} : vector<1x7xf32>, vector<7x32xf32>, vector<1x32xf32> -> vector<1x32xf32>
    %289 = arith.addf %256, %288 : vector<1x32xf32>
    %290 = arith.mulf %140, %265 : vector<1x32xf32>
    %291 = vector.broadcast %285 : vector<1x1xf32> to vector<1x32xf32>
    %292 = arith.mulf %291, %290 : vector<1x32xf32>
    %293 = arith.addf %289, %292 : vector<1x32xf32>
    %294 = arith.addf %257, %284 : vector<1x7xf32>
    %295 = arith.addf %258, %285 : vector<1x1xf32>
    %c16_i32_111 = arith.constant 16 : i32
    %296 = vector.broadcast %c16_i32_111 : i32 to vector<1x32xi32>
    %297 = arith.cmpi sge, %132, %296 : vector<1x32xi32>
    %c20_i32 = arith.constant 20 : i32
    %298 = vector.broadcast %c20_i32 : i32 to vector<1x32xi32>
    %299 = arith.cmpi slt, %132, %298 : vector<1x32xi32>
    %300 = arith.andi %297, %299 : vector<1x32xi1>
    %301 = arith.extui %300 : vector<1x32xi1> to vector<1x32xi32>
    %302 = arith.sitofp %301 : vector<1x32xi32> to vector<1x32xf32>
    %303 = arith.mulf %138, %302 : vector<1x32xf32>
    %cst_112 = arith.constant dense<0.000000e+00> : vector<1x7xf32>
    %304 = tpu.matmul %303, %142, %cst_112 {dimension_numbers = #tpu.dot_dimension_numbers<[1], [1], [0], [0], [0, 0, 1, 0], [], []>} : vector<1x32xf32>, vector<7x32xf32>, vector<1x7xf32> -> vector<1x7xf32>
    %305 = arith.mulf %303, %139 : vector<1x32xf32>
    %cst_113 = arith.constant dense<0.000000e+00> : vector<1xf32>
    %306 = vector.multi_reduction <add>, %305, %cst_113 [1] : vector<1x32xf32> to vector<1xf32>
    %307 = vector.shape_cast %306 : vector<1xf32> to vector<1x1xf32>
    %cst_114 = arith.constant dense<0xFF800000> : vector<1xf32>
    %308 = vector.multi_reduction <maximumf>, %304, %cst_114 [1] : vector<1x7xf32> to vector<1xf32>
    %309 = vector.shape_cast %308 : vector<1xf32> to vector<1x1xf32>
    %310 = arith.maximumf %309, %307 : vector<1x1xf32>
    %311 = vector.broadcast %310 : vector<1x1xf32> to vector<1x7xf32>
    %312 = arith.subf %304, %311 : vector<1x7xf32>
    %313 = math.exp %312 : vector<1x7xf32>
    %314 = arith.subf %307, %310 : vector<1x1xf32>
    %315 = math.exp %314 : vector<1x1xf32>
    %cst_115 = arith.constant dense<0.000000e+00> : vector<1xf32>
    %316 = vector.multi_reduction <add>, %313, %cst_115 [1] : vector<1x7xf32> to vector<1xf32>
    %317 = vector.shape_cast %316 : vector<1xf32> to vector<1x1xf32>
    %318 = arith.addf %317, %315 : vector<1x1xf32>
    %319 = tpu.reciprocal %318 {approx = true} : vector<1x1xf32> -> vector<1x1xf32>
    %320 = vector.broadcast %319 : vector<1x1xf32> to vector<1x7xf32>
    %321 = arith.mulf %313, %320 : vector<1x7xf32>
    %322 = arith.mulf %315, %319 : vector<1x1xf32>
    %323 = vector.broadcast %302 : vector<1x32xf32> to vector<7x32xf32>
    %324 = arith.mulf %144, %323 : vector<7x32xf32>
    %cst_116 = arith.constant dense<0.000000e+00> : vector<1x32xf32>
    %325 = tpu.matmul %321, %324, %cst_116 {dimension_numbers = #tpu.dot_dimension_numbers<[1], [0], [0], [1], [0, 0, 1, 1], [], []>} : vector<1x7xf32>, vector<7x32xf32>, vector<1x32xf32> -> vector<1x32xf32>
    %326 = arith.addf %293, %325 : vector<1x32xf32>
    %327 = arith.mulf %140, %302 : vector<1x32xf32>
    %328 = vector.broadcast %322 : vector<1x1xf32> to vector<1x32xf32>
    %329 = arith.mulf %328, %327 : vector<1x32xf32>
    %330 = arith.addf %326, %329 : vector<1x32xf32>
    %331 = arith.addf %294, %321 : vector<1x7xf32>
    %332 = arith.addf %295, %322 : vector<1x1xf32>
    %c20_i32_117 = arith.constant 20 : i32
    %333 = vector.broadcast %c20_i32_117 : i32 to vector<1x32xi32>
    %334 = arith.cmpi sge, %132, %333 : vector<1x32xi32>
    %c24_i32 = arith.constant 24 : i32
    %335 = vector.broadcast %c24_i32 : i32 to vector<1x32xi32>
    %336 = arith.cmpi slt, %132, %335 : vector<1x32xi32>
    %337 = arith.andi %334, %336 : vector<1x32xi1>
    %338 = arith.extui %337 : vector<1x32xi1> to vector<1x32xi32>
    %339 = arith.sitofp %338 : vector<1x32xi32> to vector<1x32xf32>
    %340 = arith.mulf %138, %339 : vector<1x32xf32>
    %cst_118 = arith.constant dense<0.000000e+00> : vector<1x7xf32>
    %341 = tpu.matmul %340, %142, %cst_118 {dimension_numbers = #tpu.dot_dimension_numbers<[1], [1], [0], [0], [0, 0, 1, 0], [], []>} : vector<1x32xf32>, vector<7x32xf32>, vector<1x7xf32> -> vector<1x7xf32>
    %342 = arith.mulf %340, %139 : vector<1x32xf32>
    %cst_119 = arith.constant dense<0.000000e+00> : vector<1xf32>
    %343 = vector.multi_reduction <add>, %342, %cst_119 [1] : vector<1x32xf32> to vector<1xf32>
    %344 = vector.shape_cast %343 : vector<1xf32> to vector<1x1xf32>
    %cst_120 = arith.constant dense<0xFF800000> : vector<1xf32>
    %345 = vector.multi_reduction <maximumf>, %341, %cst_120 [1] : vector<1x7xf32> to vector<1xf32>
    %346 = vector.shape_cast %345 : vector<1xf32> to vector<1x1xf32>
    %347 = arith.maximumf %346, %344 : vector<1x1xf32>
    %348 = vector.broadcast %347 : vector<1x1xf32> to vector<1x7xf32>
    %349 = arith.subf %341, %348 : vector<1x7xf32>
    %350 = math.exp %349 : vector<1x7xf32>
    %351 = arith.subf %344, %347 : vector<1x1xf32>
    %352 = math.exp %351 : vector<1x1xf32>
    %cst_121 = arith.constant dense<0.000000e+00> : vector<1xf32>
    %353 = vector.multi_reduction <add>, %350, %cst_121 [1] : vector<1x7xf32> to vector<1xf32>
    %354 = vector.shape_cast %353 : vector<1xf32> to vector<1x1xf32>
    %355 = arith.addf %354, %352 : vector<1x1xf32>
    %356 = tpu.reciprocal %355 {approx = true} : vector<1x1xf32> -> vector<1x1xf32>
    %357 = vector.broadcast %356 : vector<1x1xf32> to vector<1x7xf32>
    %358 = arith.mulf %350, %357 : vector<1x7xf32>
    %359 = arith.mulf %352, %356 : vector<1x1xf32>
    %360 = vector.broadcast %339 : vector<1x32xf32> to vector<7x32xf32>
    %361 = arith.mulf %144, %360 : vector<7x32xf32>
    %cst_122 = arith.constant dense<0.000000e+00> : vector<1x32xf32>
    %362 = tpu.matmul %358, %361, %cst_122 {dimension_numbers = #tpu.dot_dimension_numbers<[1], [0], [0], [1], [0, 0, 1, 1], [], []>} : vector<1x7xf32>, vector<7x32xf32>, vector<1x32xf32> -> vector<1x32xf32>
    %363 = arith.addf %330, %362 : vector<1x32xf32>
    %364 = arith.mulf %140, %339 : vector<1x32xf32>
    %365 = vector.broadcast %359 : vector<1x1xf32> to vector<1x32xf32>
    %366 = arith.mulf %365, %364 : vector<1x32xf32>
    %367 = arith.addf %363, %366 : vector<1x32xf32>
    %368 = arith.addf %331, %358 : vector<1x7xf32>
    %369 = arith.addf %332, %359 : vector<1x1xf32>
    %c24_i32_123 = arith.constant 24 : i32
    %370 = vector.broadcast %c24_i32_123 : i32 to vector<1x32xi32>
    %371 = arith.cmpi sge, %132, %370 : vector<1x32xi32>
    %c28_i32 = arith.constant 28 : i32
    %372 = vector.broadcast %c28_i32 : i32 to vector<1x32xi32>
    %373 = arith.cmpi slt, %132, %372 : vector<1x32xi32>
    %374 = arith.andi %371, %373 : vector<1x32xi1>
    %375 = arith.extui %374 : vector<1x32xi1> to vector<1x32xi32>
    %376 = arith.sitofp %375 : vector<1x32xi32> to vector<1x32xf32>
    %377 = arith.mulf %138, %376 : vector<1x32xf32>
    %cst_124 = arith.constant dense<0.000000e+00> : vector<1x7xf32>
    %378 = tpu.matmul %377, %142, %cst_124 {dimension_numbers = #tpu.dot_dimension_numbers<[1], [1], [0], [0], [0, 0, 1, 0], [], []>} : vector<1x32xf32>, vector<7x32xf32>, vector<1x7xf32> -> vector<1x7xf32>
    %379 = arith.mulf %377, %139 : vector<1x32xf32>
    %cst_125 = arith.constant dense<0.000000e+00> : vector<1xf32>
    %380 = vector.multi_reduction <add>, %379, %cst_125 [1] : vector<1x32xf32> to vector<1xf32>
    %381 = vector.shape_cast %380 : vector<1xf32> to vector<1x1xf32>
    %cst_126 = arith.constant dense<0xFF800000> : vector<1xf32>
    %382 = vector.multi_reduction <maximumf>, %378, %cst_126 [1] : vector<1x7xf32> to vector<1xf32>
    %383 = vector.shape_cast %382 : vector<1xf32> to vector<1x1xf32>
    %384 = arith.maximumf %383, %381 : vector<1x1xf32>
    %385 = vector.broadcast %384 : vector<1x1xf32> to vector<1x7xf32>
    %386 = arith.subf %378, %385 : vector<1x7xf32>
    %387 = math.exp %386 : vector<1x7xf32>
    %388 = arith.subf %381, %384 : vector<1x1xf32>
    %389 = math.exp %388 : vector<1x1xf32>
    %cst_127 = arith.constant dense<0.000000e+00> : vector<1xf32>
    %390 = vector.multi_reduction <add>, %387, %cst_127 [1] : vector<1x7xf32> to vector<1xf32>
    %391 = vector.shape_cast %390 : vector<1xf32> to vector<1x1xf32>
    %392 = arith.addf %391, %389 : vector<1x1xf32>
    %393 = tpu.reciprocal %392 {approx = true} : vector<1x1xf32> -> vector<1x1xf32>
    %394 = vector.broadcast %393 : vector<1x1xf32> to vector<1x7xf32>
    %395 = arith.mulf %387, %394 : vector<1x7xf32>
    %396 = arith.mulf %389, %393 : vector<1x1xf32>
    %397 = vector.broadcast %376 : vector<1x32xf32> to vector<7x32xf32>
    %398 = arith.mulf %144, %397 : vector<7x32xf32>
    %cst_128 = arith.constant dense<0.000000e+00> : vector<1x32xf32>
    %399 = tpu.matmul %395, %398, %cst_128 {dimension_numbers = #tpu.dot_dimension_numbers<[1], [0], [0], [1], [0, 0, 1, 1], [], []>} : vector<1x7xf32>, vector<7x32xf32>, vector<1x32xf32> -> vector<1x32xf32>
    %400 = arith.addf %367, %399 : vector<1x32xf32>
    %401 = arith.mulf %140, %376 : vector<1x32xf32>
    %402 = vector.broadcast %396 : vector<1x1xf32> to vector<1x32xf32>
    %403 = arith.mulf %402, %401 : vector<1x32xf32>
    %404 = arith.addf %400, %403 : vector<1x32xf32>
    %405 = arith.addf %368, %395 : vector<1x7xf32>
    %406 = arith.addf %369, %396 : vector<1x1xf32>
    %c28_i32_129 = arith.constant 28 : i32
    %407 = vector.broadcast %c28_i32_129 : i32 to vector<1x32xi32>
    %408 = arith.cmpi sge, %132, %407 : vector<1x32xi32>
    %c32_i32 = arith.constant 32 : i32
    %409 = vector.broadcast %c32_i32 : i32 to vector<1x32xi32>
    %410 = arith.cmpi slt, %132, %409 : vector<1x32xi32>
    %411 = arith.andi %408, %410 : vector<1x32xi1>
    %412 = arith.extui %411 : vector<1x32xi1> to vector<1x32xi32>
    %413 = arith.sitofp %412 : vector<1x32xi32> to vector<1x32xf32>
    %414 = arith.mulf %138, %413 : vector<1x32xf32>
    %cst_130 = arith.constant dense<0.000000e+00> : vector<1x7xf32>
    %415 = tpu.matmul %414, %142, %cst_130 {dimension_numbers = #tpu.dot_dimension_numbers<[1], [1], [0], [0], [0, 0, 1, 0], [], []>} : vector<1x32xf32>, vector<7x32xf32>, vector<1x7xf32> -> vector<1x7xf32>
    %416 = arith.mulf %414, %139 : vector<1x32xf32>
    %cst_131 = arith.constant dense<0.000000e+00> : vector<1xf32>
    %417 = vector.multi_reduction <add>, %416, %cst_131 [1] : vector<1x32xf32> to vector<1xf32>
    %418 = vector.shape_cast %417 : vector<1xf32> to vector<1x1xf32>
    %cst_132 = arith.constant dense<0xFF800000> : vector<1xf32>
    %419 = vector.multi_reduction <maximumf>, %415, %cst_132 [1] : vector<1x7xf32> to vector<1xf32>
    %420 = vector.shape_cast %419 : vector<1xf32> to vector<1x1xf32>
    %421 = arith.maximumf %420, %418 : vector<1x1xf32>
    %422 = vector.broadcast %421 : vector<1x1xf32> to vector<1x7xf32>
    %423 = arith.subf %415, %422 : vector<1x7xf32>
    %424 = math.exp %423 : vector<1x7xf32>
    %425 = arith.subf %418, %421 : vector<1x1xf32>
    %426 = math.exp %425 : vector<1x1xf32>
    %cst_133 = arith.constant dense<0.000000e+00> : vector<1xf32>
    %427 = vector.multi_reduction <add>, %424, %cst_133 [1] : vector<1x7xf32> to vector<1xf32>
    %428 = vector.shape_cast %427 : vector<1xf32> to vector<1x1xf32>
    %429 = arith.addf %428, %426 : vector<1x1xf32>
    %430 = tpu.reciprocal %429 {approx = true} : vector<1x1xf32> -> vector<1x1xf32>
    %431 = vector.broadcast %430 : vector<1x1xf32> to vector<1x7xf32>
    %432 = arith.mulf %424, %431 : vector<1x7xf32>
    %433 = arith.mulf %426, %430 : vector<1x1xf32>
    %434 = vector.broadcast %413 : vector<1x32xf32> to vector<7x32xf32>
    %435 = arith.mulf %144, %434 : vector<7x32xf32>
    %cst_134 = arith.constant dense<0.000000e+00> : vector<1x32xf32>
    %436 = tpu.matmul %432, %435, %cst_134 {dimension_numbers = #tpu.dot_dimension_numbers<[1], [0], [0], [1], [0, 0, 1, 1], [], []>} : vector<1x7xf32>, vector<7x32xf32>, vector<1x32xf32> -> vector<1x32xf32>
    %437 = arith.addf %404, %436 : vector<1x32xf32>
    %438 = arith.mulf %140, %413 : vector<1x32xf32>
    %439 = vector.broadcast %433 : vector<1x1xf32> to vector<1x32xf32>
    %440 = arith.mulf %439, %438 : vector<1x32xf32>
    %441 = arith.addf %437, %440 : vector<1x32xf32>
    %442 = arith.addf %405, %432 : vector<1x7xf32>
    %443 = arith.addf %406, %433 : vector<1x1xf32>
    %cst_135 = arith.constant 1.250000e-01 : f32
    %444 = vector.broadcast %cst_135 : f32 to vector<1x7xf32>
    %445 = arith.mulf %442, %444 : vector<1x7xf32>
    %cst_136 = arith.constant 1.250000e-01 : f32
    %446 = vector.broadcast %cst_136 : f32 to vector<1x1xf32>
    %447 = arith.mulf %443, %446 : vector<1x1xf32>
    %cst_137 = arith.constant 0.000000e+00 : f32
    %448 = vector.broadcast %cst_137 : f32 to vector<1x7xf32>
    %449 = arith.cmpf ogt, %445, %448 : vector<1x7xf32>
    %cst_138 = arith.constant 1.000000e+00 : f32
    %450 = vector.broadcast %cst_138 : f32 to vector<1x7xf32>
    %451 = arith.select %449, %445, %450 : vector<1x7xi1>, vector<1x7xf32>
    %452 = math.log %451 : vector<1x7xf32>
    %453 = arith.mulf %445, %452 : vector<1x7xf32>
    %cst_139 = arith.constant dense<0.000000e+00> : vector<1xf32>
    %454 = vector.multi_reduction <add>, %453, %cst_139 [1] : vector<1x7xf32> to vector<1xf32>
    %455 = vector.shape_cast %454 : vector<1xf32> to vector<1x1xf32>
    %cst_140 = arith.constant 0.000000e+00 : f32
    %456 = vector.broadcast %cst_140 : f32 to vector<1x1xf32>
    %457 = arith.cmpf ogt, %447, %456 : vector<1x1xf32>
    %cst_141 = arith.constant 1.000000e+00 : f32
    %458 = vector.broadcast %cst_141 : f32 to vector<1x1xf32>
    %459 = arith.select %457, %447, %458 : vector<1x1xi1>, vector<1x1xf32>
    %460 = math.log %459 : vector<1x1xf32>
    %461 = arith.mulf %447, %460 : vector<1x1xf32>
    %462 = arith.addf %455, %461 : vector<1x1xf32>
    %cst_142 = arith.constant 0.000000e+00 : f32
    %463 = vector.broadcast %cst_142 : f32 to vector<1x1xf32>
    %464 = arith.subf %463, %462 : vector<1x1xf32>
    %c0_i32_143 = arith.constant 0 : i32
    %465 = vector.broadcast %c0_i32_143 : i32 to vector<2x1xi32>
    %466 = arith.cmpi eq, %133, %465 : vector<2x1xi32>
    %467 = vector.shape_cast %466 : vector<2x1xi1> to vector<2x1xi1>
    %468 = vector.broadcast %467 : vector<2x1xi1> to vector<2x32xi1>
    %469 = vector.shape_cast %441 : vector<1x32xf32> to vector<1x32xf32>
    %470 = vector.broadcast %469 : vector<1x32xf32> to vector<2x32xf32>
    %471 = arith.select %468, %470, %134 : vector<2x32xi1>, vector<2x32xf32>
    %c0_i32_144 = arith.constant 0 : i32
    %472 = vector.broadcast %c0_i32_144 : i32 to vector<2x1xi32>
    %473 = arith.cmpi eq, %133, %472 : vector<2x1xi32>
    %474 = vector.shape_cast %464 : vector<1x1xf32> to vector<1x1xf32>
    %475 = vector.broadcast %474 : vector<1x1xf32> to vector<2x1xf32>
    %476 = arith.select %473, %475, %135 : vector<2x1xi1>, vector<2x1xf32>
    %477 = vector.extract_strided_slice %121 {offsets = [1, 0], sizes = [1, 32], strides = [1, 1]} : vector<2x32xf32> to vector<1x32xf32>
    %cst_145 = arith.constant 5.000000e-01 : f32
    %478 = vector.broadcast %cst_145 : f32 to vector<1x32xf32>
    %479 = arith.mulf %477, %478 : vector<1x32xf32>
    %480 = vector.extract_strided_slice %126 {offsets = [1, 0], sizes = [1, 32], strides = [1, 1]} : vector<2x32xf32> to vector<1x32xf32>
    %481 = vector.extract_strided_slice %131 {offsets = [1, 0], sizes = [1, 32], strides = [1, 1]} : vector<2x32xf32> to vector<1x32xf32>
    %c1_146 = arith.constant 1 : index
    %c0_147 = arith.constant 0 : index
    %c0_148 = arith.constant 0 : index
    %482 = vector.load %arg1[%c1_146, %c0_147, %c0_148] : memref<2x7x32xf32, #tpu.memory_space<vmem>>, vector<1x7x32xf32>
    %483 = vector.shape_cast %482 : vector<1x7x32xf32> to vector<7x32xf32>
    %c1_149 = arith.constant 1 : index
    %c0_150 = arith.constant 0 : index
    %c0_151 = arith.constant 0 : index
    %484 = vector.load %arg2[%c1_149, %c0_150, %c0_151] : memref<2x7x32xf32, #tpu.memory_space<vmem>>, vector<1x7x32xf32>
    %485 = vector.shape_cast %484 : vector<1x7x32xf32> to vector<7x32xf32>
    %cst_152 = arith.constant 0.000000e+00 : f32
    %486 = vector.broadcast %cst_152 : f32 to vector<1x32xf32>
    %cst_153 = arith.constant 0.000000e+00 : f32
    %487 = vector.broadcast %cst_153 : f32 to vector<1x7xf32>
    %cst_154 = arith.constant 0.000000e+00 : f32
    %488 = vector.broadcast %cst_154 : f32 to vector<1x1xf32>
    %c0_i32_155 = arith.constant 0 : i32
    %489 = vector.broadcast %c0_i32_155 : i32 to vector<1x32xi32>
    %490 = arith.cmpi sge, %132, %489 : vector<1x32xi32>
    %c4_i32_156 = arith.constant 4 : i32
    %491 = vector.broadcast %c4_i32_156 : i32 to vector<1x32xi32>
    %492 = arith.cmpi slt, %132, %491 : vector<1x32xi32>
    %493 = arith.andi %490, %492 : vector<1x32xi1>
    %494 = arith.extui %493 : vector<1x32xi1> to vector<1x32xi32>
    %495 = arith.sitofp %494 : vector<1x32xi32> to vector<1x32xf32>
    %496 = arith.mulf %479, %495 : vector<1x32xf32>
    %cst_157 = arith.constant dense<0.000000e+00> : vector<1x7xf32>
    %497 = tpu.matmul %496, %483, %cst_157 {dimension_numbers = #tpu.dot_dimension_numbers<[1], [1], [0], [0], [0, 0, 1, 0], [], []>} : vector<1x32xf32>, vector<7x32xf32>, vector<1x7xf32> -> vector<1x7xf32>
    %498 = arith.mulf %496, %480 : vector<1x32xf32>
    %cst_158 = arith.constant dense<0.000000e+00> : vector<1xf32>
    %499 = vector.multi_reduction <add>, %498, %cst_158 [1] : vector<1x32xf32> to vector<1xf32>
    %500 = vector.shape_cast %499 : vector<1xf32> to vector<1x1xf32>
    %cst_159 = arith.constant dense<0xFF800000> : vector<1xf32>
    %501 = vector.multi_reduction <maximumf>, %497, %cst_159 [1] : vector<1x7xf32> to vector<1xf32>
    %502 = vector.shape_cast %501 : vector<1xf32> to vector<1x1xf32>
    %503 = arith.maximumf %502, %500 : vector<1x1xf32>
    %504 = vector.broadcast %503 : vector<1x1xf32> to vector<1x7xf32>
    %505 = arith.subf %497, %504 : vector<1x7xf32>
    %506 = math.exp %505 : vector<1x7xf32>
    %507 = arith.subf %500, %503 : vector<1x1xf32>
    %508 = math.exp %507 : vector<1x1xf32>
    %cst_160 = arith.constant dense<0.000000e+00> : vector<1xf32>
    %509 = vector.multi_reduction <add>, %506, %cst_160 [1] : vector<1x7xf32> to vector<1xf32>
    %510 = vector.shape_cast %509 : vector<1xf32> to vector<1x1xf32>
    %511 = arith.addf %510, %508 : vector<1x1xf32>
    %512 = tpu.reciprocal %511 {approx = true} : vector<1x1xf32> -> vector<1x1xf32>
    %513 = vector.broadcast %512 : vector<1x1xf32> to vector<1x7xf32>
    %514 = arith.mulf %506, %513 : vector<1x7xf32>
    %515 = arith.mulf %508, %512 : vector<1x1xf32>
    %516 = vector.broadcast %495 : vector<1x32xf32> to vector<7x32xf32>
    %517 = arith.mulf %485, %516 : vector<7x32xf32>
    %cst_161 = arith.constant dense<0.000000e+00> : vector<1x32xf32>
    %518 = tpu.matmul %514, %517, %cst_161 {dimension_numbers = #tpu.dot_dimension_numbers<[1], [0], [0], [1], [0, 0, 1, 1], [], []>} : vector<1x7xf32>, vector<7x32xf32>, vector<1x32xf32> -> vector<1x32xf32>
    %519 = arith.addf %486, %518 : vector<1x32xf32>
    %520 = arith.mulf %481, %495 : vector<1x32xf32>
    %521 = vector.broadcast %515 : vector<1x1xf32> to vector<1x32xf32>
    %522 = arith.mulf %521, %520 : vector<1x32xf32>
    %523 = arith.addf %519, %522 : vector<1x32xf32>
    %524 = arith.addf %487, %514 : vector<1x7xf32>
    %525 = arith.addf %488, %515 : vector<1x1xf32>
    %c4_i32_162 = arith.constant 4 : i32
    %526 = vector.broadcast %c4_i32_162 : i32 to vector<1x32xi32>
    %527 = arith.cmpi sge, %132, %526 : vector<1x32xi32>
    %c8_i32_163 = arith.constant 8 : i32
    %528 = vector.broadcast %c8_i32_163 : i32 to vector<1x32xi32>
    %529 = arith.cmpi slt, %132, %528 : vector<1x32xi32>
    %530 = arith.andi %527, %529 : vector<1x32xi1>
    %531 = arith.extui %530 : vector<1x32xi1> to vector<1x32xi32>
    %532 = arith.sitofp %531 : vector<1x32xi32> to vector<1x32xf32>
    %533 = arith.mulf %479, %532 : vector<1x32xf32>
    %cst_164 = arith.constant dense<0.000000e+00> : vector<1x7xf32>
    %534 = tpu.matmul %533, %483, %cst_164 {dimension_numbers = #tpu.dot_dimension_numbers<[1], [1], [0], [0], [0, 0, 1, 0], [], []>} : vector<1x32xf32>, vector<7x32xf32>, vector<1x7xf32> -> vector<1x7xf32>
    %535 = arith.mulf %533, %480 : vector<1x32xf32>
    %cst_165 = arith.constant dense<0.000000e+00> : vector<1xf32>
    %536 = vector.multi_reduction <add>, %535, %cst_165 [1] : vector<1x32xf32> to vector<1xf32>
    %537 = vector.shape_cast %536 : vector<1xf32> to vector<1x1xf32>
    %cst_166 = arith.constant dense<0xFF800000> : vector<1xf32>
    %538 = vector.multi_reduction <maximumf>, %534, %cst_166 [1] : vector<1x7xf32> to vector<1xf32>
    %539 = vector.shape_cast %538 : vector<1xf32> to vector<1x1xf32>
    %540 = arith.maximumf %539, %537 : vector<1x1xf32>
    %541 = vector.broadcast %540 : vector<1x1xf32> to vector<1x7xf32>
    %542 = arith.subf %534, %541 : vector<1x7xf32>
    %543 = math.exp %542 : vector<1x7xf32>
    %544 = arith.subf %537, %540 : vector<1x1xf32>
    %545 = math.exp %544 : vector<1x1xf32>
    %cst_167 = arith.constant dense<0.000000e+00> : vector<1xf32>
    %546 = vector.multi_reduction <add>, %543, %cst_167 [1] : vector<1x7xf32> to vector<1xf32>
    %547 = vector.shape_cast %546 : vector<1xf32> to vector<1x1xf32>
    %548 = arith.addf %547, %545 : vector<1x1xf32>
    %549 = tpu.reciprocal %548 {approx = true} : vector<1x1xf32> -> vector<1x1xf32>
    %550 = vector.broadcast %549 : vector<1x1xf32> to vector<1x7xf32>
    %551 = arith.mulf %543, %550 : vector<1x7xf32>
    %552 = arith.mulf %545, %549 : vector<1x1xf32>
    %553 = vector.broadcast %532 : vector<1x32xf32> to vector<7x32xf32>
    %554 = arith.mulf %485, %553 : vector<7x32xf32>
    %cst_168 = arith.constant dense<0.000000e+00> : vector<1x32xf32>
    %555 = tpu.matmul %551, %554, %cst_168 {dimension_numbers = #tpu.dot_dimension_numbers<[1], [0], [0], [1], [0, 0, 1, 1], [], []>} : vector<1x7xf32>, vector<7x32xf32>, vector<1x32xf32> -> vector<1x32xf32>
    %556 = arith.addf %523, %555 : vector<1x32xf32>
    %557 = arith.mulf %481, %532 : vector<1x32xf32>
    %558 = vector.broadcast %552 : vector<1x1xf32> to vector<1x32xf32>
    %559 = arith.mulf %558, %557 : vector<1x32xf32>
    %560 = arith.addf %556, %559 : vector<1x32xf32>
    %561 = arith.addf %524, %551 : vector<1x7xf32>
    %562 = arith.addf %525, %552 : vector<1x1xf32>
    %c8_i32_169 = arith.constant 8 : i32
    %563 = vector.broadcast %c8_i32_169 : i32 to vector<1x32xi32>
    %564 = arith.cmpi sge, %132, %563 : vector<1x32xi32>
    %c12_i32_170 = arith.constant 12 : i32
    %565 = vector.broadcast %c12_i32_170 : i32 to vector<1x32xi32>
    %566 = arith.cmpi slt, %132, %565 : vector<1x32xi32>
    %567 = arith.andi %564, %566 : vector<1x32xi1>
    %568 = arith.extui %567 : vector<1x32xi1> to vector<1x32xi32>
    %569 = arith.sitofp %568 : vector<1x32xi32> to vector<1x32xf32>
    %570 = arith.mulf %479, %569 : vector<1x32xf32>
    %cst_171 = arith.constant dense<0.000000e+00> : vector<1x7xf32>
    %571 = tpu.matmul %570, %483, %cst_171 {dimension_numbers = #tpu.dot_dimension_numbers<[1], [1], [0], [0], [0, 0, 1, 0], [], []>} : vector<1x32xf32>, vector<7x32xf32>, vector<1x7xf32> -> vector<1x7xf32>
    %572 = arith.mulf %570, %480 : vector<1x32xf32>
    %cst_172 = arith.constant dense<0.000000e+00> : vector<1xf32>
    %573 = vector.multi_reduction <add>, %572, %cst_172 [1] : vector<1x32xf32> to vector<1xf32>
    %574 = vector.shape_cast %573 : vector<1xf32> to vector<1x1xf32>
    %cst_173 = arith.constant dense<0xFF800000> : vector<1xf32>
    %575 = vector.multi_reduction <maximumf>, %571, %cst_173 [1] : vector<1x7xf32> to vector<1xf32>
    %576 = vector.shape_cast %575 : vector<1xf32> to vector<1x1xf32>
    %577 = arith.maximumf %576, %574 : vector<1x1xf32>
    %578 = vector.broadcast %577 : vector<1x1xf32> to vector<1x7xf32>
    %579 = arith.subf %571, %578 : vector<1x7xf32>
    %580 = math.exp %579 : vector<1x7xf32>
    %581 = arith.subf %574, %577 : vector<1x1xf32>
    %582 = math.exp %581 : vector<1x1xf32>
    %cst_174 = arith.constant dense<0.000000e+00> : vector<1xf32>
    %583 = vector.multi_reduction <add>, %580, %cst_174 [1] : vector<1x7xf32> to vector<1xf32>
    %584 = vector.shape_cast %583 : vector<1xf32> to vector<1x1xf32>
    %585 = arith.addf %584, %582 : vector<1x1xf32>
    %586 = tpu.reciprocal %585 {approx = true} : vector<1x1xf32> -> vector<1x1xf32>
    %587 = vector.broadcast %586 : vector<1x1xf32> to vector<1x7xf32>
    %588 = arith.mulf %580, %587 : vector<1x7xf32>
    %589 = arith.mulf %582, %586 : vector<1x1xf32>
    %590 = vector.broadcast %569 : vector<1x32xf32> to vector<7x32xf32>
    %591 = arith.mulf %485, %590 : vector<7x32xf32>
    %cst_175 = arith.constant dense<0.000000e+00> : vector<1x32xf32>
    %592 = tpu.matmul %588, %591, %cst_175 {dimension_numbers = #tpu.dot_dimension_numbers<[1], [0], [0], [1], [0, 0, 1, 1], [], []>} : vector<1x7xf32>, vector<7x32xf32>, vector<1x32xf32> -> vector<1x32xf32>
    %593 = arith.addf %560, %592 : vector<1x32xf32>
    %594 = arith.mulf %481, %569 : vector<1x32xf32>
    %595 = vector.broadcast %589 : vector<1x1xf32> to vector<1x32xf32>
    %596 = arith.mulf %595, %594 : vector<1x32xf32>
    %597 = arith.addf %593, %596 : vector<1x32xf32>
    %598 = arith.addf %561, %588 : vector<1x7xf32>
    %599 = arith.addf %562, %589 : vector<1x1xf32>
    %c12_i32_176 = arith.constant 12 : i32
    %600 = vector.broadcast %c12_i32_176 : i32 to vector<1x32xi32>
    %601 = arith.cmpi sge, %132, %600 : vector<1x32xi32>
    %c16_i32_177 = arith.constant 16 : i32
    %602 = vector.broadcast %c16_i32_177 : i32 to vector<1x32xi32>
    %603 = arith.cmpi slt, %132, %602 : vector<1x32xi32>
    %604 = arith.andi %601, %603 : vector<1x32xi1>
    %605 = arith.extui %604 : vector<1x32xi1> to vector<1x32xi32>
    %606 = arith.sitofp %605 : vector<1x32xi32> to vector<1x32xf32>
    %607 = arith.mulf %479, %606 : vector<1x32xf32>
    %cst_178 = arith.constant dense<0.000000e+00> : vector<1x7xf32>
    %608 = tpu.matmul %607, %483, %cst_178 {dimension_numbers = #tpu.dot_dimension_numbers<[1], [1], [0], [0], [0, 0, 1, 0], [], []>} : vector<1x32xf32>, vector<7x32xf32>, vector<1x7xf32> -> vector<1x7xf32>
    %609 = arith.mulf %607, %480 : vector<1x32xf32>
    %cst_179 = arith.constant dense<0.000000e+00> : vector<1xf32>
    %610 = vector.multi_reduction <add>, %609, %cst_179 [1] : vector<1x32xf32> to vector<1xf32>
    %611 = vector.shape_cast %610 : vector<1xf32> to vector<1x1xf32>
    %cst_180 = arith.constant dense<0xFF800000> : vector<1xf32>
    %612 = vector.multi_reduction <maximumf>, %608, %cst_180 [1] : vector<1x7xf32> to vector<1xf32>
    %613 = vector.shape_cast %612 : vector<1xf32> to vector<1x1xf32>
    %614 = arith.maximumf %613, %611 : vector<1x1xf32>
    %615 = vector.broadcast %614 : vector<1x1xf32> to vector<1x7xf32>
    %616 = arith.subf %608, %615 : vector<1x7xf32>
    %617 = math.exp %616 : vector<1x7xf32>
    %618 = arith.subf %611, %614 : vector<1x1xf32>
    %619 = math.exp %618 : vector<1x1xf32>
    %cst_181 = arith.constant dense<0.000000e+00> : vector<1xf32>
    %620 = vector.multi_reduction <add>, %617, %cst_181 [1] : vector<1x7xf32> to vector<1xf32>
    %621 = vector.shape_cast %620 : vector<1xf32> to vector<1x1xf32>
    %622 = arith.addf %621, %619 : vector<1x1xf32>
    %623 = tpu.reciprocal %622 {approx = true} : vector<1x1xf32> -> vector<1x1xf32>
    %624 = vector.broadcast %623 : vector<1x1xf32> to vector<1x7xf32>
    %625 = arith.mulf %617, %624 : vector<1x7xf32>
    %626 = arith.mulf %619, %623 : vector<1x1xf32>
    %627 = vector.broadcast %606 : vector<1x32xf32> to vector<7x32xf32>
    %628 = arith.mulf %485, %627 : vector<7x32xf32>
    %cst_182 = arith.constant dense<0.000000e+00> : vector<1x32xf32>
    %629 = tpu.matmul %625, %628, %cst_182 {dimension_numbers = #tpu.dot_dimension_numbers<[1], [0], [0], [1], [0, 0, 1, 1], [], []>} : vector<1x7xf32>, vector<7x32xf32>, vector<1x32xf32> -> vector<1x32xf32>
    %630 = arith.addf %597, %629 : vector<1x32xf32>
    %631 = arith.mulf %481, %606 : vector<1x32xf32>
    %632 = vector.broadcast %626 : vector<1x1xf32> to vector<1x32xf32>
    %633 = arith.mulf %632, %631 : vector<1x32xf32>
    %634 = arith.addf %630, %633 : vector<1x32xf32>
    %635 = arith.addf %598, %625 : vector<1x7xf32>
    %636 = arith.addf %599, %626 : vector<1x1xf32>
    %c16_i32_183 = arith.constant 16 : i32
    %637 = vector.broadcast %c16_i32_183 : i32 to vector<1x32xi32>
    %638 = arith.cmpi sge, %132, %637 : vector<1x32xi32>
    %c20_i32_184 = arith.constant 20 : i32
    %639 = vector.broadcast %c20_i32_184 : i32 to vector<1x32xi32>
    %640 = arith.cmpi slt, %132, %639 : vector<1x32xi32>
    %641 = arith.andi %638, %640 : vector<1x32xi1>
    %642 = arith.extui %641 : vector<1x32xi1> to vector<1x32xi32>
    %643 = arith.sitofp %642 : vector<1x32xi32> to vector<1x32xf32>
    %644 = arith.mulf %479, %643 : vector<1x32xf32>
    %cst_185 = arith.constant dense<0.000000e+00> : vector<1x7xf32>
    %645 = tpu.matmul %644, %483, %cst_185 {dimension_numbers = #tpu.dot_dimension_numbers<[1], [1], [0], [0], [0, 0, 1, 0], [], []>} : vector<1x32xf32>, vector<7x32xf32>, vector<1x7xf32> -> vector<1x7xf32>
    %646 = arith.mulf %644, %480 : vector<1x32xf32>
    %cst_186 = arith.constant dense<0.000000e+00> : vector<1xf32>
    %647 = vector.multi_reduction <add>, %646, %cst_186 [1] : vector<1x32xf32> to vector<1xf32>
    %648 = vector.shape_cast %647 : vector<1xf32> to vector<1x1xf32>
    %cst_187 = arith.constant dense<0xFF800000> : vector<1xf32>
    %649 = vector.multi_reduction <maximumf>, %645, %cst_187 [1] : vector<1x7xf32> to vector<1xf32>
    %650 = vector.shape_cast %649 : vector<1xf32> to vector<1x1xf32>
    %651 = arith.maximumf %650, %648 : vector<1x1xf32>
    %652 = vector.broadcast %651 : vector<1x1xf32> to vector<1x7xf32>
    %653 = arith.subf %645, %652 : vector<1x7xf32>
    %654 = math.exp %653 : vector<1x7xf32>
    %655 = arith.subf %648, %651 : vector<1x1xf32>
    %656 = math.exp %655 : vector<1x1xf32>
    %cst_188 = arith.constant dense<0.000000e+00> : vector<1xf32>
    %657 = vector.multi_reduction <add>, %654, %cst_188 [1] : vector<1x7xf32> to vector<1xf32>
    %658 = vector.shape_cast %657 : vector<1xf32> to vector<1x1xf32>
    %659 = arith.addf %658, %656 : vector<1x1xf32>
    %660 = tpu.reciprocal %659 {approx = true} : vector<1x1xf32> -> vector<1x1xf32>
    %661 = vector.broadcast %660 : vector<1x1xf32> to vector<1x7xf32>
    %662 = arith.mulf %654, %661 : vector<1x7xf32>
    %663 = arith.mulf %656, %660 : vector<1x1xf32>
    %664 = vector.broadcast %643 : vector<1x32xf32> to vector<7x32xf32>
    %665 = arith.mulf %485, %664 : vector<7x32xf32>
    %cst_189 = arith.constant dense<0.000000e+00> : vector<1x32xf32>
    %666 = tpu.matmul %662, %665, %cst_189 {dimension_numbers = #tpu.dot_dimension_numbers<[1], [0], [0], [1], [0, 0, 1, 1], [], []>} : vector<1x7xf32>, vector<7x32xf32>, vector<1x32xf32> -> vector<1x32xf32>
    %667 = arith.addf %634, %666 : vector<1x32xf32>
    %668 = arith.mulf %481, %643 : vector<1x32xf32>
    %669 = vector.broadcast %663 : vector<1x1xf32> to vector<1x32xf32>
    %670 = arith.mulf %669, %668 : vector<1x32xf32>
    %671 = arith.addf %667, %670 : vector<1x32xf32>
    %672 = arith.addf %635, %662 : vector<1x7xf32>
    %673 = arith.addf %636, %663 : vector<1x1xf32>
    %c20_i32_190 = arith.constant 20 : i32
    %674 = vector.broadcast %c20_i32_190 : i32 to vector<1x32xi32>
    %675 = arith.cmpi sge, %132, %674 : vector<1x32xi32>
    %c24_i32_191 = arith.constant 24 : i32
    %676 = vector.broadcast %c24_i32_191 : i32 to vector<1x32xi32>
    %677 = arith.cmpi slt, %132, %676 : vector<1x32xi32>
    %678 = arith.andi %675, %677 : vector<1x32xi1>
    %679 = arith.extui %678 : vector<1x32xi1> to vector<1x32xi32>
    %680 = arith.sitofp %679 : vector<1x32xi32> to vector<1x32xf32>
    %681 = arith.mulf %479, %680 : vector<1x32xf32>
    %cst_192 = arith.constant dense<0.000000e+00> : vector<1x7xf32>
    %682 = tpu.matmul %681, %483, %cst_192 {dimension_numbers = #tpu.dot_dimension_numbers<[1], [1], [0], [0], [0, 0, 1, 0], [], []>} : vector<1x32xf32>, vector<7x32xf32>, vector<1x7xf32> -> vector<1x7xf32>
    %683 = arith.mulf %681, %480 : vector<1x32xf32>
    %cst_193 = arith.constant dense<0.000000e+00> : vector<1xf32>
    %684 = vector.multi_reduction <add>, %683, %cst_193 [1] : vector<1x32xf32> to vector<1xf32>
    %685 = vector.shape_cast %684 : vector<1xf32> to vector<1x1xf32>
    %cst_194 = arith.constant dense<0xFF800000> : vector<1xf32>
    %686 = vector.multi_reduction <maximumf>, %682, %cst_194 [1] : vector<1x7xf32> to vector<1xf32>
    %687 = vector.shape_cast %686 : vector<1xf32> to vector<1x1xf32>
    %688 = arith.maximumf %687, %685 : vector<1x1xf32>
    %689 = vector.broadcast %688 : vector<1x1xf32> to vector<1x7xf32>
    %690 = arith.subf %682, %689 : vector<1x7xf32>
    %691 = math.exp %690 : vector<1x7xf32>
    %692 = arith.subf %685, %688 : vector<1x1xf32>
    %693 = math.exp %692 : vector<1x1xf32>
    %cst_195 = arith.constant dense<0.000000e+00> : vector<1xf32>
    %694 = vector.multi_reduction <add>, %691, %cst_195 [1] : vector<1x7xf32> to vector<1xf32>
    %695 = vector.shape_cast %694 : vector<1xf32> to vector<1x1xf32>
    %696 = arith.addf %695, %693 : vector<1x1xf32>
    %697 = tpu.reciprocal %696 {approx = true} : vector<1x1xf32> -> vector<1x1xf32>
    %698 = vector.broadcast %697 : vector<1x1xf32> to vector<1x7xf32>
    %699 = arith.mulf %691, %698 : vector<1x7xf32>
    %700 = arith.mulf %693, %697 : vector<1x1xf32>
    %701 = vector.broadcast %680 : vector<1x32xf32> to vector<7x32xf32>
    %702 = arith.mulf %485, %701 : vector<7x32xf32>
    %cst_196 = arith.constant dense<0.000000e+00> : vector<1x32xf32>
    %703 = tpu.matmul %699, %702, %cst_196 {dimension_numbers = #tpu.dot_dimension_numbers<[1], [0], [0], [1], [0, 0, 1, 1], [], []>} : vector<1x7xf32>, vector<7x32xf32>, vector<1x32xf32> -> vector<1x32xf32>
    %704 = arith.addf %671, %703 : vector<1x32xf32>
    %705 = arith.mulf %481, %680 : vector<1x32xf32>
    %706 = vector.broadcast %700 : vector<1x1xf32> to vector<1x32xf32>
    %707 = arith.mulf %706, %705 : vector<1x32xf32>
    %708 = arith.addf %704, %707 : vector<1x32xf32>
    %709 = arith.addf %672, %699 : vector<1x7xf32>
    %710 = arith.addf %673, %700 : vector<1x1xf32>
    %c24_i32_197 = arith.constant 24 : i32
    %711 = vector.broadcast %c24_i32_197 : i32 to vector<1x32xi32>
    %712 = arith.cmpi sge, %132, %711 : vector<1x32xi32>
    %c28_i32_198 = arith.constant 28 : i32
    %713 = vector.broadcast %c28_i32_198 : i32 to vector<1x32xi32>
    %714 = arith.cmpi slt, %132, %713 : vector<1x32xi32>
    %715 = arith.andi %712, %714 : vector<1x32xi1>
    %716 = arith.extui %715 : vector<1x32xi1> to vector<1x32xi32>
    %717 = arith.sitofp %716 : vector<1x32xi32> to vector<1x32xf32>
    %718 = arith.mulf %479, %717 : vector<1x32xf32>
    %cst_199 = arith.constant dense<0.000000e+00> : vector<1x7xf32>
    %719 = tpu.matmul %718, %483, %cst_199 {dimension_numbers = #tpu.dot_dimension_numbers<[1], [1], [0], [0], [0, 0, 1, 0], [], []>} : vector<1x32xf32>, vector<7x32xf32>, vector<1x7xf32> -> vector<1x7xf32>
    %720 = arith.mulf %718, %480 : vector<1x32xf32>
    %cst_200 = arith.constant dense<0.000000e+00> : vector<1xf32>
    %721 = vector.multi_reduction <add>, %720, %cst_200 [1] : vector<1x32xf32> to vector<1xf32>
    %722 = vector.shape_cast %721 : vector<1xf32> to vector<1x1xf32>
    %cst_201 = arith.constant dense<0xFF800000> : vector<1xf32>
    %723 = vector.multi_reduction <maximumf>, %719, %cst_201 [1] : vector<1x7xf32> to vector<1xf32>
    %724 = vector.shape_cast %723 : vector<1xf32> to vector<1x1xf32>
    %725 = arith.maximumf %724, %722 : vector<1x1xf32>
    %726 = vector.broadcast %725 : vector<1x1xf32> to vector<1x7xf32>
    %727 = arith.subf %719, %726 : vector<1x7xf32>
    %728 = math.exp %727 : vector<1x7xf32>
    %729 = arith.subf %722, %725 : vector<1x1xf32>
    %730 = math.exp %729 : vector<1x1xf32>
    %cst_202 = arith.constant dense<0.000000e+00> : vector<1xf32>
    %731 = vector.multi_reduction <add>, %728, %cst_202 [1] : vector<1x7xf32> to vector<1xf32>
    %732 = vector.shape_cast %731 : vector<1xf32> to vector<1x1xf32>
    %733 = arith.addf %732, %730 : vector<1x1xf32>
    %734 = tpu.reciprocal %733 {approx = true} : vector<1x1xf32> -> vector<1x1xf32>
    %735 = vector.broadcast %734 : vector<1x1xf32> to vector<1x7xf32>
    %736 = arith.mulf %728, %735 : vector<1x7xf32>
    %737 = arith.mulf %730, %734 : vector<1x1xf32>
    %738 = vector.broadcast %717 : vector<1x32xf32> to vector<7x32xf32>
    %739 = arith.mulf %485, %738 : vector<7x32xf32>
    %cst_203 = arith.constant dense<0.000000e+00> : vector<1x32xf32>
    %740 = tpu.matmul %736, %739, %cst_203 {dimension_numbers = #tpu.dot_dimension_numbers<[1], [0], [0], [1], [0, 0, 1, 1], [], []>} : vector<1x7xf32>, vector<7x32xf32>, vector<1x32xf32> -> vector<1x32xf32>
    %741 = arith.addf %708, %740 : vector<1x32xf32>
    %742 = arith.mulf %481, %717 : vector<1x32xf32>
    %743 = vector.broadcast %737 : vector<1x1xf32> to vector<1x32xf32>
    %744 = arith.mulf %743, %742 : vector<1x32xf32>
    %745 = arith.addf %741, %744 : vector<1x32xf32>
    %746 = arith.addf %709, %736 : vector<1x7xf32>
    %747 = arith.addf %710, %737 : vector<1x1xf32>
    %c28_i32_204 = arith.constant 28 : i32
    %748 = vector.broadcast %c28_i32_204 : i32 to vector<1x32xi32>
    %749 = arith.cmpi sge, %132, %748 : vector<1x32xi32>
    %c32_i32_205 = arith.constant 32 : i32
    %750 = vector.broadcast %c32_i32_205 : i32 to vector<1x32xi32>
    %751 = arith.cmpi slt, %132, %750 : vector<1x32xi32>
    %752 = arith.andi %749, %751 : vector<1x32xi1>
    %753 = arith.extui %752 : vector<1x32xi1> to vector<1x32xi32>
    %754 = arith.sitofp %753 : vector<1x32xi32> to vector<1x32xf32>
    %755 = arith.mulf %479, %754 : vector<1x32xf32>
    %cst_206 = arith.constant dense<0.000000e+00> : vector<1x7xf32>
    %756 = tpu.matmul %755, %483, %cst_206 {dimension_numbers = #tpu.dot_dimension_numbers<[1], [1], [0], [0], [0, 0, 1, 0], [], []>} : vector<1x32xf32>, vector<7x32xf32>, vector<1x7xf32> -> vector<1x7xf32>
    %757 = arith.mulf %755, %480 : vector<1x32xf32>
    %cst_207 = arith.constant dense<0.000000e+00> : vector<1xf32>
    %758 = vector.multi_reduction <add>, %757, %cst_207 [1] : vector<1x32xf32> to vector<1xf32>
    %759 = vector.shape_cast %758 : vector<1xf32> to vector<1x1xf32>
    %cst_208 = arith.constant dense<0xFF800000> : vector<1xf32>
    %760 = vector.multi_reduction <maximumf>, %756, %cst_208 [1] : vector<1x7xf32> to vector<1xf32>
    %761 = vector.shape_cast %760 : vector<1xf32> to vector<1x1xf32>
    %762 = arith.maximumf %761, %759 : vector<1x1xf32>
    %763 = vector.broadcast %762 : vector<1x1xf32> to vector<1x7xf32>
    %764 = arith.subf %756, %763 : vector<1x7xf32>
    %765 = math.exp %764 : vector<1x7xf32>
    %766 = arith.subf %759, %762 : vector<1x1xf32>
    %767 = math.exp %766 : vector<1x1xf32>
    %cst_209 = arith.constant dense<0.000000e+00> : vector<1xf32>
    %768 = vector.multi_reduction <add>, %765, %cst_209 [1] : vector<1x7xf32> to vector<1xf32>
    %769 = vector.shape_cast %768 : vector<1xf32> to vector<1x1xf32>
    %770 = arith.addf %769, %767 : vector<1x1xf32>
    %771 = tpu.reciprocal %770 {approx = true} : vector<1x1xf32> -> vector<1x1xf32>
    %772 = vector.broadcast %771 : vector<1x1xf32> to vector<1x7xf32>
    %773 = arith.mulf %765, %772 : vector<1x7xf32>
    %774 = arith.mulf %767, %771 : vector<1x1xf32>
    %775 = vector.broadcast %754 : vector<1x32xf32> to vector<7x32xf32>
    %776 = arith.mulf %485, %775 : vector<7x32xf32>
    %cst_210 = arith.constant dense<0.000000e+00> : vector<1x32xf32>
    %777 = tpu.matmul %773, %776, %cst_210 {dimension_numbers = #tpu.dot_dimension_numbers<[1], [0], [0], [1], [0, 0, 1, 1], [], []>} : vector<1x7xf32>, vector<7x32xf32>, vector<1x32xf32> -> vector<1x32xf32>
    %778 = arith.addf %745, %777 : vector<1x32xf32>
    %779 = arith.mulf %481, %754 : vector<1x32xf32>
    %780 = vector.broadcast %774 : vector<1x1xf32> to vector<1x32xf32>
    %781 = arith.mulf %780, %779 : vector<1x32xf32>
    %782 = arith.addf %778, %781 : vector<1x32xf32>
    %783 = arith.addf %746, %773 : vector<1x7xf32>
    %784 = arith.addf %747, %774 : vector<1x1xf32>
    %cst_211 = arith.constant 1.250000e-01 : f32
    %785 = vector.broadcast %cst_211 : f32 to vector<1x7xf32>
    %786 = arith.mulf %783, %785 : vector<1x7xf32>
    %cst_212 = arith.constant 1.250000e-01 : f32
    %787 = vector.broadcast %cst_212 : f32 to vector<1x1xf32>
    %788 = arith.mulf %784, %787 : vector<1x1xf32>
    %cst_213 = arith.constant 0.000000e+00 : f32
    %789 = vector.broadcast %cst_213 : f32 to vector<1x7xf32>
    %790 = arith.cmpf ogt, %786, %789 : vector<1x7xf32>
    %cst_214 = arith.constant 1.000000e+00 : f32
    %791 = vector.broadcast %cst_214 : f32 to vector<1x7xf32>
    %792 = arith.select %790, %786, %791 : vector<1x7xi1>, vector<1x7xf32>
    %793 = math.log %792 : vector<1x7xf32>
    %794 = arith.mulf %786, %793 : vector<1x7xf32>
    %cst_215 = arith.constant dense<0.000000e+00> : vector<1xf32>
    %795 = vector.multi_reduction <add>, %794, %cst_215 [1] : vector<1x7xf32> to vector<1xf32>
    %796 = vector.shape_cast %795 : vector<1xf32> to vector<1x1xf32>
    %cst_216 = arith.constant 0.000000e+00 : f32
    %797 = vector.broadcast %cst_216 : f32 to vector<1x1xf32>
    %798 = arith.cmpf ogt, %788, %797 : vector<1x1xf32>
    %cst_217 = arith.constant 1.000000e+00 : f32
    %799 = vector.broadcast %cst_217 : f32 to vector<1x1xf32>
    %800 = arith.select %798, %788, %799 : vector<1x1xi1>, vector<1x1xf32>
    %801 = math.log %800 : vector<1x1xf32>
    %802 = arith.mulf %788, %801 : vector<1x1xf32>
    %803 = arith.addf %796, %802 : vector<1x1xf32>
    %cst_218 = arith.constant 0.000000e+00 : f32
    %804 = vector.broadcast %cst_218 : f32 to vector<1x1xf32>
    %805 = arith.subf %804, %803 : vector<1x1xf32>
    %c1_i32_219 = arith.constant 1 : i32
    %806 = vector.broadcast %c1_i32_219 : i32 to vector<2x1xi32>
    %807 = arith.cmpi eq, %133, %806 : vector<2x1xi32>
    %808 = vector.shape_cast %807 : vector<2x1xi1> to vector<2x1xi1>
    %809 = vector.broadcast %808 : vector<2x1xi1> to vector<2x32xi1>
    %810 = vector.shape_cast %782 : vector<1x32xf32> to vector<1x32xf32>
    %811 = vector.broadcast %810 : vector<1x32xf32> to vector<2x32xf32>
    %812 = arith.select %809, %811, %471 : vector<2x32xi1>, vector<2x32xf32>
    %c1_i32_220 = arith.constant 1 : i32
    %813 = vector.broadcast %c1_i32_220 : i32 to vector<2x1xi32>
    %814 = arith.cmpi eq, %133, %813 : vector<2x1xi32>
    %815 = vector.shape_cast %805 : vector<1x1xf32> to vector<1x1xf32>
    %816 = vector.broadcast %815 : vector<1x1xf32> to vector<2x1xf32>
    %817 = arith.select %814, %816, %476 : vector<2x1xi1>, vector<2x1xf32>
    %c0_221 = arith.constant 0 : index
    %c0_222 = arith.constant 0 : index
    %818 = vector.load %arg16[%c0_221, %c0_222] : memref<32x32xf32, #tpu.memory_space<vmem>>, vector<32x32xf32>
    %cst_223 = arith.constant dense<0.000000e+00> : vector<2x32xf32>
    %819 = tpu.matmul %812, %818, %cst_223 {dimension_numbers = #tpu.dot_dimension_numbers<[1], [0], [0], [1], [0, 0, 1, 1], [], []>} : vector<2x32xf32>, vector<32x32xf32>, vector<2x32xf32> -> vector<2x32xf32>
    %c0_224 = arith.constant 0 : index
    %c0_225 = arith.constant 0 : index
    %820 = vector.load %arg17[%c0_224, %c0_225] : memref<1x32xf32, #tpu.memory_space<vmem>>, vector<1x32xf32>
    %821 = vector.broadcast %820 : vector<1x32xf32> to vector<2x32xf32>
    %822 = arith.addf %819, %821 : vector<2x32xf32>
    %823 = arith.addf %822, %116 : vector<2x32xf32>
    %cst_226 = arith.constant dense<0.000000e+00> : vector<2xf32>
    %824 = vector.multi_reduction <add>, %823, %cst_226 [1] : vector<2x32xf32> to vector<2xf32>
    %825 = vector.shape_cast %824 : vector<2xf32> to vector<2x1xf32>
    %cst_227 = arith.constant 3.200000e+01 : f32
    %826 = vector.broadcast %cst_227 : f32 to vector<2x1xf32>
    %827 = arith.divf %825, %826 : vector<2x1xf32>
    %828 = vector.broadcast %827 : vector<2x1xf32> to vector<2x32xf32>
    %829 = arith.subf %823, %828 : vector<2x32xf32>
    %830 = arith.mulf %829, %829 : vector<2x32xf32>
    %cst_228 = arith.constant dense<0.000000e+00> : vector<2xf32>
    %831 = vector.multi_reduction <add>, %830, %cst_228 [1] : vector<2x32xf32> to vector<2xf32>
    %832 = vector.shape_cast %831 : vector<2xf32> to vector<2x1xf32>
    %cst_229 = arith.constant 3.200000e+01 : f32
    %833 = vector.broadcast %cst_229 : f32 to vector<2x1xf32>
    %834 = arith.divf %832, %833 : vector<2x1xf32>
    %835 = vector.broadcast %827 : vector<2x1xf32> to vector<2x32xf32>
    %836 = arith.subf %823, %835 : vector<2x32xf32>
    %cst_230 = arith.constant 9.99999974E-6 : f32
    %837 = vector.broadcast %cst_230 : f32 to vector<2x1xf32>
    %838 = arith.addf %834, %837 : vector<2x1xf32>
    %839 = math.rsqrt %838 : vector<2x1xf32>
    %840 = vector.broadcast %839 : vector<2x1xf32> to vector<2x32xf32>
    %841 = arith.mulf %836, %840 : vector<2x32xf32>
    %842 = vector.broadcast %0 : vector<1x32xf32> to vector<2x32xf32>
    %843 = arith.mulf %841, %842 : vector<2x32xf32>
    %844 = vector.broadcast %1 : vector<1x32xf32> to vector<2x32xf32>
    %845 = arith.addf %843, %844 : vector<2x32xf32>
    %c0_231 = arith.constant 0 : index
    %c0_232 = arith.constant 0 : index
    %846 = vector.load %arg18[%c0_231, %c0_232] : memref<32x32xf32, #tpu.memory_space<vmem>>, vector<32x32xf32>
    %cst_233 = arith.constant dense<0.000000e+00> : vector<2x32xf32>
    %847 = tpu.matmul %845, %846, %cst_233 {dimension_numbers = #tpu.dot_dimension_numbers<[1], [0], [0], [1], [0, 0, 1, 1], [], []>} : vector<2x32xf32>, vector<32x32xf32>, vector<2x32xf32> -> vector<2x32xf32>
    %c0_234 = arith.constant 0 : index
    %c0_235 = arith.constant 0 : index
    %848 = vector.load %arg19[%c0_234, %c0_235] : memref<1x32xf32, #tpu.memory_space<vmem>>, vector<1x32xf32>
    %849 = vector.broadcast %848 : vector<1x32xf32> to vector<2x32xf32>
    %850 = arith.addf %847, %849 : vector<2x32xf32>
    %cst_236 = arith.constant 0.000000e+00 : f32
    %851 = vector.broadcast %cst_236 : f32 to vector<2x32xf32>
    %852 = arith.maximumf %850, %851 : vector<2x32xf32>
    %c0_237 = arith.constant 0 : index
    %c0_238 = arith.constant 0 : index
    %853 = vector.load %arg20[%c0_237, %c0_238] : memref<32x32xf32, #tpu.memory_space<vmem>>, vector<32x32xf32>
    %cst_239 = arith.constant dense<0.000000e+00> : vector<2x32xf32>
    %854 = tpu.matmul %852, %853, %cst_239 {dimension_numbers = #tpu.dot_dimension_numbers<[1], [0], [0], [1], [0, 0, 1, 1], [], []>} : vector<2x32xf32>, vector<32x32xf32>, vector<2x32xf32> -> vector<2x32xf32>
    %c0_240 = arith.constant 0 : index
    %c0_241 = arith.constant 0 : index
    %855 = vector.load %arg21[%c0_240, %c0_241] : memref<1x32xf32, #tpu.memory_space<vmem>>, vector<1x32xf32>
    %856 = vector.broadcast %855 : vector<1x32xf32> to vector<2x32xf32>
    %857 = arith.addf %854, %856 : vector<2x32xf32>
    %858 = arith.addf %857, %845 : vector<2x32xf32>
    %cst_242 = arith.constant dense<0.000000e+00> : vector<2xf32>
    %859 = vector.multi_reduction <add>, %858, %cst_242 [1] : vector<2x32xf32> to vector<2xf32>
    %860 = vector.shape_cast %859 : vector<2xf32> to vector<2x1xf32>
    %cst_243 = arith.constant 3.200000e+01 : f32
    %861 = vector.broadcast %cst_243 : f32 to vector<2x1xf32>
    %862 = arith.divf %860, %861 : vector<2x1xf32>
    %863 = vector.broadcast %862 : vector<2x1xf32> to vector<2x32xf32>
    %864 = arith.subf %858, %863 : vector<2x32xf32>
    %865 = arith.mulf %864, %864 : vector<2x32xf32>
    %cst_244 = arith.constant dense<0.000000e+00> : vector<2xf32>
    %866 = vector.multi_reduction <add>, %865, %cst_244 [1] : vector<2x32xf32> to vector<2xf32>
    %867 = vector.shape_cast %866 : vector<2xf32> to vector<2x1xf32>
    %cst_245 = arith.constant 3.200000e+01 : f32
    %868 = vector.broadcast %cst_245 : f32 to vector<2x1xf32>
    %869 = arith.divf %867, %868 : vector<2x1xf32>
    %870 = vector.broadcast %862 : vector<2x1xf32> to vector<2x32xf32>
    %871 = arith.subf %858, %870 : vector<2x32xf32>
    %cst_246 = arith.constant 9.99999974E-6 : f32
    %872 = vector.broadcast %cst_246 : f32 to vector<2x1xf32>
    %873 = arith.addf %869, %872 : vector<2x1xf32>
    %874 = math.rsqrt %873 : vector<2x1xf32>
    %875 = vector.broadcast %874 : vector<2x1xf32> to vector<2x32xf32>
    %876 = arith.mulf %871, %875 : vector<2x32xf32>
    %877 = vector.broadcast %0 : vector<1x32xf32> to vector<2x32xf32>
    %878 = arith.mulf %876, %877 : vector<2x32xf32>
    %879 = vector.broadcast %1 : vector<1x32xf32> to vector<2x32xf32>
    %880 = arith.addf %878, %879 : vector<2x32xf32>
    %c0_i32_247 = arith.constant 0 : i32
    %881 = vector.broadcast %c0_i32_247 : i32 to vector<2x1xi32>
    %882 = arith.cmpi eq, %111, %881 : vector<2x1xi32>
    %c0_i32_248 = arith.constant 0 : i32
    %883 = vector.broadcast %c0_i32_248 : i32 to vector<2x1xi32>
    %884 = arith.cmpi sgt, %111, %883 : vector<2x1xi32>
    %885 = vector.shape_cast %884 : vector<2x1xi1> to vector<2x1xi1>
    %886 = vector.broadcast %885 : vector<2x1xi1> to vector<2x32xi1>
    %887 = arith.select %886, %3, %5 : vector<2x32xi1>, vector<2x32xf32>
    %888 = vector.shape_cast %882 : vector<2x1xi1> to vector<2x1xi1>
    %889 = vector.broadcast %888 : vector<2x1xi1> to vector<2x32xi1>
    %890 = arith.select %889, %880, %887 : vector<2x32xi1>, vector<2x32xf32>
    %c0_249 = arith.constant 0 : index
    %c0_250 = arith.constant 0 : index
    %c0_251 = arith.constant 0 : index
    %891 = vector.load %arg24[%c0_249, %c0_250, %c0_251] : memref<2x2x32xf32, #tpu.memory_space<vmem>>, vector<1x2x32xf32>
    %892 = vector.shape_cast %891 : vector<1x2x32xf32> to vector<2x32xf32>
    %893 = vector.shape_cast %890 : vector<2x32xf32> to vector<1x2x32xf32>
    tpu.vector_store %arg24[%c0_249, %c0_250, %c0_251], %893 {strides = array<i32>} : memref<2x2x32xf32, #tpu.memory_space<vmem>>, vector<1x2x32xf32>,
    %c1_i32_252 = arith.constant 1 : i32
    %894 = vector.broadcast %c1_i32_252 : i32 to vector<2x1xi32>
    %895 = arith.cmpi eq, %111, %894 : vector<2x1xi32>
    %c1_i32_253 = arith.constant 1 : i32
    %896 = vector.broadcast %c1_i32_253 : i32 to vector<2x1xi32>
    %897 = arith.cmpi sgt, %111, %896 : vector<2x1xi32>
    %898 = vector.shape_cast %897 : vector<2x1xi1> to vector<2x1xi1>
    %899 = vector.broadcast %898 : vector<2x1xi1> to vector<2x32xi1>
    %900 = arith.select %899, %5, %7 : vector<2x32xi1>, vector<2x32xf32>
    %901 = vector.shape_cast %895 : vector<2x1xi1> to vector<2x1xi1>
    %902 = vector.broadcast %901 : vector<2x1xi1> to vector<2x32xi1>
    %903 = arith.select %902, %880, %900 : vector<2x32xi1>, vector<2x32xf32>
    %c1_254 = arith.constant 1 : index
    %c0_255 = arith.constant 0 : index
    %c0_256 = arith.constant 0 : index
    %904 = vector.load %arg24[%c1_254, %c0_255, %c0_256] : memref<2x2x32xf32, #tpu.memory_space<vmem>>, vector<1x2x32xf32>
    %905 = vector.shape_cast %904 : vector<1x2x32xf32> to vector<2x32xf32>
    %906 = vector.shape_cast %903 : vector<2x32xf32> to vector<1x2x32xf32>
    tpu.vector_store %arg24[%c1_254, %c0_255, %c0_256], %906 {strides = array<i32>} : memref<2x2x32xf32, #tpu.memory_space<vmem>>, vector<1x2x32xf32>,
    %c0_257 = arith.constant 0 : index
    %c0_258 = arith.constant 0 : index
    %907 = vector.load %arg25[%c0_257, %c0_258] : memref<2x1xf32, #tpu.memory_space<vmem>>, vector<2x1xf32>
    tpu.vector_store %arg25[%c0_257, %c0_258], %817 {strides = array<i32>} : memref<2x1xf32, #tpu.memory_space<vmem>>, vector<2x1xf32>,
    return
  }
}

</mosaic_0001>

<bundles_post_ra>
// kernel: encoder_forward.6
= control target key start
LH: loop header
LB: loop body
LE: loop exit
PB: predicated region body
PF: predicated region fallthrough
CT: control target
= control target key end

     0   :  { %v394_v0 = vmov 0.0   ;;  %vm395_vm0 = vmmov 0   ;;  %vm42_vm1 = vcmask 261120   ;;  %vm213_vm2 = vcmask 523264   ;;  %s523_s3 = inlined_call_operand.vmem [shape: f32[32,64], index: 3, kind: input, shape index: {}]   ;;  %s524_s1 = inlined_call_operand.vmem [shape: f32[2,32], index: 1, kind: input, shape index: {}]   ;;  %s525_s2 = inlined_call_operand.vmem [shape: f32[32,64], index: 2, kind: input, shape index: {}]   ;;  %s526_s0 = inlined_call_operand.vmem [shape: f32[2,32], index: 0, kind: input, shape index: {}]   ;;  %s527_s5 = inlined_call_operand.vmem [shape: f32[64,32], index: 5, kind: input, shape index: {}]   ;;  %s528_s4 = inlined_call_operand.vmem [shape: f32[1,64], index: 4, kind: input, shape index: {}]   ;;  %s529_s6 = inlined_call_operand.vmem [shape: f32[1,32], index: 6, kind: input, shape index: {}]   ;;  %s530_s7 = inlined_call_operand.vmem [shape: f32[1,32], index: 7, kind: input, shape index: {}]   ;;  %s531_s8 = inlined_call_operand.vmem [shape: f32[1,32], index: 8, kind: input, shape index: {}]   ;;  %s532_s9 = inlined_call_operand.vmem [shape: f32[2,32], index: 9, kind: output, shape index: {}]  }
   0x1   :  { %349 = vmatprep.subr.mxu1 %v394_v0  ;;  %v41_v1 = vld [vmem:[%s523_s3 + $0x18] sm:$0xff]  ;;  %v40_v2 = vld [vmem:[%s523_s3 + $0x10] sm:$0xff]  ;;  %357 = vmatprep.mubr.msk.f32.mxu1 %vm395_vm0, %v394_v0  ;;  %v39_v3 = vld [vmem:[%s523_s3 + $0x8] sm:$0xff]  ;;  %vm289_vm3 = vcmask 254976  }
   0x2   :  { %350 = vmatpush3.msra.mxu1 %v41_v1  ;;  %371 = vmatprep.subr.mxu0 %v394_v0  ;;  %v38_v4 = vld [vmem:[%s523_s3] sm:$0xff]  ;;  %v36_v6 = vld [vmem:[%s525_s2 + $0x18] sm:$0xff]  ;;  %v35_v7 = vld [vmem:[%s525_s2 + $0x10] sm:$0xff] }
   0x3   :  { %351 = vmatprep.subr.mxu1 %v394_v0  ;;  %387 = vmatprep.mubr.msk.f32.mxu0 %vm395_vm0, %v394_v0  ;;  %v37_v5 = vld [vmem:[%s524_s1] sm:$0x3]  ;;  %v34_v8 = vld [vmem:[%s525_s2 + $0x8] sm:$0xff]  ;;  %v205_v11 = vld [vmem:[%s527_s5 + $0x38] sm:$0xff] }
   0x4   :  { %352 = vmatpush3.msra.mxu1 %v40_v2  ;;  %v33_v9 = vld [vmem:[%s525_s2] sm:$0xff]  ;;  %372 = vmatpush3.msra.mxu0 %v205_v11  ;;  %v204_v12 = vld [vmem:[%s527_s5 + $0x30] sm:$0xff]  ;;  %v203_v13 = vld [vmem:[%s527_s5 + $0x28] sm:$0xff] }
   0x5   :  { %353 = vmatprep.subr.mxu1 %v394_v0  ;;  %v32_v10 = vld [vmem:[%s526_s0] sm:$0x3]  ;;  %373 = vmatprep.subr.mxu0 %v394_v0  ;;  %v201_v15 = vld [vmem:[%s527_s5 + $0x18] sm:$0xff]  ;;  %v200_v16 = vld [vmem:[%s527_s5 + $0x10] sm:$0xff] }
   0x6   :  { %354 = vmatpush3.msra.mxu1 %v39_v3  ;;  %374 = vmatpush3.msra.mxu0 %v204_v12  ;;  %v202_v14 = vld [vmem:[%s527_s5 + $0x20] sm:$0xff]  ;;  %v199_v17 = vld [vmem:[%s527_s5 + $0x8] sm:$0xff] }
   0x7   :  { %355 = vmatprep.subr.mxu1 %v394_v0  ;;  %375 = vmatprep.subr.mxu0 %v394_v0  ;;  %v198_v18 = vld [vmem:[%s527_s5] sm:$0xff] }
   0x8   :  { %356 = vmatpush3.msra.mxu1 %v38_v4  ;;  %376 = vmatpush3.msra.mxu0 %v203_v13  ;;  %v325_v22 = vld [vmem:[%s528_s4] ss:$0 sm:$0xff] }
   0x9   :  { %358 = vmatmul.mubr.msk.f32.vlgmr.msra.gmra.mxu1 %vm42_vm1, %v37_v5  ;;  %360 = vmatprep.subr.mxu1 %v394_v0  ;;  %v326_v27 = vld [vmem:[%s529_s6] ss:$0 sm:$0xff] }
   0xa   :  { %361 = vmatpush3.msra.mxu1 %v36_v6  ;;  %368 = vmatprep.mubr.msk.f32.mxu1 %vm395_vm0, %v394_v0  ;;  %v328_v41 = vld [vmem:[%s530_s7] ss:$0 sm:$0xff] }
   0xb   :  { %362 = vmatprep.subr.mxu1 %v394_v0  ;;  %377 = vmatprep.subr.mxu0 %v394_v0  ;;  %v329_v43 = vld [vmem:[%s531_s8] ss:$0 sm:$0xff] }
   0xc   :  { %363 = vmatpush3.msra.mxu1 %v35_v7  ;;  %378 = vmatpush3.msra.mxu0 %v202_v14 }
   0xd   :  { %364 = vmatprep.subr.mxu1 %v394_v0  ;;  %379 = vmatprep.subr.mxu0 %v394_v0 }
   0xe   :  { %365 = vmatpush3.msra.mxu1 %v34_v8  ;;  %380 = vmatpush3.msra.mxu0 %v201_v15 }
   0xf   :  { %366 = vmatprep.subr.mxu1 %v394_v0  ;;  %381 = vmatprep.subr.mxu0 %v394_v0 }
  0x10   :  { %367 = vmatpush3.msra.mxu1 %v33_v9  ;;  %382 = vmatpush3.msra.mxu0 %v200_v16 }
  0x11   :  { %369 = vmatmul.mubr.msk.f32.vlgmr.msra.gmra.mxu1 %vm42_vm1, %v32_v10  ;;  %383 = vmatprep.subr.mxu0 %v394_v0 }
  0x12   :  { %384 = vmatpush3.msra.mxu0 %v199_v17 }
  0x13   :  { %385 = vmatprep.subr.mxu0 %v394_v0 }
  0x14   :  { %386 = vmatpush3.msra.mxu0 %v198_v18 }
  0xc9   :  { %v112_v19 = vpop.f32.mrf.mxu1 }
  0xcb   :  { %v359_v20 = vpop.f32.mrf.mxu1 }
  0xd1   :  { %v185_v21 = vpop.f32.mrf.mxu1 }
  0xd2   :  { %v186_v23 = vadd.f32 %v185_v21, %v112_v19 }
  0xd3   :  { %v370_v24 = vpop.f32.mrf.mxu1 }
  0xd4   :  { %v196_v25 = vadd.f32 %v325_v22, %v186_v23 }
  0xd6   :  { %v197_v26 = vmax.f32 %v196_v25, 0.0 }
  0xd8   :  { %388 = vmatmul.mubr.msk.f32.vlgmr.msra.gmra.mxu0 %vm213_vm2, %v197_v26 }
 0x198   :  { %v283_v28 = vpop.f32.mrf.mxu0 }
 0x199   :  { %v284_v29 = vadd.f32 %v326_v27, %v283_v28 }
 0x19a   :  { %v389_v30 = vpop.f32.mrf.mxu0 }
 0x19b   :  { %v290_v31 = vsel %vm289_vm3, %v284_v29, 0.0 }
 0x19c   :  { %291 = vadd.xlane.f32.xlu0 %v290_v31 }
 0x225   :  { %v292_v32 = vpop.xlane.xlu0 %291 }
 0x226   :  { %v294_v33 = vmul.f32 0.03125, %v292_v32 }
 0x228   :  { %v295_v34 = vsub.f32 %v284_v29, %v294_v33 }
 0x22a   :  { %v296_v35 = vmul.f32 %v295_v34, %v295_v34 }
 0x22c   :  { %v297_v36 = vsel %vm289_vm3, %v296_v35, 0.0 }
 0x22d   :  { %298 = vadd.xlane.f32.xlu0 %v297_v36 }
 0x2b6   :  { %v299_v37 = vpop.xlane.xlu0 %298 }
 0x2b7   :  { %v300_v38 = vmul.f32 0.03125, %v299_v37 }
 0x2b9   :  { %v301_v39 = vadd.f32 1e-05, %v300_v38 }
 0x2bb   :  { %392 = vrsqrt.f32 %v301_v39 }
 0x2c8   :  { %v393_v40 = vpop.eup %392 }
 0x2c9   :  { %v303_v42 = vmul.f32 %v393_v40, %v295_v34 }
 0x2cb   :  { %v310_v44 = vmul.f32 %v328_v41, %v303_v42 }
 0x2cd   :  { %v317_v45 = vadd.f32 %v329_v43, %v310_v44 }
 0x2cf   :  { %318 = vst.msk [vmem:[%s532_s9] sm:$0x3] %vm289_vm3, %v317_v45 }

// kernel: encoder_forward.7
= control target key start
LH: loop header
LB: loop body
LE: loop exit
PB: predicated region body
PF: predicated region fallthrough
CT: control target
= control target key end

     0   :  { %v2370_v0 = vmov 0.0   ;;  %vm2371_vm0 = vmmov 0   ;;  %vm38_vm1 = vcmask 261120   ;;  %v193_v11 = vlaneseq  ;;  %s3034_s2 = inlined_call_operand.vmem [shape: f32[32,32], index: 2, kind: input, shape index: {}]   ;;  %s3035_s4 = inlined_call_operand.vmem [shape: f32[32,32], index: 4, kind: input, shape index: {}]   ;;  %s3036_s0 = inlined_call_operand.vmem [shape: f32[2,32], index: 0, kind: input, shape index: {}]   ;;  %s3037_s1 = inlined_call_operand.vmem [shape: f32[2,7,32], index: 1, kind: input, shape index: {}]   ;;  %s3038_s3 = inlined_call_operand.vmem [shape: f32[1,32], index: 3, kind: input, shape index: {}]   ;;  %s3039_s5 = inlined_call_operand.vmem [shape: f32[1,32], index: 5, kind: input, shape index: {}]   ;;  %s3040_s7 = inlined_call_operand.vmem [shape: f32[2,1], index: 7, kind: output, shape index: {1}]   ;;  %s3041_s6 = inlined_call_operand.vmem [shape: f32[2,7], index: 6, kind: output, shape index: {0}]   ;;  %s3042_s8 = inlined_call_operand.vmem [shape: f32[2,1], index: 8, kind: output, shape index: {2}]  }
   0x1   :  { %2159 = vmatprep.subr.mxu0 %v2370_v0  ;;  %v30_v1 = vld [vmem:[%s3034_s2 + $0x18] sm:$0xff]  ;;  %v29_v2 = vld [vmem:[%s3034_s2 + $0x10] sm:$0xff]  ;;  %2170 = vmatprep.subr.mxu1 %v2370_v0  ;;  %v28_v5 = vld [vmem:[%s3034_s2 + $0x8] sm:$0xff] }
   0x2   :  { %2160 = vmatpush3.msra.mxu0 %v30_v1  ;;  %v115_v3 = vld [vmem:[%s3035_s4 + $0x18] sm:$0xff]  ;;  %2167 = vmatprep.mubr.msk.f32.mxu0 %vm2371_vm0, %v2370_v0  ;;  %v114_v4 = vld [vmem:[%s3035_s4 + $0x10] sm:$0xff]  ;;  %v113_v6 = vld [vmem:[%s3035_s4 + $0x8] sm:$0xff]  ;;  %v194_v12 = vand.u32 127, %v193_v11 }
   0x3   :  { %2161 = vmatprep.subr.mxu0 %v2370_v0  ;;  %2171 = vmatpush3.msra.mxu1 %v115_v3  ;;  %v27_v7 = vld [vmem:[%s3034_s2] sm:$0xff]  ;;  %v2100_v51 = vld [vmem:[%s3037_s1 + $0x8] sm:$0x7f] }
   0x4   :  { %2162 = vmatpush3.msra.mxu0 %v29_v2  ;;  %2172 = vmatprep.subr.mxu1 %v2370_v0  ;;  %v26_v8 = vld [vmem:[%s3036_s0] sm:$0x3]  ;;  %vm308_vm2 = vcmp.ge.s32.totalorder %v194_v12, 4  ;;  %vm309_vm3 = vcmp.lt.s32.totalorder %v194_v12, 8  ;;  %vm516_vm4 = vcmp.ge.s32.totalorder %v194_v12, 12  ;;  %vm517_vm5 = vcmp.lt.s32.totalorder %v194_v12, 16 }
   0x5   :  { %2163 = vmatprep.subr.mxu0 %v2370_v0  ;;  %2173 = vmatpush3.msra.mxu1 %v114_v4  ;;  %v112_v9 = vld [vmem:[%s3035_s4] sm:$0xff]  ;;  %vm412_vm6 = vcmp.ge.s32.totalorder %v194_v12, 8  ;;  %vm413_vm7 = vcmp.lt.s32.totalorder %v194_v12, 12  ;;  %vm310_vm8 = vmand %vm308_vm2, %vm309_vm3  ;;  %vm200_vm9 = vcmp.lt.s32.totalorder %v194_v12, 4  ;;  %vm620_vm12 = vcmp.ge.s32.totalorder %v194_v12, 16 }
   0x6   :  { %2164 = vmatpush3.msra.mxu0 %v28_v5  ;;  %2174 = vmatprep.subr.mxu1 %v2370_v0  ;;  %v2468_v10 = vld [vmem:[%s3037_s1] sm:$0x7f]  ;;  %vm518_vm10 = vmand %vm516_vm4, %vm517_vm5  ;;  %vm724_vm13 = vcmp.ge.s32.totalorder %v194_v12, 20  ;;  %vm725_vm14 = vcmp.lt.s32.totalorder %v194_v12, 24  ;;  %v2076_v19 = vsel %vm200_vm9, 1.0, %v2370_v0  ;;  %v2079_v20 = vsel %vm310_vm8, 1.0, %v2370_v0 }
   0x7   :  { %2165 = vmatprep.subr.mxu0 %v2370_v0  ;;  %2175 = vmatpush3.msra.mxu1 %v113_v6  ;;  %v2072_v13 = vld [vmem:[%s3038_s3] ss:$0 sm:$0xff]  ;;  %vm414_vm11 = vmand %vm412_vm6, %vm413_vm7  ;;  %v2085_v21 = vsel %vm518_vm10, 1.0, %v2370_v0  ;;  %vm621_vm15 = vcmp.lt.s32.totalorder %v194_v12, 20  ;;  %vm828_vm4 = vcmp.ge.s32.totalorder %v194_v12, 24  ;;  %vm282_vm5 = vcmask 253952  }
   0x8   :  { %2166 = vmatpush3.msra.mxu0 %v27_v7  ;;  %2176 = vmatprep.subr.mxu1 %v2370_v0  ;;  %v2074_v15 = vld [vmem:[%s3039_s5] ss:$0 sm:$0xff]  ;;  %v2082_v24 = vsel %vm414_vm11, 1.0, %v2370_v0  ;;  %vm726_vm2 = vmand %vm724_vm13, %vm725_vm14  ;;  %vm932_vm6 = vcmp.ge.s32.totalorder %v194_v12, 28  ;;  %vm933_vm7 = vcmp.lt.s32.totalorder %v194_v12, 32  ;;  %vm829_vm8 = vcmp.lt.s32.totalorder %v194_v12, 28 }
   0x9   :  { %2168 = vmatmul.mubr.msk.f32.vlgmr.msra.gmra.mxu0 %vm38_vm1, %v26_v8  ;;  %2177 = vmatpush3.msra.mxu1 %v112_v9  ;;  %vm622_vm3 = vmand %vm620_vm12, %vm621_vm15  ;;  %v2091_v32 = vsel %vm726_vm2, 1.0, %v2370_v0  ;;  %vm1151_vm11 = vcmask 254977   ;;  %vm2057_vm12 = vcmask 1024   ;;  %vm286_vm13 = vcmask 49152  }
   0xa   :  { %2178 = vmatprep.mubr.msk.f32.mxu1 %vm2371_vm0, %v2370_v0  ;;  %2181 = vmatprep.subr.mxu0 %v2370_v0  ;;  %v2088_v33 = vsel %vm622_vm3, 1.0, %v2370_v0  ;;  %vm934_vm9 = vmand %vm932_vm6, %vm933_vm7  ;;  %vm2055_vm14 = vcmask 50176  }
   0xb   :  { %2179 = vmatmul.mubr.msk.f32.vlgmr.msra.gmra.mxu1 %vm38_vm1, %v26_v8  ;;  %2186 = vmatprep.subr.mxu1 %v2370_v0  ;;  %vm830_vm10 = vmand %vm828_vm4, %vm829_vm8  ;;  %v2097_v40 = vsel %vm934_vm9, 1.0, %v2370_v0 }
   0xc   :  { %2183 = vmatprep.mubr.msk.f32.mxu0 %vm2371_vm0, %v2370_v0  ;;  %2188 = vmatprep.mubr.msk.f32.mxu1 %vm2371_vm0, %v2370_v0  ;;  %v2094_v42 = vsel %vm830_vm10, 1.0, %v2370_v0 }
   0xd   :  { %2182 = vmatpush3.xpose.msk.msra.mxu0 %vm38_vm1, %v2468_v10  ;;  %2187 = vmatpush3.xpose.msk.msra.mxu1 %vm38_vm1, %v2468_v10 }
   0xe   :  { %2191 = vmatprep.subr.mxu0 %v2370_v0  ;;  %2196 = vmatprep.subr.mxu1 %v2370_v0 }
  0xc9   :  { %v108_v14 = vpop.f32.mrf.mxu0 }
  0xca   :  { %v109_v16 = vadd.f32 %v2072_v13, %v108_v14 }
  0xcb   :  { %v2169_v17 = vpop.f32.mrf.mxu0  ;;  %v189_v18 = vpop.f32.mrf.mxu1 }
  0xcc   :  { %v197_v22 = vmul.f32 0.5, %v109_v16  ;;  %v2486_v23 = vadd.f32 %v2074_v15, %v189_v18 }
  0xcd   :  { %v2180_v25 = vpop.f32.mrf.mxu1 }
  0xce   :  { %v2489_v26 = vmul.f32 %v2076_v19, %v197_v22  ;;  %v2491_v27 = vmul.f32 %v2079_v20, %v197_v22  ;;  %v2493_v28 = vmul.f32 %v2085_v21, %v197_v22  ;;  %v2496_v29 = vmul.f32 %v2082_v24, %v197_v22 }
  0xcf   :  { %v2532_v38 = vmul.f32 %v2091_v32, %v197_v22  ;;  %v2539_v39 = vmul.f32 %v2088_v33, %v197_v22  ;;  %v2564_v46 = vmul.f32 %v2097_v40, %v197_v22  ;;  %v2570_v47 = vmul.f32 %v2094_v42, %v197_v22 }
  0xd0   :  { %2184 = vmatmul.mubr.msk.f32.vlgmr.msra.gmra.mxu0 %vm38_vm1, %v2489_v26  ;;  %2189 = vmatmul.mubr.msk.f32.vlgmr.msra.gmra.mxu1 %vm38_vm1, %v2491_v27  ;;  %v2504_v30 = vmul.f32 %v2491_v27, %v2486_v23  ;;  %v2508_v31 = vmul.f32 %v2489_v26, %v2486_v23  ;;  %v2526_v36 = vmul.f32 %v2493_v28, %v2486_v23  ;;  %v1075_v55 = vrot.slane %v2489_v26, 1 }
  0xd1   :  { %2192 = vmatpush3.xpose.msk.msra.mxu0 %vm38_vm1, %v2468_v10  ;;  %2197 = vmatpush3.xpose.msk.msra.mxu1 %vm38_vm1, %v2468_v10  ;;  %v491_v37 = vmul.f32 %v2496_v29, %v2486_v23  ;;  %v2556_v44 = vmul.f32 %v2532_v38, %v2486_v23  ;;  %v2562_v45 = vmul.f32 %v2539_v39, %v2486_v23  ;;  %v1196_v56 = vrot.slane %v2491_v27, 1 }
  0xd2   :  { %v388_v34 = vsel %vm282_vm5, %v2504_v30, 0.0  ;;  %2198 = vmatprep.mubr.msk.f32.mxu1 %vm2371_vm0, %v2370_v0  ;;  %v283_v35 = vsel %vm282_vm5, %v2508_v31, 0.0  ;;  %2193 = vmatprep.mubr.msk.f32.mxu0 %vm2371_vm0, %v2370_v0  ;;  %v596_v41 = vsel %vm282_vm5, %v2526_v36, 0.0  ;;  %v1011_v50 = vmul.f32 %v2564_v46, %v2486_v23 }
  0xd3   :  { %389 = vadd.xlane.f32.xlu1 %v388_v34  ;;  %284 = vadd.xlane.f32.xlu0 %v283_v35  ;;  %v492_v43 = vsel %vm282_vm5, %v491_v37, 0.0  ;;  %v804_v48 = vsel %vm282_vm5, %v2556_v44, 0.0  ;;  %v700_v49 = vsel %vm282_vm5, %v2562_v45, 0.0  ;;  %v907_v52 = vmul.f32 %v2570_v47, %v2486_v23 }
  0xd4   :  { %2194 = vmatmul.mubr.msk.f32.vlgmr.msra.gmra.mxu0 %vm38_vm1, %v2496_v29  ;;  %2199 = vmatmul.mubr.msk.f32.vlgmr.msra.gmra.mxu1 %vm38_vm1, %v2493_v28  ;;  %v1012_v53 = vsel %vm282_vm5, %v1011_v50, 0.0  ;;  %v1152_v57 = vsel %vm1151_vm11, %v2508_v31, 0.0  ;;  %v1386_v58 = vsel %vm1151_vm11, %v491_v37, 0.0  ;;  %v1313_v59 = vrot.slane %v2496_v29, 1 }
  0xd5   :  { %2201 = vmatprep.subr.mxu0 %v2370_v0  ;;  %2206 = vmatprep.subr.mxu1 %v2370_v0  ;;  %v908_v54 = vsel %vm282_vm5, %v907_v52, 0.0  ;;  %v1430_v60 = vrot.slane %v2493_v28, 1  ;;  %v1269_v61 = vsel %vm1151_vm11, %v2504_v30, 0.0  ;;  %v1503_v62 = vsel %vm1151_vm11, %v2526_v36, 0.0 }
  0xd6   :  { %2202 = vmatpush3.xpose.msk.msra.mxu0 %vm38_vm1, %v2468_v10  ;;  %2207 = vmatpush3.xpose.msk.msra.mxu1 %vm38_vm1, %v2468_v10  ;;  %v1547_v63 = vrot.slane %v2539_v39, 1  ;;  %v1664_v1 = vrot.slane %v2532_v38, 1  ;;  %v1620_v2 = vsel %vm1151_vm11, %v2562_v45, 0.0  ;;  %v1971_v3 = vsel %vm1151_vm11, %v1011_v50, 0.0 }
  0xd7   :  { %597 = vadd.xlane.f32.xlu1 %v596_v41  ;;  %2208 = vmatprep.mubr.msk.f32.mxu1 %vm2371_vm0, %v2370_v0  ;;  %v1781_v4 = vrot.slane %v2570_v47, 1  ;;  %v1898_v5 = vrot.slane %v2564_v46, 1  ;;  %v1737_v6 = vsel %vm1151_vm11, %v2556_v44, 0.0  ;;  %v1854_v7 = vsel %vm1151_vm11, %v907_v52, 0.0 }
  0xd8   :  { %493 = vadd.xlane.f32.xlu0 %v492_v43  ;;  %2203 = vmatprep.mubr.msk.f32.mxu0 %vm2371_vm0, %v2370_v0  ;;  %v2699_v31 = vshrl.u32 %v193_v11, 7 }
  0xd9   :  { %2204 = vmatmul.mubr.msk.f32.vlgmr.msra.gmra.mxu0 %vm38_vm1, %v2539_v39  ;;  %2209 = vmatmul.mubr.msk.f32.vlgmr.msra.gmra.mxu1 %vm38_vm1, %v2532_v38 }
  0xda   :  { %2211 = vmatprep.subr.mxu0 %v2370_v0  ;;  %2216 = vmatprep.subr.mxu1 %v2370_v0  ;;  %v2706_v35 = vsub.s32 0, %v2699_v31  ;;  %v2047_v40 = vsub.s32 1, %v2699_v31 }
  0xdb   :  { %2212 = vmatpush3.xpose.msk.msra.mxu0 %vm38_vm1, %v2468_v10  ;;  %2217 = vmatpush3.xpose.msk.msra.mxu1 %vm38_vm1, %v2468_v10 }
  0xdc   :  { %805 = vadd.xlane.f32.xlu1 %v804_v48  ;;  %2218 = vmatprep.mubr.msk.f32.mxu1 %vm2371_vm0, %v2370_v0 }
  0xdd   :  { %701 = vadd.xlane.f32.xlu0 %v700_v49  ;;  %2213 = vmatprep.mubr.msk.f32.mxu0 %vm2371_vm0, %v2370_v0 }
  0xde   :  { %2214 = vmatmul.mubr.msk.f32.vlgmr.msra.gmra.mxu0 %vm38_vm1, %v2570_v47  ;;  %2219 = vmatmul.mubr.msk.f32.vlgmr.msra.gmra.mxu1 %vm38_vm1, %v2564_v46 }
  0xdf   :  { %2221 = vmatprep.subr.mxu0 %v2370_v0  ;;  %2226 = vmatprep.subr.mxu1 %v2370_v0 }
  0xe0   :  { %2222 = vmatpush3.xpose.msk.msra.mxu0 %vm38_vm1, %v2100_v51  ;;  %2227 = vmatpush3.xpose.msk.msra.mxu1 %vm38_vm1, %v2100_v51 }
  0xe1   :  { %1013 = vadd.xlane.f32.xlu1 %v1012_v53  ;;  %2228 = vmatprep.mubr.msk.f32.mxu1 %vm2371_vm0, %v2370_v0 }
  0xe2   :  { %909 = vadd.xlane.f32.xlu0 %v908_v54  ;;  %2223 = vmatprep.mubr.msk.f32.mxu0 %vm2371_vm0, %v2370_v0 }
  0xe3   :  { %2224 = vmatmul.mubr.msk.f32.vlgmr.msra.gmra.mxu0 %vm38_vm1, %v1075_v55  ;;  %2229 = vmatmul.mubr.msk.f32.vlgmr.msra.gmra.mxu1 %vm38_vm1, %v1196_v56 }
  0xe4   :  { %2231 = vmatprep.subr.mxu0 %v2370_v0  ;;  %2236 = vmatprep.subr.mxu1 %v2370_v0 }
  0xe5   :  { %2232 = vmatpush3.xpose.msk.msra.mxu0 %vm38_vm1, %v2100_v51  ;;  %2237 = vmatpush3.xpose.msk.msra.mxu1 %vm38_vm1, %v2100_v51 }
  0xe6   :  { %2238 = vmatprep.mubr.msk.f32.mxu1 %vm2371_vm0, %v2370_v0  ;;  %1153 = vadd.xlane.f32.xlu1 %v1152_v57 }
  0xe7   :  { %1387 = vadd.xlane.f32.xlu0 %v1386_v58  ;;  %2233 = vmatprep.mubr.msk.f32.mxu0 %vm2371_vm0, %v2370_v0 }
  0xe8   :  { %2234 = vmatmul.mubr.msk.f32.vlgmr.msra.gmra.mxu0 %vm38_vm1, %v1313_v59  ;;  %2239 = vmatmul.mubr.msk.f32.vlgmr.msra.gmra.mxu1 %vm38_vm1, %v1430_v60 }
  0xe9   :  { %2241 = vmatprep.subr.mxu0 %v2370_v0  ;;  %2246 = vmatprep.subr.mxu1 %v2370_v0 }
  0xea   :  { %2242 = vmatpush3.xpose.msk.msra.mxu0 %vm38_vm1, %v2100_v51  ;;  %2247 = vmatpush3.xpose.msk.msra.mxu1 %vm38_vm1, %v2100_v51 }
  0xeb   :  { %2248 = vmatprep.mubr.msk.f32.mxu1 %vm2371_vm0, %v2370_v0  ;;  %1270 = vadd.xlane.f32.xlu1 %v1269_v61 }
  0xec   :  { %1504 = vadd.xlane.f32.xlu0 %v1503_v62  ;;  %2243 = vmatprep.mubr.msk.f32.mxu0 %vm2371_vm0, %v2370_v0 }
  0xed   :  { %2244 = vmatmul.mubr.msk.f32.vlgmr.msra.gmra.mxu0 %vm38_vm1, %v1547_v63  ;;  %2249 = vmatmul.mubr.msk.f32.vlgmr.msra.gmra.mxu1 %vm38_vm1, %v1664_v1 }
  0xee   :  { %2251 = vmatprep.subr.mxu0 %v2370_v0  ;;  %2256 = vmatprep.subr.mxu1 %v2370_v0 }
  0xef   :  { %2252 = vmatpush3.xpose.msk.msra.mxu0 %vm38_vm1, %v2100_v51  ;;  %2257 = vmatpush3.xpose.msk.msra.mxu1 %vm38_vm1, %v2100_v51 }
  0xf0   :  { %2258 = vmatprep.mubr.msk.f32.mxu1 %vm2371_vm0, %v2370_v0  ;;  %1621 = vadd.xlane.f32.xlu1 %v1620_v2 }
  0xf1   :  { %1972 = vadd.xlane.f32.xlu0 %v1971_v3  ;;  %2253 = vmatprep.mubr.msk.f32.mxu0 %vm2371_vm0, %v2370_v0  ;;  %vm1053_vm0 = vcmp.eq.s32.totalorder %v2699_v31, 0 }
  0xf2   :  { %2254 = vmatmul.mubr.msk.f32.vlgmr.msra.gmra.mxu0 %vm38_vm1, %v1781_v4  ;;  %2259 = vmatmul.mubr.msk.f32.vlgmr.msra.gmra.mxu1 %vm38_vm1, %v1898_v5  ;;  %vm2035_vm1 = vcmp.eq.s32.totalorder %v2699_v31, 1 }
  0xf4   :  { %1738 = vadd.xlane.f32.xlu1 %v1737_v6 }
  0xf8   :  { %1855 = vadd.xlane.f32.xlu1 %v1854_v7 }
 0x15c   :  { %v2660_v8 = vpop.xlane.xlu1 %389  ;;  %v2662_v9 = vpop.xlane.xlu0 %284 }
 0x15d   :  { %v411_v14 = vadd.f32 %v2660_v8, %v2662_v9 }
 0x160   :  { %v2664_v10 = vpop.xlane.xlu1 %597 }
 0x161   :  { %v2666_v12 = vpop.xlane.xlu0 %493 }
 0x162   :  { %v515_v15 = vadd.f32 %v2666_v12, %v411_v14 }
 0x164   :  { %v619_v18 = vadd.f32 %v2664_v10, %v515_v15 }
 0x165   :  { %v2668_v0 = vpop.xlane.xlu1 %805 }
 0x166   :  { %v2670_v13 = vpop.xlane.xlu0 %701 }
 0x167   :  { %v723_v20 = vadd.f32 %v2670_v13, %v619_v18 }
 0x169   :  { %v827_v23 = vadd.f32 %v2668_v0, %v723_v20 }
 0x16a   :  { %v2675_v16 = vpop.xlane.xlu1 %1013 }
 0x16b   :  { %v2677_v17 = vpop.xlane.xlu0 %909 }
 0x16c   :  { %v931_v27 = vadd.f32 %v2677_v17, %v827_v23 }
 0x16e   :  { %v1035_v32 = vadd.f32 %v2675_v16, %v931_v27 }
 0x16f   :  { %v2680_v19 = vpop.xlane.xlu1 %1153 }
 0x170   :  { %v2683_v21 = vpop.xlane.xlu0 %1387  ;;  %v1062_v36 = vmul.f32 0.125, %v1035_v32 }
 0x172   :  { %v1066_v41 = vrot.slane %v1062_v36, %v2706_v35 }
 0x174   :  { %v2685_v22 = vpop.xlane.xlu1 %1270  ;;  %v1067_v44 = vsel %vm1053_vm0, %v1066_v41, 0.0 }
 0x175   :  { %v1312_v24 = vadd.f32 %v2685_v22, %v2680_v19  ;;  %v2691_v26 = vpop.xlane.xlu0 %1504 }
 0x177   :  { %v1429_v25 = vadd.f32 %v2683_v21, %v1312_v24 }
 0x179   :  { %v1546_v28 = vadd.f32 %v2691_v26, %v1429_v25  ;;  %v2695_v29 = vpop.xlane.xlu1 %1621 }
 0x17a   :  { %v2711_v39 = vpop.xlane.xlu0 %1972 }
 0x17b   :  { %v1663_v30 = vadd.f32 %v2695_v29, %v1546_v28 }
 0x17d   :  { %v2702_v33 = vpop.xlane.xlu1 %1738 }
 0x17e   :  { %v1780_v34 = vadd.f32 %v2702_v33, %v1663_v30 }
 0x181   :  { %v2708_v37 = vpop.xlane.xlu1 %1855 }
 0x182   :  { %v1897_v38 = vadd.f32 %v2708_v37, %v1780_v34 }
 0x184   :  { %v2014_v11 = vadd.f32 %v2711_v39, %v1897_v38 }
 0x186   :  { %v2044_v42 = vmul.f32 0.125, %v2014_v11 }
 0x188   :  { %v2048_v43 = vrot.slane %v2044_v42, %v2047_v40 }
 0x18a   :  { %v2049_v45 = vsel %vm2035_vm1, %v2048_v43, %v1067_v44 }
 0x18b   :  { %2058 = vst.msk [vmem:[%s3040_s7] sm:$0x3] %vm2057_vm12, %v2049_v45 }
 0x190   :  { %v2726_v46 = vpop.f32.mrf.mxu0  ;;  %v2728_v47 = vpop.f32.mrf.mxu1 }
 0x191   :  { %v287_v48 = vsel %vm286_vm13, %v2726_v46, -inf  ;;  %v391_v53 = vsel %vm286_vm13, %v2728_v47, -inf  ;;  %v410_v57 = vadd.f32 %v2728_v47, %v2726_v46 }
 0x192   :  { %v2190_v49 = vpop.f32.mrf.mxu1  ;;  %288 = vmax.xlane.f32.xlu0 %v287_v48  ;;  %v2185_v50 = vpop.f32.mrf.mxu0 }
 0x194   :  { %v2732_v51 = vpop.f32.mrf.mxu0  ;;  %v2734_v52 = vpop.f32.mrf.mxu1 }
 0x195   :  { %v495_v54 = vsel %vm286_vm13, %v2732_v51, -inf  ;;  %v599_v60 = vsel %vm286_vm13, %v2734_v52, -inf  ;;  %v514_v61 = vadd.f32 %v2732_v51, %v410_v57 }
 0x196   :  { %v2200_v55 = vpop.f32.mrf.mxu1  ;;  %392 = vmax.xlane.f32.xlu0 %v391_v53  ;;  %496 = vmax.xlane.f32.xlu1 %v495_v54  ;;  %v2195_v56 = vpop.f32.mrf.mxu0 }
 0x197   :  { %v618_v3 = vadd.f32 %v2734_v52, %v514_v61 }
 0x199   :  { %v2742_v58 = vpop.f32.mrf.mxu0  ;;  %v2744_v59 = vpop.f32.mrf.mxu1 }
 0x19a   :  { %600 = vmax.xlane.f32.xlu0 %v599_v60  ;;  %v703_v62 = vsel %vm286_vm13, %v2742_v58, -inf  ;;  %v807_v2 = vsel %vm286_vm13, %v2744_v59, -inf  ;;  %v722_v18 = vadd.f32 %v2742_v58, %v618_v3 }
 0x19b   :  { %v2210_v63 = vpop.f32.mrf.mxu1  ;;  %704 = vmax.xlane.f32.xlu1 %v703_v62  ;;  %v2205_v1 = vpop.f32.mrf.mxu0 }
 0x19c   :  { %v826_v28 = vadd.f32 %v2744_v59, %v722_v18 }
 0x19e   :  { %v2754_v4 = vpop.f32.mrf.mxu0  ;;  %v2756_v5 = vpop.f32.mrf.mxu1  ;;  %808 = vmax.xlane.f32.xlu0 %v807_v2 }
 0x19f   :  { %v911_v6 = vsel %vm286_vm13, %v2754_v4, -inf  ;;  %v1015_v15 = vsel %vm286_vm13, %v2756_v5, -inf  ;;  %v930_v11 = vadd.f32 %v2754_v4, %v826_v28 }
 0x1a0   :  { %v2220_v7 = vpop.f32.mrf.mxu1  ;;  %912 = vmax.xlane.f32.xlu1 %v911_v6  ;;  %v2215_v14 = vpop.f32.mrf.mxu0 }
 0x1a1   :  { %v1034_v49 = vadd.f32 %v2756_v5, %v930_v11  ;;  %v2372_v14 = vmov 0  }
 0x1a2   :  { %1016 = vmax.xlane.f32.xlu0 %v1015_v15  ;;  %2264 = vset.pattern.permute.xlu1 %v2372_v14 }
 0x1a3   :  { %v2763_v20 = vpop.f32.mrf.mxu0  ;;  %v2765_v23 = vpop.f32.mrf.mxu1  ;;  %v1054_v57 = vmul.f32 0.125, %v1034_v49  ;;  %2265 = vset.pattern.permute.xlu0 %v2372_v14 }
 0x1a4   :  { %v1155_v27 = vsel %vm286_vm13, %v2763_v20, -inf  ;;  %v1311_v30 = vadd.f32 %v2765_v23, %v2763_v20  ;;  %v1272_v40 = vsel %vm286_vm13, %v2765_v23, -inf }
 0x1a5   :  { %v2230_v24 = vpop.f32.mrf.mxu1  ;;  %v2225_v25 = vpop.f32.mrf.mxu0  ;;  %v1060_v6 = vrot.slane %v1054_v57, %v2706_v35 }
 0x1a6   :  { %1156 = vmax.xlane.f32.xlu0 %v1155_v27 }
 0x1a7   :  { %v1061_v24 = vsel %vm1053_vm0, %v1060_v6, 0.0 }
 0x1a8   :  { %v2772_v32 = vpop.f32.mrf.mxu0  ;;  %v2774_v34 = vpop.f32.mrf.mxu1 }
 0x1a9   :  { %v1428_v36 = vadd.f32 %v2772_v32, %v1311_v30  ;;  %v1389_v38 = vsel %vm286_vm13, %v2772_v32, -inf  ;;  %v1506_v48 = vsel %vm286_vm13, %v2774_v34, -inf }
 0x1aa   :  { %v2240_v41 = vpop.f32.mrf.mxu1  ;;  %1390 = vmax.xlane.f32.xlu1 %v1389_v38  ;;  %v2235_v42 = vpop.f32.mrf.mxu0  ;;  %1273 = vmax.xlane.f32.xlu0 %v1272_v40 }
 0x1ab   :  { %v1545_v43 = vadd.f32 %v2774_v34, %v1428_v36  ;;  %v1159_v42 = vrot.slane %v2680_v19, 1 }
 0x1ad   :  { %v2783_v44 = vpop.f32.mrf.mxu0  ;;  %v2785_v45 = vpop.f32.mrf.mxu1 }
 0x1ae   :  { %v1662_v50 = vadd.f32 %v2783_v44, %v1545_v43  ;;  %1507 = vmax.xlane.f32.xlu1 %v1506_v48  ;;  %v1623_v56 = vsel %vm286_vm13, %v2783_v44, -inf  ;;  %v1740_v3 = vsel %vm286_vm13, %v2785_v45, -inf }
 0x1af   :  { %v2250_v53 = vpop.f32.mrf.mxu1  ;;  %v2245_v54 = vpop.f32.mrf.mxu0 }
 0x1b0   :  { %v1779_v55 = vadd.f32 %v2785_v45, %v1662_v50  ;;  %v1276_v50 = vrot.slane %v2685_v22, 1 }
 0x1b2   :  { %v2794_v60 = vpop.f32.mrf.mxu0  ;;  %v2796_v61 = vpop.f32.mrf.mxu1  ;;  %1624 = vmax.xlane.f32.xlu1 %v1623_v56  ;;  %v1510_v56 = vrot.slane %v2691_v26, 1 }
 0x1b3   :  { %v1896_v62 = vadd.f32 %v2794_v60, %v1779_v55  ;;  %v1857_v18 = vsel %vm286_vm13, %v2794_v60, -inf  ;;  %v1974_v27 = vsel %vm286_vm13, %v2796_v61, -inf }
 0x1b4   :  { %v2260_v63 = vpop.f32.mrf.mxu1  ;;  %v2255_v1 = vpop.f32.mrf.mxu0 }
 0x1b5   :  { %v2013_v2 = vadd.f32 %v2796_v61, %v1896_v62 }
 0x1b6   :  { %1741 = vmax.xlane.f32.xlu1 %v1740_v3 }
 0x1b7   :  { %v2036_v7 = vmul.f32 0.125, %v2013_v2 }
 0x1b9   :  { %v2042_v15 = vrot.slane %v2036_v7, %v2706_v35 }
 0x1ba   :  { %1858 = vmax.xlane.f32.xlu1 %v1857_v18 }
 0x1bb   :  { %v2043_v25 = vsel %vm2035_vm1, %v2042_v15, %v1061_v24 }
 0x1bc   :  { %2056 = vst.msk [vmem:[%s3041_s6] sm:$0x3] %vm2055_vm14, %v2043_v25 }
 0x1be   :  { %1975 = vmax.xlane.f32.xlu1 %v1974_v27 }
 0x21b   :  { %v289_v28 = vpop.xlane.xlu0 %288 }
 0x21c   :  { %v2837_v1 = vmax.f32 %v289_v28, %v2662_v9 }
 0x21e   :  { %v291_v3 = vsub.f32 %v2726_v46, %v2837_v1 }
 0x21f   :  { %v393_v30 = vpop.xlane.xlu0 %392  ;;  %v497_v36 = vpop.xlane.xlu1 %496 }
 0x220   :  { %v2834_v63 = vmax.f32 %v497_v36, %v2666_v12  ;;  %v2844_v6 = vmax.f32 %v393_v30, %v2660_v8  ;;  %v292_v14 = vmul.f32 1.442695, %v291_v3  ;;  %v1393_v36 = vrot.slane %v2683_v21, 1 }
 0x222   :  { %v499_v2 = vsub.f32 %v2732_v51, %v2834_v63  ;;  %v395_v15 = vsub.f32 %v2728_v47, %v2844_v6 }
 0x223   :  { %v601_v38 = vpop.xlane.xlu0 %600 }
 0x224   :  { %v705_v11 = vpop.xlane.xlu1 %704  ;;  %v500_v7 = vmul.f32 1.442695, %v499_v2  ;;  %v396_v18 = vmul.f32 1.442695, %v395_v15 }
 0x226   :  { %2266 = vpow2.f32 %v500_v7 }
 0x227   :  { %v2815_v40 = vpop.xlane.xlu0 %808  ;;  %2268 = vpow2.f32 %v292_v14 }
 0x228   :  { %2270 = vpow2.f32 %v396_v18  ;;  %v1627_v18 = vrot.slane %v2695_v29, 1 }
 0x229   :  { %v2820_v43 = vpop.xlane.xlu1 %912 }
 0x22b   :  { %v2817_v41 = vpop.xlane.xlu0 %1016 }
 0x22f   :  { %v1157_v48 = vpop.xlane.xlu0 %1156 }
 0x230   :  { %v2822_v49 = vmax.f32 %v1157_v48, %v1159_v42  ;;  %v1744_v42 = vrot.slane %v2702_v33, 1 }
 0x232   :  { %1164 = vperm.xlu1 %2264, %v2822_v49  }
 0x233   :  { %v1391_v53 = vpop.xlane.xlu1 %1390  ;;  %v1274_v54 = vpop.xlane.xlu0 %1273 }
 0x234   :  { %v2826_v55 = vmax.f32 %v1274_v54, %v1276_v50  ;;  %v2848_v24 = vpop.eup %2266  ;;  %v2862_v48 = vmax.f32 %v1391_v53, %v1393_v36  ;;  %v2869_v54 = vmax.f32 %v705_v11, %v2670_v13  ;;  %v2902_v36 = vmax.f32 %v2815_v40, %v2668_v0 }
 0x235   :  { %v2850_v25 = vpop.eup %2268  ;;  %v505_v51 = vsel %vm286_vm13, %v2848_v24, 0.0 }
 0x236   :  { %1281 = vperm.xlu1 %2264, %v2826_v55   ;;  %v297_v46 = vsel %vm286_vm13, %v2850_v25, 0.0  ;;  %v2856_v27 = vpop.eup %2270 }
 0x237   :  { %v1508_v57 = vpop.xlane.xlu1 %1507  ;;  %v401_v47 = vsel %vm286_vm13, %v2856_v27, 0.0 }
 0x238   :  { %v2830_v62 = vmax.f32 %v1508_v57, %v1510_v56  ;;  %v707_v56 = vsub.f32 %v2742_v58, %v2869_v54  ;;  %v2874_v57 = vmax.f32 %v601_v38, %v2664_v10 }
 0x23a   :  { %1515 = vperm.xlu0 %2265, %v2830_v62   ;;  %v708_v2 = vmul.f32 1.442695, %v707_v56  ;;  %v603_v53 = vsub.f32 %v2734_v52, %v2874_v57  ;;  %v1978_v52 = vrot.slane %v2711_v39, 1 }
 0x23b   :  { %v1625_v28 = vpop.xlane.xlu1 %1624 }
 0x23c   :  { %2272 = vpow2.f32 %v708_v2  ;;  %v604_v3 = vmul.f32 1.442695, %v603_v53  ;;  %v811_v2 = vsub.f32 %v2744_v59, %v2902_v36 }
 0x23e   :  { %2274 = vpow2.f32 %v604_v3  ;;  %v812_v3 = vmul.f32 1.442695, %v811_v2 }
 0x23f   :  { %v1742_v30 = vpop.xlane.xlu1 %1741 }
 0x240   :  { %v2864_v50 = vmax.f32 %v1742_v30, %v1744_v42 }
 0x243   :  { %v1859_v38 = vpop.xlane.xlu1 %1858 }
 0x247   :  { %v1976_v15 = vpop.xlane.xlu1 %1975 }
 0x249   :  { %v2878_v7 = vpop.eup %2272 }
 0x24a   :  { %v713_v14 = vsel %vm286_vm13, %v2878_v7, 0.0 }
 0x24b   :  { %v2882_v11 = vpop.eup %2274 }
 0x24c   :  { %v609_v58 = vsel %vm286_vm13, %v2882_v11, 0.0 }
 0x259   :  { %506 = vadd.xlane.f32.xlu0 %v505_v51  ;;  %v2888_v51 = vmax.f32 %v1625_v28, %v1627_v18 }
 0x25a   :  { %298 = vadd.xlane.f32.xlu1 %v297_v46  ;;  %v2890_v46 = vmax.f32 %v1976_v15, %v1978_v52  ;;  %v294_v15 = vsub.f32 %v2662_v9, %v2837_v1  ;;  %v2931_v9 = vmax.f32 %v2817_v41, %v2675_v16 }
 0x25c   :  { %v295_v52 = vmul.f32 1.442695, %v294_v15 }
 0x25e   :  { %402 = vadd.xlane.f32.xlu1 %v401_v47  ;;  %v2896_v47 = vmax.f32 %v2820_v43, %v2677_v17 }
 0x260   :  { %v915_v30 = vsub.f32 %v2754_v4, %v2896_v47 }
 0x262   :  { %v916_v28 = vmul.f32 1.442695, %v915_v30  ;;  %v398_v30 = vsub.f32 %v2660_v8, %v2844_v6 }
 0x264   :  { %2276 = vpow2.f32 %v916_v28  ;;  %v399_v28 = vmul.f32 1.442695, %v398_v30 }
 0x26f   :  { %1749 = vperm.xlu0 %2265, %v2864_v50   ;;  %1398 = vperm.xlu1 %2264, %v2862_v48  }
 0x271   :  { %v2907_v43 = vpop.eup %2276 }
 0x272   :  { %v921_v4 = vsel %vm286_vm13, %v2907_v43, 0.0 }
 0x28e   :  { %714 = vadd.xlane.f32.xlu0 %v713_v14 }
 0x293   :  { %610 = vadd.xlane.f32.xlu1 %v609_v58  ;;  %v502_v58 = vsub.f32 %v2666_v12, %v2834_v63 }
 0x295   :  { %v503_v18 = vmul.f32 1.442695, %v502_v58 }
 0x2a4   :  { %1983 = vperm.xlu0 %2265, %v2890_v46   ;;  %1632 = vperm.xlu1 %2264, %v2888_v51  }
 0x2ad   :  { %v1165_v42 = vpop.permute.xlu1 %1164 }
 0x2ae   :  { %v1167_v56 = vsub.f32 %v2763_v20, %v1165_v42  ;;  %v1861_v42 = vrot.slane %v2708_v37, 1 }
 0x2b0   :  { %v1168_v53 = vmul.f32 1.442695, %v1167_v56  ;;  %v2926_v56 = vmax.f32 %v1859_v38, %v1861_v42 }
 0x2b1   :  { %v1282_v12 = vpop.permute.xlu1 %1281 }
 0x2b2   :  { %2278 = vpow2.f32 %v1168_v53  ;;  %v1284_v58 = vsub.f32 %v2765_v23, %v1282_v12 }
 0x2b3   :  { %2280 = vpow2.f32 %v812_v3  ;;  %v1019_v3 = vsub.f32 %v2756_v5, %v2931_v9 }
 0x2b4   :  { %2282 = vpow2.f32 %v503_v18  ;;  %v1285_v18 = vmul.f32 1.442695, %v1284_v58 }
 0x2b5   :  { %2284 = vpow2.f32 %v295_v52  ;;  %v1516_v2 = vpop.permute.xlu0 %1515 }
 0x2b6   :  { %2286 = vpow2.f32 %v399_v28  ;;  %v1518_v30 = vsub.f32 %v2774_v34, %v1516_v2 }
 0x2bf   :  { %v2911_v14 = vpop.eup %2278 }
 0x2c0   :  { %v2913_v40 = vpop.eup %2280  ;;  %v1175_v20 = vsel %vm286_vm13, %v2911_v14, 0.0 }
 0x2c1   :  { %v817_v59 = vsel %vm286_vm13, %v2913_v40, 0.0  ;;  %v2283_v63 = vpop.eup %2282 }
 0x2c2   :  { %v2285_v53 = vpop.eup %2284 }
 0x2c3   :  { %922 = vadd.xlane.f32.xlu0 %v921_v4  ;;  %v2287_v38 = vpop.eup %2286 }
 0x2c7   :  { %1176 = vadd.xlane.f32.xlu0 %v1175_v20 }
 0x2c8   :  { %818 = vadd.xlane.f32.xlu1 %v817_v59  ;;  %v1020_v59 = vmul.f32 1.442695, %v1019_v3 }
 0x2d9   :  { %1866 = vperm.xlu1 %2264, %v2926_v56  }
 0x2e2   :  { %v507_v1 = vpop.xlane.xlu0 %506 }
 0x2e3   :  { %v508_v8 = vadd.f32 %v2283_v63, %v507_v1  ;;  %v299_v6 = vpop.xlane.xlu1 %298 }
 0x2e4   :  { %v300_v4 = vadd.f32 %v2285_v53, %v299_v6 }
 0x2e5   :  { %2288 = vrcp.f32 %v508_v8  ;;  %v1519_v8 = vmul.f32 1.442695, %v1518_v30  ;;  %v606_v30 = vsub.f32 %v2664_v10, %v2874_v57 }
 0x2e6   :  { %2290 = vrcp.f32 %v300_v4 }
 0x2e7   :  { %v403_v20 = vpop.xlane.xlu1 %402 }
 0x2e8   :  { %v404_v15 = vadd.f32 %v2287_v38, %v403_v20 }
 0x2ea   :  { %2292 = vrcp.f32 %v404_v15  ;;  %v1750_v5 = vpop.permute.xlu0 %1749 }
 0x2eb   :  { %v1399_v41 = vpop.permute.xlu1 %1398  ;;  %2294 = vpow2.f32 %v1020_v59  ;;  %v1752_v3 = vsub.f32 %v2785_v45, %v1750_v5 }
 0x2ec   :  { %v1401_v52 = vsub.f32 %v2772_v32, %v1399_v41  ;;  %2296 = vpow2.f32 %v1285_v18 }
 0x2ed   :  { %v1753_v20 = vmul.f32 1.442695, %v1752_v3 }
 0x2ee   :  { %v1402_v42 = vmul.f32 1.442695, %v1401_v52 }
 0x2f0   :  { %2298 = vpow2.f32 %v1402_v42 }
 0x2f1   :  { %2300 = vpow2.f32 %v1519_v8 }
 0x2f2   :  { %v2289_v28 = vpop.eup %2288  ;;  %2302 = vpow2.f32 %v1753_v20 }
 0x2f3   :  { %v2291_v1 = vpop.eup %2290  ;;  %v512_v6 = vmul.f32 %v2289_v28, %v2283_v63  ;;  %v510_v2 = vmul.f32 %v2289_v28, %v2848_v24  ;;  %v710_v24 = vsub.f32 %v2670_v13, %v2869_v54  ;;  %v607_v28 = vmul.f32 1.442695, %v606_v30 }
 0x2f4   :  { %v304_v4 = vmul.f32 %v2291_v1, %v2285_v53  ;;  %v302_v12 = vmul.f32 %v2291_v1, %v2850_v25 }
 0x2f5   :  { %v711_v52 = vmul.f32 1.442695, %v710_v24 }
 0x2f7   :  { %v2293_v23 = vpop.eup %2292  ;;  %2304 = vpow2.f32 %v711_v52 }
 0x2f8   :  { %v406_v32 = vmul.f32 %v2293_v23, %v2856_v27  ;;  %v408_v59 = vmul.f32 %v2293_v23, %v2287_v38  ;;  %v2941_v34 = vpop.eup %2294  ;;  %2306 = vpow2.f32 %v607_v28 }
 0x2f9   :  { %v1025_v63 = vsel %vm286_vm13, %v2941_v34, 0.0  ;;  %v2946_v41 = vpop.eup %2296 }
 0x2fa   :  { %v407_v58 = vadd.f32 %v406_v32, %v302_v12  ;;  %v409_v15 = vadd.f32 %v408_v59, %v304_v4  ;;  %v1292_v25 = vsel %vm286_vm13, %v2946_v41, 0.0 }
 0x2fc   :  { %v511_v45 = vadd.f32 %v510_v2, %v407_v58  ;;  %v513_v53 = vadd.f32 %v512_v6, %v409_v15 }
 0x2fd   :  { %1026 = vadd.xlane.f32.xlu1 %v1025_v63  ;;  %v2950_v27 = vpop.eup %2298 }
 0x2fe   :  { %v2954_v38 = vpop.eup %2300  ;;  %v1409_v18 = vsel %vm286_vm13, %v2950_v27, 0.0 }
 0x2ff   :  { %v1526_v42 = vsel %vm286_vm13, %v2954_v38, 0.0  ;;  %v2962_v5 = vpop.eup %2302 }
 0x300   :  { %v1760_v13 = vsel %vm286_vm13, %v2962_v5, 0.0 }
 0x301   :  { %1293 = vadd.xlane.f32.xlu1 %v1292_v25 }
 0x304   :  { %v2305_v54 = vpop.eup %2304 }
 0x305   :  { %1410 = vadd.xlane.f32.xlu1 %v1409_v18  ;;  %v2307_v6 = vpop.eup %2306 }
 0x309   :  { %1527 = vadd.xlane.f32.xlu1 %v1526_v42 }
 0x30d   :  { %1761 = vadd.xlane.f32.xlu1 %v1760_v13 }
 0x317   :  { %v715_v1 = vpop.xlane.xlu0 %714 }
 0x318   :  { %v716_v8 = vadd.f32 %v2305_v54, %v715_v1 }
 0x31a   :  { %2308 = vrcp.f32 %v716_v8 }
 0x31c   :  { %v611_v4 = vpop.xlane.xlu1 %610 }
 0x31d   :  { %v612_v10 = vadd.f32 %v2307_v6, %v611_v4 }
 0x31f   :  { %2310 = vrcp.f32 %v612_v10 }
 0x320   :  { %v1633_v57 = vpop.permute.xlu1 %1632 }
 0x321   :  { %v1635_v3 = vsub.f32 %v2783_v44, %v1633_v57  ;;  %v918_v44 = vsub.f32 %v2677_v17, %v2896_v47 }
 0x323   :  { %v1636_v23 = vmul.f32 1.442695, %v1635_v3  ;;  %v919_v30 = vmul.f32 1.442695, %v918_v44 }
 0x325   :  { %2312 = vpow2.f32 %v1636_v23 }
 0x326   :  { %2314 = vpow2.f32 %v919_v30 }
 0x327   :  { %v2309_v12 = vpop.eup %2308 }
 0x328   :  { %v720_v20 = vmul.f32 %v2309_v12, %v2305_v54  ;;  %v718_v58 = vmul.f32 %v2309_v12, %v2878_v7  ;;  %v2977_v7 = vpop.permute.xlu0 %1983 }
 0x32c   :  { %v2311_v32 = vpop.eup %2310 }
 0x32d   :  { %v614_v59 = vmul.f32 %v2311_v32, %v2882_v11  ;;  %v616_v2 = vmul.f32 %v2311_v32, %v2307_v6  ;;  %v814_v11 = vsub.f32 %v2668_v0, %v2902_v36 }
 0x32f   :  { %v615_v15 = vadd.f32 %v614_v59, %v511_v45  ;;  %v617_v63 = vadd.f32 %v616_v2, %v513_v53  ;;  %v815_v42 = vmul.f32 1.442695, %v814_v11 }
 0x331   :  { %v719_v25 = vadd.f32 %v718_v58, %v615_v15  ;;  %v721_v24 = vadd.f32 %v720_v20, %v617_v63  ;;  %2316 = vpow2.f32 %v815_v42  ;;  %v1287_v58 = vrot.slane %v2826_v55, 7 }
 0x332   :  { %v2969_v18 = vpop.eup %2312 }
 0x333   :  { %v1643_v52 = vsel %vm286_vm13, %v2969_v18, 0.0  ;;  %v2315_v45 = vpop.eup %2314  ;;  %v1289_v63 = vsub.f32 %v2685_v22, %v1287_v58 }
 0x334   :  { %1644 = vadd.xlane.f32.xlu0 %v1643_v52 }
 0x335   :  { %v1290_v52 = vmul.f32 1.442695, %v1289_v63  ;;  %v1638_v63 = vrot.slane %v2888_v51, 7 }
 0x33e   :  { %v2317_v13 = vpop.eup %2316 }
 0x34c   :  { %v923_v53 = vpop.xlane.xlu0 %922 }
 0x34d   :  { %v924_v28 = vadd.f32 %v2315_v45, %v923_v53 }
 0x34f   :  { %2318 = vrcp.f32 %v924_v28 }
 0x351   :  { %v819_v54 = vpop.xlane.xlu1 %818 }
 0x352   :  { %v820_v1 = vadd.f32 %v2317_v13, %v819_v54 }
 0x354   :  { %2320 = vrcp.f32 %v820_v1 }
 0x355   :  { %v1867_v8 = vpop.permute.xlu1 %1866 }
 0x356   :  { %v1869_v17 = vsub.f32 %v2794_v60, %v1867_v8  ;;  %v1170_v60 = vrot.slane %v2822_v49, 7  ;;  %v1521_v49 = vrot.slane %v2830_v62, 7 }
 0x358   :  { %v1870_v47 = vmul.f32 1.442695, %v1869_v17  ;;  %v1172_v2 = vsub.f32 %v2680_v19, %v1170_v60  ;;  %v1523_v19 = vsub.f32 %v2691_v26, %v1521_v49 }
 0x35a   :  { %2322 = vpow2.f32 %v1870_v47  ;;  %v1173_v15 = vmul.f32 1.442695, %v1172_v2  ;;  %v1524_v55 = vmul.f32 1.442695, %v1523_v19 }
 0x35c   :  { %v2319_v6 = vpop.eup %2318  ;;  %2324 = vpow2.f32 %v1173_v15 }
 0x35d   :  { %v928_v0 = vmul.f32 %v2319_v6, %v2315_v45  ;;  %v926_v3 = vmul.f32 %v2319_v6, %v2907_v43  ;;  %v1404_v43 = vrot.slane %v2862_v48, 7 }
 0x361   :  { %v2321_v36 = vpop.eup %2320 }
 0x362   :  { %v822_v4 = vmul.f32 %v2321_v36, %v2913_v40  ;;  %v824_v10 = vmul.f32 %v2321_v36, %v2317_v13  ;;  %v1022_v40 = vsub.f32 %v2675_v16, %v2931_v9  ;;  %v1177_v9 = vpop.xlane.xlu0 %1176 }
 0x364   :  { %v823_v57 = vadd.f32 %v822_v4, %v719_v25  ;;  %v825_v23 = vadd.f32 %v824_v10, %v721_v24  ;;  %v1023_v25 = vmul.f32 1.442695, %v1022_v40  ;;  %v1406_v24 = vsub.f32 %v2683_v21, %v1404_v43 }
 0x366   :  { %v927_v12 = vadd.f32 %v926_v3, %v823_v57  ;;  %v929_v20 = vadd.f32 %v928_v0, %v825_v23  ;;  %2326 = vpow2.f32 %v1023_v25  ;;  %v1407_v44 = vmul.f32 1.442695, %v1406_v24 }
 0x367   :  { %v2982_v32 = vpop.eup %2322  ;;  %2328 = vpow2.f32 %v1290_v52 }
 0x368   :  { %v1877_v59 = vsel %vm286_vm13, %v2982_v32, 0.0  ;;  %2330 = vpow2.f32 %v1407_v44 }
 0x369   :  { %1878 = vadd.xlane.f32.xlu0 %v1877_v59  ;;  %2332 = vpow2.f32 %v1524_v55  ;;  %v2325_v16 = vpop.eup %2324 }
 0x36a   :  { %v1179_v30 = vrot.slane %v2325_v16, 1 }
 0x36c   :  { %v1181_v42 = vadd.f32 %v1179_v30, %v1177_v9 }
 0x373   :  { %v2327_v48 = vpop.eup %2326 }
 0x374   :  { %v2329_v22 = vpop.eup %2328 }
 0x375   :  { %v1296_v21 = vrot.slane %v2329_v22, 1  ;;  %v2331_v53 = vpop.eup %2330 }
 0x376   :  { %v1413_v13 = vrot.slane %v2331_v53, 1  ;;  %v2333_v26 = vpop.eup %2332 }
 0x377   :  { %v1530_v8 = vrot.slane %v2333_v26, 1 }
 0x386   :  { %v1027_v11 = vpop.xlane.xlu1 %1026 }
 0x387   :  { %v1028_v45 = vadd.f32 %v2327_v48, %v1027_v11 }
 0x389   :  { %2334 = vrcp.f32 %v1028_v45 }
 0x38a   :  { %v1294_v62 = vpop.xlane.xlu1 %1293  ;;  %2336 = vrcp.f32 %v1181_v42 }
 0x38b   :  { %v1298_v28 = vadd.f32 %v1296_v21, %v1294_v62 }
 0x38d   :  { %2338 = vrcp.f32 %v1298_v28 }
 0x38e   :  { %v1411_v54 = vpop.xlane.xlu1 %1410 }
 0x38f   :  { %v1415_v1 = vadd.f32 %v1413_v13, %v1411_v54  ;;  %v1872_v13 = vrot.slane %v2926_v56, 7 }
 0x391   :  { %2340 = vrcp.f32 %v1415_v1  ;;  %v1874_v54 = vsub.f32 %v2708_v37, %v1872_v13 }
 0x392   :  { %v1528_v17 = vpop.xlane.xlu1 %1527 }
 0x393   :  { %v1532_v47 = vadd.f32 %v1530_v8, %v1528_v17  ;;  %v1875_v8 = vmul.f32 1.442695, %v1874_v54 }
 0x395   :  { %2342 = vrcp.f32 %v1532_v47 }
 0x396   :  { %v2335_v6 = vpop.eup %2334  ;;  %v1762_v17 = vpop.xlane.xlu1 %1761 }
 0x397   :  { %v1030_v0 = vmul.f32 %v2335_v6, %v2941_v34  ;;  %v1032_v36 = vmul.f32 %v2335_v6, %v2327_v48  ;;  %v2337_v4 = vpop.eup %2336 }
 0x398   :  { %v1190_v23 = vrot.slane %v2337_v4, 7 }
 0x399   :  { %v1031_v10 = vadd.f32 %v1030_v0, %v927_v12  ;;  %v2997_v57 = vadd.f32 %v1032_v36, %v929_v20  ;;  %v1640_v20 = vsub.f32 %v2695_v29, %v1638_v63  ;;  %v1755_v29 = vrot.slane %v2864_v50, 7 }
 0x39a   :  { %v2339_v3 = vpop.eup %2338  ;;  %v1192_v15 = vmul.f32 %v2325_v16, %v1190_v23 }
 0x39b   :  { %v1307_v59 = vrot.slane %v2339_v3, 7  ;;  %v1036_v60 = vmul.f32 0.125, %v1031_v10  ;;  %v1641_v19 = vmul.f32 1.442695, %v1640_v20 }
 0x39d   :  { %v1309_v2 = vmul.f32 %v2329_v22, %v1307_v59  ;;  %vm1038_vm15 = vcmp.gt.f32.partialorder %v1036_v60, 0.0 }
 0x39e   :  { %v2341_v58 = vpop.eup %2340  ;;  %v1039_v40 = vsel %vm1038_vm15, %v1036_v60, 1.0 }
 0x39f   :  { %v1424_v43 = vrot.slane %v2341_v58, 7  ;;  %2344 = vlog2.f32 %v1039_v40  ;;  %v1310_v25 = vadd.f32 %v1309_v2, %v1192_v15 }
 0x3a0   :  { %2346 = vpow2.f32 %v1641_v19 }
 0x3a1   :  { %v1426_v34 = vmul.f32 %v2331_v53, %v1424_v43  ;;  %v1757_v53 = vsub.f32 %v2702_v33, %v1755_v29 }
 0x3a2   :  { %v2343_v24 = vpop.eup %2342 }
 0x3a3   :  { %v1541_v52 = vrot.slane %v2343_v24, 7  ;;  %1536 = vperm.xlu1 %2264, %v2343_v24   ;;  %v1427_v12 = vadd.f32 %v1426_v34, %v1310_v25  ;;  %v1758_v28 = vmul.f32 1.442695, %v1757_v53 }
 0x3a5   :  { %v1543_v49 = vmul.f32 %v2333_v26, %v1541_v52  ;;  %v1986_v26 = vsub.f32 %v2796_v61, %v2977_v7 }
 0x3a7   :  { %v1544_v44 = vadd.f32 %v1543_v49, %v1427_v12  ;;  %v1987_v1 = vmul.f32 1.442695, %v1986_v26 }
 0x3ac   :  { %v2345_v55 = vpop.eup %2344 }
 0x3ad   :  { %v1041_v9 = vmul.f32 0.6931472, %v2345_v55  ;;  %v2347_v30 = vpop.eup %2346 }
 0x3ae   :  { %v1647_v51 = vrot.slane %v2347_v30, 1 }
 0x3af   :  { %v1042_v48 = vmul.f32 %v1041_v9, %v1036_v60 }
 0x3b1   :  { %v1043_v16 = vsel %vm286_vm13, %v1042_v48, 0.0 }
 0x3b2   :  { %1044 = vadd.xlane.f32.xlu0 %v1043_v16 }
 0x3bd   :  { %v1645_v22 = vpop.xlane.xlu0 %1644 }
 0x3be   :  { %v1649_v11 = vadd.f32 %v1647_v51, %v1645_v22 }
 0x3c0   :  { %2348 = vrcp.f32 %v1649_v11 }
 0x3c1   :  { %2350 = vpow2.f32 %v1758_v28 }
 0x3c2   :  { %2352 = vpow2.f32 %v1987_v1 }
 0x3c3   :  { %2354 = vpow2.f32 %v1875_v8 }
 0x3c8   :  { %1185 = vperm.xlu0 %2265, %v2337_v4  }
 0x3cc   :  { %1302 = vperm.xlu0 %2265, %v2339_v3  }
 0x3cd   :  { %v2349_v42 = vpop.eup %2348 }
 0x3ce   :  { %v1658_v45 = vrot.slane %v2349_v42, 7  ;;  %1653 = vperm.xlu1 %2264, %v2349_v42   ;;  %v2351_v50 = vpop.eup %2350 }
 0x3cf   :  { %v1764_v47 = vrot.slane %v2351_v50, 1  ;;  %v3008_v6 = vpop.eup %2352 }
 0x3d0   :  { %1419 = vperm.xlu0 %2265, %v2341_v58   ;;  %v1660_v21 = vmul.f32 %v2347_v30, %v1658_v45  ;;  %v2355_v0 = vpop.eup %2354  ;;  %v1994_v56 = vsel %vm286_vm13, %v3008_v6, 0.0  ;;  %v1037_v58 = vmul.f32 0.125, %v2997_v57  ;;  %v1989_v57 = vrot.slane %v2890_v46, 7 }
 0x3d1   :  { %v1766_v33 = vadd.f32 %v1764_v47, %v1762_v17  ;;  %v1881_v61 = vrot.slane %v2355_v0, 1 }
 0x3d2   :  { %v1661_v62 = vadd.f32 %v1660_v21, %v1544_v44  ;;  %vm1046_vm2 = vcmp.gt.f32.partialorder %v1037_v58, 0.0  ;;  %v1991_v9 = vsub.f32 %v2711_v39, %v1989_v57 }
 0x3d3   :  { %2356 = vrcp.f32 %v1766_v33  ;;  %v1047_v40 = vsel %vm1046_vm2, %v1037_v58, 1.0 }
 0x3d4   :  { %v1992_v48 = vmul.f32 1.442695, %v1991_v9 }
 0x3e0   :  { %v2357_v37 = vpop.eup %2356 }
 0x3e1   :  { %v1775_v4 = vrot.slane %v2357_v37, 7 }
 0x3e3   :  { %v1777_v3 = vmul.f32 %v2351_v50, %v1775_v4 }
 0x3e5   :  { %v1778_v59 = vadd.f32 %v1777_v3, %v1661_v62 }
 0x3ef   :  { %1995 = vadd.xlane.f32.xlu0 %v1994_v56 }
 0x3f2   :  { %v1879_v7 = vpop.xlane.xlu0 %1878 }
 0x3f3   :  { %v1883_v36 = vadd.f32 %v1881_v61, %v1879_v7 }
 0x3f5   :  { %2358 = vrcp.f32 %v1883_v36 }
 0x3f6   :  { %2360 = vlog2.f32 %v1047_v40 }
 0x3f7   :  { %2362 = vpow2.f32 %v1992_v48 }
 0x402   :  { %v2359_v10 = vpop.eup %2358 }
 0x403   :  { %1887 = vperm.xlu1 %2264, %v2359_v10   ;;  %v1892_v23 = vrot.slane %v2359_v10, 7  ;;  %v2361_v15 = vpop.eup %2360 }
 0x404   :  { %v1049_v43 = vmul.f32 0.6931472, %v2361_v15  ;;  %v2363_v16 = vpop.eup %2362 }
 0x405   :  { %1770 = vperm.xlu0 %2265, %v2357_v37   ;;  %v1894_v60 = vmul.f32 %v2355_v0, %v1892_v23  ;;  %v1998_v30 = vrot.slane %v2363_v16, 1 }
 0x406   :  { %v1050_v63 = vmul.f32 %v1049_v43, %v1037_v58 }
 0x407   :  { %v1895_v2 = vadd.f32 %v1894_v60, %v1778_v59 }
 0x41e   :  { %v1537_v29 = vpop.permute.xlu1 %1536 }
 0x43b   :  { %v1045_v25 = vpop.xlane.xlu0 %1044 }
 0x43c   :  { %v1051_v34 = vadd.f32 %v1050_v63, %v1045_v25 }
 0x43e   :  { %v1052_v36 = vsub.f32 0.0, %v1051_v34 }
 0x440   :  { %v1071_v10 = vrot.slane %v1052_v36, %v2706_v35 }
 0x442   :  { %v1072_v59 = vsel %vm1053_vm0, %v1071_v10, 0.0 }
 0x443   :  { %v1186_v24 = vpop.permute.xlu0 %1185 }
 0x444   :  { %v1188_v12 = vmul.f32 %v2911_v14, %v1186_v24 }
 0x447   :  { %v1303_v52 = vpop.permute.xlu0 %1302 }
 0x448   :  { %v1305_v20 = vmul.f32 %v2946_v41, %v1303_v52 }
 0x449   :  { %v1654_v45 = vpop.permute.xlu1 %1653 }
 0x44a   :  { %v1306_v49 = vadd.f32 %v1305_v20, %v1188_v12  ;;  %v1656_v39 = vmul.f32 %v2969_v18, %v1654_v45 }
 0x44b   :  { %v1420_v44 = vpop.permute.xlu0 %1419 }
 0x44c   :  { %v1422_v19 = vmul.f32 %v2950_v27, %v1420_v44  ;;  %v1539_v27 = vmul.f32 %v2954_v38, %v1537_v29 }
 0x44e   :  { %v1423_v55 = vadd.f32 %v1422_v19, %v1306_v49 }
 0x450   :  { %v1540_v46 = vadd.f32 %v1539_v27, %v1423_v55 }
 0x452   :  { %v1657_v62 = vadd.f32 %v1656_v39, %v1540_v46 }
 0x478   :  { %v1996_v51 = vpop.xlane.xlu0 %1995 }
 0x479   :  { %v2000_v22 = vadd.f32 %v1998_v30, %v1996_v51 }
 0x47b   :  { %2364 = vrcp.f32 %v2000_v22 }
 0x47e   :  { %v1888_v28 = vpop.permute.xlu1 %1887 }
 0x47f   :  { %v1890_v26 = vmul.f32 %v2982_v32, %v1888_v28 }
 0x480   :  { %v1771_v21 = vpop.permute.xlu0 %1770 }
 0x481   :  { %v1773_v53 = vmul.f32 %v2962_v5, %v1771_v21 }
 0x483   :  { %v1774_v13 = vadd.f32 %v1773_v53, %v1657_v62 }
 0x485   :  { %v1891_v1 = vadd.f32 %v1890_v26, %v1774_v13 }
 0x488   :  { %v2365_v11 = vpop.eup %2364 }
 0x489   :  { %2004 = vperm.xlu1 %2264, %v2365_v11   ;;  %v2009_v14 = vrot.slane %v2365_v11, 7 }
 0x48b   :  { %v2011_v41 = vmul.f32 %v2363_v16, %v2009_v14 }
 0x48d   :  { %v2012_v42 = vadd.f32 %v2011_v41, %v1895_v2 }
 0x48f   :  { %v2016_v5 = vmul.f32 0.125, %v2012_v42 }
 0x491   :  { %vm2025_vm4 = vcmp.gt.f32.partialorder %v2016_v5, 0.0 }
 0x492   :  { %v2026_v56 = vsel %vm2025_vm4, %v2016_v5, 1.0 }
 0x504   :  { %v2005_v54 = vpop.permute.xlu1 %2004 }
 0x505   :  { %v2007_v8 = vmul.f32 %v3008_v6, %v2005_v54 }
 0x507   :  { %v2008_v50 = vadd.f32 %v2007_v8, %v1891_v1 }
 0x509   :  { %v2015_v17 = vmul.f32 0.125, %v2008_v50 }
 0x50b   :  { %vm2017_vm3 = vcmp.gt.f32.partialorder %v2015_v17, 0.0 }
 0x50c   :  { %v2018_v38 = vsel %vm2017_vm3, %v2015_v17, 1.0 }
 0x50d   :  { %2366 = vlog2.f32 %v2018_v38 }
 0x50e   :  { %2368 = vlog2.f32 %v2026_v56 }
 0x51a   :  { %v2367_v47 = vpop.eup %2366 }
 0x51b   :  { %v2020_v33 = vmul.f32 0.6931472, %v2367_v47  ;;  %v2369_v32 = vpop.eup %2368 }
 0x51c   :  { %v2028_v61 = vmul.f32 0.6931472, %v2369_v32 }
 0x51d   :  { %v2021_v0 = vmul.f32 %v2020_v33, %v2015_v17 }
 0x51e   :  { %v2029_v7 = vmul.f32 %v2028_v61, %v2016_v5 }
 0x51f   :  { %v2022_v18 = vsel %vm286_vm13, %v2021_v0, 0.0 }
 0x520   :  { %2023 = vadd.xlane.f32.xlu0 %v2022_v18  ;;  %v2031_v6 = vrot.slane %v2029_v7, 1 }
 0x5a9   :  { %v2024_v37 = vpop.xlane.xlu0 %2023 }
 0x5aa   :  { %v2033_v4 = vadd.f32 %v2031_v6, %v2024_v37 }
 0x5ac   :  { %v2034_v3 = vsub.f32 0.0, %v2033_v4 }
 0x5ae   :  { %v2053_v23 = vrot.slane %v2034_v3, %v2706_v35 }
 0x5b0   :  { %v2054_v60 = vsel %vm2035_vm1, %v2053_v23, %v1072_v59 }
 0x5b1   :  { %2059 = vst.msk [vmem:[%s3042_s8] sm:$0x3] %vm2057_vm12, %v2054_v60 }

// kernel: encoder_forward.4
= control target key start
LH: loop header
LB: loop body
LE: loop exit
PB: predicated region body
PF: predicated region fallthrough
CT: control target
= control target key end

     0   :  { %vm41_vm0 = vcmask 261120   ;;  %v31_v0 = vlaneseq  ;;  %v3575_v1 = vmov 0.0   ;;  %vm3576_vm1 = vmmov 0   ;;  %s4174_s0 = inlined_call_operand.vmem [shape: f32[2,7,32], index: 0, kind: input, shape index: {}]   ;;  %s4175_s7 = inlined_call_operand.vmem [shape: f32[16,7,7], index: 7, kind: output, shape index: {0}]   ;;  %s4176_s3 = inlined_call_operand.vmem [shape: f32[32,32], index: 3, kind: input, shape index: {}]   ;;  %s4177_s1 = inlined_call_operand.vmem [shape: f32[32,32], index: 1, kind: input, shape index: {}]   ;;  %s4178_s5 = inlined_call_operand.vmem [shape: f32[1,32], index: 5, kind: input, shape index: {}]   ;;  %s4179_s6 = inlined_call_operand.vmem [shape: f32[1,32], index: 6, kind: input, shape index: {}]   ;;  %s4180_s2 = inlined_call_operand.vmem [shape: f32[1,32], index: 2, kind: input, shape index: {}]   ;;  %s4181_s4 = inlined_call_operand.vmem [shape: f32[1,32], index: 4, kind: input, shape index: {}]   ;;  %s4182_s8 = inlined_call_operand.vmem [shape: f32[2,7,32], index: 8, kind: output, shape index: {1}]   ;;  %s4183_s9 = inlined_call_operand.vmem [shape: f32[2,7,32], index: 9, kind: output, shape index: {2}]  }
   0x1   :  { %3306 = vmatprep.subr.mxu1 %v3575_v1  ;;  %v3631_v2 = vld [vmem:[%s4174_s0] sm:$0x7f]  ;;  %3308 = vmatprep.mubr.msk.f32.mxu1 %vm3576_vm1, %v3575_v1  ;;  %vm118_vm5 = vcmask 55296   ;;  %vm228_vm7 = vcmask 1046528  }
   0x2   :  { %3307 = vmatpush3.xpose.msk.msra.mxu1 %vm41_vm0, %v3631_v2  ;;  %v3637_v3 = vand.u32 127, %v31_v0  ;;  %3301 = vmatprep.subr.mxu0 %v3575_v1 }
   0x3   :  { %3302 = vmatpush3.xpose.msk.msra.mxu0 %vm41_vm0, %v3631_v2  ;;  %3303 = vmatprep.mubr.msk.f32.mxu0 %vm3576_vm1, %v3575_v1 }
   0x4   :  { %vm131_vm2 = vcmp.ge.s32.totalorder %v3637_v3, 4  ;;  %vm132_vm3 = vcmp.lt.s32.totalorder %v3637_v3, 8  ;;  %3311 = vmatprep.subr.mxu0 %v3575_v1  ;;  %3316 = vmatprep.subr.mxu1 %v3575_v1  ;;  %vm35_vm6 = vcmp.lt.s32.totalorder %v3637_v3, 4  ;;  %vm378_vm8 = vcmp.ge.s32.totalorder %v3637_v3, 8 }
   0x5   :  { %vm133_vm4 = vmand %vm131_vm2, %vm132_vm3  ;;  %v3659_v10 = vsel %vm35_vm6, 1.0, %v3575_v1  ;;  %vm379_vm9 = vcmp.lt.s32.totalorder %v3637_v3, 12  ;;  %vm548_vm11 = vcmp.ge.s32.totalorder %v3637_v3, 12  ;;  %vm549_vm12 = vcmp.lt.s32.totalorder %v3637_v3, 16 }
   0x6   :  { %v3649_v4 = vsel %vm133_vm4, 1.0, %v3575_v1  ;;  %v39_v11 = vmul.f32 %v3659_v10, %v3631_v2  ;;  %vm380_vm10 = vmand %vm378_vm8, %vm379_vm9  ;;  %vm718_vm14 = vcmp.ge.s32.totalorder %v3637_v3, 16  ;;  %vm719_vm15 = vcmp.lt.s32.totalorder %v3637_v3, 20 }
   0x7   :  { %v136_v5 = vmul.f32 %v3649_v4, %v3631_v2  ;;  %v3680_v22 = vsel %vm380_vm10, 1.0, %v3575_v1  ;;  %vm550_vm13 = vmand %vm548_vm11, %vm549_vm12  ;;  %vm224_vm2 = vcmask 56320   ;;  %vm888_vm4 = vcmp.ge.s32.totalorder %v3637_v3, 20 }
   0x8   :  { %v40_v12 = vmul.f32 0.5, %v39_v11  ;;  %v3686_v23 = vmul.f32 %v3680_v22, %v3631_v2  ;;  %v3689_v25 = vsel %vm550_vm13, 1.0, %v3575_v1  ;;  %vm720_vm3 = vmand %vm718_vm14, %vm719_vm15  ;;  %vm889_vm6 = vcmp.lt.s32.totalorder %v3637_v3, 24 }
   0x9   :  { %v137_v6 = vmul.f32 0.5, %v136_v5  ;;  %v3701_v28 = vmul.f32 %v3689_v25, %v3631_v2  ;;  %v3708_v29 = vsel %vm720_vm3, 1.0, %v3575_v1  ;;  %vm890_vm8 = vmand %vm888_vm4, %vm889_vm6  ;;  %vm1058_vm9 = vcmp.ge.s32.totalorder %v3637_v3, 24 }
   0xa   :  { %3304 = vmatmul.mubr.msk.f32.vlgmr.msra.gmra.mxu0 %vm41_vm0, %v40_v12  ;;  %v384_v27 = vmul.f32 0.5, %v3686_v23  ;;  %vm1059_vm10 = vcmp.lt.s32.totalorder %v3637_v3, 28  ;;  %v3717_v31 = vmul.f32 %v3708_v29, %v3631_v2  ;;  %v3724_v32 = vsel %vm890_vm8, 1.0, %v3575_v1 }
   0xb   :  { %3309 = vmatmul.mubr.msk.f32.vlgmr.msra.gmra.mxu1 %vm41_vm0, %v137_v6  ;;  %3313 = vmatprep.mubr.msk.f32.mxu0 %vm3576_vm1, %v3575_v1  ;;  %v554_v30 = vmul.f32 0.5, %v3701_v28  ;;  %vm1060_vm11 = vmand %vm1058_vm9, %vm1059_vm10  ;;  %vm1228_vm12 = vcmp.ge.s32.totalorder %v3637_v3, 28  ;;  %vm1229_vm13 = vcmp.lt.s32.totalorder %v3637_v3, 32  ;;  %v3733_v34 = vmul.f32 %v3724_v32, %v3631_v2 }
   0xc   :  { %3318 = vmatprep.mubr.msk.f32.mxu1 %vm3576_vm1, %v3575_v1  ;;  %3312 = vmatpush3.msk.msra.mxu0 %vm228_vm7, %v136_v5  ;;  %v724_v33 = vmul.f32 0.5, %v3717_v31  ;;  %v3740_v35 = vsel %vm1060_vm11, 1.0, %v3575_v1  ;;  %vm1230_vm14 = vmand %vm1228_vm12, %vm1229_vm13  ;;  %vm1400_vm15 = vcmask 260096  }
   0xd   :  { %3317 = vmatpush3.msk.msra.mxu1 %vm228_vm7, %v39_v11  ;;  %3321 = vmatprep.subr.mxu0 %v3575_v1  ;;  %v894_v36 = vmul.f32 0.5, %v3733_v34  ;;  %v3747_v37 = vmul.f32 %v3740_v35, %v3631_v2  ;;  %v3754_v38 = vsel %vm1230_vm14, 1.0, %v3575_v1 }
   0xe   :  { %3326 = vmatprep.subr.mxu1 %v3575_v1  ;;  %v3761_v40 = vmul.f32 %v3754_v38, %v3631_v2 }
   0xf   :  { %v1064_v39 = vmul.f32 0.5, %v3747_v37 }
  0x10   :  { %v1234_v41 = vmul.f32 0.5, %v3761_v40 }
  0xca   :  { %v3671_v18 = vpop.f32.mrf.mxu0 }
  0xcb   :  { %v207_v7 = vpop.f32.mrf.mxu1  ;;  %v119_v19 = vsel %vm118_vm5, %v3671_v18, -inf }
  0xcc   :  { %v211_v8 = vsel %vm118_vm5, %v207_v7, -inf  ;;  %120 = vmax.xlane.f32.xlu1 %v119_v19  ;;  %v3305_v20 = vpop.f32.mrf.mxu0 }
  0xcd   :  { %212 = vmax.xlane.f32.xlu0 %v211_v8  ;;  %v3310_v9 = vpop.f32.mrf.mxu1 }
 0x155   :  { %v121_v42 = vpop.xlane.xlu1 %120 }
 0x156   :  { %v213_v13 = vpop.xlane.xlu0 %212  ;;  %v122_v44 = vsub.f32 %v3671_v18, %v121_v42 }
 0x157   :  { %v214_v14 = vsub.f32 %v207_v7, %v213_v13 }
 0x158   :  { %v123_v47 = vmul.f32 1.442695, %v122_v44 }
 0x159   :  { %v215_v15 = vmul.f32 1.442695, %v214_v14 }
 0x15b   :  { %3507 = vpow2.f32 %v215_v15 }
 0x168   :  { %v3508_v16 = vpop.eup %3507 }
 0x169   :  { %v217_v17 = vsel %vm118_vm5, %v3508_v16, 0.0 }
 0x16a   :  { %218 = vadd.xlane.f32.xlu0 %v217_v17 }
 0x1f3   :  { %v219_v21 = vpop.xlane.xlu0 %218 }
 0x1f4   :  { %3509 = vrcp.f32 %v219_v21 }
 0x1f5   :  { %3511 = vpow2.f32 %v123_v47 }
 0x201   :  { %v3510_v24 = vpop.eup %3509 }
 0x202   :  { %v221_v26 = vmul.f32 %v3510_v24, %v3508_v16  ;;  %v3512_v61 = vpop.eup %3511 }
 0x203   :  { %v125_v0 = vsel %vm118_vm5, %v3512_v61, 0.0 }
 0x204   :  { %3123 = vst.msk [vmem:[%s4175_s7 + $0x8] sm:$0x7f] %vm118_vm5, %v221_v26  ;;  %3314 = vmatmul.mubr.msk.f32.vlgmr.msra.gmra.mxu0 %vm224_vm2, %v221_v26 }
 0x205   :  { %3322 = vmatpush3.xpose.msk.msra.mxu0 %vm41_vm0, %v3631_v2  ;;  %3323 = vmatprep.mubr.msk.f32.mxu0 %vm3576_vm1, %v3575_v1 }
 0x206   :  { %3331 = vmatprep.subr.mxu0 %v3575_v1 }
 0x208   :  { %3324 = vmatmul.mubr.msk.f32.vlgmr.msra.gmra.mxu0 %vm41_vm0, %v384_v27 }
 0x209   :  { %3332 = vmatpush3.xpose.msk.msra.mxu0 %vm41_vm0, %v3631_v2  ;;  %3333 = vmatprep.mubr.msk.f32.mxu0 %vm3576_vm1, %v3575_v1 }
 0x20a   :  { %3341 = vmatprep.subr.mxu0 %v3575_v1 }
 0x20c   :  { %3334 = vmatmul.mubr.msk.f32.vlgmr.msra.gmra.mxu0 %vm41_vm0, %v554_v30 }
 0x20d   :  { %3342 = vmatpush3.xpose.msk.msra.mxu0 %vm41_vm0, %v3631_v2  ;;  %3343 = vmatprep.mubr.msk.f32.mxu0 %vm3576_vm1, %v3575_v1 }
 0x20e   :  { %3351 = vmatprep.subr.mxu0 %v3575_v1 }
 0x210   :  { %3344 = vmatmul.mubr.msk.f32.vlgmr.msra.gmra.mxu0 %vm41_vm0, %v724_v33 }
 0x211   :  { %3352 = vmatpush3.xpose.msk.msra.mxu0 %vm41_vm0, %v3631_v2  ;;  %3353 = vmatprep.mubr.msk.f32.mxu0 %vm3576_vm1, %v3575_v1 }
 0x212   :  { %3361 = vmatprep.subr.mxu0 %v3575_v1 }
 0x214   :  { %3354 = vmatmul.mubr.msk.f32.vlgmr.msra.gmra.mxu0 %vm41_vm0, %v894_v36 }
 0x215   :  { %3362 = vmatpush3.xpose.msk.msra.mxu0 %vm41_vm0, %v3631_v2  ;;  %3363 = vmatprep.mubr.msk.f32.mxu0 %vm3576_vm1, %v3575_v1 }
 0x216   :  { %3371 = vmatprep.subr.mxu0 %v3575_v1 }
 0x218   :  { %3364 = vmatmul.mubr.msk.f32.vlgmr.msra.gmra.mxu0 %vm41_vm0, %v1064_v39 }
 0x219   :  { %3372 = vmatpush3.xpose.msk.msra.mxu0 %vm41_vm0, %v3631_v2  ;;  %3373 = vmatprep.mubr.msk.f32.mxu0 %vm3576_vm1, %v3575_v1 }
 0x21a   :  { %3381 = vmatprep.subr.mxu0 %v3575_v1 }
 0x21c   :  { %3374 = vmatmul.mubr.msk.f32.vlgmr.msra.gmra.mxu0 %vm41_vm0, %v1234_v41 }
 0x21d   :  { %3389 = vmatprep.mubr.msk.f32.mxu0 %vm3576_vm1, %v3575_v1 }
 0x2c4   :  { %v3778_v43 = vpop.f32.mrf.mxu0 }
 0x2c6   :  { %v3315_v45 = vpop.f32.mrf.mxu0 }
 0x2c8   :  { %v454_v46 = vpop.f32.mrf.mxu0 }
 0x2c9   :  { %v458_v48 = vsel %vm118_vm5, %v454_v46, -inf }
 0x2ca   :  { %459 = vmax.xlane.f32.xlu1 %v458_v48  ;;  %v3325_v49 = vpop.f32.mrf.mxu0 }
 0x2cc   :  { %v624_v50 = vpop.f32.mrf.mxu0 }
 0x2cd   :  { %v628_v51 = vsel %vm118_vm5, %v624_v50, -inf }
 0x2ce   :  { %629 = vmax.xlane.f32.xlu0 %v628_v51  ;;  %v3335_v52 = vpop.f32.mrf.mxu0 }
 0x2d0   :  { %v794_v53 = vpop.f32.mrf.mxu0 }
 0x2d1   :  { %v798_v54 = vsel %vm118_vm5, %v794_v53, -inf }
 0x2d2   :  { %799 = vmax.xlane.f32.xlu1 %v798_v54  ;;  %v3345_v55 = vpop.f32.mrf.mxu0 }
 0x2d4   :  { %v964_v56 = vpop.f32.mrf.mxu0 }
 0x2d5   :  { %v968_v57 = vsel %vm118_vm5, %v964_v56, -inf }
 0x2d6   :  { %969 = vmax.xlane.f32.xlu0 %v968_v57  ;;  %v3355_v58 = vpop.f32.mrf.mxu0 }
 0x2d8   :  { %v1134_v59 = vpop.f32.mrf.mxu0 }
 0x2d9   :  { %v1138_v60 = vsel %vm118_vm5, %v1134_v59, -inf }
 0x2da   :  { %1139 = vmax.xlane.f32.xlu1 %v1138_v60  ;;  %v3365_v62 = vpop.f32.mrf.mxu0 }
 0x2dc   :  { %v1304_v63 = vpop.f32.mrf.mxu0 }
 0x2dd   :  { %v1308_v3 = vsel %vm118_vm5, %v1304_v63, -inf }
 0x2de   :  { %126 = vadd.xlane.f32.xlu1 %v125_v0  ;;  %1309 = vmax.xlane.f32.xlu0 %v1308_v3  ;;  %v3375_v5 = vpop.f32.mrf.mxu0 }
 0x353   :  { %v460_v6 = vpop.xlane.xlu1 %459 }
 0x354   :  { %v461_v7 = vsub.f32 %v454_v46, %v460_v6 }
 0x356   :  { %v462_v8 = vmul.f32 1.442695, %v461_v7 }
 0x357   :  { %v630_v9 = vpop.xlane.xlu0 %629 }
 0x358   :  { %3513 = vpow2.f32 %v462_v8  ;;  %v631_v11 = vsub.f32 %v624_v50, %v630_v9 }
 0x35a   :  { %v632_v12 = vmul.f32 1.442695, %v631_v11 }
 0x35b   :  { %v800_v13 = vpop.xlane.xlu1 %799 }
 0x35c   :  { %3515 = vpow2.f32 %v632_v12  ;;  %v801_v14 = vsub.f32 %v794_v53, %v800_v13 }
 0x35e   :  { %v802_v15 = vmul.f32 1.442695, %v801_v14 }
 0x35f   :  { %v970_v16 = vpop.xlane.xlu0 %969 }
 0x360   :  { %3517 = vpow2.f32 %v802_v15  ;;  %v971_v17 = vsub.f32 %v964_v56, %v970_v16 }
 0x362   :  { %v972_v18 = vmul.f32 1.442695, %v971_v17 }
 0x363   :  { %v1140_v19 = vpop.xlane.xlu1 %1139 }
 0x364   :  { %3519 = vpow2.f32 %v972_v18  ;;  %v1141_v20 = vsub.f32 %v1134_v59, %v1140_v19 }
 0x365   :  { %v3514_v21 = vpop.eup %3513 }
 0x366   :  { %v1142_v24 = vmul.f32 1.442695, %v1141_v20  ;;  %v464_v26 = vsel %vm118_vm5, %v3514_v21, 0.0 }
 0x367   :  { %v127_v27 = vpop.xlane.xlu1 %126  ;;  %465 = vadd.xlane.f32.xlu0 %v464_v26  ;;  %v1310_v30 = vpop.xlane.xlu0 %1309 }
 0x368   :  { %3521 = vpow2.f32 %v1142_v24  ;;  %v1311_v33 = vsub.f32 %v1304_v63, %v1310_v30 }
 0x369   :  { %v3516_v36 = vpop.eup %3515  ;;  %3523 = vrcp.f32 %v127_v27 }
 0x36a   :  { %v1312_v39 = vmul.f32 1.442695, %v1311_v33  ;;  %v634_v41 = vsel %vm118_vm5, %v3516_v36, 0.0 }
 0x36b   :  { %635 = vadd.xlane.f32.xlu1 %v634_v41 }
 0x36c   :  { %3525 = vpow2.f32 %v1312_v39 }
 0x36d   :  { %v3518_v42 = vpop.eup %3517 }
 0x36e   :  { %v804_v44 = vsel %vm118_vm5, %v3518_v42, 0.0 }
 0x36f   :  { %805 = vadd.xlane.f32.xlu0 %v804_v44 }
 0x371   :  { %v3520_v45 = vpop.eup %3519 }
 0x372   :  { %v974_v46 = vsel %vm118_vm5, %v3520_v45, 0.0 }
 0x373   :  { %975 = vadd.xlane.f32.xlu1 %v974_v46  ;;  %v3868_v46 = vld [vmem:[%s4176_s3 + $0x18] sm:$0xff] }
 0x375   :  { %v3522_v47 = vpop.eup %3521 }
 0x376   :  { %v3524_v48 = vpop.eup %3523  ;;  %v1144_v49 = vsel %vm118_vm5, %v3522_v47, 0.0 }
 0x377   :  { %1145 = vadd.xlane.f32.xlu0 %v1144_v49  ;;  %v129_v50 = vmul.f32 %v3524_v48, %v3512_v61  ;;  %v3885_v48 = vld [vmem:[%s4177_s1 + $0x10] sm:$0xff]  ;;  %v3892_v49 = vld [vmem:[%s4176_s3 + $0x8] sm:$0xff] }
 0x379   :  { %v3526_v51 = vpop.eup %3525  ;;  %130 = vst.msk [vmem:[%s4175_s7] sm:$0x7f] %vm118_vm5, %v129_v50  ;;  %3319 = vmatmul.mubr.msk.f32.vlgmr.msra.gmra.mxu1 %vm224_vm2, %v129_v50  ;;  %v3897_v50 = vld [vmem:[%s4177_s1 + $0x8] sm:$0xff] }
 0x37a   :  { %v1314_v52 = vsel %vm118_vm5, %v3526_v51, 0.0  ;;  %3327 = vmatpush3.msk.msra.mxu1 %vm228_vm7, %v3686_v23  ;;  %3328 = vmatprep.mubr.msk.f32.mxu1 %vm3576_vm1, %v3575_v1 }
 0x37b   :  { %1315 = vadd.xlane.f32.xlu1 %v1314_v52  ;;  %3336 = vmatprep.subr.mxu1 %v3575_v1  ;;  %v3911_v52 = vld [vmem:[%s4177_s1] sm:$0xff] }
 0x3f0   :  { %v466_v53 = vpop.xlane.xlu0 %465 }
 0x3f1   :  { %3527 = vrcp.f32 %v466_v53 }
 0x3f4   :  { %v636_v54 = vpop.xlane.xlu1 %635 }
 0x3f5   :  { %3529 = vrcp.f32 %v636_v54 }
 0x3f8   :  { %v806_v55 = vpop.xlane.xlu0 %805 }
 0x3f9   :  { %3531 = vrcp.f32 %v806_v55 }
 0x3fc   :  { %v976_v56 = vpop.xlane.xlu1 %975 }
 0x3fd   :  { %3533 = vrcp.f32 %v976_v56 }
 0x3fe   :  { %v3528_v57 = vpop.eup %3527 }
 0x3ff   :  { %v468_v58 = vmul.f32 %v3528_v57, %v3514_v21  ;;  %v3924_v57 = vld [vmem:[%s4174_s0 + $0x8] sm:$0x7f] }
 0x400   :  { %v1146_v59 = vpop.xlane.xlu0 %1145 }
 0x401   :  { %3535 = vrcp.f32 %v1146_v59  ;;  %3131 = vst.msk [vmem:[%s4175_s7 + $0x10] sm:$0x7f] %vm118_vm5, %v468_v58  ;;  %3329 = vmatmul.mubr.msk.f32.vlgmr.msra.gmra.mxu1 %vm224_vm2, %v468_v58  ;;  %v3929_v58 = vld [vmem:[%s4178_s5] ss:$0 sm:$0xff] }
 0x402   :  { %v3530_v23 = vpop.eup %3529  ;;  %3337 = vmatpush3.msk.msra.mxu1 %vm228_vm7, %v3701_v28  ;;  %3338 = vmatprep.mubr.msk.f32.mxu1 %vm3576_vm1, %v3575_v1 }
 0x403   :  { %3346 = vmatprep.subr.mxu1 %v3575_v1  ;;  %v638_v60 = vmul.f32 %v3530_v23, %v3516_v36  ;;  %v3934_v23 = vld [vmem:[%s4179_s6] ss:$0 sm:$0xff] }
 0x404   :  { %v1316_v61 = vpop.xlane.xlu1 %1315 }
 0x405   :  { %3537 = vrcp.f32 %v1316_v61  ;;  %3137 = vst.msk [vmem:[%s4175_s7 + $0x18] sm:$0x7f] %vm118_vm5, %v638_v60  ;;  %3339 = vmatmul.mubr.msk.f32.vlgmr.msra.gmra.mxu1 %vm224_vm2, %v638_v60  ;;  %v1689_v60 = vmul.f32 %v3924_v57, %v3649_v4  ;;  %v1598_v4 = vmul.f32 %v3924_v57, %v3659_v10  ;;  %v3967_v10 = vld [vmem:[%s4181_s4] ss:$0 sm:$0xff] }
 0x406   :  { %v3532_v62 = vpop.eup %3531  ;;  %3347 = vmatpush3.msk.msra.mxu1 %vm228_vm7, %v3717_v31  ;;  %3348 = vmatprep.mubr.msk.f32.mxu1 %vm3576_vm1, %v3575_v1 }
 0x407   :  { %3356 = vmatprep.subr.mxu1 %v3575_v1  ;;  %v808_v28 = vmul.f32 %v3532_v62, %v3518_v42 }
 0x409   :  { %3143 = vst.msk [vmem:[%s4175_s7 + $0x20] sm:$0x7f] %vm118_vm5, %v808_v28  ;;  %3349 = vmatmul.mubr.msk.f32.vlgmr.msra.gmra.mxu1 %vm224_vm2, %v808_v28  ;;  %v1690_v28 = vmul.f32 0.5, %v1689_v60 }
 0x40a   :  { %v3534_v63 = vpop.eup %3533  ;;  %3357 = vmatpush3.msk.msra.mxu1 %vm228_vm7, %v3733_v34  ;;  %3358 = vmatprep.mubr.msk.f32.mxu1 %vm3576_vm1, %v3575_v1 }
 0x40b   :  { %3366 = vmatprep.subr.mxu1 %v3575_v1  ;;  %v978_v31 = vmul.f32 %v3534_v63, %v3520_v45  ;;  %v3962_v63 = vld [vmem:[%s4180_s2] ss:$0 sm:$0xff] }
 0x40d   :  { %3149 = vst.msk [vmem:[%s4175_s7 + $0x28] sm:$0x7f] %vm118_vm5, %v978_v31  ;;  %3359 = vmatmul.mubr.msk.f32.vlgmr.msra.gmra.mxu1 %vm224_vm2, %v978_v31 }
 0x40e   :  { %v3536_v0 = vpop.eup %3535  ;;  %3367 = vmatpush3.msk.msra.mxu1 %vm228_vm7, %v3747_v37  ;;  %3368 = vmatprep.mubr.msk.f32.mxu1 %vm3576_vm1, %v3575_v1 }
 0x40f   :  { %3376 = vmatprep.subr.mxu1 %v3575_v1  ;;  %v1148_v34 = vmul.f32 %v3536_v0, %v3522_v47  ;;  %v3873_v47 = vld [vmem:[%s4177_s1 + $0x18] sm:$0xff] }
 0x410   :  { %3382 = vmatpush3.msra.mxu0 %v3873_v47 }
 0x411   :  { %3155 = vst.msk [vmem:[%s4175_s7 + $0x30] sm:$0x7f] %vm118_vm5, %v1148_v34  ;;  %3369 = vmatmul.mubr.msk.f32.vlgmr.msra.gmra.mxu1 %vm224_vm2, %v1148_v34  ;;  %3383 = vmatprep.subr.mxu0 %v3575_v1 }
 0x412   :  { %v3538_v3 = vpop.eup %3537  ;;  %3377 = vmatpush3.msk.msra.mxu1 %vm228_vm7, %v3761_v40  ;;  %3378 = vmatprep.mubr.msk.f32.mxu1 %vm3576_vm1, %v3575_v1 }
 0x413   :  { %v1318_v37 = vmul.f32 %v3538_v3, %v3526_v51  ;;  %3392 = vmatprep.subr.mxu1 %v3575_v1  ;;  %3384 = vmatpush3.msra.mxu0 %v3885_v48  ;;  %v3906_v51 = vld [vmem:[%s4176_s3] sm:$0xff] }
 0x414   :  { %3385 = vmatprep.subr.mxu0 %v3575_v1 }
 0x415   :  { %3161 = vst.msk [vmem:[%s4175_s7 + $0x38] sm:$0x7f] %vm118_vm5, %v1318_v37  ;;  %3379 = vmatmul.mubr.msk.f32.vlgmr.msra.gmra.mxu1 %vm224_vm2, %v1318_v37  ;;  %3386 = vmatpush3.msra.mxu0 %v3897_v50 }
 0x416   :  { %3400 = vmatprep.mubr.msk.f32.mxu1 %vm3576_vm1, %v3575_v1  ;;  %3393 = vmatpush3.msra.mxu1 %v3868_v46 }
 0x417   :  { %3394 = vmatprep.subr.mxu1 %v3575_v1  ;;  %3387 = vmatprep.subr.mxu0 %v3575_v1 }
 0x418   :  { %3388 = vmatpush3.msra.mxu0 %v3911_v52 }
 0x419   :  { %3403 = vmatprep.subr.mxu0 %v3575_v1 }
 0x439   :  { %v374_v5 = vpop.f32.mrf.mxu1 }
 0x43a   :  { %v375_v12 = vadd.f32 %v374_v5, %v3778_v43 }
 0x43b   :  { %v3320_v6 = vpop.f32.mrf.mxu1 }
 0x4c1   :  { %v543_v7 = vpop.f32.mrf.mxu1 }
 0x4c2   :  { %v547_v14 = vadd.f32 %v543_v7, %v375_v12 }
 0x4c3   :  { %v3330_v40 = vpop.f32.mrf.mxu1 }
 0x4c5   :  { %v713_v8 = vpop.f32.mrf.mxu1 }
 0x4c6   :  { %v717_v16 = vadd.f32 %v713_v8, %v547_v14  ;;  %v1599_v8 = vmul.f32 0.5, %v1598_v4 }
 0x4c7   :  { %v3340_v9 = vpop.f32.mrf.mxu1 }
 0x4c9   :  { %v883_v11 = vpop.f32.mrf.mxu1 }
 0x4ca   :  { %v887_v18 = vadd.f32 %v883_v11, %v717_v16 }
 0x4cb   :  { %v3350_v13 = vpop.f32.mrf.mxu1 }
 0x4cd   :  { %v1053_v15 = vpop.f32.mrf.mxu1 }
 0x4ce   :  { %v1057_v20 = vadd.f32 %v1053_v15, %v887_v18 }
 0x4cf   :  { %v3360_v17 = vpop.f32.mrf.mxu1 }
 0x4d1   :  { %v1223_v19 = vpop.f32.mrf.mxu1 }
 0x4d2   :  { %v1227_v24 = vadd.f32 %v1223_v19, %v1057_v20  ;;  %v3989_v19 = vmul.f32 %v3924_v57, %v3680_v22 }
 0x4d3   :  { %v3370_v21 = vpop.f32.mrf.mxu1 }
 0x4d5   :  { %v1393_v26 = vpop.f32.mrf.mxu1 }
 0x4d6   :  { %v1397_v27 = vadd.f32 %v1393_v26, %v1227_v24  ;;  %v1930_v24 = vmul.f32 0.5, %v3989_v19  ;;  %v3999_v26 = vmul.f32 %v3924_v57, %v3689_v25 }
 0x4d7   :  { %v3380_v30 = vpop.f32.mrf.mxu1 }
 0x4d8   :  { %v1398_v33 = vmul.f32 0.1, %v1397_v27  ;;  %v2095_v22 = vmul.f32 0.5, %v3999_v26  ;;  %v4010_v27 = vmul.f32 %v3924_v57, %v3708_v29  ;;  %v4021_v30 = vmul.f32 %v3924_v57, %v3724_v32 }
 0x4da   :  { %v1399_v36 = vadd.f32 %v1398_v33, %v3631_v2  ;;  %v3880_v2 = vld [vmem:[%s4176_s3 + $0x10] sm:$0xff]  ;;  %v2260_v25 = vmul.f32 0.5, %v4010_v27  ;;  %v2425_v29 = vmul.f32 0.5, %v4021_v30  ;;  %v4032_v33 = vmul.f32 %v3924_v57, %v3740_v35 }
 0x4db   :  { %3395 = vmatpush3.msra.mxu1 %v3880_v2 }
 0x4dc   :  { %v1401_v39 = vsel %vm1400_vm15, %v1399_v36, 0.0  ;;  %3396 = vmatprep.subr.mxu1 %v3575_v1  ;;  %v2590_v32 = vmul.f32 0.5, %v4032_v33 }
 0x4dd   :  { %1402 = vadd.xlane.f32.xlu0 %v1401_v39  ;;  %3397 = vmatpush3.msra.mxu1 %v3892_v49 }
 0x4de   :  { %3398 = vmatprep.subr.mxu1 %v3575_v1 }
 0x4df   :  { %3399 = vmatpush3.msra.mxu1 %v3906_v51 }
 0x4e0   :  { %3408 = vmatprep.subr.mxu1 %v3575_v1 }
 0x566   :  { %v1403_v43 = vpop.xlane.xlu0 %1402 }
 0x567   :  { %v1405_v41 = vmul.f32 0.03125, %v1403_v43 }
 0x569   :  { %v1406_v42 = vsub.f32 %v1399_v36, %v1405_v41  ;;  %v4043_v36 = vmul.f32 %v3924_v57, %v3754_v38 }
 0x56b   :  { %v1407_v44 = vmul.f32 %v1406_v42, %v1406_v42  ;;  %v2755_v35 = vmul.f32 0.5, %v4043_v36 }
 0x56d   :  { %v1408_v45 = vsel %vm1400_vm15, %v1407_v44, 0.0 }
 0x56e   :  { %1409 = vadd.xlane.f32.xlu1 %v1408_v45 }
 0x5f7   :  { %v1410_v53 = vpop.xlane.xlu1 %1409 }
 0x5f8   :  { %v1411_v54 = vmul.f32 0.03125, %v1410_v53 }
 0x5fa   :  { %v1412_v55 = vadd.f32 1e-05, %v1411_v54 }
 0x5fc   :  { %3539 = vrsqrt.f32 %v1412_v55 }
 0x609   :  { %v3540_v56 = vpop.eup %3539 }
 0x60a   :  { %v1414_v59 = vmul.f32 %v3540_v56, %v1406_v42 }
 0x60c   :  { %v1421_v61 = vmul.f32 %v3929_v58, %v1414_v59 }
 0x60e   :  { %v1428_v62 = vadd.f32 %v3934_v23, %v1421_v61 }
 0x610   :  { %3390 = vmatmul.mubr.msk.f32.vlgmr.msra.gmra.mxu0 %vm41_vm0, %v1428_v62  ;;  %3401 = vmatmul.mubr.msk.f32.vlgmr.msra.gmra.mxu1 %vm41_vm0, %v1428_v62 }
 0x611   :  { %3409 = vmatpush3.xpose.msk.msra.mxu1 %vm41_vm0, %v3924_v57  ;;  %3410 = vmatprep.mubr.msk.f32.mxu1 %vm3576_vm1, %v3575_v1 }
 0x612   :  { %3404 = vmatpush3.xpose.msk.msra.mxu0 %vm41_vm0, %v3924_v57  ;;  %3405 = vmatprep.mubr.msk.f32.mxu0 %vm3576_vm1, %v3575_v1 }
 0x613   :  { %3413 = vmatprep.subr.mxu0 %v3575_v1  ;;  %3418 = vmatprep.subr.mxu1 %v3575_v1 }
 0x614   :  { %3411 = vmatmul.mubr.msk.f32.vlgmr.msra.gmra.mxu1 %vm41_vm0, %v1690_v28 }
 0x615   :  { %3419 = vmatpush3.msk.msra.mxu1 %vm228_vm7, %v1598_v4  ;;  %3420 = vmatprep.mubr.msk.f32.mxu1 %vm3576_vm1, %v3575_v1 }
 0x616   :  { %3428 = vmatprep.subr.mxu1 %v3575_v1  ;;  %3406 = vmatmul.mubr.msk.f32.vlgmr.msra.gmra.mxu0 %vm41_vm0, %v1599_v8 }
 0x617   :  { %3414 = vmatpush3.msk.msra.mxu0 %vm228_vm7, %v1689_v60  ;;  %3415 = vmatprep.mubr.msk.f32.mxu0 %vm3576_vm1, %v3575_v1 }
 0x618   :  { %3423 = vmatprep.subr.mxu0 %v3575_v1 }
 0x6d0   :  { %v1509_v31 = vpop.f32.mrf.mxu0  ;;  %v1591_v0 = vpop.f32.mrf.mxu1 }
 0x6d1   :  { %v1510_v34 = vadd.f32 %v3962_v63, %v1509_v31  ;;  %v1592_v3 = vadd.f32 %v3967_v10, %v1591_v0 }
 0x6d2   :  { %v3391_v37 = vpop.f32.mrf.mxu0  ;;  %v3402_v5 = vpop.f32.mrf.mxu1 }
 0x6d3   :  { %1513 = vst.msk [vmem:[%s4182_s8] sm:$0x7f] %vm1400_vm15, %v1510_v34  ;;  %1595 = vst.msk [vmem:[%s4183_s9] sm:$0x7f] %vm1400_vm15, %v1592_v3 }
 0x6d4   :  { %v1760_v6 = vpop.f32.mrf.mxu1 }
 0x6d5   :  { %v1764_v7 = vsel %vm118_vm5, %v1760_v6, -inf }
 0x6d6   :  { %1765 = vmax.xlane.f32.xlu0 %v1764_v7  ;;  %v3412_v40 = vpop.f32.mrf.mxu1  ;;  %v1672_v15 = vpop.f32.mrf.mxu0 }
 0x6d7   :  { %v1676_v16 = vsel %vm118_vm5, %v1672_v15, -inf }
 0x6d8   :  { %v3407_v17 = vpop.f32.mrf.mxu0 }
 0x6da   :  { %1677 = vmax.xlane.f32.xlu0 %v1676_v16 }
 0x75f   :  { %v1766_v9 = vpop.xlane.xlu0 %1765 }
 0x760   :  { %v1767_v11 = vsub.f32 %v1760_v6, %v1766_v9 }
 0x762   :  { %v1768_v12 = vmul.f32 1.442695, %v1767_v11 }
 0x763   :  { %v1678_v38 = vpop.xlane.xlu0 %1677 }
 0x764   :  { %3541 = vpow2.f32 %v1768_v12  ;;  %v1679_v43 = vsub.f32 %v1672_v15, %v1678_v38 }
 0x766   :  { %v1680_v44 = vmul.f32 1.442695, %v1679_v43 }
 0x771   :  { %v3542_v13 = vpop.eup %3541 }
 0x772   :  { %v1770_v14 = vsel %vm118_vm5, %v3542_v13, 0.0 }
 0x773   :  { %1771 = vadd.xlane.f32.xlu1 %v1770_v14 }
 0x7fc   :  { %v1772_v18 = vpop.xlane.xlu1 %1771 }
 0x7fd   :  { %3543 = vrcp.f32 %v1772_v18 }
 0x7fe   :  { %3545 = vpow2.f32 %v1680_v44 }
 0x80a   :  { %v3544_v20 = vpop.eup %3543 }
 0x80b   :  { %v1774_v21 = vmul.f32 %v3544_v20, %v3542_v13  ;;  %v3546_v28 = vpop.eup %3545 }
 0x80c   :  { %v1682_v0 = vsel %vm118_vm5, %v3546_v28, 0.0 }
 0x80d   :  { %3176 = vst.msk [vmem:[%s4175_s7 + $0x48] sm:$0x7f] %vm118_vm5, %v1774_v21  ;;  %3416 = vmatmul.mubr.msk.f32.vlgmr.msra.gmra.mxu0 %vm224_vm2, %v1774_v21 }
 0x80e   :  { %3424 = vmatpush3.xpose.msk.msra.mxu0 %vm41_vm0, %v3924_v57  ;;  %3425 = vmatprep.mubr.msk.f32.mxu0 %vm3576_vm1, %v3575_v1 }
 0x80f   :  { %3433 = vmatprep.subr.mxu0 %v3575_v1 }
 0x811   :  { %3426 = vmatmul.mubr.msk.f32.vlgmr.msra.gmra.mxu0 %vm41_vm0, %v1930_v24 }
 0x812   :  { %3434 = vmatpush3.xpose.msk.msra.mxu0 %vm41_vm0, %v3924_v57  ;;  %3435 = vmatprep.mubr.msk.f32.mxu0 %vm3576_vm1, %v3575_v1 }
 0x813   :  { %3443 = vmatprep.subr.mxu0 %v3575_v1 }
 0x815   :  { %3436 = vmatmul.mubr.msk.f32.vlgmr.msra.gmra.mxu0 %vm41_vm0, %v2095_v22 }
 0x816   :  { %3444 = vmatpush3.xpose.msk.msra.mxu0 %vm41_vm0, %v3924_v57  ;;  %3445 = vmatprep.mubr.msk.f32.mxu0 %vm3576_vm1, %v3575_v1 }
 0x817   :  { %3453 = vmatprep.subr.mxu0 %v3575_v1 }
 0x819   :  { %3446 = vmatmul.mubr.msk.f32.vlgmr.msra.gmra.mxu0 %vm41_vm0, %v2260_v25 }
 0x81a   :  { %3454 = vmatpush3.xpose.msk.msra.mxu0 %vm41_vm0, %v3924_v57  ;;  %3455 = vmatprep.mubr.msk.f32.mxu0 %vm3576_vm1, %v3575_v1 }
 0x81b   :  { %3463 = vmatprep.subr.mxu0 %v3575_v1 }
 0x81d   :  { %3456 = vmatmul.mubr.msk.f32.vlgmr.msra.gmra.mxu0 %vm41_vm0, %v2425_v29 }
 0x81e   :  { %3464 = vmatpush3.xpose.msk.msra.mxu0 %vm41_vm0, %v3924_v57  ;;  %3465 = vmatprep.mubr.msk.f32.mxu0 %vm3576_vm1, %v3575_v1 }
 0x81f   :  { %3473 = vmatprep.subr.mxu0 %v3575_v1 }
 0x821   :  { %3466 = vmatmul.mubr.msk.f32.vlgmr.msra.gmra.mxu0 %vm41_vm0, %v2590_v32 }
 0x822   :  { %3474 = vmatpush3.xpose.msk.msra.mxu0 %vm41_vm0, %v3924_v57  ;;  %3475 = vmatprep.mubr.msk.f32.mxu0 %vm3576_vm1, %v3575_v1 }
 0x823   :  { %3483 = vmatprep.subr.mxu0 %v3575_v1 }
 0x825   :  { %3476 = vmatmul.mubr.msk.f32.vlgmr.msra.gmra.mxu0 %vm41_vm0, %v2755_v35 }
 0x826   :  { %3484 = vmatpush3.msra.mxu0 %v3873_v47  ;;  %3491 = vmatprep.mubr.msk.f32.mxu0 %vm3576_vm1, %v3575_v1 }
 0x827   :  { %3485 = vmatprep.subr.mxu0 %v3575_v1 }
 0x828   :  { %3486 = vmatpush3.msra.mxu0 %v3885_v48 }
 0x829   :  { %3487 = vmatprep.subr.mxu0 %v3575_v1 }
 0x82a   :  { %3488 = vmatpush3.msra.mxu0 %v3897_v50 }
 0x82b   :  { %3489 = vmatprep.subr.mxu0 %v3575_v1 }
 0x82c   :  { %3490 = vmatpush3.msra.mxu0 %v3911_v52 }
 0x8cd   :  { %v4067_v39 = vpop.f32.mrf.mxu0 }
 0x8cf   :  { %v3417_v41 = vpop.f32.mrf.mxu0 }
 0x8d1   :  { %v2000_v42 = vpop.f32.mrf.mxu0 }
 0x8d2   :  { %v2004_v45 = vsel %vm118_vm5, %v2000_v42, -inf }
 0x8d3   :  { %2005 = vmax.xlane.f32.xlu1 %v2004_v45  ;;  %v3427_v47 = vpop.f32.mrf.mxu0 }
 0x8d5   :  { %v2165_v48 = vpop.f32.mrf.mxu0 }
 0x8d6   :  { %v2169_v53 = vsel %vm118_vm5, %v2165_v48, -inf }
 0x8d7   :  { %2170 = vmax.xlane.f32.xlu0 %v2169_v53  ;;  %v3437_v50 = vpop.f32.mrf.mxu0 }
 0x8d9   :  { %v2330_v54 = vpop.f32.mrf.mxu0 }
 0x8da   :  { %v2334_v52 = vsel %vm118_vm5, %v2330_v54, -inf }
 0x8db   :  { %2335 = vmax.xlane.f32.xlu1 %v2334_v52  ;;  %v3447_v55 = vpop.f32.mrf.mxu0 }
 0x8dd   :  { %v2495_v56 = vpop.f32.mrf.mxu0 }
 0x8de   :  { %v2499_v59 = vsel %vm118_vm5, %v2495_v56, -inf }
 0x8df   :  { %2500 = vmax.xlane.f32.xlu0 %v2499_v59  ;;  %v3457_v60 = vpop.f32.mrf.mxu0 }
 0x8e1   :  { %v2660_v61 = vpop.f32.mrf.mxu0 }
 0x8e2   :  { %v2664_v62 = vsel %vm118_vm5, %v2660_v61, -inf }
 0x8e3   :  { %2665 = vmax.xlane.f32.xlu1 %v2664_v62  ;;  %v3467_v4 = vpop.f32.mrf.mxu0 }
 0x8e5   :  { %v2825_v31 = vpop.f32.mrf.mxu0 }
 0x8e6   :  { %v2829_v34 = vsel %vm118_vm5, %v2825_v31, -inf }
 0x8e7   :  { %1683 = vadd.xlane.f32.xlu1 %v1682_v0  ;;  %2830 = vmax.xlane.f32.xlu0 %v2829_v34  ;;  %v3477_v3 = vpop.f32.mrf.mxu0 }
 0x95c   :  { %v2006_v37 = vpop.xlane.xlu1 %2005 }
 0x95d   :  { %v2007_v5 = vsub.f32 %v2000_v42, %v2006_v37 }
 0x95f   :  { %v2008_v6 = vmul.f32 1.442695, %v2007_v5 }
 0x960   :  { %v2171_v7 = vpop.xlane.xlu0 %2170 }
 0x961   :  { %3547 = vpow2.f32 %v2008_v6  ;;  %v2172_v40 = vsub.f32 %v2165_v48, %v2171_v7 }
 0x963   :  { %v2173_v8 = vmul.f32 1.442695, %v2172_v40 }
 0x964   :  { %v2336_v9 = vpop.xlane.xlu1 %2335 }
 0x965   :  { %3549 = vpow2.f32 %v2173_v8  ;;  %v2337_v11 = vsub.f32 %v2330_v54, %v2336_v9 }
 0x967   :  { %v2338_v12 = vmul.f32 1.442695, %v2337_v11 }
 0x968   :  { %v2501_v13 = vpop.xlane.xlu0 %2500 }
 0x969   :  { %3551 = vpow2.f32 %v2338_v12  ;;  %v2502_v14 = vsub.f32 %v2495_v56, %v2501_v13 }
 0x96b   :  { %v2503_v15 = vmul.f32 1.442695, %v2502_v14 }
 0x96c   :  { %v2666_v16 = vpop.xlane.xlu1 %2665 }
 0x96d   :  { %3553 = vpow2.f32 %v2503_v15  ;;  %v2667_v17 = vsub.f32 %v2660_v61, %v2666_v16 }
 0x96e   :  { %v3548_v18 = vpop.eup %3547 }
 0x96f   :  { %v2668_v20 = vmul.f32 1.442695, %v2667_v17  ;;  %v2010_v21 = vsel %vm118_vm5, %v3548_v18, 0.0 }
 0x970   :  { %v1684_v24 = vpop.xlane.xlu1 %1683  ;;  %2011 = vadd.xlane.f32.xlu0 %v2010_v21  ;;  %v2831_v22 = vpop.xlane.xlu0 %2830 }
 0x971   :  { %3555 = vpow2.f32 %v2668_v20  ;;  %v2832_v25 = vsub.f32 %v2825_v31, %v2831_v22 }
 0x972   :  { %v3550_v29 = vpop.eup %3549  ;;  %3557 = vrcp.f32 %v1684_v24 }
 0x973   :  { %v2833_v32 = vmul.f32 1.442695, %v2832_v25  ;;  %v2175_v35 = vsel %vm118_vm5, %v3550_v29, 0.0 }
 0x974   :  { %2176 = vadd.xlane.f32.xlu1 %v2175_v35 }
 0x975   :  { %3559 = vpow2.f32 %v2833_v32 }
 0x976   :  { %v3552_v38 = vpop.eup %3551 }
 0x977   :  { %v2340_v43 = vsel %vm118_vm5, %v3552_v38, 0.0 }
 0x978   :  { %2341 = vadd.xlane.f32.xlu0 %v2340_v43 }
 0x97a   :  { %v3554_v41 = vpop.eup %3553 }
 0x97b   :  { %v2505_v42 = vsel %vm118_vm5, %v3554_v41, 0.0 }
 0x97c   :  { %2506 = vadd.xlane.f32.xlu1 %v2505_v42 }
 0x97e   :  { %v3556_v44 = vpop.eup %3555 }
 0x97f   :  { %v3558_v45 = vpop.eup %3557  ;;  %v2670_v47 = vsel %vm118_vm5, %v3556_v44, 0.0 }
 0x980   :  { %2671 = vadd.xlane.f32.xlu0 %v2670_v47  ;;  %v1686_v48 = vmul.f32 %v3558_v45, %v3546_v28 }
 0x982   :  { %v3560_v53 = vpop.eup %3559  ;;  %3173 = vst.msk [vmem:[%s4175_s7 + $0x40] sm:$0x7f] %vm118_vm5, %v1686_v48  ;;  %3421 = vmatmul.mubr.msk.f32.vlgmr.msra.gmra.mxu1 %vm224_vm2, %v1686_v48 }
 0x983   :  { %v2835_v50 = vsel %vm118_vm5, %v3560_v53, 0.0  ;;  %3429 = vmatpush3.msk.msra.mxu1 %vm228_vm7, %v3989_v19  ;;  %3430 = vmatprep.mubr.msk.f32.mxu1 %vm3576_vm1, %v3575_v1 }
 0x984   :  { %2836 = vadd.xlane.f32.xlu1 %v2835_v50  ;;  %3438 = vmatprep.subr.mxu1 %v3575_v1 }
 0x9f9   :  { %v2012_v54 = vpop.xlane.xlu0 %2011 }
 0x9fa   :  { %3561 = vrcp.f32 %v2012_v54 }
 0x9fd   :  { %v2177_v52 = vpop.xlane.xlu1 %2176 }
 0x9fe   :  { %3563 = vrcp.f32 %v2177_v52 }
 0xa01   :  { %v2342_v55 = vpop.xlane.xlu0 %2341 }
 0xa02   :  { %3565 = vrcp.f32 %v2342_v55 }
 0xa05   :  { %v2507_v56 = vpop.xlane.xlu1 %2506 }
 0xa06   :  { %3567 = vrcp.f32 %v2507_v56 }
 0xa07   :  { %v3562_v59 = vpop.eup %3561 }
 0xa08   :  { %v2014_v60 = vmul.f32 %v3562_v59, %v3548_v18 }
 0xa09   :  { %v2672_v61 = vpop.xlane.xlu0 %2671 }
 0xa0a   :  { %3569 = vrcp.f32 %v2672_v61  ;;  %3183 = vst.msk [vmem:[%s4175_s7 + $0x50] sm:$0x7f] %vm118_vm5, %v2014_v60  ;;  %3431 = vmatmul.mubr.msk.f32.vlgmr.msra.gmra.mxu1 %vm224_vm2, %v2014_v60 }
 0xa0b   :  { %v3564_v19 = vpop.eup %3563  ;;  %3439 = vmatpush3.msk.msra.mxu1 %vm228_vm7, %v3999_v26  ;;  %3440 = vmatprep.mubr.msk.f32.mxu1 %vm3576_vm1, %v3575_v1 }
 0xa0c   :  { %3448 = vmatprep.subr.mxu1 %v3575_v1  ;;  %v2179_v62 = vmul.f32 %v3564_v19, %v3550_v29 }
 0xa0d   :  { %v2837_v28 = vpop.xlane.xlu1 %2836 }
 0xa0e   :  { %3571 = vrcp.f32 %v2837_v28  ;;  %3188 = vst.msk [vmem:[%s4175_s7 + $0x58] sm:$0x7f] %vm118_vm5, %v2179_v62  ;;  %3441 = vmatmul.mubr.msk.f32.vlgmr.msra.gmra.mxu1 %vm224_vm2, %v2179_v62 }
 0xa0f   :  { %v3566_v4 = vpop.eup %3565  ;;  %3449 = vmatpush3.msk.msra.mxu1 %vm228_vm7, %v4010_v27  ;;  %3450 = vmatprep.mubr.msk.f32.mxu1 %vm3576_vm1, %v3575_v1 }
 0xa10   :  { %3458 = vmatprep.subr.mxu1 %v3575_v1  ;;  %v2344_v26 = vmul.f32 %v3566_v4, %v3552_v38 }
 0xa12   :  { %3193 = vst.msk [vmem:[%s4175_s7 + $0x60] sm:$0x7f] %vm118_vm5, %v2344_v26  ;;  %3451 = vmatmul.mubr.msk.f32.vlgmr.msra.gmra.mxu1 %vm224_vm2, %v2344_v26 }
 0xa13   :  { %v3568_v31 = vpop.eup %3567  ;;  %3459 = vmatpush3.msk.msra.mxu1 %vm228_vm7, %v4021_v30  ;;  %3460 = vmatprep.mubr.msk.f32.mxu1 %vm3576_vm1, %v3575_v1 }
 0xa14   :  { %3468 = vmatprep.subr.mxu1 %v3575_v1  ;;  %v2509_v27 = vmul.f32 %v3568_v31, %v3554_v41 }
 0xa16   :  { %3198 = vst.msk [vmem:[%s4175_s7 + $0x68] sm:$0x7f] %vm118_vm5, %v2509_v27  ;;  %3461 = vmatmul.mubr.msk.f32.vlgmr.msra.gmra.mxu1 %vm224_vm2, %v2509_v27 }
 0xa17   :  { %v3570_v0 = vpop.eup %3569  ;;  %3469 = vmatpush3.msk.msra.mxu1 %vm228_vm7, %v4032_v33  ;;  %3470 = vmatprep.mubr.msk.f32.mxu1 %vm3576_vm1, %v3575_v1 }
 0xa18   :  { %3478 = vmatprep.subr.mxu1 %v3575_v1  ;;  %v2674_v30 = vmul.f32 %v3570_v0, %v3556_v44 }
 0xa1a   :  { %3203 = vst.msk [vmem:[%s4175_s7 + $0x70] sm:$0x7f] %vm118_vm5, %v2674_v30  ;;  %3471 = vmatmul.mubr.msk.f32.vlgmr.msra.gmra.mxu1 %vm224_vm2, %v2674_v30 }
 0xa1b   :  { %v3572_v34 = vpop.eup %3571  ;;  %3479 = vmatpush3.msk.msra.mxu1 %vm228_vm7, %v4043_v36  ;;  %3480 = vmatprep.mubr.msk.f32.mxu1 %vm3576_vm1, %v3575_v1 }
 0xa1c   :  { %v2839_v33 = vmul.f32 %v3572_v34, %v3560_v53  ;;  %3494 = vmatprep.subr.mxu1 %v3575_v1 }
 0xa1e   :  { %3208 = vst.msk [vmem:[%s4175_s7 + $0x78] sm:$0x7f] %vm118_vm5, %v2839_v33  ;;  %3481 = vmatmul.mubr.msk.f32.vlgmr.msra.gmra.mxu1 %vm224_vm2, %v2839_v33 }
 0xa1f   :  { %3495 = vmatpush3.msra.mxu1 %v3868_v46  ;;  %3502 = vmatprep.mubr.msk.f32.mxu1 %vm3576_vm1, %v3575_v1 }
 0xa20   :  { %3496 = vmatprep.subr.mxu1 %v3575_v1 }
 0xa21   :  { %3497 = vmatpush3.msra.mxu1 %v3880_v2 }
 0xa22   :  { %3498 = vmatprep.subr.mxu1 %v3575_v1 }
 0xa23   :  { %3499 = vmatpush3.msra.mxu1 %v3892_v49 }
 0xa24   :  { %3500 = vmatprep.subr.mxu1 %v3575_v1 }
 0xa25   :  { %3501 = vmatpush3.msra.mxu1 %v3906_v51 }
 0xa42   :  { %v1925_v36 = vpop.f32.mrf.mxu1 }
 0xa43   :  { %v1926_v40 = vadd.f32 %v1925_v36, %v4067_v39 }
 0xa44   :  { %v3422_v3 = vpop.f32.mrf.mxu1 }
 0xaca   :  { %v2089_v37 = vpop.f32.mrf.mxu1 }
 0xacb   :  { %v2093_v9 = vadd.f32 %v2089_v37, %v1926_v40 }
 0xacc   :  { %v3432_v5 = vpop.f32.mrf.mxu1 }
 0xace   :  { %v2254_v46 = vpop.f32.mrf.mxu1 }
 0xacf   :  { %v2258_v11 = vadd.f32 %v2254_v46, %v2093_v9 }
 0xad0   :  { %v3442_v6 = vpop.f32.mrf.mxu1 }
 0xad2   :  { %v2419_v7 = vpop.f32.mrf.mxu1 }
 0xad3   :  { %v2423_v13 = vadd.f32 %v2419_v7, %v2258_v11 }
 0xad4   :  { %v3452_v8 = vpop.f32.mrf.mxu1 }
 0xad6   :  { %v2584_v2 = vpop.f32.mrf.mxu1 }
 0xad7   :  { %v2588_v14 = vadd.f32 %v2584_v2, %v2423_v13 }
 0xad8   :  { %v3462_v12 = vpop.f32.mrf.mxu1 }
 0xada   :  { %v2749_v49 = vpop.f32.mrf.mxu1 }
 0xadb   :  { %v2753_v15 = vadd.f32 %v2749_v49, %v2588_v14 }
 0xadc   :  { %v3472_v1 = vpop.f32.mrf.mxu1 }
 0xade   :  { %v2914_v51 = vpop.f32.mrf.mxu1 }
 0xadf   :  { %v2918_v16 = vadd.f32 %v2914_v51, %v2753_v15 }
 0xae0   :  { %v3482_v17 = vpop.f32.mrf.mxu1 }
 0xae1   :  { %v2919_v18 = vmul.f32 0.1, %v2918_v16 }
 0xae3   :  { %v2920_v20 = vadd.f32 %v3924_v57, %v2919_v18 }
 0xae5   :  { %v2921_v21 = vsel %vm1400_vm15, %v2920_v20, 0.0 }
 0xae6   :  { %2922 = vadd.xlane.f32.xlu0 %v2921_v21 }
 0xb6f   :  { %v2923_v39 = vpop.xlane.xlu0 %2922 }
 0xb70   :  { %v2924_v24 = vmul.f32 0.03125, %v2923_v39 }
 0xb72   :  { %v2925_v22 = vsub.f32 %v2920_v20, %v2924_v24 }
 0xb74   :  { %v2926_v25 = vmul.f32 %v2925_v22, %v2925_v22 }
 0xb76   :  { %v2927_v29 = vsel %vm1400_vm15, %v2926_v25, 0.0 }
 0xb77   :  { %2928 = vadd.xlane.f32.xlu1 %v2927_v29 }
 0xc00   :  { %v2929_v32 = vpop.xlane.xlu1 %2928 }
 0xc01   :  { %v2930_v35 = vmul.f32 0.03125, %v2929_v32 }
 0xc03   :  { %v2931_v38 = vadd.f32 1e-05, %v2930_v35 }
 0xc05   :  { %3573 = vrsqrt.f32 %v2931_v38 }
 0xc12   :  { %v3574_v43 = vpop.eup %3573 }
 0xc13   :  { %v2933_v41 = vmul.f32 %v3574_v43, %v2925_v22 }
 0xc15   :  { %v2934_v42 = vmul.f32 %v3929_v58, %v2933_v41 }
 0xc17   :  { %v2935_v57 = vadd.f32 %v3934_v23, %v2934_v42 }
 0xc19   :  { %3492 = vmatmul.mubr.msk.f32.vlgmr.msra.gmra.mxu0 %vm41_vm0, %v2935_v57  ;;  %3503 = vmatmul.mubr.msk.f32.vlgmr.msra.gmra.mxu1 %vm41_vm0, %v2935_v57 }
 0xcd9   :  { %v3016_v44 = vpop.f32.mrf.mxu0  ;;  %v3099_v45 = vpop.f32.mrf.mxu1 }
 0xcda   :  { %v3017_v47 = vadd.f32 %v3962_v63, %v3016_v44  ;;  %v3100_v48 = vadd.f32 %v3967_v10, %v3099_v45 }
 0xcdb   :  { %v3493_v53 = vpop.f32.mrf.mxu0  ;;  %v3504_v50 = vpop.f32.mrf.mxu1 }
 0xcdc   :  { %3213 = vst.msk [vmem:[%s4182_s8 + $0x8] sm:$0x7f] %vm1400_vm15, %v3017_v47  ;;  %3216 = vst.msk [vmem:[%s4183_s9 + $0x8] sm:$0x7f] %vm1400_vm15, %v3100_v48 }

// kernel: encoder_forward.5
= control target key start
LH: loop header
LB: loop body
LE: loop exit
PB: predicated region body
PF: predicated region fallthrough
CT: control target
= control target key end

     0   :  { %v6351_v0 = vmov 0.0   ;;  %vm6348_vm0 = vcmask 261120   ;;  %vm6346_vm1 = vmmov 0   ;;  %vm267_vm2 = vcmask 523264   ;;  %s6311_s4 = inlined_call_operand.vmem [shape: f32[32,64], index: 4, kind: input, shape index: {}]   ;;  %s6312_s3 = inlined_call_operand.vmem [shape: f32[32,64], index: 3, kind: input, shape index: {}]   ;;  %s6313_s0 = inlined_call_operand.vmem [shape: f32[3,2,32], index: 0, kind: input, shape index: {}]   ;;  %s6314_s6 = inlined_call_operand.vmem [shape: f32[64,32], index: 6, kind: input, shape index: {}]   ;;  %s6315_s5 = inlined_call_operand.vmem [shape: f32[1,64], index: 5, kind: input, shape index: {}]   ;;  %s6316_s7 = inlined_call_operand.vmem [shape: f32[1,32], index: 7, kind: input, shape index: {}]   ;;  %s6317_s9 = inlined_call_operand.<no memory space> [shape: f32[1,1], index: 9, kind: input, shape index: {}]   ;;  %s6318_s22 = inlined_call_operand.vmem [shape: f32[1,32], index: 22, kind: input, shape index: {}]   ;;  %s6319_s23 = inlined_call_operand.vmem [shape: f32[1,32], index: 23, kind: input, shape index: {}]   ;;  %s6320_s8 = inlined_call_operand.vmem [shape: f32[1,32], index: 8, kind: input, shape index: {}]   ;;  %s6321_s10 = inlined_call_operand.vmem [shape: f32[32,32], index: 10, kind: input, shape index: {}]   ;;  %s6322_s14 = inlined_call_operand.vmem [shape: f32[32,32], index: 14, kind: input, shape index: {}]   ;;  %s6323_s12 = inlined_call_operand.vmem [shape: f32[32,32], index: 12, kind: input, shape index: {}]   ;;  %s6324_s1 = inlined_call_operand.vmem [shape: f32[2,7,32], index: 1, kind: input, shape index: {}]   ;;  %s6325_s11 = inlined_call_operand.vmem [shape: f32[1,32], index: 11, kind: input, shape index: {}]   ;;  %s6326_s13 = inlined_call_operand.vmem [shape: f32[1,32], index: 13, kind: input, shape index: {}]   ;;  %s6327_s2 = inlined_call_operand.vmem [shape: f32[2,7,32], index: 2, kind: input, shape index: {}]   ;;  %s6328_s15 = inlined_call_operand.vmem [shape: f32[1,32], index: 15, kind: input, shape index: {}]   ;;  %s6329_s16 = inlined_call_operand.vmem [shape: f32[32,32], index: 16, kind: input, shape index: {}]   ;;  %s6330_s17 = inlined_call_operand.vmem [shape: f32[1,32], index: 17, kind: input, shape index: {}]   ;;  %s6331_s18 = inlined_call_operand.vmem [shape: f32[32,32], index: 18, kind: input, shape index: {}]   ;;  %s6332_s20 = inlined_call_operand.vmem [shape: f32[32,32], index: 20, kind: input, shape index: {}]   ;;  %s6333_s25 = inlined_call_operand.vmem [shape: f32[2,1], index: 25, kind: output, shape index: {1}]   ;;  %s6334_s19 = inlined_call_operand.vmem [shape: f32[1,32], index: 19, kind: input, shape index: {}]   ;;  %s6335_s21 = inlined_call_operand.vmem [shape: f32[1,32], index: 21, kind: input, shape index: {}]   ;;  %s6336_s24 = inlined_call_operand.vmem [shape: f32[2,2,32], index: 24, kind: output, shape index: {0}]  }
   0x1   :  { %6368 = sst [smem:[#allocation17_spill]] %s6311_s4  ;;  %4620 = vmatprep.subr.mxu0 %v6351_v0  ;;  %4631 = vmatprep.subr.mxu1 %v6351_v0  ;;  %vm6345_vm3 = vcmask 254976  }
   0x2   :  { %6369 = sst [smem:[#allocation18_spill]] %s6312_s3  ;;  %4628 = vmatprep.mubr.msk.f32.mxu0 %vm6346_vm1, %v6351_v0  ;;  %4639 = vmatprep.mubr.msk.f32.mxu1 %vm6346_vm1, %v6351_v0 }
   0x3   :  { %6370 = sst [smem:[#allocation19_spill]] %s6313_s0 }
   0x4   :  { %6371 = sst [smem:[#allocation20_spill]] %s6314_s6 }
   0x5   :  { %6372 = sst [smem:[#allocation21_spill]] %s6315_s5 }
   0x6   :  { %6373 = sst [smem:[#allocation22_spill]] %s6316_s7 }
   0x7   :  { %6374 = sst [smem:[#allocation23_spill]] %s6317_s9 }
   0x8   :  { %6375 = sst [smem:[#allocation24_spill]] %s6318_s22 }
   0x9   :  { %6376 = sst [smem:[#allocation25_spill]] %s6319_s23 }
   0xa   :  { %6377 = sst [smem:[#allocation26_spill]] %s6320_s8 }
   0xb   :  { %s6378_s9 = sld [smem:[#allocation17_spill]] }
   0xc   :  { %s6379_s6 = sld [smem:[#allocation18_spill]] }
   0xd   :  { %s6380_s3 = sld [smem:[#allocation19_spill]] }
   0xe   :  { %s6381_s5 = sld [smem:[#allocation20_spill]] }
   0xf   :  { %s6382_s4 = sld [smem:[#allocation21_spill]] }
  0x10   :  { %s6383_s22 = sld [smem:[#allocation22_spill]] }
  0x11   :  { %v95_v1 = vld [vmem:[%s6378_s9 + $0x18] sm:$0xff]  ;;  %v94_v3 = vld [vmem:[%s6378_s9 + $0x10] sm:$0xff]  ;;  %v93_v5 = vld [vmem:[%s6378_s9 + $0x8] sm:$0xff]  ;;  %s6384_s27 = sld [smem:[#allocation23_spill]] }
  0x12   :  { %v91_v2 = vld [vmem:[%s6379_s6 + $0x18] sm:$0xff]  ;;  %4621 = vmatpush3.msra.mxu0 %v95_v1  ;;  %v90_v4 = vld [vmem:[%s6379_s6 + $0x10] sm:$0xff]  ;;  %v89_v6 = vld [vmem:[%s6379_s6 + $0x8] sm:$0xff]  ;;  %s6385_s28 = sld [smem:[#allocation24_spill]] }
  0x13   :  { %4632 = vmatpush3.msra.mxu1 %v91_v2  ;;  %4622 = vmatprep.subr.mxu0 %v6351_v0  ;;  %v92_v7 = vld [vmem:[%s6378_s9] sm:$0xff]  ;;  %s6386_s0 = sld [smem:[#allocation25_spill]] }
  0x14   :  { %4633 = vmatprep.subr.mxu1 %v6351_v0  ;;  %4623 = vmatpush3.msra.mxu0 %v94_v3  ;;  %v88_v8 = vld [vmem:[%s6379_s6] sm:$0xff]  ;;  %v259_v11 = vld [vmem:[%s6381_s5 + $0x38] sm:$0xff]  ;;  %v258_v12 = vld [vmem:[%s6381_s5 + $0x30] sm:$0xff] }
  0x15   :  { %4634 = vmatpush3.msra.mxu1 %v90_v4  ;;  %4624 = vmatprep.subr.mxu0 %v6351_v0  ;;  %v4383_v9 = vld [vmem:[%s6380_s3 + $0x2] sm:$0x3]  ;;  %v83_v10 = vld [vmem:[%s6380_s3] sm:$0x3]  ;;  %v257_v13 = vld [vmem:[%s6381_s5 + $0x28] sm:$0xff] }
  0x16   :  { %4635 = vmatprep.subr.mxu1 %v6351_v0  ;;  %4625 = vmatpush3.msra.mxu0 %v93_v5  ;;  %v4384_v14 = vld [vmem:[%s6380_s3 + $0x4] sm:$0x3]  ;;  %v255_v16 = vld [vmem:[%s6381_s5 + $0x18] sm:$0xff]  ;;  %v254_v17 = vld [vmem:[%s6381_s5 + $0x10] sm:$0xff] }
  0x17   :  { %4636 = vmatpush3.msra.mxu1 %v89_v6  ;;  %4626 = vmatprep.subr.mxu0 %v6351_v0  ;;  %v256_v15 = vld [vmem:[%s6381_s5 + $0x20] sm:$0xff]  ;;  %v253_v18 = vld [vmem:[%s6381_s5 + $0x8] sm:$0xff]  ;;  %v31_v54 = vstv %s6384_s27 }
  0x18   :  { %4637 = vmatprep.subr.mxu1 %v6351_v0  ;;  %4627 = vmatpush3.msra.mxu0 %v92_v7  ;;  %v252_v19 = vld [vmem:[%s6381_s5] sm:$0xff]  ;;  %32 = vst [vmem:[#allocation2] sm:$0x1] %v31_v54  ;;  %s6387_s5 = sld [smem:[#allocation26_spill]] }
  0x19   :  { %4638 = vmatpush3.msra.mxu1 %v88_v8  ;;  %4629 = vmatmul.mubr.msk.f32.vlgmr.msra.gmra.mxu0 %vm6348_vm0, %v4383_v9  ;;  %v4387_v22 = vld [vmem:[%s6382_s4] ss:$0 sm:$0xff] }
  0x1a   :  { %4640 = vmatmul.mubr.msk.f32.vlgmr.msra.gmra.mxu1 %vm6348_vm0, %v83_v10  ;;  %4661 = vmatprep.subr.mxu1 %v6351_v0  ;;  %v4388_v35 = vld [vmem:[%s6383_s22] ss:$0 sm:$0xff] }
  0x1b   :  { %4669 = vmatprep.mubr.msk.f32.mxu1 %vm6346_vm1, %v6351_v0  ;;  %4662 = vmatpush3.msra.mxu1 %v95_v1  ;;  %v4390_v61 = vld [vmem:[%s6385_s28] ss:$0 sm:$0xff] }
  0x1c   :  { %4642 = vmatprep.subr.mxu0 %v6351_v0  ;;  %4663 = vmatprep.subr.mxu1 %v6351_v0  ;;  %v4391_v1 = vld [vmem:[%s6386_s0] ss:$0 sm:$0xff] }
  0x1d   :  { %4643 = vmatpush3.msra.mxu0 %v259_v11  ;;  %4664 = vmatpush3.msra.mxu1 %v94_v3 }
  0x1e   :  { %4644 = vmatprep.subr.mxu0 %v6351_v0  ;;  %4665 = vmatprep.subr.mxu1 %v6351_v0  ;;  %v4392_v3 = vld [vmem:[%s6387_s5] ss:$0 sm:$0xff] }
  0x1f   :  { %4645 = vmatpush3.msra.mxu0 %v258_v12  ;;  %4666 = vmatpush3.msra.mxu1 %v93_v5 }
  0x20   :  { %4646 = vmatprep.subr.mxu0 %v6351_v0  ;;  %4667 = vmatprep.subr.mxu1 %v6351_v0 }
  0x21   :  { %4647 = vmatpush3.msra.mxu0 %v257_v13  ;;  %4668 = vmatpush3.msra.mxu1 %v92_v7 }
  0x22   :  { %4648 = vmatprep.subr.mxu0 %v6351_v0  ;;  %4670 = vmatmul.mubr.msk.f32.vlgmr.msra.gmra.mxu1 %vm6348_vm0, %v4384_v14  ;;  %v651_v14 = vld [vmem:[%s6321_s10 + $0x18] sm:$0xff] }
  0x23   :  { %4672 = vmatprep.subr.mxu1 %v6351_v0  ;;  %4680 = vmatprep.mubr.msk.f32.mxu1 %vm6346_vm1, %v6351_v0 }
  0x24   :  { %4673 = vmatpush3.msra.mxu1 %v91_v2  ;;  %4649 = vmatpush3.msra.mxu0 %v256_v15 }
  0x25   :  { %4674 = vmatprep.subr.mxu1 %v6351_v0  ;;  %4650 = vmatprep.subr.mxu0 %v6351_v0 }
  0x26   :  { %4675 = vmatpush3.msra.mxu1 %v90_v4  ;;  %4658 = vmatprep.mubr.msk.f32.mxu0 %vm6346_vm1, %v6351_v0 }
  0x27   :  { %4676 = vmatprep.subr.mxu1 %v6351_v0  ;;  %4651 = vmatpush3.msra.mxu0 %v255_v16 }
  0x28   :  { %4677 = vmatpush3.msra.mxu1 %v89_v6  ;;  %4652 = vmatprep.subr.mxu0 %v6351_v0 }
  0x29   :  { %4678 = vmatprep.subr.mxu1 %v6351_v0  ;;  %4653 = vmatpush3.msra.mxu0 %v254_v17 }
  0x2a   :  { %4679 = vmatpush3.msra.mxu1 %v88_v8  ;;  %4654 = vmatprep.subr.mxu0 %v6351_v0 }
  0x2b   :  { %4681 = vmatmul.mubr.msk.f32.vlgmr.msra.gmra.mxu1 %vm6348_vm0, %v4383_v9  ;;  %4702 = vmatprep.subr.mxu1 %v6351_v0 }
  0x2c   :  { %4710 = vmatprep.mubr.msk.f32.mxu1 %vm6346_vm1, %v6351_v0  ;;  %4655 = vmatpush3.msra.mxu0 %v253_v18 }
  0x2d   :  { %4656 = vmatprep.subr.mxu0 %v6351_v0  ;;  %4703 = vmatpush3.msra.mxu1 %v651_v14 }
  0x2e   :  { %4657 = vmatpush3.msra.mxu0 %v252_v19  ;;  %4704 = vmatprep.subr.mxu1 %v6351_v0 }
  0x2f   :  { %4683 = vmatprep.subr.mxu0 %v6351_v0 }
  0xd9   :  { %v166_v20 = vpop.f32.mrf.mxu0 }
  0xda   :  { %v239_v21 = vpop.f32.mrf.mxu1 }
  0xdb   :  { %v240_v23 = vadd.f32 %v239_v21, %v166_v20  ;;  %v4630_v24 = vpop.f32.mrf.mxu0  ;;  %v4393_v20 = vld [vmem:[#allocation2] ss:$0 sm:$0xff] }
  0xdc   :  { %v4641_v25 = vpop.f32.mrf.mxu1 }
  0xdd   :  { %v250_v26 = vadd.f32 %v4387_v22, %v240_v23 }
  0xdf   :  { %v251_v27 = vmax.f32 %v250_v26, 0.0 }
  0xe1   :  { %4659 = vmatmul.mubr.msk.f32.vlgmr.msra.gmra.mxu0 %vm267_vm2, %v251_v27 }
  0xe2   :  { %4684 = vmatpush3.msra.mxu0 %v259_v11  ;;  %4699 = vmatprep.mubr.msk.f32.mxu0 %vm6346_vm1, %v6351_v0  ;;  %v464_v28 = vpop.f32.mrf.mxu1 }
  0xe3   :  { %4685 = vmatprep.subr.mxu0 %v6351_v0 }
  0xe4   :  { %4686 = vmatpush3.msra.mxu0 %v258_v12  ;;  %v4671_v29 = vpop.f32.mrf.mxu1 }
  0xe5   :  { %4687 = vmatprep.subr.mxu0 %v6351_v0 }
  0xe6   :  { %4688 = vmatpush3.msra.mxu0 %v257_v13  ;;  %v6349_v13 = vmov 0  }
  0xe7   :  { %4689 = vmatprep.subr.mxu0 %v6351_v0  ;;  %4932 = vset.pattern.permute.xlu0 %v6349_v13 }
  0xe8   :  { %4690 = vmatpush3.msra.mxu0 %v256_v15  ;;  %4933 = vset.pattern.permute.xlu1 %v6349_v13  ;;  %v816_v15 = vld [vmem:[%s6322_s14 + $0x18] sm:$0xff] }
  0xe9   :  { %4691 = vmatprep.subr.mxu0 %v6351_v0 }
  0xea   :  { %4692 = vmatpush3.msra.mxu0 %v255_v16  ;;  %v650_v16 = vld [vmem:[%s6321_s10 + $0x10] sm:$0xff] }
  0xeb   :  { %v534_v30 = vpop.f32.mrf.mxu1  ;;  %4693 = vmatprep.subr.mxu0 %v6351_v0  ;;  %4705 = vmatpush3.msra.mxu1 %v650_v16 }
  0xec   :  { %v535_v31 = vadd.f32 %v534_v30, %v464_v28  ;;  %4694 = vmatpush3.msra.mxu0 %v254_v17  ;;  %v815_v17 = vld [vmem:[%s6322_s14 + $0x10] sm:$0xff]  ;;  %4706 = vmatprep.subr.mxu1 %v6351_v0 }
  0xed   :  { %v4682_v32 = vpop.f32.mrf.mxu1  ;;  %4695 = vmatprep.subr.mxu0 %v6351_v0 }
  0xee   :  { %v538_v33 = vadd.f32 %v4387_v22, %v535_v31  ;;  %4696 = vmatpush3.msra.mxu0 %v253_v18  ;;  %v649_v18 = vld [vmem:[%s6321_s10 + $0x8] sm:$0xff]  ;;  %v648_v31 = vld [vmem:[%s6321_s10] sm:$0xff] }
  0xef   :  { %4697 = vmatprep.subr.mxu0 %v6351_v0  ;;  %4707 = vmatpush3.msra.mxu1 %v649_v18 }
  0xf0   :  { %v539_v34 = vmax.f32 %v538_v33, 0.0  ;;  %4698 = vmatpush3.msra.mxu0 %v252_v19  ;;  %v814_v19 = vld [vmem:[%s6322_s14 + $0x8] sm:$0xff]  ;;  %4708 = vmatprep.subr.mxu1 %v6351_v0  ;;  %v813_v33 = vld [vmem:[%s6322_s14] sm:$0xff] }
  0xf1   :  { %4724 = vmatprep.subr.mxu0 %v6351_v0  ;;  %4709 = vmatpush3.msra.mxu1 %v648_v31 }
  0xf2   :  { %4700 = vmatmul.mubr.msk.f32.vlgmr.msra.gmra.mxu0 %vm267_vm2, %v539_v34  ;;  %4713 = vmatprep.subr.mxu1 %v6351_v0 }
  0xf3   :  { %4732 = vmatprep.mubr.msk.f32.mxu0 %vm6346_vm1, %v6351_v0  ;;  %4725 = vmatpush3.msra.mxu0 %v816_v15 }
  0xf4   :  { %4726 = vmatprep.subr.mxu0 %v6351_v0 }
  0xf5   :  { %4727 = vmatpush3.msra.mxu0 %v815_v17 }
  0xf6   :  { %4728 = vmatprep.subr.mxu0 %v6351_v0 }
  0xf7   :  { %4729 = vmatpush3.msra.mxu0 %v814_v19 }
  0xf8   :  { %4730 = vmatprep.subr.mxu0 %v6351_v0 }
  0xf9   :  { %4731 = vmatpush3.msra.mxu0 %v813_v33 }
  0xfa   :  { %4755 = vmatprep.subr.mxu0 %v6351_v0 }
 0x1a1   :  { %v337_v36 = vpop.f32.mrf.mxu0 }
 0x1a2   :  { %v338_v37 = vadd.f32 %v4388_v35, %v337_v36 }
 0x1a3   :  { %v4660_v38 = vpop.f32.mrf.mxu0 }
 0x1a4   :  { %v342_v39 = vsel %vm6345_vm3, %v338_v37, 0.0 }
 0x1a5   :  { %343 = vadd.xlane.f32.xlu0 %v342_v39  ;;  %v734_v39 = vld [vmem:[%s6323_s12 + $0x10] sm:$0xff] }
 0x1b2   :  { %v609_v40 = vpop.f32.mrf.mxu0 }
 0x1b3   :  { %v610_v41 = vadd.f32 %v4388_v35, %v609_v40  ;;  %v733_v40 = vld [vmem:[%s6323_s12 + $0x8] sm:$0xff] }
 0x1b4   :  { %v4701_v42 = vpop.f32.mrf.mxu0 }
 0x1b5   :  { %v613_v43 = vsel %vm6345_vm3, %v610_v41, 0.0  ;;  %v5419_v42 = vld [vmem:[%s6324_s1] sm:$0x7f] }
 0x1b6   :  { %614 = vadd.xlane.f32.xlu0 %v613_v43  ;;  %v6350_v43 = vlaneseq }
 0x22e   :  { %v344_v44 = vpop.xlane.xlu0 %343 }
 0x22f   :  { %v346_v45 = vmul.f32 0.03125, %v344_v44  ;;  %v895_v44 = vand.u32 127, %v6350_v43 }
 0x231   :  { %v347_v46 = vsub.f32 %v338_v37, %v346_v45  ;;  %v735_v37 = vld [vmem:[%s6323_s12 + $0x18] sm:$0xff]  ;;  %vm1272_vm6 = vcmp.ge.s32.totalorder %v895_v44, 8  ;;  %vm1273_vm7 = vcmp.lt.s32.totalorder %v895_v44, 12  ;;  %vm1455_vm8 = vcmp.ge.s32.totalorder %v895_v44, 12  ;;  %v4399_v45 = vld [vmem:[%s6325_s11] ss:$0 sm:$0xff] }
 0x232   :  { %vm1456_vm9 = vcmp.lt.s32.totalorder %v895_v44, 16  ;;  %vm1638_vm10 = vcmp.ge.s32.totalorder %v895_v44, 16  ;;  %vm1639_vm11 = vcmp.lt.s32.totalorder %v895_v44, 20  ;;  %vm5431_vm12 = vmand %vm1272_vm6, %vm1273_vm7  ;;  %vm1821_vm13 = vcmp.ge.s32.totalorder %v895_v44, 20 }
 0x233   :  { %v348_v47 = vmul.f32 %v347_v46, %v347_v46  ;;  %vm1822_vm14 = vcmp.lt.s32.totalorder %v895_v44, 24  ;;  %vm5437_vm15 = vmand %vm1455_vm8, %vm1456_vm9  ;;  %vm2004_vm2 = vcmp.ge.s32.totalorder %v895_v44, 24  ;;  %vm2187_vm6 = vcmp.ge.s32.totalorder %v895_v44, 28 }
 0x234   :  { %vm2188_vm7 = vcmp.lt.s32.totalorder %v895_v44, 32  ;;  %vm1089_vm8 = vcmp.ge.s32.totalorder %v895_v44, 4  ;;  %vm1090_vm9 = vcmp.lt.s32.totalorder %v895_v44, 8 }
 0x235   :  { %v349_v48 = vsel %vm6345_vm3, %v348_v47, 0.0 }
 0x236   :  { %350 = vadd.xlane.f32.xlu1 %v349_v48 }
 0x23f   :  { %v615_v49 = vpop.xlane.xlu0 %614 }
 0x240   :  { %v616_v50 = vmul.f32 0.03125, %v615_v49 }
 0x242   :  { %v617_v51 = vsub.f32 %v610_v41, %v616_v50  ;;  %v732_v41 = vld [vmem:[%s6323_s12] sm:$0xff] }
 0x244   :  { %v618_v52 = vmul.f32 %v617_v51, %v617_v51 }
 0x246   :  { %v619_v53 = vsel %vm6345_vm3, %v618_v52, 0.0 }
 0x247   :  { %620 = vadd.xlane.f32.xlu1 %v619_v53 }
 0x2bf   :  { %v351_v55 = vpop.xlane.xlu1 %350 }
 0x2c0   :  { %v352_v56 = vmul.f32 0.03125, %v351_v55 }
 0x2c2   :  { %v353_v57 = vadd.f32 1e-05, %v352_v56 }
 0x2c4   :  { %4934 = vrsqrt.f32 %v353_v57 }
 0x2d0   :  { %v621_v58 = vpop.xlane.xlu1 %620 }
 0x2d1   :  { %v4935_v59 = vpop.eup %4934  ;;  %v622_v60 = vmul.f32 0.03125, %v621_v58  ;;  %v5459_v58 = vsel %vm5431_vm12, 1.0, %v6351_v0 }
 0x2d2   :  { %v355_v62 = vmul.f32 %v4935_v59, %v347_v46  ;;  %v4445_v46 = vld [vmem:[%s6324_s1 + $0x8] sm:$0x7f] }
 0x2d3   :  { %v623_v63 = vadd.f32 1e-05, %v622_v60 }
 0x2d4   :  { %v362_v2 = vmul.f32 %v4390_v61, %v355_v62  ;;  %v5477_v62 = vsel %vm5437_vm15, 1.0, %v6351_v0 }
 0x2d5   :  { %4936 = vrsqrt.f32 %v623_v63 }
 0x2d6   :  { %v5328_v4 = vadd.f32 %v4391_v1, %v362_v2 }
 0x2d8   :  { %v377_v5 = vmul.f32 %v4392_v3, %v5328_v4 }
 0x2da   :  { %v378_v6 = vsel %vm6345_vm3, %v377_v5, 0.0 }
 0x2db   :  { %379 = vadd.xlane.f32.xlu0 %v378_v6 }
 0x2e2   :  { %v4937_v7 = vpop.eup %4936 }
 0x2e3   :  { %v625_v8 = vmul.f32 %v4937_v7, %v617_v51 }
 0x2e5   :  { %v626_v9 = vmul.f32 %v4390_v61, %v625_v8  ;;  %v4401_v61 = vld [vmem:[%s6326_s13] ss:$0 sm:$0xff] }
 0x2e7   :  { %v627_v10 = vadd.f32 %v4391_v1, %v626_v9 }
 0x2e9   :  { %v628_v11 = vmul.f32 %v4392_v3, %v627_v10 }
 0x2eb   :  { %v629_v12 = vsel %vm6345_vm3, %v628_v11, 0.0  ;;  %vm5441_vm3 = vmand %vm1638_vm10, %vm1639_vm11 }
 0x2ec   :  { %630 = vadd.xlane.f32.xlu1 %v629_v12  ;;  %vm2189_vm10 = vmand %vm2187_vm6, %vm2188_vm7  ;;  %v5482_v63 = vsel %vm5441_vm3, 1.0, %v6351_v0 }
 0x2ed   :  { %vm1091_vm11 = vmand %vm1089_vm8, %vm1090_vm9  ;;  %v5502_v5 = vsel %vm2189_vm10, 1.0, %v6351_v0 }
 0x2ee   :  { %6408 = vst [vmem:[#allocation9_spill] sm:$0xff] %v5502_v5  ;;  %v5505_v6 = vsel %vm1091_vm11, 1.0, %v6351_v0 }
 0x364   :  { %v380_v21 = vpop.xlane.xlu0 %379 }
 0x365   :  { %v388_v22 = vadd.f32 %v4393_v20, %v380_v21 }
 0x367   :  { %v4394_v23 = vmul.f32 -1.442695, %v388_v22 }
 0x369   :  { %4938 = vpow2.f32 %v4394_v23 }
 0x375   :  { %v631_v24 = vpop.xlane.xlu1 %630 }
 0x376   :  { %v632_v25 = vadd.f32 %v4393_v20, %v631_v24  ;;  %v4939_v27 = vpop.eup %4938 }
 0x377   :  { %v392_v28 = vadd.f32 1.0, %v4939_v27 }
 0x378   :  { %v4398_v26 = vmul.f32 -1.442695, %v632_v25 }
 0x37a   :  { %4940 = vpow2.f32 %v4398_v26 }
 0x37b   :  { %4942 = vrcp.f32 %v392_v28 }
 0x387   :  { %v4941_v29 = vpop.eup %4940 }
 0x388   :  { %v636_v30 = vadd.f32 1.0, %v4941_v29  ;;  %v5362_v32 = vpop.eup %4942 }
 0x389   :  { %6388 = vst [vmem:[#allocation3_spill] sm:$0xff] %v5362_v32 }
 0x38a   :  { %4944 = vrcp.f32 %v636_v30 }
 0x397   :  { %v5367_v34 = vpop.eup %4944 }
 0x398   :  { %6389 = vst [vmem:[#allocation4_spill] sm:$0xff] %v5367_v34  ;;  %vm6344_vm4 = vcmp.gt.f32.partialorder %v5367_v34, %v5362_v32 }
 0x399   :  { %v5377_v35 = vsel %vm6344_vm4, 1, %v6349_v13  ;;  %vm902_vm4 = vcmp.lt.s32.totalorder %v895_v44, 4 }
 0x39a   :  { %6390 = vst [vmem:[#allocation5_spill] sm:$0xff] %v5377_v35  ;;  %644 = vperm.xlu0 %4932, %v5377_v35   ;;  %v5454_v57 = vsel %vm902_vm4, 1.0, %v6351_v0  ;;  %vm6404_vm4 = vcmask 261120  }
 0x39b   :  { %6403 = vst [vmem:[#allocation8_spill] sm:$0xff] %v5454_v57  ;;  %vm6406_vm12 = vmmov %vm6404_vm4 }
 0x39c   :  { %vm6409_vm3 = vmmov %vm6404_vm4 }
 0x39d   :  { %vm6411_vm15 = vmmov %vm6409_vm3 }
 0x415   :  { %v5380_v36 = vpop.permute.xlu0 %644 }
 0x416   :  { %6391 = vst [vmem:[#allocation6_spill] sm:$0xff] %v5380_v36  ;;  %vm6343_vm5 = vcmp.eq.s32.totalorder %v5380_v36, 1 }
 0x417   :  { %v5389_v38 = vsel %vm6343_vm5, %v627_v10, %v5328_v4  ;;  %vm2005_vm5 = vcmp.lt.s32.totalorder %v895_v44, 28 }
 0x418   :  { %6392 = vst [vmem:[#allocation7_spill] sm:$0xff] %v5389_v38  ;;  %4711 = vmatmul.mubr.msk.f32.vlgmr.msra.gmra.mxu1 %vm6348_vm0, %v5389_v38  ;;  %4733 = vmatmul.mubr.msk.f32.vlgmr.msra.gmra.mxu0 %vm6348_vm0, %v5389_v38 }
 0x419   :  { %4714 = vmatpush3.msra.mxu1 %v735_v37  ;;  %4721 = vmatprep.mubr.msk.f32.mxu1 %vm6346_vm1, %v6351_v0 }
 0x41a   :  { %4715 = vmatprep.subr.mxu1 %v6351_v0  ;;  %4757 = vmatprep.mubr.msk.f32.mxu0 %vm6346_vm1, %v6351_v0 }
 0x41b   :  { %4716 = vmatpush3.msra.mxu1 %v734_v39  ;;  %4756 = vmatpush3.xpose.msk.msra.mxu0 %vm6348_vm0, %v5419_v42 }
 0x41c   :  { %4717 = vmatprep.subr.mxu1 %v6351_v0  ;;  %4765 = vmatprep.subr.mxu0 %v6351_v0 }
 0x41d   :  { %4718 = vmatpush3.msra.mxu1 %v733_v40 }
 0x41e   :  { %4719 = vmatprep.subr.mxu1 %v6351_v0 }
 0x41f   :  { %4720 = vmatpush3.msra.mxu1 %v732_v41 }
 0x420   :  { %4722 = vmatmul.mubr.msk.f32.vlgmr.msra.gmra.mxu1 %vm6348_vm0, %v5389_v38  ;;  %4735 = vmatprep.subr.mxu1 %v6351_v0 }
 0x421   :  { %4737 = vmatprep.mubr.msk.f32.mxu1 %vm6346_vm1, %v6351_v0  ;;  %4736 = vmatpush3.xpose.msk.msra.mxu1 %vm6348_vm0, %v5419_v42  ;;  %vm5445_vm1 = vmand %vm1821_vm13, %vm1822_vm14  ;;  %vm6407_vm13 = vmmov 0  }
 0x422   :  { %4740 = vmatprep.subr.mxu1 %v6351_v0  ;;  %vm5449_vm0 = vmand %vm2004_vm2, %vm2005_vm5  ;;  %v5487_v1 = vsel %vm5445_vm1, 1.0, %v6351_v0  ;;  %vm2480_vm1 = vcmask 254977  }
 0x423   :  { %vm6405_vm5 = vmmov %vm6404_vm4  ;;  %v5499_v4 = vsel %vm5449_vm0, 1.0, %v6351_v0  ;;  %vm984_vm0 = vcmask 253952  }
 0x424   :  { %vm6410_vm14 = vmmov %vm6409_vm3 }
 0x425   :  { %vm6412_vm2 = vmmov %vm6409_vm3 }
 0x426   :  { %vm6413_vm6 = vmmov %vm6412_vm2 }
 0x427   :  { %vm6414_vm7 = vmmov %vm6412_vm2 }
 0x428   :  { %vm6415_vm8 = vmmov %vm6412_vm2 }
 0x429   :  { %vm6416_vm9 = vmmov %vm6412_vm2 }
 0x42a   :  { %vm6417_vm10 = vmmov %vm6412_vm2 }
 0x42b   :  { %vm6418_vm11 = vmmov %vm6412_vm2 }
 0x4d8   :  { %v728_v47 = vpop.f32.mrf.mxu1  ;;  %v5435_v48 = vpop.f32.mrf.mxu0 }
 0x4d9   :  { %v729_v50 = vadd.f32 %v4399_v45, %v728_v47 }
 0x4da   :  { %v4712_v52 = vpop.f32.mrf.mxu1  ;;  %v4734_v53 = vpop.f32.mrf.mxu0 }
 0x4db   :  { %v898_v55 = vmul.f32 0.5, %v729_v50 }
 0x4dd   :  { %v5462_v59 = vmul.f32 %v5454_v57, %v898_v55  ;;  %v5465_v60 = vmul.f32 %v5459_v58, %v898_v55  ;;  %v5494_v3 = vmul.f32 %v5477_v62, %v898_v55  ;;  %v5509_v8 = vmul.f32 %v5482_v63, %v898_v55 }
 0x4de   :  { %v5512_v9 = vmul.f32 %v5505_v6, %v898_v55  ;;  %v5517_v11 = vmul.f32 %v5487_v1, %v898_v55  ;;  %v5520_v12 = vmul.f32 %v5499_v4, %v898_v55  ;;  %v5523_v14 = vmul.f32 %v5502_v5, %v898_v55 }
 0x4df   :  { %4738 = vmatmul.mubr.msk.f32.vlgmr.msra.gmra.mxu1 %vm6404_vm4, %v5462_v59  ;;  %4758 = vmatmul.mubr.msk.f32.vlgmr.msra.gmra.mxu0 %vm6405_vm5, %v5465_v60  ;;  %v2404_v47 = vrot.slane %v5462_v59, 1  ;;  %vm6419_vm4 = vmmov %vm6412_vm2  ;;  %v2812_v50 = vrot.slane %v5465_v60, 1  ;;  %v3015_v51 = vrot.slane %v5494_v3, 1  ;;  %v3218_v52 = vrot.slane %v5509_v8, 1 }
 0x4e0   :  { %v809_v2 = vpop.f32.mrf.mxu1  ;;  %4766 = vmatpush3.xpose.msk.msra.mxu0 %vm6406_vm12, %v5419_v42  ;;  %4767 = vmatprep.mubr.msk.f32.mxu0 %vm6407_vm13, %v6351_v0  ;;  %vm6420_vm5 = vmmov %vm6412_vm2  ;;  %v2609_v49 = vrot.slane %v5512_v9, 1  ;;  %v3421_v53 = vrot.slane %v5517_v11, 1  ;;  %v3624_v54 = vrot.slane %v5520_v12, 1  ;;  %v3827_v55 = vrot.slane %v5523_v14, 1 }
 0x4e1   :  { %v810_v7 = vadd.f32 %v4401_v61, %v809_v2  ;;  %4775 = vmatprep.subr.mxu0 %v6351_v0  ;;  %4742 = vmatprep.mubr.msk.f32.mxu1 %vm6407_vm13, %v6351_v0  ;;  %vm6421_vm12 = vmmov %vm6412_vm2 }
 0x4e2   :  { %v4723_v10 = vpop.f32.mrf.mxu1 }
 0x4e3   :  { %4768 = vmatmul.mubr.msk.f32.vlgmr.msra.gmra.mxu0 %vm6409_vm3, %v5494_v3  ;;  %v1717_v15 = vmul.f32 %v5509_v8, %v810_v7  ;;  %v983_v16 = vmul.f32 %v5462_v59, %v810_v7  ;;  %v1168_v17 = vmul.f32 %v5512_v9, %v810_v7  ;;  %v1351_v18 = vmul.f32 %v5465_v60, %v810_v7 }
 0x4e4   :  { %4776 = vmatpush3.xpose.msk.msra.mxu0 %vm6410_vm14, %v5419_v42  ;;  %4777 = vmatprep.mubr.msk.f32.mxu0 %vm6407_vm13, %v6351_v0  ;;  %v1534_v19 = vmul.f32 %v5494_v3, %v810_v7  ;;  %v1900_v20 = vmul.f32 %v5517_v11, %v810_v7  ;;  %v2083_v21 = vmul.f32 %v5520_v12, %v810_v7 }
 0x4e5   :  { %v3291_v22 = vsel %vm2480_vm1, %v1717_v15, 0.0  ;;  %v985_v23 = vsel %vm984_vm0, %v983_v16, 0.0  ;;  %4785 = vmatprep.subr.mxu0 %v6351_v0  ;;  %v5542_v24 = vsel %vm2480_vm1, %v983_v16, 0.0  ;;  %v5545_v25 = vsel %vm2480_vm1, %v1168_v17, 0.0 }
 0x4e6   :  { %3292 = vadd.xlane.f32.xlu0 %v3291_v22  ;;  %986 = vadd.xlane.f32.xlu1 %v985_v23  ;;  %v5548_v26 = vsel %vm2480_vm1, %v1351_v18, 0.0  ;;  %v5551_v27 = vsel %vm2480_vm1, %v1534_v19, 0.0  ;;  %v5554_v28 = vsel %vm2480_vm1, %v1900_v20, 0.0  ;;  %v5557_v29 = vsel %vm2480_vm1, %v2083_v21, 0.0 }
 0x4e7   :  { %4778 = vmatmul.mubr.msk.f32.vlgmr.msra.gmra.mxu0 %vm6411_vm15, %v5509_v8  ;;  %v2266_v30 = vmul.f32 %v5523_v14, %v810_v7  ;;  %v5563_v31 = vsel %vm984_vm0, %v1168_v17, 0.0  ;;  %v5566_v33 = vsel %vm984_vm0, %v1351_v18, 0.0  ;;  %v5569_v37 = vsel %vm984_vm0, %v1534_v19, 0.0 }
 0x4e8   :  { %4786 = vmatpush3.xpose.msk.msra.mxu0 %vm6412_vm2, %v5419_v42  ;;  %4787 = vmatprep.mubr.msk.f32.mxu0 %vm6407_vm13, %v6351_v0  ;;  %v5576_v39 = vsel %vm984_vm0, %v1717_v15, 0.0  ;;  %v5579_v40 = vsel %vm984_vm0, %v2083_v21, 0.0  ;;  %v5582_v41 = vsel %vm984_vm0, %v1900_v20, 0.0 }
 0x4e9   :  { %4795 = vmatprep.subr.mxu0 %v6351_v0  ;;  %v5586_v44 = vsel %vm2480_vm1, %v2266_v30, 0.0  ;;  %v5589_v45 = vsel %vm984_vm0, %v2266_v30, 0.0  ;;  %vm6422_vm1 = vmmov %vm6412_vm2 }
 0x4ea   :  { %vm6423_vm0 = vmmov %vm6422_vm1 }
 0x4eb   :  { %4788 = vmatmul.mubr.msk.f32.vlgmr.msra.gmra.mxu0 %vm6413_vm6, %v5517_v11  ;;  %vm6424_vm3 = vmmov %vm6423_vm0 }
 0x4ec   :  { %4796 = vmatpush3.xpose.msk.msra.mxu0 %vm6414_vm7, %v5419_v42  ;;  %4797 = vmatprep.mubr.msk.f32.mxu0 %vm6407_vm13, %v6351_v0  ;;  %vm6425_vm14 = vmmov %vm6423_vm0 }
 0x4ed   :  { %4805 = vmatprep.subr.mxu0 %v6351_v0  ;;  %vm6426_vm15 = vmmov %vm6423_vm0 }
 0x4ee   :  { %vm6427_vm2 = vmmov %vm6423_vm0 }
 0x4ef   :  { %4798 = vmatmul.mubr.msk.f32.vlgmr.msra.gmra.mxu0 %vm6415_vm8, %v5520_v12  ;;  %vm6428_vm6 = vmmov %vm6423_vm0 }
 0x4f0   :  { %4806 = vmatpush3.xpose.msk.msra.mxu0 %vm6416_vm9, %v5419_v42  ;;  %4807 = vmatprep.mubr.msk.f32.mxu0 %vm6407_vm13, %v6351_v0  ;;  %vm6429_vm7 = vmmov %vm6423_vm0 }
 0x4f1   :  { %4815 = vmatprep.subr.mxu0 %v6351_v0  ;;  %vm6430_vm8 = vmmov %vm6423_vm0 }
 0x4f2   :  { %vm6431_vm9 = vmmov %vm6423_vm0 }
 0x4f3   :  { %4808 = vmatmul.mubr.msk.f32.vlgmr.msra.gmra.mxu0 %vm6417_vm10, %v5523_v14  ;;  %vm6432_vm10 = vmmov %vm6423_vm0 }
 0x4f4   :  { %4816 = vmatpush3.xpose.msk.msra.mxu0 %vm6418_vm11, %v4445_v46  ;;  %4817 = vmatprep.mubr.msk.f32.mxu0 %vm6407_vm13, %v6351_v0  ;;  %vm6433_vm11 = vmmov %vm6423_vm0 }
 0x4f5   :  { %4825 = vmatprep.subr.mxu0 %v6351_v0 }
 0x4f7   :  { %4818 = vmatmul.mubr.msk.f32.vlgmr.msra.gmra.mxu0 %vm6419_vm4, %v2404_v47  ;;  %vm988_vm4 = vcmask 49152  }
 0x4f8   :  { %4826 = vmatpush3.xpose.msk.msra.mxu0 %vm6420_vm5, %v4445_v46  ;;  %4827 = vmatprep.mubr.msk.f32.mxu0 %vm6407_vm13, %v6351_v0  ;;  %vm1013_vm5 = vcmask 1046528  }
 0x4f9   :  { %4835 = vmatprep.subr.mxu0 %v6351_v0 }
 0x4fb   :  { %4828 = vmatmul.mubr.msk.f32.vlgmr.msra.gmra.mxu0 %vm6421_vm12, %v2609_v49  ;;  %vm1009_vm12 = vcmask 56320  }
 0x4fc   :  { %4836 = vmatpush3.xpose.msk.msra.mxu0 %vm6422_vm1, %v4445_v46  ;;  %4837 = vmatprep.mubr.msk.f32.mxu0 %vm6407_vm13, %v6351_v0  ;;  %vm6434_vm1 = vmmov %vm6423_vm0 }
 0x4fd   :  { %4845 = vmatprep.subr.mxu0 %v6351_v0 }
 0x4ff   :  { %4838 = vmatmul.mubr.msk.f32.vlgmr.msra.gmra.mxu0 %vm6423_vm0, %v2812_v50 }
 0x500   :  { %4846 = vmatpush3.xpose.msk.msra.mxu0 %vm6424_vm3, %v4445_v46  ;;  %4847 = vmatprep.mubr.msk.f32.mxu0 %vm6407_vm13, %v6351_v0 }
 0x501   :  { %4855 = vmatprep.subr.mxu0 %v6351_v0 }
 0x503   :  { %4848 = vmatmul.mubr.msk.f32.vlgmr.msra.gmra.mxu0 %vm6425_vm14, %v3015_v51 }
 0x504   :  { %4856 = vmatpush3.xpose.msk.msra.mxu0 %vm6426_vm15, %v4445_v46  ;;  %4857 = vmatprep.mubr.msk.f32.mxu0 %vm6407_vm13, %v6351_v0  ;;  %vm6459_vm15 = vmmov %vm6423_vm0 }
 0x505   :  { %4865 = vmatprep.subr.mxu0 %v6351_v0 }
 0x507   :  { %4858 = vmatmul.mubr.msk.f32.vlgmr.msra.gmra.mxu0 %vm6427_vm2, %v3218_v52  ;;  %vm6461_vm2 = vcmask 254976  }
 0x508   :  { %4866 = vmatpush3.xpose.msk.msra.mxu0 %vm6428_vm6, %v4445_v46  ;;  %4867 = vmatprep.mubr.msk.f32.mxu0 %vm6407_vm13, %v6351_v0 }
 0x509   :  { %4875 = vmatprep.subr.mxu0 %v6351_v0 }
 0x50b   :  { %4868 = vmatmul.mubr.msk.f32.vlgmr.msra.gmra.mxu0 %vm6429_vm7, %v3421_v53 }
 0x50c   :  { %4876 = vmatpush3.xpose.msk.msra.mxu0 %vm6430_vm8, %v4445_v46  ;;  %4877 = vmatprep.mubr.msk.f32.mxu0 %vm6407_vm13, %v6351_v0 }
 0x50d   :  { %4885 = vmatprep.subr.mxu0 %v6351_v0 }
 0x50f   :  { %4878 = vmatmul.mubr.msk.f32.vlgmr.msra.gmra.mxu0 %vm6431_vm9, %v3624_v54 }
 0x510   :  { %4886 = vmatpush3.xpose.msk.msra.mxu0 %vm6432_vm10, %v4445_v46  ;;  %4887 = vmatprep.mubr.msk.f32.mxu0 %vm6407_vm13, %v6351_v0  ;;  %vm4373_vm10 = vcmask 1024  }
 0x511   :  { %4895 = vmatprep.subr.mxu0 %v6351_v0 }
 0x513   :  { %4888 = vmatmul.mubr.msk.f32.vlgmr.msra.gmra.mxu0 %vm6433_vm11, %v3827_v55  ;;  %vm6463_vm11 = vmmov %vm6423_vm0 }
 0x514   :  { %4903 = vmatprep.mubr.msk.f32.mxu0 %vm6407_vm13, %v6351_v0 }
 0x59f   :  { %v979_v56 = vpop.f32.mrf.mxu1  ;;  %v5660_v59 = vpop.f32.mrf.mxu0 }
 0x5a0   :  { %v989_v60 = vsel %vm988_vm4, %v979_v56, -inf }
 0x5a1   :  { %v4759_v61 = vpop.f32.mrf.mxu0  ;;  %990 = vmax.xlane.f32.xlu1 %v989_v60  ;;  %v4739_v2 = vpop.f32.mrf.mxu1 }
 0x5a2   :  { %v987_v60 = vpop.xlane.xlu1 %986 }
 0x5a3   :  { %v5663_v3 = vpop.f32.mrf.mxu0 }
 0x5a5   :  { %v4769_v7 = vpop.f32.mrf.mxu0 }
 0x5a7   :  { %v5665_v8 = vpop.f32.mrf.mxu0 }
 0x5a9   :  { %v4779_v10 = vpop.f32.mrf.mxu0 }
 0x5ab   :  { %v5667_v11 = vpop.f32.mrf.mxu0 }
 0x5ad   :  { %v4789_v12 = vpop.f32.mrf.mxu0 }
 0x5af   :  { %v5669_v14 = vpop.f32.mrf.mxu0 }
 0x5b1   :  { %v4799_v15 = vpop.f32.mrf.mxu0 }
 0x5b3   :  { %v5671_v16 = vpop.f32.mrf.mxu0 }
 0x5b5   :  { %v4809_v17 = vpop.f32.mrf.mxu0 }
 0x5b7   :  { %v5673_v18 = vpop.f32.mrf.mxu0 }
 0x5b8   :  { %v2484_v17 = vsel %vm988_vm4, %v5673_v18, -inf }
 0x5b9   :  { %v4819_v19 = vpop.f32.mrf.mxu0 }
 0x5bb   :  { %v5675_v20 = vpop.f32.mrf.mxu0 }
 0x5bc   :  { %v2685_v19 = vsel %vm988_vm4, %v5675_v20, -inf }
 0x5bd   :  { %v4829_v21 = vpop.f32.mrf.mxu0 }
 0x5bf   :  { %v5677_v22 = vpop.f32.mrf.mxu0 }
 0x5c1   :  { %v4839_v23 = vpop.f32.mrf.mxu0 }
 0x5c3   :  { %v5679_v30 = vpop.f32.mrf.mxu0 }
 0x5c5   :  { %v4849_v46 = vpop.f32.mrf.mxu0 }
 0x5c7   :  { %v5681_v47 = vpop.f32.mrf.mxu0 }
 0x5c8   :  { %v3294_v21 = vsel %vm988_vm4, %v5681_v47, -inf }
 0x5c9   :  { %v4859_v49 = vpop.f32.mrf.mxu0 }
 0x5cb   :  { %v5683_v50 = vpop.f32.mrf.mxu0 }
 0x5cd   :  { %v4869_v51 = vpop.f32.mrf.mxu0 }
 0x5cf   :  { %v5685_v52 = vpop.f32.mrf.mxu0 }
 0x5d0   :  { %v3700_v23 = vsel %vm988_vm4, %v5685_v52, -inf }
 0x5d1   :  { %v4879_v53 = vpop.f32.mrf.mxu0 }
 0x5d3   :  { %v5687_v54 = vpop.f32.mrf.mxu0 }
 0x5d4   :  { %v3903_v46 = vsel %vm988_vm4, %v5687_v54, -inf }
 0x5d5   :  { %v4889_v55 = vpop.f32.mrf.mxu0 }
 0x62a   :  { %v991_v61 = vpop.xlane.xlu1 %990 }
 0x62b   :  { %v992_v2 = vmax.f32 %v991_v61, %v987_v60 }
 0x62d   :  { %v993_v7 = vsub.f32 %v979_v56, %v992_v2  ;;  %v2888_v56 = vsel %vm988_vm4, %v5677_v22, -inf  ;;  %v996_v49 = vsub.f32 %v987_v60, %v992_v2 }
 0x62f   :  { %v994_v10 = vmul.f32 1.442695, %v993_v7 }
 0x631   :  { %4946 = vpow2.f32 %v994_v10 }
 0x63e   :  { %v4947_v12 = vpop.eup %4946 }
 0x63f   :  { %v999_v15 = vsel %vm988_vm4, %v4947_v12, 0.0 }
 0x640   :  { %1000 = vadd.xlane.f32.xlu1 %v999_v15 }
 0x644   :  { %2482 = vadd.xlane.f32.xlu1 %v5542_v24  ;;  %v5702_v24 = vld [vmem:[%s6327_s2] sm:$0x7f] }
 0x648   :  { %2485 = vmax.xlane.f32.xlu1 %v2484_v17 }
 0x64c   :  { %2683 = vadd.xlane.f32.xlu1 %v5545_v25  ;;  %v1006_v25 = vmul.f32 %v5454_v57, %v5702_v24 }
 0x64e   :  { %4741 = vmatpush3.msk.msra.mxu1 %vm1013_vm5, %v1006_v25 }
 0x64f   :  { %4745 = vmatprep.subr.mxu1 %v6351_v0 }
 0x650   :  { %2686 = vmax.xlane.f32.xlu1 %v2685_v19 }
 0x654   :  { %2886 = vadd.xlane.f32.xlu1 %v5548_v26  ;;  %v3091_v26 = vsel %vm988_vm4, %v5679_v30, -inf }
 0x658   :  { %2889 = vmax.xlane.f32.xlu1 %v2888_v56 }
 0x65c   :  { %3089 = vadd.xlane.f32.xlu1 %v5551_v27  ;;  %v3497_v27 = vsel %vm988_vm4, %v5683_v50, -inf }
 0x660   :  { %3092 = vmax.xlane.f32.xlu1 %v3091_v26 }
 0x664   :  { %3295 = vmax.xlane.f32.xlu1 %v3294_v21 }
 0x668   :  { %3495 = vadd.xlane.f32.xlu1 %v5554_v28  ;;  %v997_v28 = vmul.f32 1.442695, %v996_v49 }
 0x66a   :  { %4948 = vpow2.f32 %v997_v28 }
 0x66c   :  { %3498 = vmax.xlane.f32.xlu1 %v3497_v27 }
 0x670   :  { %3698 = vadd.xlane.f32.xlu1 %v5557_v29 }
 0x674   :  { %3701 = vmax.xlane.f32.xlu1 %v3700_v23 }
 0x677   :  { %v4949_v51 = vpop.eup %4948 }
 0x678   :  { %3901 = vadd.xlane.f32.xlu1 %v5586_v44 }
 0x67c   :  { %3904 = vmax.xlane.f32.xlu1 %v3903_v46  ;;  %v5752_v46 = vpop.xlane.xlu0 %3292 }
 0x680   :  { %1170 = vadd.xlane.f32.xlu1 %v5563_v31 }
 0x6c9   :  { %v1001_v53 = vpop.xlane.xlu1 %1000 }
 0x6ca   :  { %v1002_v55 = vadd.f32 %v4949_v51, %v1001_v53 }
 0x6cc   :  { %4950 = vrcp.f32 %v1002_v55 }
 0x6cd   :  { %v5723_v29 = vpop.xlane.xlu1 %2482 }
 0x6ce   :  { %v2488_v61 = vrot.slane %v5723_v29, 1 }
 0x6d1   :  { %v2486_v7 = vpop.xlane.xlu1 %2485 }
 0x6d2   :  { %v5726_v10 = vmax.f32 %v2486_v7, %v2488_v61 }
 0x6d4   :  { %2493 = vperm.xlu1 %4933, %v5726_v10  }
 0x6d5   :  { %v5729_v44 = vpop.xlane.xlu1 %2683 }
 0x6d6   :  { %v2689_v31 = vrot.slane %v5729_v44, 1 }
 0x6d9   :  { %v4951_v60 = vpop.eup %4950  ;;  %v2687_v2 = vpop.xlane.xlu1 %2686 }
 0x6da   :  { %v5732_v15 = vmax.f32 %v2687_v2, %v2689_v31  ;;  %v5734_v17 = vmul.f32 %v4951_v60, %v4947_v12  ;;  %v5736_v19 = vmul.f32 %v4951_v60, %v4949_v51  ;;  %v3298_v51 = vrot.slane %v5752_v46, 1 }
 0x6dc   :  { %4743 = vmatmul.mubr.msk.f32.vlgmr.msra.gmra.mxu1 %vm1009_vm12, %v5734_v17  ;;  %2694 = vperm.xlu0 %4932, %v5732_v15  }
 0x6dd   :  { %4746 = vmatpush3.xpose.msk.msra.mxu1 %vm6434_vm1, %v5419_v42  ;;  %v2887_v56 = vpop.xlane.xlu1 %2886  ;;  %4747 = vmatprep.mubr.msk.f32.mxu1 %vm6407_vm13, %v6351_v0  ;;  %vm6468_vm1 = vmmov %vm6461_vm2 }
 0x6de   :  { %4750 = vmatprep.subr.mxu1 %v6351_v0  ;;  %v2892_v25 = vrot.slane %v2887_v56, 1 }
 0x6e0   :  { %4748 = vmatmul.mubr.msk.f32.vlgmr.msra.gmra.mxu1 %vm6423_vm0, %v5512_v9 }
 0x6e1   :  { %v2890_v12 = vpop.xlane.xlu1 %2889  ;;  %4752 = vmatprep.mubr.msk.f32.mxu1 %vm6407_vm13, %v6351_v0 }
 0x6e2   :  { %v2894_v26 = vmax.f32 %v2890_v12, %v2892_v25 }
 0x6e4   :  { %v2903_v21 = vrot.slane %v2894_v26, 7  ;;  %2897 = vperm.xlu1 %4933, %v2894_v26  }
 0x6e5   :  { %v3090_v27 = vpop.xlane.xlu1 %3089 }
 0x6e6   :  { %v5750_v23 = vsub.f32 %v2887_v56, %v2903_v21  ;;  %v3095_v42 = vrot.slane %v3090_v27, 1 }
 0x6e9   :  { %v3093_v49 = vpop.xlane.xlu1 %3092 }
 0x6ea   :  { %v3097_v28 = vmax.f32 %v3093_v49, %v3095_v42 }
 0x6ec   :  { %v3106_v53 = vrot.slane %v3097_v28, 7  ;;  %3100 = vperm.xlu1 %4933, %v3097_v28  }
 0x6ed   :  { %v3296_v9 = vpop.xlane.xlu1 %3295 }
 0x6ee   :  { %v5755_v55 = vsub.f32 %v3090_v27, %v3106_v53  ;;  %v5757_v61 = vmax.f32 %v3296_v9, %v3298_v51 }
 0x6f0   :  { %3303 = vperm.xlu0 %4932, %v5757_v61  }
 0x6f1   :  { %v3496_v7 = vpop.xlane.xlu1 %3495 }
 0x6f2   :  { %v3501_v31 = vrot.slane %v3496_v7, 1 }
 0x6f5   :  { %v3499_v60 = vpop.xlane.xlu1 %3498 }
 0x6f6   :  { %v3503_v2 = vmax.f32 %v3499_v60, %v3501_v31  ;;  %v1538_v31 = vsel %vm988_vm4, %v5663_v3, -inf  ;;  %v1721_v60 = vsel %vm988_vm4, %v5665_v8, -inf }
 0x6f8   :  { %v3512_v56 = vrot.slane %v3503_v2, 7  ;;  %3506 = vperm.xlu1 %4933, %v3503_v2   ;;  %v1904_v2 = vsel %vm988_vm4, %v5667_v11, -inf }
 0x6f9   :  { %v3699_v25 = vpop.xlane.xlu1 %3698 }
 0x6fa   :  { %v5760_v12 = vsub.f32 %v3496_v7, %v3512_v56  ;;  %v3704_v26 = vrot.slane %v3699_v25, 1  ;;  %v1355_v7 = vsel %vm988_vm4, %v5660_v59, -inf }
 0x6fd   :  { %v3702_v21 = vpop.xlane.xlu1 %3701 }
 0x6fe   :  { %v3706_v42 = vmax.f32 %v3702_v21, %v3704_v26 }
 0x700   :  { %v3715_v49 = vrot.slane %v3706_v42, 7  ;;  %3709 = vperm.xlu0 %4932, %v3706_v42  }
 0x701   :  { %v5762_v27 = vpop.xlane.xlu1 %3901 }
 0x702   :  { %v5764_v28 = vsub.f32 %v3699_v25, %v3715_v49  ;;  %v3907_v51 = vrot.slane %v5762_v27, 1 }
 0x705   :  { %v3905_v53 = vpop.xlane.xlu1 %3904 }
 0x706   :  { %v5767_v9 = vmax.f32 %v3905_v53, %v3907_v51 }
 0x71c   :  { %1353 = vadd.xlane.f32.xlu1 %v5566_v33  ;;  %v2087_v33 = vsel %vm988_vm4, %v5669_v14, -inf }
 0x720   :  { %1356 = vmax.xlane.f32.xlu1 %v1355_v7 }
 0x724   :  { %1536 = vadd.xlane.f32.xlu1 %v5569_v37  ;;  %v2270_v37 = vsel %vm988_vm4, %v5671_v16, -inf }
 0x728   :  { %1539 = vmax.xlane.f32.xlu1 %v1538_v31 }
 0x72c   :  { %1719 = vadd.xlane.f32.xlu1 %v5576_v39  ;;  %v5786_v39 = vpop.xlane.xlu1 %1170 }
 0x730   :  { %1722 = vmax.xlane.f32.xlu1 %v1721_v60 }
 0x734   :  { %1905 = vmax.xlane.f32.xlu1 %v1904_v2 }
 0x738   :  { %2085 = vadd.xlane.f32.xlu1 %v5579_v40 }
 0x73c   :  { %2088 = vmax.xlane.f32.xlu1 %v2087_v33 }
 0x740   :  { %2268 = vadd.xlane.f32.xlu1 %v5589_v45 }
 0x744   :  { %2271 = vmax.xlane.f32.xlu1 %v2270_v37 }
 0x74f   :  { %v2494_v56 = vpop.permute.xlu1 %2493 }
 0x750   :  { %v2496_v25 = vsub.f32 %v5673_v18, %v2494_v56 }
 0x752   :  { %v2497_v26 = vmul.f32 1.442695, %v2496_v25 }
 0x754   :  { %4952 = vpow2.f32 %v2497_v26  ;;  %v4403_v26 = vld [vmem:[%s6328_s15] ss:$0 sm:$0xff] }
 0x757   :  { %v2695_v21 = vpop.permute.xlu0 %2694 }
 0x758   :  { %v2697_v40 = vsub.f32 %v5675_v20, %v2695_v21 }
 0x75a   :  { %v2698_v42 = vmul.f32 1.442695, %v2697_v40 }
 0x75c   :  { %4954 = vpow2.f32 %v2698_v42 }
 0x75f   :  { %v2898_v51 = vpop.permute.xlu1 %2897 }
 0x761   :  { %v5790_v49 = vpop.eup %4952 }
 0x762   :  { %v2504_v45 = vsel %vm988_vm4, %v5790_v49, 0.0 }
 0x763   :  { %2505 = vadd.xlane.f32.xlu1 %v2504_v45 }
 0x767   :  { %v3101_v53 = vpop.permute.xlu1 %3100 }
 0x768   :  { %v3103_v7 = vsub.f32 %v5679_v30, %v3101_v53 }
 0x769   :  { %v5795_v31 = vpop.eup %4954 }
 0x76a   :  { %v3104_v18 = vmul.f32 1.442695, %v3103_v7  ;;  %v2705_v60 = vsel %vm988_vm4, %v5795_v31, 0.0 }
 0x76b   :  { %2706 = vadd.xlane.f32.xlu1 %v2705_v60  ;;  %v3304_v43 = vpop.permute.xlu0 %3303 }
 0x76c   :  { %4956 = vpow2.f32 %v3104_v18  ;;  %v3306_v0 = vsub.f32 %v5681_v47, %v3304_v43  ;;  %v2499_v43 = vrot.slane %v5726_v10, 7 }
 0x773   :  { %v3507_v20 = vpop.permute.xlu1 %3506 }
 0x774   :  { %v3509_v2 = vsub.f32 %v5683_v50, %v3507_v20  ;;  %v5812_v50 = vadd.f32 %v4403_v26, %v5435_v48 }
 0x776   :  { %v3510_v33 = vmul.f32 1.442695, %v3509_v2  ;;  %v5816_v21 = vmul.f32 %v5454_v57, %v5812_v50 }
 0x778   :  { %4958 = vpow2.f32 %v3510_v33  ;;  %6436 = vst [vmem:[#allocation11_spill] sm:$0xff] %v5816_v21  ;;  %v1008_v40 = vmul.f32 %v5816_v21, %v5736_v19 }
 0x779   :  { %v5800_v37 = vpop.eup %4956 }
 0x77a   :  { %v3111_v56 = vsel %vm988_vm4, %v5800_v37, 0.0 }
 0x77b   :  { %3112 = vadd.xlane.f32.xlu1 %v3111_v56  ;;  %v3710_v32 = vpop.permute.xlu0 %3709 }
 0x77c   :  { %v3712_v35 = vsub.f32 %v5685_v52, %v3710_v32 }
 0x785   :  { %v5804_v30 = vpop.eup %4958 }
 0x786   :  { %6435 = vst [vmem:[#allocation10_spill] sm:$0xff] %v5804_v30  ;;  %v3517_v25 = vsel %vm988_vm4, %v5804_v30, 0.0 }
 0x787   :  { %3518 = vadd.xlane.f32.xlu1 %v3517_v25 }
 0x79c   :  { %v1083_v42 = vpop.f32.mrf.mxu1 }
 0x79d   :  { %v5820_v45 = vadd.f32 %v1083_v42, %v1008_v40 }
 0x79e   :  { %v4744_v53 = vpop.f32.mrf.mxu1 }
 0x79f   :  { %6437 = vst [vmem:[#allocation12_spill] sm:$0xff] %v5820_v45 }
 0x7a0   :  { %v5822_v7 = vpop.f32.mrf.mxu1 }
 0x7a1   :  { %v1172_v18 = vsel %vm988_vm4, %v5822_v7, -inf }
 0x7a2   :  { %1173 = vmax.xlane.f32.xlu0 %v1172_v18  ;;  %v4749_v60 = vpop.f32.mrf.mxu1 }
 0x7a3   :  { %v3307_v60 = vmul.f32 1.442695, %v3306_v0 }
 0x7a5   :  { %v5826_v48 = vpop.xlane.xlu1 %1353 }
 0x7a9   :  { %v1357_v20 = vpop.xlane.xlu1 %1356 }
 0x7aa   :  { %v5829_v2 = vmax.f32 %v1357_v20, %v5826_v48 }
 0x7ad   :  { %v5833_v56 = vpop.xlane.xlu1 %1536 }
 0x7b1   :  { %v1540_v25 = vpop.xlane.xlu1 %1539 }
 0x7b2   :  { %v5836_v26 = vmax.f32 %v1540_v25, %v5833_v56  ;;  %v2900_v25 = vsub.f32 %v5677_v22, %v2898_v51  ;;  %v3713_v22 = vmul.f32 1.442695, %v3712_v35 }
 0x7b4   :  { %v2901_v40 = vmul.f32 1.442695, %v2900_v25 }
 0x7b5   :  { %v5840_v42 = vpop.xlane.xlu1 %1719 }
 0x7b6   :  { %4960 = vpow2.f32 %v2901_v40 }
 0x7b7   :  { %4962 = vpow2.f32 %v3307_v60 }
 0x7b8   :  { %3912 = vperm.xlu0 %4932, %v5767_v9   ;;  %4964 = vpow2.f32 %v3713_v22 }
 0x7b9   :  { %v1723_v53 = vpop.xlane.xlu1 %1722 }
 0x7ba   :  { %v5844_v18 = vmax.f32 %v1723_v53, %v5840_v42 }
 0x7bd   :  { %v5848_v20 = vpop.xlane.xlu1 %1905 }
 0x7c1   :  { %v5850_v13 = vpop.xlane.xlu1 %2085 }
 0x7c3   :  { %v5869_v25 = vpop.eup %4960 }
 0x7c4   :  { %v2908_v0 = vsel %vm988_vm4, %v5869_v25, 0.0  ;;  %v5874_v32 = vpop.eup %4962 }
 0x7c5   :  { %v2089_v33 = vpop.xlane.xlu1 %2088  ;;  %v3314_v35 = vsel %vm988_vm4, %v5874_v32, 0.0 }
 0x7c6   :  { %v5855_v36 = vmax.f32 %v2089_v33, %v5850_v13  ;;  %v2501_v33 = vsub.f32 %v5723_v29, %v2499_v43 }
 0x7c8   :  { %v2502_v40 = vmul.f32 1.442695, %v2501_v33 }
 0x7c9   :  { %v5859_v34 = vpop.xlane.xlu1 %2268 }
 0x7ca   :  { %4966 = vpow2.f32 %v2502_v40 }
 0x7cd   :  { %v2272_v38 = vpop.xlane.xlu1 %2271 }
 0x7ce   :  { %v5863_v51 = vmax.f32 %v2272_v38, %v5859_v34  ;;  %v5878_v38 = vpop.eup %4964 }
 0x7cf   :  { %6438 = vst [vmem:[#allocation13_spill] sm:$0xff] %v5878_v38  ;;  %v3720_v52 = vsel %vm988_vm4, %v5878_v38, 0.0 }
 0x7d7   :  { %1902 = vadd.xlane.f32.xlu0 %v5582_v41  ;;  %v4967_v29 = vpop.eup %4966 }
 0x7d8   :  { %v2508_v10 = vrot.slane %v4967_v29, 1 }
 0x7db   :  { %2909 = vadd.xlane.f32.xlu0 %v2908_v0  ;;  %v1542_v0 = vsub.f32 %v5663_v3, %v5836_v26  ;;  %v1725_v3 = vsub.f32 %v5665_v8, %v5844_v18 }
 0x7dd   :  { %v1543_v47 = vmul.f32 1.442695, %v1542_v0 }
 0x7df   :  { %3315 = vadd.xlane.f32.xlu0 %v3314_v35 }
 0x7e3   :  { %3721 = vadd.xlane.f32.xlu0 %v3720_v52 }
 0x7ec   :  { %v2506_v41 = vpop.xlane.xlu1 %2505 }
 0x7ed   :  { %v2510_v60 = vadd.f32 %v2508_v10, %v2506_v41  ;;  %v1359_v10 = vsub.f32 %v5660_v59, %v5829_v2  ;;  %v2700_v59 = vrot.slane %v5732_v15, 7 }
 0x7ef   :  { %4968 = vrcp.f32 %v2510_v60  ;;  %v1360_v60 = vmul.f32 1.442695, %v1359_v10  ;;  %v2702_v8 = vsub.f32 %v5729_v44, %v2700_v59  ;;  %v3309_v44 = vrot.slane %v5757_v61, 7 }
 0x7f0   :  { %v3515_v59 = vmul.f32 1.442695, %v5760_v12  ;;  %v6441_v12 = vmov 0.0  }
 0x7f1   :  { %v2703_v15 = vmul.f32 1.442695, %v2702_v8 }
 0x7fc   :  { %v5882_v22 = vpop.eup %4968 }
 0x7fd   :  { %v2518_v43 = vrot.slane %v5882_v22, 7 }
 0x7ff   :  { %v5885_v33 = vmul.f32 %v4967_v29, %v2518_v43 }
 0x82b   :  { %v1174_v40 = vpop.xlane.xlu0 %1173 }
 0x82c   :  { %v5890_v35 = vmax.f32 %v1174_v40, %v5786_v39  ;;  %v1726_v40 = vmul.f32 1.442695, %v1725_v3  ;;  %v3109_v3 = vmul.f32 1.442695, %v5755_v55  ;;  %v3718_v55 = vmul.f32 1.442695, %v5764_v28 }
 0x82e   :  { %v1176_v52 = vsub.f32 %v5822_v7, %v5890_v35  ;;  %v2091_v7 = vsub.f32 %v5669_v14, %v5855_v36 }
 0x830   :  { %v1177_v53 = vmul.f32 1.442695, %v1176_v52  ;;  %v2092_v0 = vmul.f32 1.442695, %v2091_v7  ;;  %v2906_v7 = vmul.f32 1.442695, %v5750_v23 }
 0x832   :  { %4970 = vpow2.f32 %v1177_v53 }
 0x833   :  { %v3913_v41 = vpop.permute.xlu0 %3912  ;;  %4972 = vpow2.f32 %v1543_v47 }
 0x834   :  { %v3915_v29 = vsub.f32 %v5687_v54, %v3913_v41 }
 0x836   :  { %v3916_v43 = vmul.f32 1.442695, %v3915_v29 }
 0x838   :  { %4974 = vpow2.f32 %v3916_v43 }
 0x839   :  { %4976 = vpow2.f32 %v1360_v60 }
 0x83a   :  { %4978 = vpow2.f32 %v1726_v40 }
 0x83b   :  { %4980 = vpow2.f32 %v2092_v0  ;;  %v3311_v0 = vsub.f32 %v5752_v46, %v3309_v44  ;;  %v1189_v46 = vmul.f32 %v5505_v6, %v5702_v24 }
 0x83c   :  { %4982 = vpow2.f32 %v2703_v15 }
 0x83d   :  { %4984 = vpow2.f32 %v3109_v3  ;;  %v3312_v61 = vmul.f32 1.442695, %v3311_v0  ;;  %4751 = vmatpush3.msk.msra.mxu1 %vm1013_vm5, %v1189_v46  ;;  %v2274_v3 = vsub.f32 %v5671_v16, %v5863_v51 }
 0x83e   :  { %4986 = vpow2.f32 %v2906_v7  ;;  %4760 = vmatprep.subr.mxu1 %v6441_v12 }
 0x83f   :  { %v5901_v52 = vpop.eup %4970  ;;  %4988 = vpow2.f32 %v3515_v59  ;;  %v2275_v16 = vmul.f32 1.442695, %v2274_v3 }
 0x840   :  { %v1182_v54 = vsel %vm988_vm4, %v5901_v52, 0.0  ;;  %v5906_v53 = vpop.eup %4972  ;;  %4990 = vpow2.f32 %v3312_v61 }
 0x841   :  { %1183 = vadd.xlane.f32.xlu0 %v1182_v54  ;;  %v1548_v47 = vsel %vm988_vm4, %v5906_v53, 0.0  ;;  %4992 = vpow2.f32 %v3718_v55 }
 0x845   :  { %v5911_v10 = vpop.eup %4974  ;;  %1549 = vadd.xlane.f32.xlu0 %v1548_v47  ;;  %v2707_v47 = vpop.xlane.xlu1 %2706 }
 0x846   :  { %6439 = vst [vmem:[#allocation14_spill] sm:$0xff] %v5911_v10  ;;  %v3923_v14 = vsel %vm988_vm4, %v5911_v10, 0.0  ;;  %v5915_v41 = vpop.eup %4976 }
 0x847   :  { %3924 = vadd.xlane.f32.xlu1 %v3923_v14  ;;  %v1365_v29 = vsel %vm988_vm4, %v5915_v41, 0.0  ;;  %v5919_v60 = vpop.eup %4978 }
 0x848   :  { %v1731_v43 = vsel %vm988_vm4, %v5919_v60, 0.0  ;;  %v5925_v40 = vpop.eup %4980 }
 0x849   :  { %6440 = vst [vmem:[#allocation15_spill] sm:$0xff] %v5925_v40  ;;  %v2097_v54 = vsel %vm988_vm4, %v5925_v40, 0.0  ;;  %v4983_v8 = vpop.eup %4982 }
 0x84a   :  { %v2709_v23 = vrot.slane %v4983_v8, 1  ;;  %v4985_v14 = vpop.eup %4984 }
 0x84b   :  { %1366 = vadd.xlane.f32.xlu1 %v1365_v29  ;;  %v3113_v29 = vpop.xlane.xlu1 %3112  ;;  %v4987_v44 = vpop.eup %4986 }
 0x84c   :  { %v2711_v15 = vadd.f32 %v2709_v23, %v2707_v47  ;;  %v4989_v7 = vpop.eup %4988  ;;  %v2912_v47 = vrot.slane %v4987_v44, 1 }
 0x84d   :  { %v4991_v23 = vpop.eup %4990  ;;  %v3521_v46 = vrot.slane %v4989_v7, 1 }
 0x84e   :  { %4994 = vrcp.f32 %v2711_v15 }
 0x84f   :  { %1732 = vadd.xlane.f32.xlu1 %v1731_v43  ;;  %v3115_v43 = vrot.slane %v4985_v14, 1 }
 0x851   :  { %v3117_v59 = vadd.f32 %v3115_v43, %v3113_v29  ;;  %v3318_v29 = vrot.slane %v4991_v23, 1  ;;  %v4993_v43 = vpop.eup %4992 }
 0x852   :  { %v3724_v55 = vrot.slane %v4993_v43, 1 }
 0x853   :  { %2098 = vadd.xlane.f32.xlu1 %v2097_v54  ;;  %v3519_v54 = vpop.xlane.xlu1 %3518  ;;  %4996 = vrcp.f32 %v3117_v59 }
 0x85b   :  { %v4995_v38 = vpop.eup %4994 }
 0x860   :  { %v5939_v28 = vpop.xlane.xlu0 %1902  ;;  %v4997_v40 = vpop.eup %4996 }
 0x861   :  { %v5943_v0 = vmax.f32 %v5848_v20, %v5939_v28  ;;  %v3523_v20 = vadd.f32 %v3521_v46, %v3519_v54 }
 0x863   :  { %v1908_v61 = vsub.f32 %v5667_v11, %v5943_v0 }
 0x864   :  { %2514 = vperm.xlu1 %4933, %v5882_v22   ;;  %v2910_v21 = vpop.xlane.xlu0 %2909  ;;  %v2719_v22 = vrot.slane %v4995_v38, 7 }
 0x865   :  { %v1909_v15 = vmul.f32 1.442695, %v1908_v61  ;;  %v2914_v45 = vadd.f32 %v2912_v47, %v2910_v21 }
 0x866   :  { %v5956_v54 = vmul.f32 %v4983_v8, %v2719_v22 }
 0x867   :  { %4998 = vpow2.f32 %v1909_v15 }
 0x868   :  { %5000 = vpow2.f32 %v2275_v16  ;;  %v3316_v10 = vpop.xlane.xlu0 %3315  ;;  %v3125_v16 = vrot.slane %v4997_v40, 7 }
 0x869   :  { %5002 = vrcp.f32 %v2914_v45  ;;  %v3320_v11 = vadd.f32 %v3318_v29, %v3316_v10 }
 0x86a   :  { %5004 = vrcp.f32 %v3523_v20  ;;  %v2811_v20 = vadd.f32 %v5956_v54, %v5885_v33  ;;  %v5962_v8 = vmul.f32 %v4985_v14, %v3125_v16  ;;  %v1179_v14 = vsub.f32 %v5786_v39, %v5890_v35 }
 0x86b   :  { %5006 = vrcp.f32 %v3320_v11  ;;  %v6443_v16 = vsub.f32 %v5833_v56, %v5836_v26  ;;  %v6446_v35 = vsub.f32 %v5850_v13, %v5855_v36 }
 0x86c   :  { %v3722_v57 = vpop.xlane.xlu0 %3721 }
 0x86d   :  { %v3726_v3 = vadd.f32 %v3724_v55, %v3722_v57  ;;  %v2095_v56 = vmul.f32 1.442695, %v6446_v35 }
 0x86f   :  { %5008 = vrcp.f32 %v3726_v3 }
 0x874   :  { %v5950_v61 = vpop.eup %4998 }
 0x875   :  { %v5952_v21 = vpop.eup %5000  ;;  %v1914_v59 = vsel %vm988_vm4, %v5950_v61, 0.0 }
 0x876   :  { %6442 = vst [vmem:[#allocation16_spill] sm:$0xff] %v5952_v21  ;;  %v5003_v45 = vpop.eup %5002  ;;  %1915 = vadd.xlane.f32.xlu0 %v1914_v59  ;;  %v2280_v55 = vsel %vm988_vm4, %v5952_v21, 0.0 }
 0x877   :  { %v5005_v10 = vpop.eup %5004  ;;  %2918 = vperm.xlu1 %4933, %v5003_v45   ;;  %v2922_v47 = vrot.slane %v5003_v45, 7 }
 0x878   :  { %v5007_v57 = vpop.eup %5006  ;;  %v3531_v3 = vrot.slane %v5005_v10, 7 }
 0x879   :  { %v2924_v46 = vmul.f32 %v4987_v44, %v2922_v47  ;;  %v3328_v15 = vrot.slane %v5007_v57, 7 }
 0x87a   :  { %2281 = vadd.xlane.f32.xlu0 %v2280_v55  ;;  %v5965_v5 = vmul.f32 %v4989_v7, %v3531_v3 }
 0x87b   :  { %3121 = vperm.xlu1 %4933, %v4997_v40   ;;  %v3330_v29 = vmul.f32 %v4991_v23, %v3328_v15  ;;  %v3014_v11 = vadd.f32 %v2924_v46, %v2811_v20  ;;  %v3918_v40 = vrot.slane %v5767_v9, 7  ;;  %v1180_v23 = vmul.f32 1.442695, %v1179_v14 }
 0x87c   :  { %v5009_v22 = vpop.eup %5008  ;;  %v6445_v9 = vsub.f32 %v5840_v42, %v5844_v18 }
 0x87d   :  { %v3734_v59 = vrot.slane %v5009_v22, 7  ;;  %v3217_v45 = vadd.f32 %v5962_v8, %v3014_v11  ;;  %v3920_v7 = vsub.f32 %v5762_v27, %v3918_v40  ;;  %5010 = vpow2.f32 %v1180_v23 }
 0x87e   :  { %v1729_v39 = vmul.f32 1.442695, %v6445_v9 }
 0x87f   :  { %3324 = vperm.xlu1 %4933, %v5007_v57   ;;  %v3736_v30 = vmul.f32 %v4993_v43, %v3734_v59  ;;  %v3420_v44 = vadd.f32 %v3330_v29, %v3217_v45  ;;  %v3921_v43 = vmul.f32 1.442695, %v3920_v7  ;;  %v1546_v57 = vmul.f32 1.442695, %v6443_v16 }
 0x880   :  { %v5992_v45 = vmul.f32 %v5505_v6, %v5812_v50 }
 0x881   :  { %v3623_v47 = vadd.f32 %v5965_v5, %v3420_v44  ;;  %5012 = vpow2.f32 %v3921_v43 }
 0x882   :  { %5014 = vpow2.f32 %v1546_v57 }
 0x883   :  { %3730 = vperm.xlu1 %4933, %v5009_v22   ;;  %v5968_v21 = vadd.f32 %v3736_v30, %v3623_v47  ;;  %v1372_v22 = vmul.f32 %v5459_v58, %v5702_v24 }
 0x887   :  { %2524 = vperm.xlu1 %4933, %v5885_v33  }
 0x88a   :  { %v5011_v33 = vpop.eup %5010 }
 0x88b   :  { %3005 = vperm.xlu1 %4933, %v2924_v46  }
 0x88f   :  { %3411 = vperm.xlu1 %4933, %v3330_v29  }
 0x890   :  { %2715 = vperm.xlu0 %4932, %v4995_v38  }
 0x893   :  { %3817 = vperm.xlu1 %4933, %v3736_v30   ;;  %v6444_v30 = vsub.f32 %v5826_v48, %v5829_v2 }
 0x894   :  { %3527 = vperm.xlu0 %4932, %v5005_v10   ;;  %v5013_v10 = vpop.eup %5012 }
 0x895   :  { %v1363_v38 = vmul.f32 1.442695, %v6444_v30  ;;  %v5015_v55 = vpop.eup %5014  ;;  %v3927_v2 = vrot.slane %v5013_v10, 1 }
 0x897   :  { %5016 = vpow2.f32 %v1363_v38 }
 0x898   :  { %5018 = vpow2.f32 %v1729_v39 }
 0x8a4   :  { %v5017_v42 = vpop.eup %5016 }
 0x8a5   :  { %v5019_v11 = vpop.eup %5018 }
 0x8ca   :  { %v1184_v27 = vpop.xlane.xlu0 %1183 }
 0x8cb   :  { %v1185_v26 = vadd.f32 %v5011_v33, %v1184_v27  ;;  %v6014_v27 = vmul.f32 %v5459_v58, %v5812_v50 }
 0x8cd   :  { %5020 = vrcp.f32 %v1185_v26 }
 0x8ce   :  { %v1550_v46 = vpop.xlane.xlu0 %1549  ;;  %5022 = vpow2.f32 %v2095_v56 }
 0x8cf   :  { %v1551_v48 = vadd.f32 %v5015_v55, %v1550_v46 }
 0x8d0   :  { %v3925_v15 = vpop.xlane.xlu1 %3924 }
 0x8d1   :  { %5024 = vrcp.f32 %v1551_v48  ;;  %v3929_v20 = vadd.f32 %v3927_v2, %v3925_v15 }
 0x8d3   :  { %5026 = vrcp.f32 %v3929_v20 }
 0x8d4   :  { %v1367_v18 = vpop.xlane.xlu1 %1366 }
 0x8d5   :  { %v1368_v29 = vadd.f32 %v5017_v42, %v1367_v18 }
 0x8d7   :  { %5028 = vrcp.f32 %v1368_v29  ;;  %v6051_v29 = vmul.f32 %v5499_v4, %v5812_v50 }
 0x8d8   :  { %v1733_v3 = vpop.xlane.xlu1 %1732 }
 0x8d9   :  { %v1734_v13 = vadd.f32 %v5019_v11, %v1733_v3  ;;  %v6447_v3 = vsub.f32 %v5939_v28, %v5943_v0 }
 0x8da   :  { %v5021_v36 = vpop.eup %5020 }
 0x8db   :  { %5030 = vrcp.f32 %v1734_v13  ;;  %v1187_v59 = vmul.f32 %v5021_v36, %v5901_v52  ;;  %v1188_v44 = vmul.f32 %v5021_v36, %v5011_v33  ;;  %v5023_v47 = vpop.eup %5022  ;;  %v6004_v52 = vmul.f32 %v5477_v62, %v5812_v50 }
 0x8dc   :  { %v2099_v40 = vpop.xlane.xlu1 %2098  ;;  %v1555_v33 = vmul.f32 %v5477_v62, %v5702_v24  ;;  %v1912_v13 = vmul.f32 1.442695, %v6447_v3 }
 0x8dd   :  { %v2100_v14 = vadd.f32 %v5023_v47, %v2099_v40  ;;  %4753 = vmatmul.mubr.msk.f32.vlgmr.msra.gmra.mxu1 %vm1009_vm12, %v1187_v59  ;;  %v5996_v7 = vmul.f32 %v5992_v45, %v1188_v44  ;;  %v1270_v39 = vadd.f32 %v1187_v59, %v5734_v17  ;;  %v1271_v26 = vadd.f32 %v1188_v44, %v5736_v19 }
 0x8de   :  { %v5025_v23 = vpop.eup %5024  ;;  %4761 = vmatpush3.msk.msra.mxu1 %vm1013_vm5, %v1372_v22  ;;  %4762 = vmatprep.mubr.msk.f32.mxu1 %vm6407_vm13, %v6441_v12 }
 0x8df   :  { %5032 = vrcp.f32 %v2100_v14  ;;  %4770 = vmatprep.subr.mxu1 %v6441_v12  ;;  %v1554_v43 = vmul.f32 %v5025_v23, %v5015_v55  ;;  %v1553_v55 = vmul.f32 %v5025_v23, %v5906_v53 }
 0x8e0   :  { %v5027_v16 = vpop.eup %5026  ;;  %5034 = vpow2.f32 %v1912_v13  ;;  %v2515_v28 = vpop.permute.xlu1 %2514  ;;  %v6452_v13 = vld [vmem:[#allocation16_spill] sm:$0xff] }
 0x8e1   :  { %3933 = vperm.xlu0 %4932, %v5027_v16   ;;  %v3937_v57 = vrot.slane %v5027_v16, 7  ;;  %v6007_v30 = vmul.f32 %v6004_v52, %v1554_v43 }
 0x8e3   :  { %v3939_v38 = vmul.f32 %v5013_v10, %v3937_v57  ;;  %v2517_v57 = vmul.f32 %v5790_v49, %v2515_v28 }
 0x8e4   :  { %v5029_v9 = vpop.eup %5028 }
 0x8e5   :  { %2802 = vperm.xlu0 %4932, %v5956_v54   ;;  %v1370_v35 = vmul.f32 %v5029_v9, %v5915_v41  ;;  %v6019_v56 = vadd.f32 %v3939_v38, %v5968_v21  ;;  %v1371_v10 = vmul.f32 %v5029_v9, %v5017_v42  ;;  %v1738_v41 = vmul.f32 %v5482_v63, %v5702_v24 }
 0x8e6   :  { %v6037_v54 = vmul.f32 %v5482_v63, %v5812_v50 }
 0x8e7   :  { %4763 = vmatmul.mubr.msk.f32.vlgmr.msra.gmra.mxu1 %vm1009_vm12, %v1370_v35  ;;  %v1453_v17 = vadd.f32 %v1370_v35, %v1270_v39  ;;  %v6025_v46 = vmul.f32 %v6014_v27, %v1371_v10  ;;  %v1454_v48 = vadd.f32 %v1371_v10, %v1271_v26  ;;  %v6075_v35 = vmul.f32 %v5487_v1, %v5812_v50 }
 0x8e8   :  { %v5031_v2 = vpop.eup %5030  ;;  %4771 = vmatpush3.msk.msra.mxu1 %vm1013_vm5, %v1555_v33  ;;  %4772 = vmatprep.mubr.msk.f32.mxu1 %vm6407_vm13, %v6441_v12  ;;  %v2104_v33 = vmul.f32 %v5499_v4, %v5702_v24 }
 0x8e9   :  { %3208 = vperm.xlu0 %4932, %v5962_v8   ;;  %v1636_v19 = vadd.f32 %v1553_v55, %v1453_v17  ;;  %4780 = vmatprep.subr.mxu1 %v6441_v12  ;;  %v1736_v53 = vmul.f32 %v5031_v2, %v5919_v60  ;;  %v1637_v21 = vadd.f32 %v1554_v43, %v1454_v48 }
 0x8ea   :  { %v1737_v15 = vmul.f32 %v5031_v2, %v5019_v11  ;;  %v1921_v8 = vmul.f32 %v5487_v1, %v5702_v24 }
 0x8eb   :  { %4773 = vmatmul.mubr.msk.f32.vlgmr.msra.gmra.mxu1 %vm1009_vm12, %v1553_v55  ;;  %v1819_v20 = vadd.f32 %v1736_v53, %v1636_v19 }
 0x8ec   :  { %v5033_v42 = vpop.eup %5032  ;;  %4781 = vmatpush3.msk.msra.mxu1 %vm1013_vm5, %v1738_v41  ;;  %4782 = vmatprep.mubr.msk.f32.mxu1 %vm6407_vm13, %v6441_v12  ;;  %v6046_v60 = vmul.f32 %v6037_v54, %v1737_v15  ;;  %v1820_v18 = vadd.f32 %v1737_v15, %v1637_v21  ;;  %v6450_v15 = vld [vmem:[#allocation10_spill] sm:$0xff] }
 0x8ed   :  { %3614 = vperm.xlu0 %4932, %v5965_v5   ;;  %4790 = vmatprep.subr.mxu1 %v6441_v12  ;;  %v2103_v11 = vmul.f32 %v5033_v42, %v5023_v47  ;;  %v6448_v5 = vsub.f32 %v5859_v34, %v5863_v51  ;;  %v5035_v0 = vpop.eup %5034 }
 0x8ef   :  { %4783 = vmatmul.mubr.msk.f32.vlgmr.msra.gmra.mxu1 %vm1009_vm12, %v1736_v53  ;;  %v6059_v36 = vmul.f32 %v6051_v29, %v2103_v11  ;;  %v2278_v22 = vmul.f32 1.442695, %v6448_v5 }
 0x8f0   :  { %4791 = vmatpush3.msk.msra.mxu1 %vm1013_vm5, %v1921_v8  ;;  %4792 = vmatprep.mubr.msk.f32.mxu1 %vm6407_vm13, %v6441_v12 }
 0x8f1   :  { %4020 = vperm.xlu0 %4932, %v3939_v38   ;;  %4800 = vmatprep.subr.mxu1 %v6441_v12  ;;  %5036 = vpow2.f32 %v2278_v22 }
 0x8f2   :  { %v2919_v47 = vpop.permute.xlu1 %2918 }
 0x8f3   :  { %v2921_v51 = vmul.f32 %v5869_v25, %v2919_v47  ;;  %v6449_v25 = vld [vmem:[#allocation9_spill] sm:$0xff]  ;;  %v6454_v47 = vld [vmem:[#allocation8_spill] sm:$0xff] }
 0x8f4   :  { %v6082_v48 = vmul.f32 %v6449_v25, %v5812_v50 }
 0x8f6   :  { %v3122_v43 = vpop.permute.xlu1 %3121 }
 0x8f7   :  { %v3124_v26 = vmul.f32 %v5800_v37, %v3122_v43 }
 0x8fa   :  { %v3325_v34 = vpop.permute.xlu1 %3324 }
 0x8fe   :  { %v5037_v40 = vpop.eup %5036  ;;  %v3731_v21 = vpop.permute.xlu1 %3730 }
 0x8ff   :  { %v1916_v59 = vpop.xlane.xlu0 %1915 }
 0x900   :  { %v1917_v44 = vadd.f32 %v5035_v0, %v1916_v59 }
 0x902   :  { %5038 = vrcp.f32 %v1917_v44 }
 0x903   :  { %v2282_v14 = vpop.xlane.xlu0 %2281 }
 0x904   :  { %v2283_v23 = vadd.f32 %v5037_v40, %v2282_v14 }
 0x906   :  { %5040 = vrcp.f32 %v2283_v23 }
 0x90b   :  { %v2716_v16 = vpop.permute.xlu0 %2715 }
 0x90c   :  { %v2718_v38 = vmul.f32 %v5795_v31, %v2716_v16  ;;  %v3327_v31 = vmul.f32 %v5874_v32, %v3325_v34  ;;  %v6451_v32 = vld [vmem:[#allocation15_spill] sm:$0xff]  ;;  %v6455_v16 = vld [vmem:[#allocation14_spill] sm:$0xff] }
 0x90d   :  { %v2102_v50 = vmul.f32 %v5033_v42, %v6451_v32 }
 0x90e   :  { %v2810_v9 = vadd.f32 %v2718_v38, %v2517_v57 }
 0x90f   :  { %v5039_v39 = vpop.eup %5038  ;;  %v3528_v17 = vpop.permute.xlu0 %3527 }
 0x910   :  { %v3013_v10 = vadd.f32 %v2921_v51, %v2810_v9  ;;  %v1919_v49 = vmul.f32 %v5039_v39, %v5950_v61  ;;  %v1920_v55 = vmul.f32 %v5039_v39, %v5035_v0  ;;  %v3530_v8 = vmul.f32 %v6450_v15, %v3528_v17  ;;  %v6453_v0 = vld [vmem:[#allocation13_spill] sm:$0xff] }
 0x911   :  { %v2287_v61 = vmul.f32 %v6449_v25, %v5702_v24  ;;  %v3733_v59 = vmul.f32 %v6453_v0, %v3731_v21 }
 0x912   :  { %v3216_v2 = vadd.f32 %v3124_v26, %v3013_v10  ;;  %4793 = vmatmul.mubr.msk.f32.vlgmr.msra.gmra.mxu1 %vm1009_vm12, %v1919_v49  ;;  %v6086_v41 = vmul.f32 %v6075_v35, %v1920_v55  ;;  %v2003_v19 = vadd.f32 %v1920_v55, %v1820_v18  ;;  %v2002_v53 = vadd.f32 %v1919_v49, %v1819_v20  ;;  %v4446_v20 = vld [vmem:[%s6327_s2 + $0x8] sm:$0x7f]  ;;  %v4065_v10 = vld [vmem:[%s6329_s16 + $0x10] sm:$0xff] }
 0x913   :  { %v5041_v37 = vpop.eup %5040  ;;  %4801 = vmatpush3.msk.msra.mxu1 %vm1013_vm5, %v2104_v33  ;;  %4802 = vmatprep.mubr.msk.f32.mxu1 %vm6407_vm13, %v6441_v12  ;;  %v2521_v14 = vmul.f32 %v4446_v20, %v6454_v47  ;;  %v2722_v23 = vmul.f32 %v4446_v20, %v5505_v6  ;;  %v2925_v43 = vmul.f32 %v4446_v20, %v5459_v58  ;;  %v4064_v49 = vld [vmem:[%s6329_s16 + $0x8] sm:$0xff] }
 0x914   :  { %v3419_v3 = vadd.f32 %v3327_v31, %v3216_v2  ;;  %4810 = vmatprep.subr.mxu1 %v6441_v12  ;;  %v2285_v18 = vmul.f32 %v5041_v37, %v6452_v13  ;;  %v2186_v5 = vadd.f32 %v2103_v11, %v2003_v19  ;;  %v2286_v22 = vmul.f32 %v5041_v37, %v5037_v40 }
 0x915   :  { %v2185_v28 = vadd.f32 %v2102_v50, %v2002_v53  ;;  %v3128_v6 = vmul.f32 %v4446_v20, %v5477_v62  ;;  %v3331_v58 = vmul.f32 %v4446_v20, %v5482_v63  ;;  %v3534_v62 = vmul.f32 %v4446_v20, %v5487_v1 }
 0x916   :  { %v3622_v44 = vadd.f32 %v3530_v8, %v3419_v3  ;;  %4803 = vmatmul.mubr.msk.f32.vlgmr.msra.gmra.mxu1 %vm1009_vm12, %v2102_v50  ;;  %v6103_v42 = vmul.f32 %v6082_v48, %v2286_v22  ;;  %v6105_v24 = vadd.f32 %v2286_v22, %v2186_v5  ;;  %v3737_v63 = vmul.f32 %v4446_v20, %v5499_v4 }
 0x917   :  { %4811 = vmatpush3.msk.msra.mxu1 %vm1013_vm5, %v2287_v61  ;;  %4812 = vmatprep.mubr.msk.f32.mxu1 %vm6407_vm13, %v6441_v12  ;;  %v6111_v11 = vadd.f32 %v2285_v18, %v2185_v28  ;;  %v3940_v1 = vmul.f32 %v4446_v20, %v6449_v25 }
 0x918   :  { %4820 = vmatprep.subr.mxu1 %v6441_v12  ;;  %v3825_v40 = vadd.f32 %v3733_v59, %v3622_v44 }
 0x91a   :  { %4813 = vmatmul.mubr.msk.f32.vlgmr.msra.gmra.mxu1 %vm1009_vm12, %v2285_v18 }
 0x91b   :  { %4821 = vmatpush3.msk.msra.mxu1 %vm1013_vm5, %v2521_v14  ;;  %4822 = vmatprep.mubr.msk.f32.mxu1 %vm6407_vm13, %v6441_v12 }
 0x91c   :  { %4830 = vmatprep.subr.mxu1 %v6441_v12 }
 0x91e   :  { %4823 = vmatmul.mubr.msk.f32.vlgmr.msra.gmra.mxu1 %vm1009_vm12, %v2517_v57 }
 0x91f   :  { %4831 = vmatpush3.msk.msra.mxu1 %vm1013_vm5, %v2722_v23  ;;  %4832 = vmatprep.mubr.msk.f32.mxu1 %vm6407_vm13, %v6441_v12 }
 0x920   :  { %4840 = vmatprep.subr.mxu1 %v6441_v12 }
 0x922   :  { %4833 = vmatmul.mubr.msk.f32.vlgmr.msra.gmra.mxu1 %vm1009_vm12, %v2718_v38 }
 0x923   :  { %4841 = vmatpush3.msk.msra.mxu1 %vm1013_vm5, %v2925_v43  ;;  %4842 = vmatprep.mubr.msk.f32.mxu1 %vm6407_vm13, %v6441_v12  ;;  %v6457_v43 = vld [vmem:[#allocation11_spill] sm:$0xff] }
 0x924   :  { %4850 = vmatprep.subr.mxu1 %v6441_v12 }
 0x926   :  { %4843 = vmatmul.mubr.msk.f32.vlgmr.msra.gmra.mxu1 %vm1009_vm12, %v2921_v51  ;;  %v6456_v51 = vld [vmem:[#allocation12_spill] sm:$0xff] }
 0x927   :  { %4851 = vmatpush3.msk.msra.mxu1 %vm1013_vm5, %v3128_v6  ;;  %4852 = vmatprep.mubr.msk.f32.mxu1 %vm6407_vm13, %v6441_v12 }
 0x928   :  { %4860 = vmatprep.subr.mxu1 %v6441_v12 }
 0x92a   :  { %4853 = vmatmul.mubr.msk.f32.vlgmr.msra.gmra.mxu1 %vm1009_vm12, %v3124_v26  ;;  %v4066_v26 = vld [vmem:[%s6329_s16 + $0x18] sm:$0xff] }
 0x92b   :  { %4861 = vmatpush3.msk.msra.mxu1 %vm1013_vm5, %v3331_v58  ;;  %4862 = vmatprep.mubr.msk.f32.mxu1 %vm6407_vm13, %v6441_v12 }
 0x92c   :  { %4870 = vmatprep.subr.mxu1 %v6441_v12  ;;  %4896 = vmatpush3.msra.mxu0 %v4066_v26 }
 0x92d   :  { %4897 = vmatprep.subr.mxu0 %v6441_v12 }
 0x92e   :  { %4863 = vmatmul.mubr.msk.f32.vlgmr.msra.gmra.mxu1 %vm1009_vm12, %v3327_v31  ;;  %4898 = vmatpush3.msra.mxu0 %v4065_v10 }
 0x92f   :  { %4871 = vmatpush3.msk.msra.mxu1 %vm1013_vm5, %v3534_v62  ;;  %4872 = vmatprep.mubr.msk.f32.mxu1 %vm6407_vm13, %v6441_v12 }
 0x930   :  { %4880 = vmatprep.subr.mxu1 %v6441_v12  ;;  %4899 = vmatprep.subr.mxu0 %v6441_v12 }
 0x931   :  { %4900 = vmatpush3.msra.mxu0 %v4064_v49 }
 0x932   :  { %4873 = vmatmul.mubr.msk.f32.vlgmr.msra.gmra.mxu1 %vm1009_vm12, %v3530_v8  ;;  %4901 = vmatprep.subr.mxu0 %v6441_v12 }
 0x933   :  { %4881 = vmatpush3.msk.msra.mxu1 %vm1013_vm5, %v3737_v63  ;;  %4882 = vmatprep.mubr.msk.f32.mxu1 %vm6407_vm13, %v6441_v12 }
 0x934   :  { %4890 = vmatprep.subr.mxu1 %v6441_v12 }
 0x936   :  { %4883 = vmatmul.mubr.msk.f32.vlgmr.msra.gmra.mxu1 %vm1009_vm12, %v3733_v59 }
 0x937   :  { %4891 = vmatpush3.msk.msra.mxu1 %vm1013_vm5, %v3940_v1  ;;  %4892 = vmatprep.mubr.msk.f32.mxu1 %vm6407_vm13, %v6441_v12  ;;  %vm6465_vm5 = vmmov %vm6461_vm2 }
 0x938   :  { %4906 = vmatprep.subr.mxu1 %v6441_v12 }
 0x95c   :  { %v3934_v4 = vpop.permute.xlu0 %3933 }
 0x95d   :  { %v3936_v57 = vmul.f32 %v6455_v16, %v3934_v4 }
 0x95f   :  { %v6162_v38 = vadd.f32 %v3936_v57, %v3825_v40  ;;  %4893 = vmatmul.mubr.msk.f32.vlgmr.msra.gmra.mxu1 %vm1009_vm12, %v3936_v57  ;;  %v2525_v40 = vpop.permute.xlu1 %2524 }
 0x960   :  { %4914 = vmatprep.mubr.msk.f32.mxu1 %vm6407_vm13, %v6441_v12  ;;  %v2803_v62 = vpop.permute.xlu0 %2802 }
 0x961   :  { %v2805_v1 = vmul.f32 %v2803_v62, %v5992_v45  ;;  %v2370_v62 = vmul.f32 0.125, %v6111_v11 }
 0x963   :  { %vm2372_vm6 = vcmp.gt.f32.partialorder %v2370_v62, 0.0 }
 0x99d   :  { %v1262_v34 = vpop.f32.mrf.mxu1 }
 0x99e   :  { %v1266_v9 = vadd.f32 %v1262_v34, %v6456_v51  ;;  %v2807_v34 = vrot.slane %v2805_v1, 1 }
 0x99f   :  { %v4754_v39 = vpop.f32.mrf.mxu1 }
 0x9a0   :  { %v1269_v33 = vadd.f32 %v5996_v7, %v1266_v9  ;;  %v4063_v7 = vld [vmem:[%s6329_s16] sm:$0xff]  ;;  %v3006_v9 = vpop.permute.xlu1 %3005 }
 0x9a1   :  { %4902 = vmatpush3.msra.mxu0 %v4063_v7  ;;  %v3008_v26 = vmul.f32 %v3006_v9, %v6014_v27 }
 0x9a2   :  { %4917 = vmatprep.subr.mxu0 %v6441_v12 }
 0x9a3   :  { %v3010_v49 = vrot.slane %v3008_v26, 1 }
 0x9a7   :  { %v1445_v17 = vpop.f32.mrf.mxu1 }
 0x9a8   :  { %v1449_v55 = vadd.f32 %v1445_v17, %v1269_v33 }
 0x9a9   :  { %v4764_v31 = vpop.f32.mrf.mxu1 }
 0x9aa   :  { %v1452_v25 = vadd.f32 %v6025_v46, %v1449_v55  ;;  %v3209_v55 = vpop.permute.xlu0 %3208 }
 0x9ab   :  { %v1628_v2 = vpop.f32.mrf.mxu1  ;;  %v3211_v7 = vmul.f32 %v3209_v55, %v6004_v52  ;;  %v6458_v52 = vlaneseq  ;;  %v4164_v55 = vld [vmem:[%s6331_s18 + $0x8] sm:$0xff] }
 0x9ac   :  { %v1632_v19 = vadd.f32 %v1628_v2, %v1452_v25  ;;  %v3412_v2 = vpop.permute.xlu1 %3411 }
 0x9ad   :  { %v4774_v53 = vpop.f32.mrf.mxu1  ;;  %v3213_v45 = vrot.slane %v3211_v7, 1  ;;  %v4251_v7 = vld [vmem:[%s6332_s20 + $0x18] sm:$0xff] }
 0x9ae   :  { %v1635_v37 = vadd.f32 %v6007_v30, %v1632_v19  ;;  %v3414_v53 = vmul.f32 %v3412_v2, %v6037_v54 }
 0x9af   :  { %v1811_v21 = vpop.f32.mrf.mxu1 }
 0x9b0   :  { %v1815_v15 = vadd.f32 %v1811_v21, %v1635_v37  ;;  %v3416_v21 = vrot.slane %v3414_v53, 1 }
 0x9b1   :  { %v4784_v8 = vpop.f32.mrf.mxu1 }
 0x9b2   :  { %v1818_v32 = vadd.f32 %v6046_v60, %v1815_v15  ;;  %v3615_v15 = vpop.permute.xlu0 %3614 }
 0x9d2   :  { %v1994_v50 = vpop.f32.mrf.mxu1 }
 0x9d3   :  { %v1998_v61 = vadd.f32 %v1994_v50, %v1818_v32  ;;  %v3617_v32 = vmul.f32 %v3615_v15, %v6075_v35 }
 0x9d4   :  { %v4794_v3 = vpop.f32.mrf.mxu1 }
 0x9d5   :  { %v2001_v46 = vadd.f32 %v6086_v41, %v1998_v61  ;;  %v2527_v41 = vmul.f32 %v2525_v40, %v6457_v43  ;;  %v3619_v50 = vrot.slane %v3617_v32, 1  ;;  %v3818_v61 = vpop.permute.xlu1 %3817 }
 0x9d6   :  { %v2177_v13 = vpop.f32.mrf.mxu1 }
 0x9d7   :  { %v2181_v18 = vadd.f32 %v2177_v13, %v2001_v46  ;;  %v2529_v63 = vrot.slane %v2527_v41, 1  ;;  %v3820_v46 = vmul.f32 %v3818_v61, %v6051_v29  ;;  %v4021_v13 = vpop.permute.xlu0 %4020  ;;  %v6460_v41 = vld [vmem:[#allocation7_spill] sm:$0xff] }
 0x9d8   :  { %v4804_v20 = vpop.f32.mrf.mxu1  ;;  %v4023_v54 = vmul.f32 %v4021_v13, %v6082_v48 }
 0x9d9   :  { %v2184_v5 = vadd.f32 %v6059_v36, %v2181_v18  ;;  %v6201_v18 = vshrl.u32 %v6458_v52, 7 }
 0x9da   :  { %v2360_v22 = vpop.f32.mrf.mxu1  ;;  %v4025_v35 = vrot.slane %v4023_v54, 1 }
 0x9db   :  { %v2364_v28 = vadd.f32 %v2360_v22, %v2184_v5  ;;  %v3822_v5 = vrot.slane %v3820_v46, 1  ;;  %v6205_v22 = vsub.s32 0, %v6201_v18  ;;  %vm2387_vm3 = vcmp.eq.s32.totalorder %v6201_v18, 0 }
 0x9dc   :  { %v4814_v0 = vpop.f32.mrf.mxu1  ;;  %vm4050_vm14 = vcmp.eq.s32.totalorder %v6201_v18, 1  ;;  %v4250_v18 = vld [vmem:[%s6332_s20 + $0x10] sm:$0xff] }
 0x9dd   :  { %v6191_v30 = vadd.f32 %v6103_v42, %v2364_v28 }
 0x9de   :  { %v2603_v59 = vpop.f32.mrf.mxu1 }
 0x9df   :  { %v2604_v4 = vadd.f32 %v2603_v59, %v2529_v63  ;;  %v4030_v63 = vmul.f32 0.125, %v6162_v38 }
 0x9e0   :  { %v4824_v44 = vpop.f32.mrf.mxu1 }
 0x9e1   :  { %v2393_v44 = vrot.slane %v6191_v30, %v6205_v22  ;;  %v4479_v30 = vld [vmem:[%s6330_s17] ss:$0 sm:$0xff]  ;;  %vm4032_vm7 = vcmp.gt.f32.partialorder %v4030_v63, 0.0 }
 0x9e2   :  { %v2795_v47 = vpop.f32.mrf.mxu1  ;;  %v4033_v1 = vsel %vm4032_vm7, %v4030_v63, 1.0  ;;  %vm6475_vm7 = vmmov %vm6468_vm1 }
 0x9e3   :  { %v2799_v42 = vadd.f32 %v2795_v47, %v2604_v4  ;;  %v2394_v48 = vsel %vm2387_vm3, %v2393_v44, 0.0  ;;  %v5054_v44 = vld [vmem:[%s6385_s28] ss:$0 sm:$0xff] }
 0x9e4   :  { %v4834_v60 = vpop.f32.mrf.mxu1 }
 0x9e5   :  { %v2809_v39 = vadd.f32 %v2807_v34, %v2799_v42 }
 0x9e6   :  { %v2998_v14 = vpop.f32.mrf.mxu1 }
 0x9e7   :  { %v3002_v17 = vadd.f32 %v2998_v14, %v2809_v39 }
 0x9e8   :  { %v4844_v23 = vpop.f32.mrf.mxu1 }
 0x9e9   :  { %v3012_v31 = vadd.f32 %v3010_v49, %v3002_v17  ;;  %v4166_v17 = vld [vmem:[%s6331_s18 + $0x18] sm:$0xff]  ;;  %v4165_v49 = vld [vmem:[%s6331_s18 + $0x10] sm:$0xff] }
 0x9ea   :  { %v3201_v6 = vpop.f32.mrf.mxu1  ;;  %4907 = vmatpush3.msra.mxu1 %v4166_v17 }
 0x9eb   :  { %v3205_v25 = vadd.f32 %v3201_v6, %v3012_v31  ;;  %4908 = vmatprep.subr.mxu1 %v6441_v12  ;;  %v4163_v31 = vld [vmem:[%s6331_s18] sm:$0xff] }
 0x9ec   :  { %v4854_v58 = vpop.f32.mrf.mxu1  ;;  %4909 = vmatpush3.msra.mxu1 %v4165_v49 }
 0x9ed   :  { %v3215_v19 = vadd.f32 %v3213_v45, %v3205_v25  ;;  %4910 = vmatprep.subr.mxu1 %v6441_v12  ;;  %v4031_v25 = vmul.f32 0.125, %v6019_v56  ;;  %v2371_v45 = vmul.f32 0.125, %v6105_v24 }
 0x9ee   :  { %v3404_v36 = vpop.f32.mrf.mxu1  ;;  %4911 = vmatpush3.msra.mxu1 %v4164_v55 }
 0x9ef   :  { %v3408_v37 = vadd.f32 %v3404_v36, %v3215_v19  ;;  %v2373_v36 = vsel %vm2372_vm6, %v2370_v62, 1.0  ;;  %4912 = vmatprep.subr.mxu1 %v6441_v12  ;;  %vm4040_vm8 = vcmp.gt.f32.partialorder %v4031_v25, 0.0  ;;  %vm2380_vm9 = vcmp.gt.f32.partialorder %v2371_v45, 0.0  ;;  %vm6474_vm6 = vmmov %vm6468_vm1 }
 0x9f0   :  { %v4864_v16 = vpop.f32.mrf.mxu1  ;;  %5042 = vlog2.f32 %v2373_v36  ;;  %4913 = vmatpush3.msra.mxu1 %v4163_v31  ;;  %v4041_v2 = vsel %vm4040_vm8, %v4031_v25, 1.0  ;;  %v2381_v19 = vsel %vm2380_vm9, %v2371_v45, 1.0  ;;  %v6466_v36 = vld [vmem:[#allocation5_spill] sm:$0xff] }
 0x9f1   :  { %v3418_v8 = vadd.f32 %v3416_v21, %v3408_v37  ;;  %5044 = vlog2.f32 %v4033_v1  ;;  %vm4363_vm12 = vcmp.gt.s32.totalorder %v6466_v36, 1  ;;  %v6467_v1 = vmov 0  }
 0x9f2   :  { %v3607_v57 = vpop.f32.mrf.mxu1  ;;  %5046 = vlog2.f32 %v4041_v2  ;;  %v5056_v2 = vld [vmem:[%s6380_s3 + $0x2] sm:$0x3] }
 0x9f3   :  { %v3611_v27 = vadd.f32 %v3607_v57, %v3418_v8  ;;  %5048 = vlog2.f32 %v2381_v19  ;;  %v5057_v19 = vld [vmem:[%s6380_s3] sm:$0x3] }
 0x9f4   :  { %v4874_v51 = vpop.f32.mrf.mxu1 }
 0x9f5   :  { %v3621_v3 = vadd.f32 %v3619_v50, %v3611_v27 }
 0x9f6   :  { %v3810_v33 = vpop.f32.mrf.mxu1 }
 0x9f7   :  { %v3814_v20 = vadd.f32 %v3810_v33, %v3621_v3 }
 0x9f8   :  { %v4884_v10 = vpop.f32.mrf.mxu1 }
 0x9f9   :  { %v3824_v28 = vadd.f32 %v3822_v5, %v3814_v20 }
 0x9fd   :  { %v5043_v4 = vpop.eup %5042 }
 0x9fe   :  { %v2375_v34 = vmul.f32 0.6931472, %v5043_v4  ;;  %v5045_v51 = vpop.eup %5044  ;;  %v4364_v4 = vsel %vm4363_vm12, 1, %v6467_v1 }
 0x9ff   :  { %v4035_v26 = vmul.f32 0.6931472, %v5045_v51  ;;  %v5047_v53 = vpop.eup %5046 }
 0xa00   :  { %v2376_v33 = vmul.f32 %v2375_v34, %v2370_v62  ;;  %v5049_v37 = vpop.eup %5048  ;;  %v4043_v15 = vmul.f32 0.6931472, %v5047_v53 }
 0xa01   :  { %v4036_v38 = vmul.f32 %v4035_v26, %v4030_v63  ;;  %v2383_v21 = vmul.f32 0.6931472, %v5049_v37  ;;  %v5058_v37 = vld [vmem:[%s6380_s3 + $0x4] sm:$0x3] }
 0xa02   :  { %v2377_v11 = vsel %vm988_vm4, %v2376_v33, 0.0  ;;  %v4044_v61 = vmul.f32 %v4043_v15, %v4031_v25  ;;  %v6470_v33 = vld [vmem:[#allocation3_spill] sm:$0xff] }
 0xa03   :  { %v4037_v10 = vsel %vm988_vm4, %v4036_v38, 0.0  ;;  %v2384_v50 = vmul.f32 %v2383_v21, %v2371_v45  ;;  %vm6464_vm4 = vmmov %vm6423_vm0 }
 0xa04   :  { %v4046_v24 = vrot.slane %v4044_v61, 1 }
 0xa1f   :  { %v4013_v0 = vpop.f32.mrf.mxu1 }
 0xa20   :  { %v4017_v59 = vadd.f32 %v4013_v0, %v3824_v28 }
 0xa21   :  { %v4894_v47 = vpop.f32.mrf.mxu1 }
 0xa22   :  { %v4027_v29 = vadd.f32 %v4025_v35, %v4017_v59 }
 0xa24   :  { %v4056_v60 = vrot.slane %v4027_v29, %v6205_v22 }
 0xa26   :  { %v4057_v14 = vsel %vm4050_vm14, %v4056_v60, %v2394_v48  ;;  %v4249_v60 = vld [vmem:[%s6332_s20 + $0x8] sm:$0xff]  ;;  %v4248_v48 = vld [vmem:[%s6332_s20] sm:$0xff] }
 0xa27   :  { %4904 = vmatmul.mubr.msk.f32.vlgmr.msra.gmra.mxu0 %vm6459_vm15, %v4057_v14  ;;  %v4481_v14 = vld [vmem:[%s6334_s19] ss:$0 sm:$0xff] }
 0xa28   :  { %4925 = vmatprep.mubr.msk.f32.mxu0 %vm6407_vm13, %v6441_v12  ;;  %vm6462_vm13 = vmmov %vm6461_vm2  ;;  %4918 = vmatpush3.msra.mxu0 %v4251_v7 }
 0xa29   :  { %4919 = vmatprep.subr.mxu0 %v6441_v12 }
 0xa2a   :  { %4920 = vmatpush3.msra.mxu0 %v4250_v18 }
 0xa2b   :  { %4921 = vmatprep.subr.mxu0 %v6441_v12 }
 0xa2c   :  { %4922 = vmatpush3.msra.mxu0 %v4249_v60 }
 0xa2d   :  { %4923 = vmatprep.subr.mxu0 %v6441_v12 }
 0xa2e   :  { %4924 = vmatpush3.msra.mxu0 %v4248_v48 }
 0xae7   :  { %v4143_v40 = vpop.f32.mrf.mxu0 }
 0xae8   :  { %v4144_v23 = vadd.f32 %v4479_v30, %v4143_v40 }
 0xae9   :  { %v4905_v43 = vpop.f32.mrf.mxu0 }
 0xaea   :  { %v4147_v6 = vadd.f32 %v4144_v23, %v6460_v41  ;;  %v4483_v41 = vld [vmem:[%s6335_s21] ss:$0 sm:$0xff] }
 0xaec   :  { %v4148_v58 = vsel %vm6461_vm2, %v4147_v6, 0.0 }
 0xaed   :  { %4149 = vadd.xlane.f32.xlu1 %v4148_v58 }
 0xb76   :  { %v4150_v16 = vpop.xlane.xlu1 %4149 }
 0xb77   :  { %v4151_v42 = vmul.f32 0.03125, %v4150_v16 }
 0xb79   :  { %v4152_v57 = vsub.f32 %v4147_v6, %v4151_v42 }
 0xb7b   :  { %v4153_v9 = vmul.f32 %v4152_v57, %v4152_v57 }
 0xb7d   :  { %v4154_v39 = vsel %vm6462_vm13, %v4153_v9, 0.0  ;;  %v5062_v9 = vmov 1  }
 0xb7e   :  { %4155 = vadd.xlane.f32.xlu0 %v4154_v39  ;;  %v6469_v39 = vld [vmem:[#allocation4_spill] sm:$0xff] }
 0xb7f   :  { %vm6471_vm0 = vcmp.gt.f32.partialorder %v6469_v39, %v6470_v33 }
 0xb80   :  { %v4486_v26 = vsel %vm6471_vm0, 0, %v5062_v9 }
 0xb82   :  { %2378 = vadd.xlane.f32.xlu0 %v2377_v11 }
 0xb86   :  { %4038 = vadd.xlane.f32.xlu0 %v4037_v10 }
 0xc07   :  { %v4156_v8 = vpop.xlane.xlu0 %4155 }
 0xc08   :  { %v4157_v32 = vmul.f32 0.03125, %v4156_v8  ;;  %v6472_v8 = vld [vmem:[#allocation6_spill] sm:$0xff] }
 0xc09   :  { %vm6473_vm2 = vcmp.eq.s32.totalorder %v6472_v8, 1 }
 0xc0a   :  { %v4158_v27 = vadd.f32 1e-05, %v4157_v32 }
 0xc0b   :  { %v2379_v3 = vpop.xlane.xlu0 %2378 }
 0xc0c   :  { %5050 = vrsqrt.f32 %v4158_v27  ;;  %v2385_v56 = vadd.f32 %v2384_v50, %v2379_v3 }
 0xc0e   :  { %v2386_v46 = vsub.f32 0.0, %v2385_v56 }
 0xc0f   :  { %v4039_v13 = vpop.xlane.xlu0 %4038 }
 0xc10   :  { %v4048_v52 = vadd.f32 %v4046_v24, %v4039_v13  ;;  %v2398_v20 = vrot.slane %v2386_v46, %v6205_v22 }
 0xc12   :  { %v4049_v5 = vsub.f32 0.0, %v4048_v52  ;;  %v2399_v28 = vsel %vm2387_vm3, %v2398_v20, 0.0 }
 0xc14   :  { %v4061_v54 = vrot.slane %v4049_v5, %v6205_v22  ;;  %v5055_v22 = vld [vmem:[%s6386_s0] ss:$0 sm:$0xff] }
 0xc16   :  { %v4062_v0 = vsel %vm4050_vm14, %v4061_v54, %v2399_v28 }
 0xc17   :  { %4374 = vst.msk [vmem:[%s6333_s25] sm:$0x3] %vm4373_vm10, %v4062_v0 }
 0xc19   :  { %v5051_v35 = vpop.eup %5050 }
 0xc1a   :  { %v4160_v59 = vmul.f32 %v5051_v35, %v4152_v57 }
 0xc1c   :  { %v4161_v47 = vmul.f32 %v5054_v44, %v4160_v59 }
 0xc1e   :  { %v4162_v29 = vadd.f32 %v5055_v22, %v4161_v47 }
 0xc20   :  { %4915 = vmatmul.mubr.msk.f32.vlgmr.msra.gmra.mxu1 %vm6463_vm11, %v4162_v29 }
 0xce0   :  { %v4243_v30 = vpop.f32.mrf.mxu1 }
 0xce1   :  { %v4244_v40 = vadd.f32 %v4481_v14, %v4243_v30 }
 0xce2   :  { %v4916_v23 = vpop.f32.mrf.mxu1 }
 0xce3   :  { %v4247_v43 = vmax.f32 %v4244_v40, 0.0 }
 0xce5   :  { %4926 = vmatmul.mubr.msk.f32.vlgmr.msra.gmra.mxu0 %vm6464_vm4, %v4247_v43 }
 0xda5   :  { %v4328_v6 = vpop.f32.mrf.mxu0 }
 0xda6   :  { %v4329_v58 = vadd.f32 %v4483_v41, %v4328_v6 }
 0xda7   :  { %v4927_v62 = vpop.f32.mrf.mxu0 }
 0xda8   :  { %v4332_v63 = vadd.f32 %v4329_v58, %v4162_v29 }
 0xdaa   :  { %v4333_v12 = vsel %vm6465_vm5, %v4332_v63, 0.0 }
 0xdab   :  { %4334 = vadd.xlane.f32.xlu1 %v4333_v12 }
 0xdbc   :  { %4352 = vperm.xlu1 %4933, %v6466_v36  }
 0xdc0   :  { %4366 = vperm.xlu1 %4933, %v4364_v4  }
 0xe34   :  { %v4335_v16 = vpop.xlane.xlu1 %4334 }
 0xe35   :  { %v4336_v42 = vmul.f32 0.03125, %v4335_v16 }
 0xe37   :  { %v4337_v57 = vsub.f32 %v4332_v63, %v4336_v42 }
 0xe38   :  { %v4353_v17 = vpop.permute.xlu1 %4352 }
 0xe39   :  { %v4338_v34 = vmul.f32 %v4337_v57, %v4337_v57  ;;  %vm4354_vm3 = vcmp.eq.s32.totalorder %v4353_v17, 1 }
 0xe3a   :  { %v4355_v53 = vsel %vm4354_vm3, %v5057_v19, %v5056_v2 }
 0xe3b   :  { %v4339_v51 = vsel %vm6468_vm1, %v4338_v34, 0.0 }
 0xe3c   :  { %4340 = vadd.xlane.f32.xlu0 %v4339_v51  ;;  %v4367_v55 = vpop.permute.xlu1 %4366 }
 0xe3d   :  { %vm4368_vm14 = vcmp.eq.s32.totalorder %v4367_v55, 1 }
 0xe3e   :  { %v4369_v21 = vsel %vm4368_vm14, %v5056_v2, %v5058_v37 }
 0xe52   :  { %4358 = vperm.xlu0 %4932, %v4486_v26  }
 0xec5   :  { %v4341_v11 = vpop.xlane.xlu0 %4340 }
 0xec6   :  { %v4342_v38 = vmul.f32 0.03125, %v4341_v11 }
 0xec8   :  { %v4343_v10 = vadd.f32 1e-05, %v4342_v38 }
 0xeca   :  { %5052 = vrsqrt.f32 %v4343_v10 }
 0xecd   :  { %v4359_v25 = vpop.permute.xlu0 %4358 }
 0xece   :  { %vm4360_vm15 = vcmp.eq.s32.totalorder %v4359_v25, 1 }
 0xed7   :  { %v5053_v49 = vpop.eup %5052 }
 0xed8   :  { %v4345_v31 = vmul.f32 %v5053_v49, %v4337_v57 }
 0xeda   :  { %v4346_v7 = vmul.f32 %v5054_v44, %v4345_v31 }
 0xedc   :  { %v4347_v45 = vadd.f32 %v5055_v22, %v4346_v7 }
 0xede   :  { %v4361_v15 = vsel %vm4360_vm15, %v4347_v45, %v4355_v53  ;;  %v4370_v32 = vsel %vm6473_vm2, %v4347_v45, %v4369_v21 }
 0xedf   :  { %4362 = vst.msk [vmem:[%s6336_s24] sm:$0x3] %vm6474_vm6, %v4361_v15 }
 0xee0   :  { %4487 = vst.msk [vmem:[%s6336_s24 + $0x2] sm:$0x3] %vm6475_vm7, %v4370_v32 }

</bundles_post_ra>
